<compile_context>
chip_gen: v7x
topology: tpu7x:2x2x1
jax: 0.10.0
libtpu: 0.0.40
codegen_flags: <defaults>
</compile_context>

<pallas_src>
import functools
import math

import jax
import jax.numpy as jnp
from jax.experimental import pallas as pl
from jax.experimental.pallas import tpu as pltpu

NEG_INF = -1e9  # single finite large-negative mask constant


def _vmem():
    return pl.BlockSpec(memory_space=pltpu.MemorySpace.VMEM)


# ------------------------------ fused kernel --------------------------------

def _fused_forward_kernel(
    # activations / FiLM input / masks
    src_ref, tgt_ref, film_in_ref, film_w_ref, film_b_ref,
    src_bias_ref, tgt_bias_ref, src_kpm_ref, tgt_kpm_ref, mem_kpm_ref,
    # encoder weights, stacked along a leading layer axis
    enc_wqkv_ref, enc_bqkv_ref, enc_wo_ref, enc_bo_ref,
    enc_lin1_w_ref, enc_lin1_b_ref, enc_lin2_w_ref, enc_lin2_b_ref,
    enc_norm_w_ref, enc_norm_b_ref,
    # decoder weights, stacked along a leading layer axis
    dec_wqkv_ref, dec_bqkv_ref, dec_wo_self_ref, dec_bo_self_ref,
    dec_wq_cross_ref, dec_bq_cross_ref, dec_wkv_cross_ref, dec_bkv_cross_ref,
    dec_wo_cross_ref, dec_bo_cross_ref,
    dec_lin1_w_ref, dec_lin1_b_ref, dec_lin2_w_ref, dec_lin2_b_ref,
    dec_norm_w_ref, dec_norm_b_ref,
    # generator (lane-padded to a multiple of 128)
    gen_w_ref, gen_b_ref,
    # output
    out_ref,
    *, n_enc, n_dec, nhead, E, FF,
):
    B, S, _ = src_ref.shape
    T = tgt_ref.shape[1]
    dh = E // nhead
    scale = 1.0 / math.sqrt(dh)

    # --- FiLM: ONE lane-dense matmul for every layer's gamma/beta ----------
    film_all = (jnp.dot(film_in_ref[...], film_w_ref[...],
                        preferred_element_type=jnp.float32) + film_b_ref[...])
    film_off = [0]

    def film_take(width):
        o = film_off[0]
        film_off[0] = o + width
        return film_all[:, o:o + width]                       # (B, width)

    # --- additive attention biases (built once, reused per layer) ----------
    src_self_bias = src_bias_ref[...][None, :, :] + src_kpm_ref[...][:, None, :]  # (B,S,S)
    tgt_self_bias = tgt_bias_ref[...][None, :, :] + tgt_kpm_ref[...][:, None, :]  # (B,T,T)
    mem_cross_bias = mem_kpm_ref[...][:, None, :]                                 # (B,1,S)

    def layernorm(x, w, b):
        mean = jnp.mean(x, axis=-1, keepdims=True)
        var = jnp.mean((x - mean) * (x - mean), axis=-1, keepdims=True)
        return (x - mean) * jax.lax.rsqrt(var + 1e-5) * w + b

    def film_res_norm(resid, y, gamma, beta, nw, nb):
        z = resid + (1.0 + gamma[:, None, :]) * y + beta[:, None, :]
        return layernorm(z, nw, nb)

    def split_heads(x):
        # (B, S_, E) -> (nhead*B, S_, dh), head-major blocks along leading axis
        return jnp.concatenate(
            [x[:, :, h * dh:(h + 1) * dh] for h in range(nhead)], axis=0)

    def merge_heads(x):
        # (nhead*B, S_, dh) -> (B, S_, E)
        return jnp.concatenate(
            [x[h * B:(h + 1) * B] for h in range(nhead)], axis=-1)

    def attention(q, k, v, bias):
        # q (B,Sq,E), k/v (B,Sk,E); bias broadcastable to (B,Sq,Sk)
        Sq, Sk = q.shape[1], k.shape[1]
        qh, kh, vh = split_heads(q), split_heads(k), split_heads(v)
        s = jnp.einsum('bqd,bkd->bqk', qh, kh,
                       preferred_element_type=jnp.float32) * scale
        # bias added once (broadcast over heads via a leading-dim reshape)
        s = (s.reshape(nhead, B, Sq, Sk) + bias[None]).reshape(nhead * B, Sq, Sk)
        m = jnp.max(s, axis=-1, keepdims=True)
        p = jnp.exp(s - m)
        denom = jnp.sum(p, axis=-1, keepdims=True)
        # exact division (review note); guard fully-masked rows
        p = p / jnp.maximum(denom, 1e-20)
        o = jnp.einsum('bqk,bkd->bqd', p, vh, preferred_element_type=jnp.float32)
        return merge_heads(o)                                  # (B, Sq, E)

    # ------------------------------ encoder stack ---------------------------
    memory = src_ref[...]
    for l in range(n_enc):
        sa_gamma = film_take(E); sa_beta = film_take(E)
        ff_gamma = film_take(FF); ff_beta = film_take(FF)
        x = memory
        # fused QKV projection: one (B*S, E) @ (E, 3E) matmul
        qkv = jnp.dot(x.reshape(B * S, E), enc_wqkv_ref[l],
                      preferred_element_type=jnp.float32) + enc_bqkv_ref[l]
        q = qkv[:, :E].reshape(B, S, E)
        k = qkv[:, E:2 * E].reshape(B, S, E)
        v = qkv[:, 2 * E:].reshape(B, S, E)
        attn = attention(q, k, v, src_self_bias)
        attn = (jnp.dot(attn.reshape(B * S, E), enc_wo_ref[l],
                        preferred_element_type=jnp.float32)
                + enc_bo_ref[l]).reshape(B, S, E)
        norm_w, norm_b = enc_norm_w_ref[l], enc_norm_b_ref[l]
        x = film_res_norm(x, attn, sa_gamma, sa_beta, norm_w[0:1], norm_b[0:1])
        # feed-forward
        hidden = jnp.maximum(
            jnp.dot(x.reshape(B * S, E), enc_lin1_w_ref[l],
                    preferred_element_type=jnp.float32) + enc_lin1_b_ref[l], 0.0)
        ff = (jnp.dot(hidden, enc_lin2_w_ref[l],
                      preferred_element_type=jnp.float32)
              + enc_lin2_b_ref[l]).reshape(B, S, E)
        memory = film_res_norm(x, ff, ff_gamma, ff_beta, norm_w[1:2], norm_b[1:2])

    # ------------------------------ decoder stack ---------------------------
    out = tgt_ref[...]
    for l in range(n_dec):
        sa_gamma = film_take(E); sa_beta = film_take(E)
        ca_gamma = film_take(E); ca_beta = film_take(E)
        ff_gamma = film_take(FF); ff_beta = film_take(FF)
        x = out
        # self-attention (fused QKV)
        qkv = jnp.dot(x.reshape(B * T, E), dec_wqkv_ref[l],
                      preferred_element_type=jnp.float32) + dec_bqkv_ref[l]
        q = qkv[:, :E].reshape(B, T, E)
        k = qkv[:, E:2 * E].reshape(B, T, E)
        v = qkv[:, 2 * E:].reshape(B, T, E)
        attn = attention(q, k, v, tgt_self_bias)
        attn = (jnp.dot(attn.reshape(B * T, E), dec_wo_self_ref[l],
                        preferred_element_type=jnp.float32)
                + dec_bo_self_ref[l]).reshape(B, T, E)
        norm_w, norm_b = dec_norm_w_ref[l], dec_norm_b_ref[l]
        x = film_res_norm(x, attn, sa_gamma, sa_beta, norm_w[0:1], norm_b[0:1])
        # cross-attention: Q from x, fused KV from encoder memory; no attn_mask
        q = (jnp.dot(x.reshape(B * T, E), dec_wq_cross_ref[l],
                     preferred_element_type=jnp.float32)
             + dec_bq_cross_ref[l]).reshape(B, T, E)
        kv = jnp.dot(memory.reshape(B * S, E), dec_wkv_cross_ref[l],
                     preferred_element_type=jnp.float32) + dec_bkv_cross_ref[l]
        k = kv[:, :E].reshape(B, S, E)
        v = kv[:, E:].reshape(B, S, E)
        attn = attention(q, k, v, mem_cross_bias)
        attn = (jnp.dot(attn.reshape(B * T, E), dec_wo_cross_ref[l],
                        preferred_element_type=jnp.float32)
                + dec_bo_cross_ref[l]).reshape(B, T, E)
        x = film_res_norm(x, attn, ca_gamma, ca_beta, norm_w[1:2], norm_b[1:2])
        # feed-forward
        hidden = jnp.maximum(
            jnp.dot(x.reshape(B * T, E), dec_lin1_w_ref[l],
                    preferred_element_type=jnp.float32) + dec_lin1_b_ref[l], 0.0)
        ff = (jnp.dot(hidden, dec_lin2_w_ref[l],
                      preferred_element_type=jnp.float32)
              + dec_lin2_b_ref[l]).reshape(B, T, E)
        out = film_res_norm(x, ff, ff_gamma, ff_beta, norm_w[2:3], norm_b[2:3])

    # ------------------------------ generator -------------------------------
    V_pad = gen_w_ref.shape[1]
    logits = (jnp.dot(out.reshape(B * T, E), gen_w_ref[...],
                      preferred_element_type=jnp.float32) + gen_b_ref[...])
    out_ref[...] = logits.reshape(B, T, V_pad)   # full 128-lane unmasked store


# --------------------------------- glue -------------------------------------

def gen_film_input(params, cfg, film_toks):
    # embedding gathers are glue (plain JAX), not a Pallas hot path.
    B = film_toks.shape[0]
    genre = jnp.take(params["genre_emb"], film_toks[:, 0:3], axis=0) * math.sqrt(cfg["genre_emb_size"])
    genre_flat = genre.reshape(B, -1)
    timesig = jnp.take(params["timesig_emb"], film_toks[:, 3], axis=0) * math.sqrt(cfg["timesig_emb_size"])
    ticks = jnp.take(params["ticks_emb"], film_toks[:, 4], axis=0) * math.sqrt(cfg["ticks_emb_size"])
    return jnp.concatenate([genre_flat, timesig, ticks], axis=1).astype(jnp.float32)


def forward(params, cfg, src, tgt, src_mask, tgt_mask,
            src_padding_mask, tgt_padding_mask, memory_padding_mask, film_toks):
    E = cfg["embedding_size"]
    FF = cfg["dim_feedforward"]
    nhead = cfg["nhead"]
    V = cfg["tgt_vocab_size"]
    V_pad = params["gen_w_pad"].shape[1]
    S, B = src.shape
    T = tgt.shape[0]
    pe = params["pos_embedding"]

    # glue: token embedding + positional encoding, then batch-first layout
    src_emb = jnp.take(params["src_tok_emb"], src, axis=0) * math.sqrt(E) + pe[:S]
    tgt_emb = jnp.take(params["tgt_tok_emb"], tgt, axis=0) * math.sqrt(E) + pe[:T]
    src_bf = jnp.transpose(src_emb, (1, 0, 2)).astype(jnp.float32)    # (B, S, E)
    tgt_bf = jnp.transpose(tgt_emb, (1, 0, 2)).astype(jnp.float32)    # (B, T, E)

    film_input = gen_film_input(params, cfg, film_toks)               # (B, F)

    # additive float masks with one finite NEG_INF constant
    src_kpm = jnp.where(src_padding_mask, NEG_INF, 0.0).astype(jnp.float32)      # (B, S)
    tgt_kpm = jnp.where(tgt_padding_mask, NEG_INF, 0.0).astype(jnp.float32)      # (B, T)
    mem_kpm = jnp.where(memory_padding_mask, NEG_INF, 0.0).astype(jnp.float32)   # (B, S)
    src_bias = src_mask.astype(jnp.float32)                                      # (S, S)
    tgt_bias = tgt_mask.astype(jnp.float32)                                      # (T, T)

    enc, dec = params["enc"], params["dec"]
    kernel = functools.partial(
        _fused_forward_kernel,
        n_enc=cfg["num_encoders"], n_dec=cfg["num_decoders"],
        nhead=nhead, E=E, FF=FF)

    operands = (
        src_bf, tgt_bf, film_input, params["film_w"], params["film_b"],
        src_bias, tgt_bias, src_kpm, tgt_kpm, mem_kpm,
        enc["wqkv"], enc["bqkv"], enc["wo"], enc["bo"],
        enc["lin1_w"], enc["lin1_b"], enc["lin2_w"], enc["lin2_b"],
        enc["norm_w"], enc["norm_b"],
        dec["wqkv"], dec["bqkv"], dec["wo_self"], dec["bo_self"],
        dec["wq_cross"], dec["bq_cross"], dec["wkv_cross"], dec["bkv_cross"],
        dec["wo_cross"], dec["bo_cross"],
        dec["lin1_w"], dec["lin1_b"], dec["lin2_w"], dec["lin2_b"],
        dec["norm_w"], dec["norm_b"],
        params["gen_w_pad"], params["gen_b_pad"],
    )

    # TODO(synk): if E/vocab/seq-len grow, set pltpu.CompilerParams(
    # vmem_limit_bytes=...) and re-check against v7x's 64 MiB VMEM.
    out_padded = pl.pallas_call(
        kernel,
        out_shape=jax.ShapeDtypeStruct((B, T, V_pad), jnp.float32),
        in_specs=[_vmem()] * len(operands),
        out_specs=_vmem(),
    )(*operands)

    # back to seq-first (T, B, V) like the PyTorch module; drop lane padding
    return jnp.transpose(out_padded, (1, 0, 2))[:, :, :V]


# ------------------------------ parameter init ------------------------------

def _lin_params(key, in_f, out_f):
    kw, kb = jax.random.split(key)
    bound = 1.0 / math.sqrt(in_f)
    w = jax.random.uniform(kw, (in_f, out_f), jnp.float32, -bound, bound)
    b = jax.random.uniform(kb, (1, out_f), jnp.float32, -bound, bound)
    return w, b


def _init_mha_self(key, E):
    ks = jax.random.split(key, 4)
    wq, bq = _lin_params(ks[0], E, E)
    wk, bk = _lin_params(ks[1], E, E)
    wv, bv = _lin_params(ks[2], E, E)
    wo, bo = _lin_params(ks[3], E, E)
    return (jnp.concatenate([wq, wk, wv], axis=1),
            jnp.concatenate([bq, bk, bv], axis=1), wo, bo)


def _init_mha_cross(key, E):
    ks = jax.random.split(key, 4)
    wq, bq = _lin_params(ks[0], E, E)
    wk, bk = _lin_params(ks[1], E, E)
    wv, bv = _lin_params(ks[2], E, E)
    wo, bo = _lin_params(ks[3], E, E)
    return (wq, bq,
            jnp.concatenate([wk, wv], axis=1),
            jnp.concatenate([bk, bv], axis=1), wo, bo)


def _init_film_pair(key, in_f, out_f):
    k1, k2 = jax.random.split(key)
    gw, gb = _lin_params(k1, in_f, out_f)
    bw, bb = _lin_params(k2, in_f, out_f)
    return gw, gb, bw, bb


def _positional_encoding(maxlen, E):
    den = jnp.exp(-jnp.arange(0, E, 2, dtype=jnp.float32) * math.log(10000.0) / E)
    pos = jnp.arange(maxlen, dtype=jnp.float32).reshape(maxlen, 1)
    pe = jnp.zeros((maxlen, E), jnp.float32)
    pe = pe.at[:, 0::2].set(jnp.sin(pos * den))
    pe = pe.at[:, 1::2].set(jnp.cos(pos * den))
    return pe[:, None, :]  # (maxlen, 1, E)


def init_params(key, cfg):
    E = cfg["embedding_size"]
    ff = cfg["dim_feedforward"]
    # FiLM-FF broadcast in the original module only works when ff == d_model.
    assert ff == E, "dim_feedforward must equal embedding_size (FiLM-FF broadcast)"
    assert E % cfg["nhead"] == 0
    film_in = 3 * cfg["genre_emb_size"] + cfg["timesig_emb_size"] + cfg["ticks_emb_size"]
    n_enc, n_dec = cfg["num_encoders"], cfg["num_decoders"]
    V = cfg["tgt_vocab_size"]
    V_pad = max(128, ((V + 127) // 128) * 128)

    ks = jax.random.split(key, 8 + n_enc + n_dec)
    params = {
        "src_tok_emb": 0.02 * jax.random.normal(ks[0], (cfg["src_vocab_size"], E)),
        "tgt_tok_emb": 0.02 * jax.random.normal(ks[1], (V, E)),
        "genre_emb": 0.02 * jax.random.normal(ks[2], (581, cfg["genre_emb_size"])),
        "timesig_emb": 0.02 * jax.random.normal(ks[3], (30, cfg["timesig_emb_size"])),
        "ticks_emb": 0.02 * jax.random.normal(ks[4], (21, cfg["ticks_emb_size"])),
        "pos_embedding": _positional_encoding(512, E),
    }
    gen_w, gen_b = _lin_params(ks[5], E, V)
    params["gen_w_pad"] = jnp.pad(gen_w, ((0, 0), (0, V_pad - V)))
    params["gen_b_pad"] = jnp.pad(gen_b, ((0, 0), (0, V_pad - V)))

    film_ws, film_bs = [], []

    # ---- encoder layers (stack per-layer weights along a leading axis) ----
    enc = {k: [] for k in ("wqkv", "bqkv", "wo", "bo", "lin1_w", "lin1_b",
                           "lin2_w", "lin2_b", "norm_w", "norm_b")}
    for i in range(n_enc):
        kk = jax.random.split(ks[8 + i], 5)
        wqkv, bqkv, wo, bo = _init_mha_self(kk[0], E)
        lin1_w, lin1_b = _lin_params(kk[1], E, ff)
        lin2_w, lin2_b = _lin_params(kk[2], ff, E)
        enc["wqkv"].append(wqkv); enc["bqkv"].append(bqkv)
        enc["wo"].append(wo); enc["bo"].append(bo)
        enc["lin1_w"].append(lin1_w); enc["lin1_b"].append(lin1_b)
        enc["lin2_w"].append(lin2_w); enc["lin2_b"].append(lin2_b)
        enc["norm_w"].append(jnp.ones((2, E), jnp.float32))
        enc["norm_b"].append(jnp.zeros((2, E), jnp.float32))
        sg_w, sg_b, sb_w, sb_b = _init_film_pair(kk[3], film_in, E)
        fg_w, fg_b, fb_w, fb_b = _init_film_pair(kk[4], film_in, ff)
        film_ws += [sg_w, sb_w, fg_w, fb_w]       # consumption order in kernel
        film_bs += [sg_b, sb_b, fg_b, fb_b]
    params["enc"] = {k: jnp.stack(v) for k, v in enc.items()}

    # ---- decoder layers ----
    dec = {k: [] for k in ("wqkv", "bqkv", "wo_self", "bo_self",
                           "wq_cross", "bq_cross", "wkv_cross", "bkv_cross",
                           "wo_cross", "bo_cross",
                           "lin1_w", "lin1_b", "lin2_w", "lin2_b",
                           "norm_w", "norm_b")}
    for i in range(n_dec):
        kk = jax.random.split(ks[8 + n_enc + i], 7)
        wqkv, bqkv, wo_s, bo_s = _init_mha_self(kk[0], E)
        wq_c, bq_c, wkv_c, bkv_c, wo_c, bo_c = _init_mha_cross(kk[1], E)
        lin1_w, lin1_b = _lin_params(kk[2], E, ff)
        lin2_w, lin2_b = _lin_params(kk[3], ff, E)
        dec["wqkv"].append(wqkv); dec["bqkv"].append(bqkv)
        dec["wo_self"].append(wo_s); dec["bo_self"].append(bo_s)
        dec["wq_cross"].append(wq_c); dec["bq_cross"].append(bq_c)
        dec["wkv_cross"].append(wkv_c); dec["bkv_cross"].append(bkv_c)
        dec["wo_cross"].append(wo_c); dec["bo_cross"].append(bo_c)
        dec["lin1_w"].append(lin1_w); dec["lin1_b"].append(lin1_b)
        dec["lin2_w"].append(lin2_w); dec["lin2_b"].append(lin2_b)
        dec["norm_w"].append(jnp.ones((3, E), jnp.float32))
        dec["norm_b"].append(jnp.zeros((3, E), jnp.float32))
        sg_w, sg_b, sb_w, sb_b = _init_film_pair(kk[4], film_in, E)
        cg_w, cg_b, cb_w, cb_b = _init_film_pair(kk[5], film_in, E)
        fg_w, fg_b, fb_w, fb_b = _init_film_pair(kk[6], film_in, ff)
        film_ws += [sg_w, sb_w, cg_w, cb_w, fg_w, fb_w]
        film_bs += [sg_b, sb_b, cg_b, cb_b, fg_b, fb_b]
    params["dec"] = {k: jnp.stack(v) for k, v in dec.items()}

    # single concatenated FiLM linear (one in-kernel matmul for all layers)
    params["film_w"] = jnp.concatenate(film_ws, axis=1)
    params["film_b"] = jnp.concatenate(film_bs, axis=1)
    return params


# ----------------------------------- main -----------------------------------

if __name__ == "__main__":
    cfg = dict(
        num_encoders=2, num_decoders=2,
        embedding_size=32, nhead=4,
        src_vocab_size=40, tgt_vocab_size=48,
        dim_feedforward=32,   # must equal embedding_size (FiLM-FF broadcast in original module)
        genre_emb_size=8, timesig_emb_size=4, ticks_emb_size=4,
    )
    S, T, B = 8, 8, 2

    key = jax.random.PRNGKey(0)
    kp, ks, kt, kg, kts, ktk = jax.random.split(key, 6)
    params = init_params(kp, cfg)

    src = jax.random.randint(ks, (S, B), 0, cfg["src_vocab_size"], dtype=jnp.int32)
    tgt = jax.random.randint(kt, (T, B), 0, cfg["tgt_vocab_size"], dtype=jnp.int32)
    film_toks = jnp.concatenate(
        [
            jax.random.randint(kg, (B, 3), 0, 581, dtype=jnp.int32),
            jax.random.randint(kts, (B, 1), 0, 30, dtype=jnp.int32),
            jax.random.randint(ktk, (B, 1), 0, 21, dtype=jnp.int32),
        ],
        axis=1,
    )

    src_mask = jnp.zeros((S, S), jnp.float32)
    tgt_mask = jnp.where(jnp.triu(jnp.ones((T, T), bool), k=1), NEG_INF, 0.0).astype(jnp.float32)
    src_padding_mask = jnp.zeros((B, S), bool)
    tgt_padding_mask = jnp.zeros((B, T), bool)
    memory_padding_mask = jnp.zeros((B, S), bool)

    logits = forward(params, cfg, src, tgt, src_mask, tgt_mask,
                     src_padding_mask, tgt_padding_mask, memory_padding_mask, film_toks)
    logits = jax.block_until_ready(logits)

    assert logits.shape == (T, B, cfg["tgt_vocab_size"]), logits.shape
    assert bool(jnp.all(jnp.isfinite(logits)))
    print("KERNEL_OK")
</pallas_src>

<mosaic_0001>
module attributes {stable_mosaic.version = 11 : i64} {
  func.func @_fused_forward_kernel(%arg0: memref<2x8x32xf32, #tpu.memory_space<vmem>>, %arg1: memref<2x8x32xf32, #tpu.memory_space<vmem>>, %arg2: memref<2x32xf32, #tpu.memory_space<vmem>>, %arg3: memref<32x640xf32, #tpu.memory_space<vmem>>, %arg4: memref<1x640xf32, #tpu.memory_space<vmem>>, %arg5: memref<8x8xf32, #tpu.memory_space<vmem>>, %arg6: memref<8x8xf32, #tpu.memory_space<vmem>>, %arg7: memref<2x8xf32, #tpu.memory_space<vmem>>, %arg8: memref<2x8xf32, #tpu.memory_space<vmem>>, %arg9: memref<2x8xf32, #tpu.memory_space<vmem>>, %arg10: memref<2x32x96xf32, #tpu.memory_space<vmem>>, %arg11: memref<2x1x96xf32, #tpu.memory_space<vmem>>, %arg12: memref<2x32x32xf32, #tpu.memory_space<vmem>>, %arg13: memref<2x1x32xf32, #tpu.memory_space<vmem>>, %arg14: memref<2x32x32xf32, #tpu.memory_space<vmem>>, %arg15: memref<2x1x32xf32, #tpu.memory_space<vmem>>, %arg16: memref<2x32x32xf32, #tpu.memory_space<vmem>>, %arg17: memref<2x1x32xf32, #tpu.memory_space<vmem>>, %arg18: memref<2x2x32xf32, #tpu.memory_space<vmem>>, %arg19: memref<2x2x32xf32, #tpu.memory_space<vmem>>, %arg20: memref<2x32x96xf32, #tpu.memory_space<vmem>>, %arg21: memref<2x1x96xf32, #tpu.memory_space<vmem>>, %arg22: memref<2x32x32xf32, #tpu.memory_space<vmem>>, %arg23: memref<2x1x32xf32, #tpu.memory_space<vmem>>, %arg24: memref<2x32x32xf32, #tpu.memory_space<vmem>>, %arg25: memref<2x1x32xf32, #tpu.memory_space<vmem>>, %arg26: memref<2x32x64xf32, #tpu.memory_space<vmem>>, %arg27: memref<2x1x64xf32, #tpu.memory_space<vmem>>, %arg28: memref<2x32x32xf32, #tpu.memory_space<vmem>>, %arg29: memref<2x1x32xf32, #tpu.memory_space<vmem>>, %arg30: memref<2x32x32xf32, #tpu.memory_space<vmem>>, %arg31: memref<2x1x32xf32, #tpu.memory_space<vmem>>, %arg32: memref<2x32x32xf32, #tpu.memory_space<vmem>>, %arg33: memref<2x1x32xf32, #tpu.memory_space<vmem>>, %arg34: memref<2x3x32xf32, #tpu.memory_space<vmem>>, %arg35: memref<2x3x32xf32, #tpu.memory_space<vmem>>, %arg36: memref<32x128xf32, #tpu.memory_space<vmem>>, %arg37: memref<1x128xf32, #tpu.memory_space<vmem>>, %arg38: memref<2x8x128xf32, #tpu.memory_space<vmem>>) attributes {dimension_semantics = [], scalar_prefetch = 0 : i64, scratch_operands = 0 : i64, tpu.core_type = #tpu.core_type<tc>} {
    %c0 = arith.constant 0 : index
    %c0_0 = arith.constant 0 : index
    %0 = vector.load %arg2[%c0, %c0_0] : memref<2x32xf32, #tpu.memory_space<vmem>>, vector<2x32xf32>
    %c0_1 = arith.constant 0 : index
    %c0_2 = arith.constant 0 : index
    %1 = vector.load %arg3[%c0_1, %c0_2] : memref<32x640xf32, #tpu.memory_space<vmem>>, vector<32x640xf32>
    %cst = arith.constant dense<0.000000e+00> : vector<2x640xf32>
    %2 = tpu.matmul %0, %1, %cst {dimension_numbers = #tpu.dot_dimension_numbers<[1], [0], [0], [1], [0, 0, 1, 1], [], []>} : vector<2x32xf32>, vector<32x640xf32>, vector<2x640xf32> -> vector<2x640xf32>
    %c0_3 = arith.constant 0 : index
    %c0_4 = arith.constant 0 : index
    %3 = vector.load %arg4[%c0_3, %c0_4] : memref<1x640xf32, #tpu.memory_space<vmem>>, vector<1x640xf32>
    %4 = vector.broadcast %3 : vector<1x640xf32> to vector<2x640xf32>
    %5 = arith.addf %2, %4 : vector<2x640xf32>
    %c0_5 = arith.constant 0 : index
    %c0_6 = arith.constant 0 : index
    %6 = vector.load %arg5[%c0_5, %c0_6] : memref<8x8xf32, #tpu.memory_space<vmem>>, vector<8x8xf32>
    %7 = vector.shape_cast %6 : vector<8x8xf32> to vector<1x8x8xf32>
    %c0_7 = arith.constant 0 : index
    %c0_8 = arith.constant 0 : index
    %8 = vector.load %arg7[%c0_7, %c0_8] : memref<2x8xf32, #tpu.memory_space<vmem>>, vector<2x8xf32>
    %9 = vector.shape_cast %8 : vector<2x8xf32> to vector<2x1x8xf32>
    %10 = vector.broadcast %7 : vector<1x8x8xf32> to vector<2x8x8xf32>
    %11 = vector.broadcast %9 : vector<2x1x8xf32> to vector<2x8x8xf32>
    %12 = arith.addf %10, %11 : vector<2x8x8xf32>
    %c0_9 = arith.constant 0 : index
    %c0_10 = arith.constant 0 : index
    %13 = vector.load %arg6[%c0_9, %c0_10] : memref<8x8xf32, #tpu.memory_space<vmem>>, vector<8x8xf32>
    %14 = vector.shape_cast %13 : vector<8x8xf32> to vector<1x8x8xf32>
    %c0_11 = arith.constant 0 : index
    %c0_12 = arith.constant 0 : index
    %15 = vector.load %arg8[%c0_11, %c0_12] : memref<2x8xf32, #tpu.memory_space<vmem>>, vector<2x8xf32>
    %16 = vector.shape_cast %15 : vector<2x8xf32> to vector<2x1x8xf32>
    %17 = vector.broadcast %14 : vector<1x8x8xf32> to vector<2x8x8xf32>
    %18 = vector.broadcast %16 : vector<2x1x8xf32> to vector<2x8x8xf32>
    %19 = arith.addf %17, %18 : vector<2x8x8xf32>
    %c0_13 = arith.constant 0 : index
    %c0_14 = arith.constant 0 : index
    %20 = vector.load %arg9[%c0_13, %c0_14] : memref<2x8xf32, #tpu.memory_space<vmem>>, vector<2x8xf32>
    %21 = vector.shape_cast %20 : vector<2x8xf32> to vector<2x1x8xf32>
    %c0_15 = arith.constant 0 : index
    %c0_16 = arith.constant 0 : index
    %c0_17 = arith.constant 0 : index
    %22 = vector.load %arg0[%c0_15, %c0_16, %c0_17] : memref<2x8x32xf32, #tpu.memory_space<vmem>>, vector<2x8x32xf32>
    %23 = vector.extract_strided_slice %5 {offsets = [0, 0], sizes = [2, 32], strides = [1, 1]} : vector<2x640xf32> to vector<2x32xf32>
    %24 = vector.extract_strided_slice %5 {offsets = [0, 32], sizes = [2, 32], strides = [1, 1]} : vector<2x640xf32> to vector<2x32xf32>
    %25 = vector.extract_strided_slice %5 {offsets = [0, 64], sizes = [2, 32], strides = [1, 1]} : vector<2x640xf32> to vector<2x32xf32>
    %26 = vector.extract_strided_slice %5 {offsets = [0, 96], sizes = [2, 32], strides = [1, 1]} : vector<2x640xf32> to vector<2x32xf32>
    %27 = vector.shape_cast %22 : vector<2x8x32xf32> to vector<16x32xf32>
    %c0_18 = arith.constant 0 : index
    %c0_19 = arith.constant 0 : index
    %c0_20 = arith.constant 0 : index
    %28 = vector.load %arg10[%c0_18, %c0_19, %c0_20] : memref<2x32x96xf32, #tpu.memory_space<vmem>>, vector<1x32x96xf32>
    %29 = vector.shape_cast %28 : vector<1x32x96xf32> to vector<32x96xf32>
    %cst_21 = arith.constant dense<0.000000e+00> : vector<16x96xf32>
    %30 = tpu.matmul %27, %29, %cst_21 {dimension_numbers = #tpu.dot_dimension_numbers<[1], [0], [0], [1], [0, 0, 1, 1], [], []>} : vector<16x32xf32>, vector<32x96xf32>, vector<16x96xf32> -> vector<16x96xf32>
    %c0_22 = arith.constant 0 : index
    %c0_23 = arith.constant 0 : index
    %c0_24 = arith.constant 0 : index
    %31 = vector.load %arg11[%c0_22, %c0_23, %c0_24] : memref<2x1x96xf32, #tpu.memory_space<vmem>>, vector<1x1x96xf32>
    %32 = vector.shape_cast %31 : vector<1x1x96xf32> to vector<1x96xf32>
    %33 = vector.broadcast %32 : vector<1x96xf32> to vector<16x96xf32>
    %34 = arith.addf %30, %33 : vector<16x96xf32>
    %35 = vector.extract_strided_slice %34 {offsets = [0, 0], sizes = [16, 32], strides = [1, 1]} : vector<16x96xf32> to vector<16x32xf32>
    %36 = vector.shape_cast %35 : vector<16x32xf32> to vector<2x8x32xf32>
    %37 = vector.extract_strided_slice %34 {offsets = [0, 32], sizes = [16, 32], strides = [1, 1]} : vector<16x96xf32> to vector<16x32xf32>
    %38 = vector.shape_cast %37 : vector<16x32xf32> to vector<2x8x32xf32>
    %39 = vector.extract_strided_slice %34 {offsets = [0, 64], sizes = [16, 32], strides = [1, 1]} : vector<16x96xf32> to vector<16x32xf32>
    %40 = vector.shape_cast %39 : vector<16x32xf32> to vector<2x8x32xf32>
    %41 = vector.extract_strided_slice %36 {offsets = [0, 0, 0], sizes = [2, 8, 8], strides = [1, 1, 1]} : vector<2x8x32xf32> to vector<2x8x8xf32>
    %42 = vector.extract_strided_slice %36 {offsets = [0, 0, 8], sizes = [2, 8, 8], strides = [1, 1, 1]} : vector<2x8x32xf32> to vector<2x8x8xf32>
    %43 = vector.extract_strided_slice %36 {offsets = [0, 0, 16], sizes = [2, 8, 8], strides = [1, 1, 1]} : vector<2x8x32xf32> to vector<2x8x8xf32>
    %44 = vector.extract_strided_slice %36 {offsets = [0, 0, 24], sizes = [2, 8, 8], strides = [1, 1, 1]} : vector<2x8x32xf32> to vector<2x8x8xf32>
    %45 = tpu.concatenate %41, %42, %43, %44 in 0 : vector<2x8x8xf32>, vector<2x8x8xf32>, vector<2x8x8xf32>, vector<2x8x8xf32> -> vector<8x8x8xf32>
    %46 = vector.extract_strided_slice %38 {offsets = [0, 0, 0], sizes = [2, 8, 8], strides = [1, 1, 1]} : vector<2x8x32xf32> to vector<2x8x8xf32>
    %47 = vector.extract_strided_slice %38 {offsets = [0, 0, 8], sizes = [2, 8, 8], strides = [1, 1, 1]} : vector<2x8x32xf32> to vector<2x8x8xf32>
    %48 = vector.extract_strided_slice %38 {offsets = [0, 0, 16], sizes = [2, 8, 8], strides = [1, 1, 1]} : vector<2x8x32xf32> to vector<2x8x8xf32>
    %49 = vector.extract_strided_slice %38 {offsets = [0, 0, 24], sizes = [2, 8, 8], strides = [1, 1, 1]} : vector<2x8x32xf32> to vector<2x8x8xf32>
    %50 = tpu.concatenate %46, %47, %48, %49 in 0 : vector<2x8x8xf32>, vector<2x8x8xf32>, vector<2x8x8xf32>, vector<2x8x8xf32> -> vector<8x8x8xf32>
    %51 = vector.extract_strided_slice %40 {offsets = [0, 0, 0], sizes = [2, 8, 8], strides = [1, 1, 1]} : vector<2x8x32xf32> to vector<2x8x8xf32>
    %52 = vector.extract_strided_slice %40 {offsets = [0, 0, 8], sizes = [2, 8, 8], strides = [1, 1, 1]} : vector<2x8x32xf32> to vector<2x8x8xf32>
    %53 = vector.extract_strided_slice %40 {offsets = [0, 0, 16], sizes = [2, 8, 8], strides = [1, 1, 1]} : vector<2x8x32xf32> to vector<2x8x8xf32>
    %54 = vector.extract_strided_slice %40 {offsets = [0, 0, 24], sizes = [2, 8, 8], strides = [1, 1, 1]} : vector<2x8x32xf32> to vector<2x8x8xf32>
    %55 = tpu.concatenate %51, %52, %53, %54 in 0 : vector<2x8x8xf32>, vector<2x8x8xf32>, vector<2x8x8xf32>, vector<2x8x8xf32> -> vector<8x8x8xf32>
    "tpu.trace_start"() <{level = 10 : i32, message = "bqd,bkd->bqk"}> : () -> ()
    %cst_25 = arith.constant dense<0.000000e+00> : vector<8x8x8xf32>
    %56 = tpu.matmul %45, %50, %cst_25 {dimension_numbers = #tpu.dot_dimension_numbers<[2], [2], [1], [1], [0, 0, 0, 1, 1, 1], [0], [0]>} : vector<8x8x8xf32>, vector<8x8x8xf32>, vector<8x8x8xf32> -> vector<8x8x8xf32>
    "tpu.trace_stop"() : () -> ()
    %cst_26 = arith.constant 0.353553385 : f32
    %57 = vector.broadcast %cst_26 : f32 to vector<8x8x8xf32>
    %58 = arith.mulf %56, %57 : vector<8x8x8xf32>
    %59 = vector.shape_cast %58 : vector<8x8x8xf32> to vector<4x2x8x8xf32>
    %60 = vector.shape_cast %12 : vector<2x8x8xf32> to vector<1x2x8x8xf32>
    %61 = vector.broadcast %60 : vector<1x2x8x8xf32> to vector<4x2x8x8xf32>
    %62 = arith.addf %59, %61 : vector<4x2x8x8xf32>
    %63 = vector.shape_cast %62 : vector<4x2x8x8xf32> to vector<8x8x8xf32>
    %cst_27 = arith.constant dense<0xFF800000> : vector<8x8xf32>
    %64 = vector.multi_reduction <maximumf>, %63, %cst_27 [2] : vector<8x8x8xf32> to vector<8x8xf32>
    %65 = vector.shape_cast %64 : vector<8x8xf32> to vector<8x8x1xf32>
    %66 = vector.broadcast %65 : vector<8x8x1xf32> to vector<8x8x8xf32>
    %67 = arith.subf %63, %66 : vector<8x8x8xf32>
    %68 = math.exp %67 : vector<8x8x8xf32>
    %cst_28 = arith.constant dense<0.000000e+00> : vector<8x8xf32>
    %69 = vector.multi_reduction <add>, %68, %cst_28 [2] : vector<8x8x8xf32> to vector<8x8xf32>
    %70 = vector.shape_cast %69 : vector<8x8xf32> to vector<8x8x1xf32>
    %cst_29 = arith.constant 9.99999968E-21 : f32
    %71 = vector.broadcast %cst_29 : f32 to vector<8x8x1xf32>
    %72 = arith.maximumf %70, %71 : vector<8x8x1xf32>
    %73 = vector.broadcast %72 : vector<8x8x1xf32> to vector<8x8x8xf32>
    %74 = arith.divf %68, %73 : vector<8x8x8xf32>
    "tpu.trace_start"() <{level = 10 : i32, message = "bqk,bkd->bqd"}> : () -> ()
    %cst_30 = arith.constant dense<0.000000e+00> : vector<8x8x8xf32>
    %75 = tpu.matmul %74, %55, %cst_30 {dimension_numbers = #tpu.dot_dimension_numbers<[2], [1], [1], [2], [0, 0, 0, 1, 1, 2], [0], [0]>} : vector<8x8x8xf32>, vector<8x8x8xf32>, vector<8x8x8xf32> -> vector<8x8x8xf32>
    "tpu.trace_stop"() : () -> ()
    %76 = vector.extract_strided_slice %75 {offsets = [0, 0, 0], sizes = [2, 8, 8], strides = [1, 1, 1]} : vector<8x8x8xf32> to vector<2x8x8xf32>
    %77 = vector.extract_strided_slice %75 {offsets = [2, 0, 0], sizes = [2, 8, 8], strides = [1, 1, 1]} : vector<8x8x8xf32> to vector<2x8x8xf32>
    %78 = vector.extract_strided_slice %75 {offsets = [4, 0, 0], sizes = [2, 8, 8], strides = [1, 1, 1]} : vector<8x8x8xf32> to vector<2x8x8xf32>
    %79 = vector.extract_strided_slice %75 {offsets = [6, 0, 0], sizes = [2, 8, 8], strides = [1, 1, 1]} : vector<8x8x8xf32> to vector<2x8x8xf32>
    %80 = tpu.concatenate %76, %77, %78, %79 in 2 : vector<2x8x8xf32>, vector<2x8x8xf32>, vector<2x8x8xf32>, vector<2x8x8xf32> -> vector<2x8x32xf32>
    %81 = vector.shape_cast %80 : vector<2x8x32xf32> to vector<16x32xf32>
    %c0_31 = arith.constant 0 : index
    %c0_32 = arith.constant 0 : index
    %c0_33 = arith.constant 0 : index
    %82 = vector.load %arg12[%c0_31, %c0_32, %c0_33] : memref<2x32x32xf32, #tpu.memory_space<vmem>>, vector<1x32x32xf32>
    %83 = vector.shape_cast %82 : vector<1x32x32xf32> to vector<32x32xf32>
    %cst_34 = arith.constant dense<0.000000e+00> : vector<16x32xf32>
    %84 = tpu.matmul %81, %83, %cst_34 {dimension_numbers = #tpu.dot_dimension_numbers<[1], [0], [0], [1], [0, 0, 1, 1], [], []>} : vector<16x32xf32>, vector<32x32xf32>, vector<16x32xf32> -> vector<16x32xf32>
    %c0_35 = arith.constant 0 : index
    %c0_36 = arith.constant 0 : index
    %c0_37 = arith.constant 0 : index
    %85 = vector.load %arg13[%c0_35, %c0_36, %c0_37] : memref<2x1x32xf32, #tpu.memory_space<vmem>>, vector<1x1x32xf32>
    %86 = vector.shape_cast %85 : vector<1x1x32xf32> to vector<1x32xf32>
    %87 = vector.broadcast %86 : vector<1x32xf32> to vector<16x32xf32>
    %88 = arith.addf %84, %87 : vector<16x32xf32>
    %89 = vector.shape_cast %88 : vector<16x32xf32> to vector<2x8x32xf32>
    %c0_38 = arith.constant 0 : index
    %c0_39 = arith.constant 0 : index
    %c0_40 = arith.constant 0 : index
    %90 = vector.load %arg18[%c0_38, %c0_39, %c0_40] : memref<2x2x32xf32, #tpu.memory_space<vmem>>, vector<1x2x32xf32>
    %91 = vector.shape_cast %90 : vector<1x2x32xf32> to vector<2x32xf32>
    %c0_41 = arith.constant 0 : index
    %c0_42 = arith.constant 0 : index
    %c0_43 = arith.constant 0 : index
    %92 = vector.load %arg19[%c0_41, %c0_42, %c0_43] : memref<2x2x32xf32, #tpu.memory_space<vmem>>, vector<1x2x32xf32>
    %93 = vector.shape_cast %92 : vector<1x2x32xf32> to vector<2x32xf32>
    %94 = vector.extract_strided_slice %91 {offsets = [0, 0], sizes = [1, 32], strides = [1, 1]} : vector<2x32xf32> to vector<1x32xf32>
    %95 = vector.extract_strided_slice %93 {offsets = [0, 0], sizes = [1, 32], strides = [1, 1]} : vector<2x32xf32> to vector<1x32xf32>
    %96 = vector.shape_cast %23 : vector<2x32xf32> to vector<2x1x32xf32>
    %cst_44 = arith.constant 1.000000e+00 : f32
    %97 = vector.broadcast %cst_44 : f32 to vector<2x1x32xf32>
    %98 = arith.addf %97, %96 : vector<2x1x32xf32>
    %99 = vector.broadcast %98 : vector<2x1x32xf32> to vector<2x8x32xf32>
    %100 = arith.mulf %99, %89 : vector<2x8x32xf32>
    %101 = arith.addf %22, %100 : vector<2x8x32xf32>
    %102 = vector.shape_cast %24 : vector<2x32xf32> to vector<2x1x32xf32>
    %103 = vector.broadcast %102 : vector<2x1x32xf32> to vector<2x8x32xf32>
    %104 = arith.addf %101, %103 : vector<2x8x32xf32>
    %cst_45 = arith.constant dense<0.000000e+00> : vector<2x8xf32>
    %105 = vector.multi_reduction <add>, %104, %cst_45 [2] : vector<2x8x32xf32> to vector<2x8xf32>
    %106 = vector.shape_cast %105 : vector<2x8xf32> to vector<2x8x1xf32>
    %cst_46 = arith.constant 3.200000e+01 : f32
    %107 = vector.broadcast %cst_46 : f32 to vector<2x8x1xf32>
    %108 = arith.divf %106, %107 : vector<2x8x1xf32>
    %109 = vector.broadcast %108 : vector<2x8x1xf32> to vector<2x8x32xf32>
    %110 = arith.subf %104, %109 : vector<2x8x32xf32>
    %111 = vector.broadcast %108 : vector<2x8x1xf32> to vector<2x8x32xf32>
    %112 = arith.subf %104, %111 : vector<2x8x32xf32>
    %113 = arith.mulf %110, %112 : vector<2x8x32xf32>
    %cst_47 = arith.constant dense<0.000000e+00> : vector<2x8xf32>
    %114 = vector.multi_reduction <add>, %113, %cst_47 [2] : vector<2x8x32xf32> to vector<2x8xf32>
    %115 = vector.shape_cast %114 : vector<2x8xf32> to vector<2x8x1xf32>
    %cst_48 = arith.constant 3.200000e+01 : f32
    %116 = vector.broadcast %cst_48 : f32 to vector<2x8x1xf32>
    %117 = arith.divf %115, %116 : vector<2x8x1xf32>
    %118 = vector.broadcast %108 : vector<2x8x1xf32> to vector<2x8x32xf32>
    %119 = arith.subf %104, %118 : vector<2x8x32xf32>
    %cst_49 = arith.constant 9.99999974E-6 : f32
    %120 = vector.broadcast %cst_49 : f32 to vector<2x8x1xf32>
    %121 = arith.addf %117, %120 : vector<2x8x1xf32>
    %122 = math.rsqrt %121 : vector<2x8x1xf32>
    %123 = vector.broadcast %122 : vector<2x8x1xf32> to vector<2x8x32xf32>
    %124 = arith.mulf %119, %123 : vector<2x8x32xf32>
    %125 = vector.shape_cast %94 : vector<1x32xf32> to vector<1x1x32xf32>
    %126 = vector.broadcast %125 : vector<1x1x32xf32> to vector<2x8x32xf32>
    %127 = arith.mulf %124, %126 : vector<2x8x32xf32>
    %128 = vector.shape_cast %95 : vector<1x32xf32> to vector<1x1x32xf32>
    %129 = vector.broadcast %128 : vector<1x1x32xf32> to vector<2x8x32xf32>
    %130 = arith.addf %127, %129 : vector<2x8x32xf32>
    %131 = vector.shape_cast %130 : vector<2x8x32xf32> to vector<16x32xf32>
    %c0_50 = arith.constant 0 : index
    %c0_51 = arith.constant 0 : index
    %c0_52 = arith.constant 0 : index
    %132 = vector.load %arg14[%c0_50, %c0_51, %c0_52] : memref<2x32x32xf32, #tpu.memory_space<vmem>>, vector<1x32x32xf32>
    %133 = vector.shape_cast %132 : vector<1x32x32xf32> to vector<32x32xf32>
    %cst_53 = arith.constant dense<0.000000e+00> : vector<16x32xf32>
    %134 = tpu.matmul %131, %133, %cst_53 {dimension_numbers = #tpu.dot_dimension_numbers<[1], [0], [0], [1], [0, 0, 1, 1], [], []>} : vector<16x32xf32>, vector<32x32xf32>, vector<16x32xf32> -> vector<16x32xf32>
    %c0_54 = arith.constant 0 : index
    %c0_55 = arith.constant 0 : index
    %c0_56 = arith.constant 0 : index
    %135 = vector.load %arg15[%c0_54, %c0_55, %c0_56] : memref<2x1x32xf32, #tpu.memory_space<vmem>>, vector<1x1x32xf32>
    %136 = vector.shape_cast %135 : vector<1x1x32xf32> to vector<1x32xf32>
    %137 = vector.broadcast %136 : vector<1x32xf32> to vector<16x32xf32>
    %138 = arith.addf %134, %137 : vector<16x32xf32>
    %cst_57 = arith.constant 0.000000e+00 : f32
    %139 = vector.broadcast %cst_57 : f32 to vector<16x32xf32>
    %140 = arith.maximumf %138, %139 : vector<16x32xf32>
    %c0_58 = arith.constant 0 : index
    %c0_59 = arith.constant 0 : index
    %c0_60 = arith.constant 0 : index
    %141 = vector.load %arg16[%c0_58, %c0_59, %c0_60] : memref<2x32x32xf32, #tpu.memory_space<vmem>>, vector<1x32x32xf32>
    %142 = vector.shape_cast %141 : vector<1x32x32xf32> to vector<32x32xf32>
    %cst_61 = arith.constant dense<0.000000e+00> : vector<16x32xf32>
    %143 = tpu.matmul %140, %142, %cst_61 {dimension_numbers = #tpu.dot_dimension_numbers<[1], [0], [0], [1], [0, 0, 1, 1], [], []>} : vector<16x32xf32>, vector<32x32xf32>, vector<16x32xf32> -> vector<16x32xf32>
    %c0_62 = arith.constant 0 : index
    %c0_63 = arith.constant 0 : index
    %c0_64 = arith.constant 0 : index
    %144 = vector.load %arg17[%c0_62, %c0_63, %c0_64] : memref<2x1x32xf32, #tpu.memory_space<vmem>>, vector<1x1x32xf32>
    %145 = vector.shape_cast %144 : vector<1x1x32xf32> to vector<1x32xf32>
    %146 = vector.broadcast %145 : vector<1x32xf32> to vector<16x32xf32>
    %147 = arith.addf %143, %146 : vector<16x32xf32>
    %148 = vector.shape_cast %147 : vector<16x32xf32> to vector<2x8x32xf32>
    %149 = vector.extract_strided_slice %91 {offsets = [1, 0], sizes = [1, 32], strides = [1, 1]} : vector<2x32xf32> to vector<1x32xf32>
    %150 = vector.extract_strided_slice %93 {offsets = [1, 0], sizes = [1, 32], strides = [1, 1]} : vector<2x32xf32> to vector<1x32xf32>
    %151 = vector.shape_cast %25 : vector<2x32xf32> to vector<2x1x32xf32>
    %cst_65 = arith.constant 1.000000e+00 : f32
    %152 = vector.broadcast %cst_65 : f32 to vector<2x1x32xf32>
    %153 = arith.addf %152, %151 : vector<2x1x32xf32>
    %154 = vector.broadcast %153 : vector<2x1x32xf32> to vector<2x8x32xf32>
    %155 = arith.mulf %154, %148 : vector<2x8x32xf32>
    %156 = arith.addf %130, %155 : vector<2x8x32xf32>
    %157 = vector.shape_cast %26 : vector<2x32xf32> to vector<2x1x32xf32>
    %158 = vector.broadcast %157 : vector<2x1x32xf32> to vector<2x8x32xf32>
    %159 = arith.addf %156, %158 : vector<2x8x32xf32>
    %cst_66 = arith.constant dense<0.000000e+00> : vector<2x8xf32>
    %160 = vector.multi_reduction <add>, %159, %cst_66 [2] : vector<2x8x32xf32> to vector<2x8xf32>
    %161 = vector.shape_cast %160 : vector<2x8xf32> to vector<2x8x1xf32>
    %cst_67 = arith.constant 3.200000e+01 : f32
    %162 = vector.broadcast %cst_67 : f32 to vector<2x8x1xf32>
    %163 = arith.divf %161, %162 : vector<2x8x1xf32>
    %164 = vector.broadcast %163 : vector<2x8x1xf32> to vector<2x8x32xf32>
    %165 = arith.subf %159, %164 : vector<2x8x32xf32>
    %166 = vector.broadcast %163 : vector<2x8x1xf32> to vector<2x8x32xf32>
    %167 = arith.subf %159, %166 : vector<2x8x32xf32>
    %168 = arith.mulf %165, %167 : vector<2x8x32xf32>
    %cst_68 = arith.constant dense<0.000000e+00> : vector<2x8xf32>
    %169 = vector.multi_reduction <add>, %168, %cst_68 [2] : vector<2x8x32xf32> to vector<2x8xf32>
    %170 = vector.shape_cast %169 : vector<2x8xf32> to vector<2x8x1xf32>
    %cst_69 = arith.constant 3.200000e+01 : f32
    %171 = vector.broadcast %cst_69 : f32 to vector<2x8x1xf32>
    %172 = arith.divf %170, %171 : vector<2x8x1xf32>
    %173 = vector.broadcast %163 : vector<2x8x1xf32> to vector<2x8x32xf32>
    %174 = arith.subf %159, %173 : vector<2x8x32xf32>
    %cst_70 = arith.constant 9.99999974E-6 : f32
    %175 = vector.broadcast %cst_70 : f32 to vector<2x8x1xf32>
    %176 = arith.addf %172, %175 : vector<2x8x1xf32>
    %177 = math.rsqrt %176 : vector<2x8x1xf32>
    %178 = vector.broadcast %177 : vector<2x8x1xf32> to vector<2x8x32xf32>
    %179 = arith.mulf %174, %178 : vector<2x8x32xf32>
    %180 = vector.shape_cast %149 : vector<1x32xf32> to vector<1x1x32xf32>
    %181 = vector.broadcast %180 : vector<1x1x32xf32> to vector<2x8x32xf32>
    %182 = arith.mulf %179, %181 : vector<2x8x32xf32>
    %183 = vector.shape_cast %150 : vector<1x32xf32> to vector<1x1x32xf32>
    %184 = vector.broadcast %183 : vector<1x1x32xf32> to vector<2x8x32xf32>
    %185 = arith.addf %182, %184 : vector<2x8x32xf32>
    %186 = vector.extract_strided_slice %5 {offsets = [0, 128], sizes = [2, 32], strides = [1, 1]} : vector<2x640xf32> to vector<2x32xf32>
    %187 = vector.extract_strided_slice %5 {offsets = [0, 160], sizes = [2, 32], strides = [1, 1]} : vector<2x640xf32> to vector<2x32xf32>
    %188 = vector.extract_strided_slice %5 {offsets = [0, 192], sizes = [2, 32], strides = [1, 1]} : vector<2x640xf32> to vector<2x32xf32>
    %189 = vector.extract_strided_slice %5 {offsets = [0, 224], sizes = [2, 32], strides = [1, 1]} : vector<2x640xf32> to vector<2x32xf32>
    %190 = vector.shape_cast %185 : vector<2x8x32xf32> to vector<16x32xf32>
    %c1 = arith.constant 1 : index
    %c0_71 = arith.constant 0 : index
    %c0_72 = arith.constant 0 : index
    %191 = vector.load %arg10[%c1, %c0_71, %c0_72] : memref<2x32x96xf32, #tpu.memory_space<vmem>>, vector<1x32x96xf32>
    %192 = vector.shape_cast %191 : vector<1x32x96xf32> to vector<32x96xf32>
    %cst_73 = arith.constant dense<0.000000e+00> : vector<16x96xf32>
    %193 = tpu.matmul %190, %192, %cst_73 {dimension_numbers = #tpu.dot_dimension_numbers<[1], [0], [0], [1], [0, 0, 1, 1], [], []>} : vector<16x32xf32>, vector<32x96xf32>, vector<16x96xf32> -> vector<16x96xf32>
    %c1_74 = arith.constant 1 : index
    %c0_75 = arith.constant 0 : index
    %c0_76 = arith.constant 0 : index
    %194 = vector.load %arg11[%c1_74, %c0_75, %c0_76] : memref<2x1x96xf32, #tpu.memory_space<vmem>>, vector<1x1x96xf32>
    %195 = vector.shape_cast %194 : vector<1x1x96xf32> to vector<1x96xf32>
    %196 = vector.broadcast %195 : vector<1x96xf32> to vector<16x96xf32>
    %197 = arith.addf %193, %196 : vector<16x96xf32>
    %198 = vector.extract_strided_slice %197 {offsets = [0, 0], sizes = [16, 32], strides = [1, 1]} : vector<16x96xf32> to vector<16x32xf32>
    %199 = vector.shape_cast %198 : vector<16x32xf32> to vector<2x8x32xf32>
    %200 = vector.extract_strided_slice %197 {offsets = [0, 32], sizes = [16, 32], strides = [1, 1]} : vector<16x96xf32> to vector<16x32xf32>
    %201 = vector.shape_cast %200 : vector<16x32xf32> to vector<2x8x32xf32>
    %202 = vector.extract_strided_slice %197 {offsets = [0, 64], sizes = [16, 32], strides = [1, 1]} : vector<16x96xf32> to vector<16x32xf32>
    %203 = vector.shape_cast %202 : vector<16x32xf32> to vector<2x8x32xf32>
    %204 = vector.extract_strided_slice %199 {offsets = [0, 0, 0], sizes = [2, 8, 8], strides = [1, 1, 1]} : vector<2x8x32xf32> to vector<2x8x8xf32>
    %205 = vector.extract_strided_slice %199 {offsets = [0, 0, 8], sizes = [2, 8, 8], strides = [1, 1, 1]} : vector<2x8x32xf32> to vector<2x8x8xf32>
    %206 = vector.extract_strided_slice %199 {offsets = [0, 0, 16], sizes = [2, 8, 8], strides = [1, 1, 1]} : vector<2x8x32xf32> to vector<2x8x8xf32>
    %207 = vector.extract_strided_slice %199 {offsets = [0, 0, 24], sizes = [2, 8, 8], strides = [1, 1, 1]} : vector<2x8x32xf32> to vector<2x8x8xf32>
    %208 = tpu.concatenate %204, %205, %206, %207 in 0 : vector<2x8x8xf32>, vector<2x8x8xf32>, vector<2x8x8xf32>, vector<2x8x8xf32> -> vector<8x8x8xf32>
    %209 = vector.extract_strided_slice %201 {offsets = [0, 0, 0], sizes = [2, 8, 8], strides = [1, 1, 1]} : vector<2x8x32xf32> to vector<2x8x8xf32>
    %210 = vector.extract_strided_slice %201 {offsets = [0, 0, 8], sizes = [2, 8, 8], strides = [1, 1, 1]} : vector<2x8x32xf32> to vector<2x8x8xf32>
    %211 = vector.extract_strided_slice %201 {offsets = [0, 0, 16], sizes = [2, 8, 8], strides = [1, 1, 1]} : vector<2x8x32xf32> to vector<2x8x8xf32>
    %212 = vector.extract_strided_slice %201 {offsets = [0, 0, 24], sizes = [2, 8, 8], strides = [1, 1, 1]} : vector<2x8x32xf32> to vector<2x8x8xf32>
    %213 = tpu.concatenate %209, %210, %211, %212 in 0 : vector<2x8x8xf32>, vector<2x8x8xf32>, vector<2x8x8xf32>, vector<2x8x8xf32> -> vector<8x8x8xf32>
    %214 = vector.extract_strided_slice %203 {offsets = [0, 0, 0], sizes = [2, 8, 8], strides = [1, 1, 1]} : vector<2x8x32xf32> to vector<2x8x8xf32>
    %215 = vector.extract_strided_slice %203 {offsets = [0, 0, 8], sizes = [2, 8, 8], strides = [1, 1, 1]} : vector<2x8x32xf32> to vector<2x8x8xf32>
    %216 = vector.extract_strided_slice %203 {offsets = [0, 0, 16], sizes = [2, 8, 8], strides = [1, 1, 1]} : vector<2x8x32xf32> to vector<2x8x8xf32>
    %217 = vector.extract_strided_slice %203 {offsets = [0, 0, 24], sizes = [2, 8, 8], strides = [1, 1, 1]} : vector<2x8x32xf32> to vector<2x8x8xf32>
    %218 = tpu.concatenate %214, %215, %216, %217 in 0 : vector<2x8x8xf32>, vector<2x8x8xf32>, vector<2x8x8xf32>, vector<2x8x8xf32> -> vector<8x8x8xf32>
    "tpu.trace_start"() <{level = 10 : i32, message = "bqd,bkd->bqk"}> : () -> ()
    %cst_77 = arith.constant dense<0.000000e+00> : vector<8x8x8xf32>
    %219 = tpu.matmul %208, %213, %cst_77 {dimension_numbers = #tpu.dot_dimension_numbers<[2], [2], [1], [1], [0, 0, 0, 1, 1, 1], [0], [0]>} : vector<8x8x8xf32>, vector<8x8x8xf32>, vector<8x8x8xf32> -> vector<8x8x8xf32>
    "tpu.trace_stop"() : () -> ()
    %cst_78 = arith.constant 0.353553385 : f32
    %220 = vector.broadcast %cst_78 : f32 to vector<8x8x8xf32>
    %221 = arith.mulf %219, %220 : vector<8x8x8xf32>
    %222 = vector.shape_cast %221 : vector<8x8x8xf32> to vector<4x2x8x8xf32>
    %223 = vector.shape_cast %12 : vector<2x8x8xf32> to vector<1x2x8x8xf32>
    %224 = vector.broadcast %223 : vector<1x2x8x8xf32> to vector<4x2x8x8xf32>
    %225 = arith.addf %222, %224 : vector<4x2x8x8xf32>
    %226 = vector.shape_cast %225 : vector<4x2x8x8xf32> to vector<8x8x8xf32>
    %cst_79 = arith.constant dense<0xFF800000> : vector<8x8xf32>
    %227 = vector.multi_reduction <maximumf>, %226, %cst_79 [2] : vector<8x8x8xf32> to vector<8x8xf32>
    %228 = vector.shape_cast %227 : vector<8x8xf32> to vector<8x8x1xf32>
    %229 = vector.broadcast %228 : vector<8x8x1xf32> to vector<8x8x8xf32>
    %230 = arith.subf %226, %229 : vector<8x8x8xf32>
    %231 = math.exp %230 : vector<8x8x8xf32>
    %cst_80 = arith.constant dense<0.000000e+00> : vector<8x8xf32>
    %232 = vector.multi_reduction <add>, %231, %cst_80 [2] : vector<8x8x8xf32> to vector<8x8xf32>
    %233 = vector.shape_cast %232 : vector<8x8xf32> to vector<8x8x1xf32>
    %cst_81 = arith.constant 9.99999968E-21 : f32
    %234 = vector.broadcast %cst_81 : f32 to vector<8x8x1xf32>
    %235 = arith.maximumf %233, %234 : vector<8x8x1xf32>
    %236 = vector.broadcast %235 : vector<8x8x1xf32> to vector<8x8x8xf32>
    %237 = arith.divf %231, %236 : vector<8x8x8xf32>
    "tpu.trace_start"() <{level = 10 : i32, message = "bqk,bkd->bqd"}> : () -> ()
    %cst_82 = arith.constant dense<0.000000e+00> : vector<8x8x8xf32>
    %238 = tpu.matmul %237, %218, %cst_82 {dimension_numbers = #tpu.dot_dimension_numbers<[2], [1], [1], [2], [0, 0, 0, 1, 1, 2], [0], [0]>} : vector<8x8x8xf32>, vector<8x8x8xf32>, vector<8x8x8xf32> -> vector<8x8x8xf32>
    "tpu.trace_stop"() : () -> ()
    %239 = vector.extract_strided_slice %238 {offsets = [0, 0, 0], sizes = [2, 8, 8], strides = [1, 1, 1]} : vector<8x8x8xf32> to vector<2x8x8xf32>
    %240 = vector.extract_strided_slice %238 {offsets = [2, 0, 0], sizes = [2, 8, 8], strides = [1, 1, 1]} : vector<8x8x8xf32> to vector<2x8x8xf32>
    %241 = vector.extract_strided_slice %238 {offsets = [4, 0, 0], sizes = [2, 8, 8], strides = [1, 1, 1]} : vector<8x8x8xf32> to vector<2x8x8xf32>
    %242 = vector.extract_strided_slice %238 {offsets = [6, 0, 0], sizes = [2, 8, 8], strides = [1, 1, 1]} : vector<8x8x8xf32> to vector<2x8x8xf32>
    %243 = tpu.concatenate %239, %240, %241, %242 in 2 : vector<2x8x8xf32>, vector<2x8x8xf32>, vector<2x8x8xf32>, vector<2x8x8xf32> -> vector<2x8x32xf32>
    %244 = vector.shape_cast %243 : vector<2x8x32xf32> to vector<16x32xf32>
    %c1_83 = arith.constant 1 : index
    %c0_84 = arith.constant 0 : index
    %c0_85 = arith.constant 0 : index
    %245 = vector.load %arg12[%c1_83, %c0_84, %c0_85] : memref<2x32x32xf32, #tpu.memory_space<vmem>>, vector<1x32x32xf32>
    %246 = vector.shape_cast %245 : vector<1x32x32xf32> to vector<32x32xf32>
    %cst_86 = arith.constant dense<0.000000e+00> : vector<16x32xf32>
    %247 = tpu.matmul %244, %246, %cst_86 {dimension_numbers = #tpu.dot_dimension_numbers<[1], [0], [0], [1], [0, 0, 1, 1], [], []>} : vector<16x32xf32>, vector<32x32xf32>, vector<16x32xf32> -> vector<16x32xf32>
    %c1_87 = arith.constant 1 : index
    %c0_88 = arith.constant 0 : index
    %c0_89 = arith.constant 0 : index
    %248 = vector.load %arg13[%c1_87, %c0_88, %c0_89] : memref<2x1x32xf32, #tpu.memory_space<vmem>>, vector<1x1x32xf32>
    %249 = vector.shape_cast %248 : vector<1x1x32xf32> to vector<1x32xf32>
    %250 = vector.broadcast %249 : vector<1x32xf32> to vector<16x32xf32>
    %251 = arith.addf %247, %250 : vector<16x32xf32>
    %252 = vector.shape_cast %251 : vector<16x32xf32> to vector<2x8x32xf32>
    %c1_90 = arith.constant 1 : index
    %c0_91 = arith.constant 0 : index
    %c0_92 = arith.constant 0 : index
    %253 = vector.load %arg18[%c1_90, %c0_91, %c0_92] : memref<2x2x32xf32, #tpu.memory_space<vmem>>, vector<1x2x32xf32>
    %254 = vector.shape_cast %253 : vector<1x2x32xf32> to vector<2x32xf32>
    %c1_93 = arith.constant 1 : index
    %c0_94 = arith.constant 0 : index
    %c0_95 = arith.constant 0 : index
    %255 = vector.load %arg19[%c1_93, %c0_94, %c0_95] : memref<2x2x32xf32, #tpu.memory_space<vmem>>, vector<1x2x32xf32>
    %256 = vector.shape_cast %255 : vector<1x2x32xf32> to vector<2x32xf32>
    %257 = vector.extract_strided_slice %254 {offsets = [0, 0], sizes = [1, 32], strides = [1, 1]} : vector<2x32xf32> to vector<1x32xf32>
    %258 = vector.extract_strided_slice %256 {offsets = [0, 0], sizes = [1, 32], strides = [1, 1]} : vector<2x32xf32> to vector<1x32xf32>
    %259 = vector.shape_cast %186 : vector<2x32xf32> to vector<2x1x32xf32>
    %cst_96 = arith.constant 1.000000e+00 : f32
    %260 = vector.broadcast %cst_96 : f32 to vector<2x1x32xf32>
    %261 = arith.addf %260, %259 : vector<2x1x32xf32>
    %262 = vector.broadcast %261 : vector<2x1x32xf32> to vector<2x8x32xf32>
    %263 = arith.mulf %262, %252 : vector<2x8x32xf32>
    %264 = arith.addf %185, %263 : vector<2x8x32xf32>
    %265 = vector.shape_cast %187 : vector<2x32xf32> to vector<2x1x32xf32>
    %266 = vector.broadcast %265 : vector<2x1x32xf32> to vector<2x8x32xf32>
    %267 = arith.addf %264, %266 : vector<2x8x32xf32>
    %cst_97 = arith.constant dense<0.000000e+00> : vector<2x8xf32>
    %268 = vector.multi_reduction <add>, %267, %cst_97 [2] : vector<2x8x32xf32> to vector<2x8xf32>
    %269 = vector.shape_cast %268 : vector<2x8xf32> to vector<2x8x1xf32>
    %cst_98 = arith.constant 3.200000e+01 : f32
    %270 = vector.broadcast %cst_98 : f32 to vector<2x8x1xf32>
    %271 = arith.divf %269, %270 : vector<2x8x1xf32>
    %272 = vector.broadcast %271 : vector<2x8x1xf32> to vector<2x8x32xf32>
    %273 = arith.subf %267, %272 : vector<2x8x32xf32>
    %274 = vector.broadcast %271 : vector<2x8x1xf32> to vector<2x8x32xf32>
    %275 = arith.subf %267, %274 : vector<2x8x32xf32>
    %276 = arith.mulf %273, %275 : vector<2x8x32xf32>
    %cst_99 = arith.constant dense<0.000000e+00> : vector<2x8xf32>
    %277 = vector.multi_reduction <add>, %276, %cst_99 [2] : vector<2x8x32xf32> to vector<2x8xf32>
    %278 = vector.shape_cast %277 : vector<2x8xf32> to vector<2x8x1xf32>
    %cst_100 = arith.constant 3.200000e+01 : f32
    %279 = vector.broadcast %cst_100 : f32 to vector<2x8x1xf32>
    %280 = arith.divf %278, %279 : vector<2x8x1xf32>
    %281 = vector.broadcast %271 : vector<2x8x1xf32> to vector<2x8x32xf32>
    %282 = arith.subf %267, %281 : vector<2x8x32xf32>
    %cst_101 = arith.constant 9.99999974E-6 : f32
    %283 = vector.broadcast %cst_101 : f32 to vector<2x8x1xf32>
    %284 = arith.addf %280, %283 : vector<2x8x1xf32>
    %285 = math.rsqrt %284 : vector<2x8x1xf32>
    %286 = vector.broadcast %285 : vector<2x8x1xf32> to vector<2x8x32xf32>
    %287 = arith.mulf %282, %286 : vector<2x8x32xf32>
    %288 = vector.shape_cast %257 : vector<1x32xf32> to vector<1x1x32xf32>
    %289 = vector.broadcast %288 : vector<1x1x32xf32> to vector<2x8x32xf32>
    %290 = arith.mulf %287, %289 : vector<2x8x32xf32>
    %291 = vector.shape_cast %258 : vector<1x32xf32> to vector<1x1x32xf32>
    %292 = vector.broadcast %291 : vector<1x1x32xf32> to vector<2x8x32xf32>
    %293 = arith.addf %290, %292 : vector<2x8x32xf32>
    %294 = vector.shape_cast %293 : vector<2x8x32xf32> to vector<16x32xf32>
    %c1_102 = arith.constant 1 : index
    %c0_103 = arith.constant 0 : index
    %c0_104 = arith.constant 0 : index
    %295 = vector.load %arg14[%c1_102, %c0_103, %c0_104] : memref<2x32x32xf32, #tpu.memory_space<vmem>>, vector<1x32x32xf32>
    %296 = vector.shape_cast %295 : vector<1x32x32xf32> to vector<32x32xf32>
    %cst_105 = arith.constant dense<0.000000e+00> : vector<16x32xf32>
    %297 = tpu.matmul %294, %296, %cst_105 {dimension_numbers = #tpu.dot_dimension_numbers<[1], [0], [0], [1], [0, 0, 1, 1], [], []>} : vector<16x32xf32>, vector<32x32xf32>, vector<16x32xf32> -> vector<16x32xf32>
    %c1_106 = arith.constant 1 : index
    %c0_107 = arith.constant 0 : index
    %c0_108 = arith.constant 0 : index
    %298 = vector.load %arg15[%c1_106, %c0_107, %c0_108] : memref<2x1x32xf32, #tpu.memory_space<vmem>>, vector<1x1x32xf32>
    %299 = vector.shape_cast %298 : vector<1x1x32xf32> to vector<1x32xf32>
    %300 = vector.broadcast %299 : vector<1x32xf32> to vector<16x32xf32>
    %301 = arith.addf %297, %300 : vector<16x32xf32>
    %cst_109 = arith.constant 0.000000e+00 : f32
    %302 = vector.broadcast %cst_109 : f32 to vector<16x32xf32>
    %303 = arith.maximumf %301, %302 : vector<16x32xf32>
    %c1_110 = arith.constant 1 : index
    %c0_111 = arith.constant 0 : index
    %c0_112 = arith.constant 0 : index
    %304 = vector.load %arg16[%c1_110, %c0_111, %c0_112] : memref<2x32x32xf32, #tpu.memory_space<vmem>>, vector<1x32x32xf32>
    %305 = vector.shape_cast %304 : vector<1x32x32xf32> to vector<32x32xf32>
    %cst_113 = arith.constant dense<0.000000e+00> : vector<16x32xf32>
    %306 = tpu.matmul %303, %305, %cst_113 {dimension_numbers = #tpu.dot_dimension_numbers<[1], [0], [0], [1], [0, 0, 1, 1], [], []>} : vector<16x32xf32>, vector<32x32xf32>, vector<16x32xf32> -> vector<16x32xf32>
    %c1_114 = arith.constant 1 : index
    %c0_115 = arith.constant 0 : index
    %c0_116 = arith.constant 0 : index
    %307 = vector.load %arg17[%c1_114, %c0_115, %c0_116] : memref<2x1x32xf32, #tpu.memory_space<vmem>>, vector<1x1x32xf32>
    %308 = vector.shape_cast %307 : vector<1x1x32xf32> to vector<1x32xf32>
    %309 = vector.broadcast %308 : vector<1x32xf32> to vector<16x32xf32>
    %310 = arith.addf %306, %309 : vector<16x32xf32>
    %311 = vector.shape_cast %310 : vector<16x32xf32> to vector<2x8x32xf32>
    %312 = vector.extract_strided_slice %254 {offsets = [1, 0], sizes = [1, 32], strides = [1, 1]} : vector<2x32xf32> to vector<1x32xf32>
    %313 = vector.extract_strided_slice %256 {offsets = [1, 0], sizes = [1, 32], strides = [1, 1]} : vector<2x32xf32> to vector<1x32xf32>
    %314 = vector.shape_cast %188 : vector<2x32xf32> to vector<2x1x32xf32>
    %cst_117 = arith.constant 1.000000e+00 : f32
    %315 = vector.broadcast %cst_117 : f32 to vector<2x1x32xf32>
    %316 = arith.addf %315, %314 : vector<2x1x32xf32>
    %317 = vector.broadcast %316 : vector<2x1x32xf32> to vector<2x8x32xf32>
    %318 = arith.mulf %317, %311 : vector<2x8x32xf32>
    %319 = arith.addf %293, %318 : vector<2x8x32xf32>
    %320 = vector.shape_cast %189 : vector<2x32xf32> to vector<2x1x32xf32>
    %321 = vector.broadcast %320 : vector<2x1x32xf32> to vector<2x8x32xf32>
    %322 = arith.addf %319, %321 : vector<2x8x32xf32>
    %cst_118 = arith.constant dense<0.000000e+00> : vector<2x8xf32>
    %323 = vector.multi_reduction <add>, %322, %cst_118 [2] : vector<2x8x32xf32> to vector<2x8xf32>
    %324 = vector.shape_cast %323 : vector<2x8xf32> to vector<2x8x1xf32>
    %cst_119 = arith.constant 3.200000e+01 : f32
    %325 = vector.broadcast %cst_119 : f32 to vector<2x8x1xf32>
    %326 = arith.divf %324, %325 : vector<2x8x1xf32>
    %327 = vector.broadcast %326 : vector<2x8x1xf32> to vector<2x8x32xf32>
    %328 = arith.subf %322, %327 : vector<2x8x32xf32>
    %329 = vector.broadcast %326 : vector<2x8x1xf32> to vector<2x8x32xf32>
    %330 = arith.subf %322, %329 : vector<2x8x32xf32>
    %331 = arith.mulf %328, %330 : vector<2x8x32xf32>
    %cst_120 = arith.constant dense<0.000000e+00> : vector<2x8xf32>
    %332 = vector.multi_reduction <add>, %331, %cst_120 [2] : vector<2x8x32xf32> to vector<2x8xf32>
    %333 = vector.shape_cast %332 : vector<2x8xf32> to vector<2x8x1xf32>
    %cst_121 = arith.constant 3.200000e+01 : f32
    %334 = vector.broadcast %cst_121 : f32 to vector<2x8x1xf32>
    %335 = arith.divf %333, %334 : vector<2x8x1xf32>
    %336 = vector.broadcast %326 : vector<2x8x1xf32> to vector<2x8x32xf32>
    %337 = arith.subf %322, %336 : vector<2x8x32xf32>
    %cst_122 = arith.constant 9.99999974E-6 : f32
    %338 = vector.broadcast %cst_122 : f32 to vector<2x8x1xf32>
    %339 = arith.addf %335, %338 : vector<2x8x1xf32>
    %340 = math.rsqrt %339 : vector<2x8x1xf32>
    %341 = vector.broadcast %340 : vector<2x8x1xf32> to vector<2x8x32xf32>
    %342 = arith.mulf %337, %341 : vector<2x8x32xf32>
    %343 = vector.shape_cast %312 : vector<1x32xf32> to vector<1x1x32xf32>
    %344 = vector.broadcast %343 : vector<1x1x32xf32> to vector<2x8x32xf32>
    %345 = arith.mulf %342, %344 : vector<2x8x32xf32>
    %346 = vector.shape_cast %313 : vector<1x32xf32> to vector<1x1x32xf32>
    %347 = vector.broadcast %346 : vector<1x1x32xf32> to vector<2x8x32xf32>
    %348 = arith.addf %345, %347 : vector<2x8x32xf32>
    %c0_123 = arith.constant 0 : index
    %c0_124 = arith.constant 0 : index
    %c0_125 = arith.constant 0 : index
    %349 = vector.load %arg1[%c0_123, %c0_124, %c0_125] : memref<2x8x32xf32, #tpu.memory_space<vmem>>, vector<2x8x32xf32>
    %350 = vector.extract_strided_slice %5 {offsets = [0, 256], sizes = [2, 32], strides = [1, 1]} : vector<2x640xf32> to vector<2x32xf32>
    %351 = vector.extract_strided_slice %5 {offsets = [0, 288], sizes = [2, 32], strides = [1, 1]} : vector<2x640xf32> to vector<2x32xf32>
    %352 = vector.extract_strided_slice %5 {offsets = [0, 320], sizes = [2, 32], strides = [1, 1]} : vector<2x640xf32> to vector<2x32xf32>
    %353 = vector.extract_strided_slice %5 {offsets = [0, 352], sizes = [2, 32], strides = [1, 1]} : vector<2x640xf32> to vector<2x32xf32>
    %354 = vector.extract_strided_slice %5 {offsets = [0, 384], sizes = [2, 32], strides = [1, 1]} : vector<2x640xf32> to vector<2x32xf32>
    %355 = vector.extract_strided_slice %5 {offsets = [0, 416], sizes = [2, 32], strides = [1, 1]} : vector<2x640xf32> to vector<2x32xf32>
    %356 = vector.shape_cast %349 : vector<2x8x32xf32> to vector<16x32xf32>
    %c0_126 = arith.constant 0 : index
    %c0_127 = arith.constant 0 : index
    %c0_128 = arith.constant 0 : index
    %357 = vector.load %arg20[%c0_126, %c0_127, %c0_128] : memref<2x32x96xf32, #tpu.memory_space<vmem>>, vector<1x32x96xf32>
    %358 = vector.shape_cast %357 : vector<1x32x96xf32> to vector<32x96xf32>
    %cst_129 = arith.constant dense<0.000000e+00> : vector<16x96xf32>
    %359 = tpu.matmul %356, %358, %cst_129 {dimension_numbers = #tpu.dot_dimension_numbers<[1], [0], [0], [1], [0, 0, 1, 1], [], []>} : vector<16x32xf32>, vector<32x96xf32>, vector<16x96xf32> -> vector<16x96xf32>
    %c0_130 = arith.constant 0 : index
    %c0_131 = arith.constant 0 : index
    %c0_132 = arith.constant 0 : index
    %360 = vector.load %arg21[%c0_130, %c0_131, %c0_132] : memref<2x1x96xf32, #tpu.memory_space<vmem>>, vector<1x1x96xf32>
    %361 = vector.shape_cast %360 : vector<1x1x96xf32> to vector<1x96xf32>
    %362 = vector.broadcast %361 : vector<1x96xf32> to vector<16x96xf32>
    %363 = arith.addf %359, %362 : vector<16x96xf32>
    %364 = vector.extract_strided_slice %363 {offsets = [0, 0], sizes = [16, 32], strides = [1, 1]} : vector<16x96xf32> to vector<16x32xf32>
    %365 = vector.shape_cast %364 : vector<16x32xf32> to vector<2x8x32xf32>
    %366 = vector.extract_strided_slice %363 {offsets = [0, 32], sizes = [16, 32], strides = [1, 1]} : vector<16x96xf32> to vector<16x32xf32>
    %367 = vector.shape_cast %366 : vector<16x32xf32> to vector<2x8x32xf32>
    %368 = vector.extract_strided_slice %363 {offsets = [0, 64], sizes = [16, 32], strides = [1, 1]} : vector<16x96xf32> to vector<16x32xf32>
    %369 = vector.shape_cast %368 : vector<16x32xf32> to vector<2x8x32xf32>
    %370 = vector.extract_strided_slice %365 {offsets = [0, 0, 0], sizes = [2, 8, 8], strides = [1, 1, 1]} : vector<2x8x32xf32> to vector<2x8x8xf32>
    %371 = vector.extract_strided_slice %365 {offsets = [0, 0, 8], sizes = [2, 8, 8], strides = [1, 1, 1]} : vector<2x8x32xf32> to vector<2x8x8xf32>
    %372 = vector.extract_strided_slice %365 {offsets = [0, 0, 16], sizes = [2, 8, 8], strides = [1, 1, 1]} : vector<2x8x32xf32> to vector<2x8x8xf32>
    %373 = vector.extract_strided_slice %365 {offsets = [0, 0, 24], sizes = [2, 8, 8], strides = [1, 1, 1]} : vector<2x8x32xf32> to vector<2x8x8xf32>
    %374 = tpu.concatenate %370, %371, %372, %373 in 0 : vector<2x8x8xf32>, vector<2x8x8xf32>, vector<2x8x8xf32>, vector<2x8x8xf32> -> vector<8x8x8xf32>
    %375 = vector.extract_strided_slice %367 {offsets = [0, 0, 0], sizes = [2, 8, 8], strides = [1, 1, 1]} : vector<2x8x32xf32> to vector<2x8x8xf32>
    %376 = vector.extract_strided_slice %367 {offsets = [0, 0, 8], sizes = [2, 8, 8], strides = [1, 1, 1]} : vector<2x8x32xf32> to vector<2x8x8xf32>
    %377 = vector.extract_strided_slice %367 {offsets = [0, 0, 16], sizes = [2, 8, 8], strides = [1, 1, 1]} : vector<2x8x32xf32> to vector<2x8x8xf32>
    %378 = vector.extract_strided_slice %367 {offsets = [0, 0, 24], sizes = [2, 8, 8], strides = [1, 1, 1]} : vector<2x8x32xf32> to vector<2x8x8xf32>
    %379 = tpu.concatenate %375, %376, %377, %378 in 0 : vector<2x8x8xf32>, vector<2x8x8xf32>, vector<2x8x8xf32>, vector<2x8x8xf32> -> vector<8x8x8xf32>
    %380 = vector.extract_strided_slice %369 {offsets = [0, 0, 0], sizes = [2, 8, 8], strides = [1, 1, 1]} : vector<2x8x32xf32> to vector<2x8x8xf32>
    %381 = vector.extract_strided_slice %369 {offsets = [0, 0, 8], sizes = [2, 8, 8], strides = [1, 1, 1]} : vector<2x8x32xf32> to vector<2x8x8xf32>
    %382 = vector.extract_strided_slice %369 {offsets = [0, 0, 16], sizes = [2, 8, 8], strides = [1, 1, 1]} : vector<2x8x32xf32> to vector<2x8x8xf32>
    %383 = vector.extract_strided_slice %369 {offsets = [0, 0, 24], sizes = [2, 8, 8], strides = [1, 1, 1]} : vector<2x8x32xf32> to vector<2x8x8xf32>
    %384 = tpu.concatenate %380, %381, %382, %383 in 0 : vector<2x8x8xf32>, vector<2x8x8xf32>, vector<2x8x8xf32>, vector<2x8x8xf32> -> vector<8x8x8xf32>
    "tpu.trace_start"() <{level = 10 : i32, message = "bqd,bkd->bqk"}> : () -> ()
    %cst_133 = arith.constant dense<0.000000e+00> : vector<8x8x8xf32>
    %385 = tpu.matmul %374, %379, %cst_133 {dimension_numbers = #tpu.dot_dimension_numbers<[2], [2], [1], [1], [0, 0, 0, 1, 1, 1], [0], [0]>} : vector<8x8x8xf32>, vector<8x8x8xf32>, vector<8x8x8xf32> -> vector<8x8x8xf32>
    "tpu.trace_stop"() : () -> ()
    %cst_134 = arith.constant 0.353553385 : f32
    %386 = vector.broadcast %cst_134 : f32 to vector<8x8x8xf32>
    %387 = arith.mulf %385, %386 : vector<8x8x8xf32>
    %388 = vector.shape_cast %387 : vector<8x8x8xf32> to vector<4x2x8x8xf32>
    %389 = vector.shape_cast %19 : vector<2x8x8xf32> to vector<1x2x8x8xf32>
    %390 = vector.broadcast %389 : vector<1x2x8x8xf32> to vector<4x2x8x8xf32>
    %391 = arith.addf %388, %390 : vector<4x2x8x8xf32>
    %392 = vector.shape_cast %391 : vector<4x2x8x8xf32> to vector<8x8x8xf32>
    %cst_135 = arith.constant dense<0xFF800000> : vector<8x8xf32>
    %393 = vector.multi_reduction <maximumf>, %392, %cst_135 [2] : vector<8x8x8xf32> to vector<8x8xf32>
    %394 = vector.shape_cast %393 : vector<8x8xf32> to vector<8x8x1xf32>
    %395 = vector.broadcast %394 : vector<8x8x1xf32> to vector<8x8x8xf32>
    %396 = arith.subf %392, %395 : vector<8x8x8xf32>
    %397 = math.exp %396 : vector<8x8x8xf32>
    %cst_136 = arith.constant dense<0.000000e+00> : vector<8x8xf32>
    %398 = vector.multi_reduction <add>, %397, %cst_136 [2] : vector<8x8x8xf32> to vector<8x8xf32>
    %399 = vector.shape_cast %398 : vector<8x8xf32> to vector<8x8x1xf32>
    %cst_137 = arith.constant 9.99999968E-21 : f32
    %400 = vector.broadcast %cst_137 : f32 to vector<8x8x1xf32>
    %401 = arith.maximumf %399, %400 : vector<8x8x1xf32>
    %402 = vector.broadcast %401 : vector<8x8x1xf32> to vector<8x8x8xf32>
    %403 = arith.divf %397, %402 : vector<8x8x8xf32>
    "tpu.trace_start"() <{level = 10 : i32, message = "bqk,bkd->bqd"}> : () -> ()
    %cst_138 = arith.constant dense<0.000000e+00> : vector<8x8x8xf32>
    %404 = tpu.matmul %403, %384, %cst_138 {dimension_numbers = #tpu.dot_dimension_numbers<[2], [1], [1], [2], [0, 0, 0, 1, 1, 2], [0], [0]>} : vector<8x8x8xf32>, vector<8x8x8xf32>, vector<8x8x8xf32> -> vector<8x8x8xf32>
    "tpu.trace_stop"() : () -> ()
    %405 = vector.extract_strided_slice %404 {offsets = [0, 0, 0], sizes = [2, 8, 8], strides = [1, 1, 1]} : vector<8x8x8xf32> to vector<2x8x8xf32>
    %406 = vector.extract_strided_slice %404 {offsets = [2, 0, 0], sizes = [2, 8, 8], strides = [1, 1, 1]} : vector<8x8x8xf32> to vector<2x8x8xf32>
    %407 = vector.extract_strided_slice %404 {offsets = [4, 0, 0], sizes = [2, 8, 8], strides = [1, 1, 1]} : vector<8x8x8xf32> to vector<2x8x8xf32>
    %408 = vector.extract_strided_slice %404 {offsets = [6, 0, 0], sizes = [2, 8, 8], strides = [1, 1, 1]} : vector<8x8x8xf32> to vector<2x8x8xf32>
    %409 = tpu.concatenate %405, %406, %407, %408 in 2 : vector<2x8x8xf32>, vector<2x8x8xf32>, vector<2x8x8xf32>, vector<2x8x8xf32> -> vector<2x8x32xf32>
    %410 = vector.shape_cast %409 : vector<2x8x32xf32> to vector<16x32xf32>
    %c0_139 = arith.constant 0 : index
    %c0_140 = arith.constant 0 : index
    %c0_141 = arith.constant 0 : index
    %411 = vector.load %arg22[%c0_139, %c0_140, %c0_141] : memref<2x32x32xf32, #tpu.memory_space<vmem>>, vector<1x32x32xf32>
    %412 = vector.shape_cast %411 : vector<1x32x32xf32> to vector<32x32xf32>
    %cst_142 = arith.constant dense<0.000000e+00> : vector<16x32xf32>
    %413 = tpu.matmul %410, %412, %cst_142 {dimension_numbers = #tpu.dot_dimension_numbers<[1], [0], [0], [1], [0, 0, 1, 1], [], []>} : vector<16x32xf32>, vector<32x32xf32>, vector<16x32xf32> -> vector<16x32xf32>
    %c0_143 = arith.constant 0 : index
    %c0_144 = arith.constant 0 : index
    %c0_145 = arith.constant 0 : index
    %414 = vector.load %arg23[%c0_143, %c0_144, %c0_145] : memref<2x1x32xf32, #tpu.memory_space<vmem>>, vector<1x1x32xf32>
    %415 = vector.shape_cast %414 : vector<1x1x32xf32> to vector<1x32xf32>
    %416 = vector.broadcast %415 : vector<1x32xf32> to vector<16x32xf32>
    %417 = arith.addf %413, %416 : vector<16x32xf32>
    %418 = vector.shape_cast %417 : vector<16x32xf32> to vector<2x8x32xf32>
    %c0_146 = arith.constant 0 : index
    %c0_147 = arith.constant 0 : index
    %c0_148 = arith.constant 0 : index
    %419 = vector.load %arg34[%c0_146, %c0_147, %c0_148] : memref<2x3x32xf32, #tpu.memory_space<vmem>>, vector<1x3x32xf32>
    %420 = vector.shape_cast %419 : vector<1x3x32xf32> to vector<3x32xf32>
    %c0_149 = arith.constant 0 : index
    %c0_150 = arith.constant 0 : index
    %c0_151 = arith.constant 0 : index
    %421 = vector.load %arg35[%c0_149, %c0_150, %c0_151] : memref<2x3x32xf32, #tpu.memory_space<vmem>>, vector<1x3x32xf32>
    %422 = vector.shape_cast %421 : vector<1x3x32xf32> to vector<3x32xf32>
    %423 = vector.extract_strided_slice %420 {offsets = [0, 0], sizes = [1, 32], strides = [1, 1]} : vector<3x32xf32> to vector<1x32xf32>
    %424 = vector.extract_strided_slice %422 {offsets = [0, 0], sizes = [1, 32], strides = [1, 1]} : vector<3x32xf32> to vector<1x32xf32>
    %425 = vector.shape_cast %350 : vector<2x32xf32> to vector<2x1x32xf32>
    %cst_152 = arith.constant 1.000000e+00 : f32
    %426 = vector.broadcast %cst_152 : f32 to vector<2x1x32xf32>
    %427 = arith.addf %426, %425 : vector<2x1x32xf32>
    %428 = vector.broadcast %427 : vector<2x1x32xf32> to vector<2x8x32xf32>
    %429 = arith.mulf %428, %418 : vector<2x8x32xf32>
    %430 = arith.addf %349, %429 : vector<2x8x32xf32>
    %431 = vector.shape_cast %351 : vector<2x32xf32> to vector<2x1x32xf32>
    %432 = vector.broadcast %431 : vector<2x1x32xf32> to vector<2x8x32xf32>
    %433 = arith.addf %430, %432 : vector<2x8x32xf32>
    %cst_153 = arith.constant dense<0.000000e+00> : vector<2x8xf32>
    %434 = vector.multi_reduction <add>, %433, %cst_153 [2] : vector<2x8x32xf32> to vector<2x8xf32>
    %435 = vector.shape_cast %434 : vector<2x8xf32> to vector<2x8x1xf32>
    %cst_154 = arith.constant 3.200000e+01 : f32
    %436 = vector.broadcast %cst_154 : f32 to vector<2x8x1xf32>
    %437 = arith.divf %435, %436 : vector<2x8x1xf32>
    %438 = vector.broadcast %437 : vector<2x8x1xf32> to vector<2x8x32xf32>
    %439 = arith.subf %433, %438 : vector<2x8x32xf32>
    %440 = vector.broadcast %437 : vector<2x8x1xf32> to vector<2x8x32xf32>
    %441 = arith.subf %433, %440 : vector<2x8x32xf32>
    %442 = arith.mulf %439, %441 : vector<2x8x32xf32>
    %cst_155 = arith.constant dense<0.000000e+00> : vector<2x8xf32>
    %443 = vector.multi_reduction <add>, %442, %cst_155 [2] : vector<2x8x32xf32> to vector<2x8xf32>
    %444 = vector.shape_cast %443 : vector<2x8xf32> to vector<2x8x1xf32>
    %cst_156 = arith.constant 3.200000e+01 : f32
    %445 = vector.broadcast %cst_156 : f32 to vector<2x8x1xf32>
    %446 = arith.divf %444, %445 : vector<2x8x1xf32>
    %447 = vector.broadcast %437 : vector<2x8x1xf32> to vector<2x8x32xf32>
    %448 = arith.subf %433, %447 : vector<2x8x32xf32>
    %cst_157 = arith.constant 9.99999974E-6 : f32
    %449 = vector.broadcast %cst_157 : f32 to vector<2x8x1xf32>
    %450 = arith.addf %446, %449 : vector<2x8x1xf32>
    %451 = math.rsqrt %450 : vector<2x8x1xf32>
    %452 = vector.broadcast %451 : vector<2x8x1xf32> to vector<2x8x32xf32>
    %453 = arith.mulf %448, %452 : vector<2x8x32xf32>
    %454 = vector.shape_cast %423 : vector<1x32xf32> to vector<1x1x32xf32>
    %455 = vector.broadcast %454 : vector<1x1x32xf32> to vector<2x8x32xf32>
    %456 = arith.mulf %453, %455 : vector<2x8x32xf32>
    %457 = vector.shape_cast %424 : vector<1x32xf32> to vector<1x1x32xf32>
    %458 = vector.broadcast %457 : vector<1x1x32xf32> to vector<2x8x32xf32>
    %459 = arith.addf %456, %458 : vector<2x8x32xf32>
    %460 = vector.shape_cast %459 : vector<2x8x32xf32> to vector<16x32xf32>
    %c0_158 = arith.constant 0 : index
    %c0_159 = arith.constant 0 : index
    %c0_160 = arith.constant 0 : index
    %461 = vector.load %arg24[%c0_158, %c0_159, %c0_160] : memref<2x32x32xf32, #tpu.memory_space<vmem>>, vector<1x32x32xf32>
    %462 = vector.shape_cast %461 : vector<1x32x32xf32> to vector<32x32xf32>
    %cst_161 = arith.constant dense<0.000000e+00> : vector<16x32xf32>
    %463 = tpu.matmul %460, %462, %cst_161 {dimension_numbers = #tpu.dot_dimension_numbers<[1], [0], [0], [1], [0, 0, 1, 1], [], []>} : vector<16x32xf32>, vector<32x32xf32>, vector<16x32xf32> -> vector<16x32xf32>
    %c0_162 = arith.constant 0 : index
    %c0_163 = arith.constant 0 : index
    %c0_164 = arith.constant 0 : index
    %464 = vector.load %arg25[%c0_162, %c0_163, %c0_164] : memref<2x1x32xf32, #tpu.memory_space<vmem>>, vector<1x1x32xf32>
    %465 = vector.shape_cast %464 : vector<1x1x32xf32> to vector<1x32xf32>
    %466 = vector.broadcast %465 : vector<1x32xf32> to vector<16x32xf32>
    %467 = arith.addf %463, %466 : vector<16x32xf32>
    %468 = vector.shape_cast %467 : vector<16x32xf32> to vector<2x8x32xf32>
    %469 = vector.shape_cast %348 : vector<2x8x32xf32> to vector<16x32xf32>
    %c0_165 = arith.constant 0 : index
    %c0_166 = arith.constant 0 : index
    %c0_167 = arith.constant 0 : index
    %470 = vector.load %arg26[%c0_165, %c0_166, %c0_167] : memref<2x32x64xf32, #tpu.memory_space<vmem>>, vector<1x32x64xf32>
    %471 = vector.shape_cast %470 : vector<1x32x64xf32> to vector<32x64xf32>
    %cst_168 = arith.constant dense<0.000000e+00> : vector<16x64xf32>
    %472 = tpu.matmul %469, %471, %cst_168 {dimension_numbers = #tpu.dot_dimension_numbers<[1], [0], [0], [1], [0, 0, 1, 1], [], []>} : vector<16x32xf32>, vector<32x64xf32>, vector<16x64xf32> -> vector<16x64xf32>
    %c0_169 = arith.constant 0 : index
    %c0_170 = arith.constant 0 : index
    %c0_171 = arith.constant 0 : index
    %473 = vector.load %arg27[%c0_169, %c0_170, %c0_171] : memref<2x1x64xf32, #tpu.memory_space<vmem>>, vector<1x1x64xf32>
    %474 = vector.shape_cast %473 : vector<1x1x64xf32> to vector<1x64xf32>
    %475 = vector.broadcast %474 : vector<1x64xf32> to vector<16x64xf32>
    %476 = arith.addf %472, %475 : vector<16x64xf32>
    %477 = vector.extract_strided_slice %476 {offsets = [0, 0], sizes = [16, 32], strides = [1, 1]} : vector<16x64xf32> to vector<16x32xf32>
    %478 = vector.shape_cast %477 : vector<16x32xf32> to vector<2x8x32xf32>
    %479 = vector.extract_strided_slice %476 {offsets = [0, 32], sizes = [16, 32], strides = [1, 1]} : vector<16x64xf32> to vector<16x32xf32>
    %480 = vector.shape_cast %479 : vector<16x32xf32> to vector<2x8x32xf32>
    %481 = vector.extract_strided_slice %468 {offsets = [0, 0, 0], sizes = [2, 8, 8], strides = [1, 1, 1]} : vector<2x8x32xf32> to vector<2x8x8xf32>
    %482 = vector.extract_strided_slice %468 {offsets = [0, 0, 8], sizes = [2, 8, 8], strides = [1, 1, 1]} : vector<2x8x32xf32> to vector<2x8x8xf32>
    %483 = vector.extract_strided_slice %468 {offsets = [0, 0, 16], sizes = [2, 8, 8], strides = [1, 1, 1]} : vector<2x8x32xf32> to vector<2x8x8xf32>
    %484 = vector.extract_strided_slice %468 {offsets = [0, 0, 24], sizes = [2, 8, 8], strides = [1, 1, 1]} : vector<2x8x32xf32> to vector<2x8x8xf32>
    %485 = tpu.concatenate %481, %482, %483, %484 in 0 : vector<2x8x8xf32>, vector<2x8x8xf32>, vector<2x8x8xf32>, vector<2x8x8xf32> -> vector<8x8x8xf32>
    %486 = vector.extract_strided_slice %478 {offsets = [0, 0, 0], sizes = [2, 8, 8], strides = [1, 1, 1]} : vector<2x8x32xf32> to vector<2x8x8xf32>
    %487 = vector.extract_strided_slice %478 {offsets = [0, 0, 8], sizes = [2, 8, 8], strides = [1, 1, 1]} : vector<2x8x32xf32> to vector<2x8x8xf32>
    %488 = vector.extract_strided_slice %478 {offsets = [0, 0, 16], sizes = [2, 8, 8], strides = [1, 1, 1]} : vector<2x8x32xf32> to vector<2x8x8xf32>
    %489 = vector.extract_strided_slice %478 {offsets = [0, 0, 24], sizes = [2, 8, 8], strides = [1, 1, 1]} : vector<2x8x32xf32> to vector<2x8x8xf32>
    %490 = tpu.concatenate %486, %487, %488, %489 in 0 : vector<2x8x8xf32>, vector<2x8x8xf32>, vector<2x8x8xf32>, vector<2x8x8xf32> -> vector<8x8x8xf32>
    %491 = vector.extract_strided_slice %480 {offsets = [0, 0, 0], sizes = [2, 8, 8], strides = [1, 1, 1]} : vector<2x8x32xf32> to vector<2x8x8xf32>
    %492 = vector.extract_strided_slice %480 {offsets = [0, 0, 8], sizes = [2, 8, 8], strides = [1, 1, 1]} : vector<2x8x32xf32> to vector<2x8x8xf32>
    %493 = vector.extract_strided_slice %480 {offsets = [0, 0, 16], sizes = [2, 8, 8], strides = [1, 1, 1]} : vector<2x8x32xf32> to vector<2x8x8xf32>
    %494 = vector.extract_strided_slice %480 {offsets = [0, 0, 24], sizes = [2, 8, 8], strides = [1, 1, 1]} : vector<2x8x32xf32> to vector<2x8x8xf32>
    %495 = tpu.concatenate %491, %492, %493, %494 in 0 : vector<2x8x8xf32>, vector<2x8x8xf32>, vector<2x8x8xf32>, vector<2x8x8xf32> -> vector<8x8x8xf32>
    "tpu.trace_start"() <{level = 10 : i32, message = "bqd,bkd->bqk"}> : () -> ()
    %cst_172 = arith.constant dense<0.000000e+00> : vector<8x8x8xf32>
    %496 = tpu.matmul %485, %490, %cst_172 {dimension_numbers = #tpu.dot_dimension_numbers<[2], [2], [1], [1], [0, 0, 0, 1, 1, 1], [0], [0]>} : vector<8x8x8xf32>, vector<8x8x8xf32>, vector<8x8x8xf32> -> vector<8x8x8xf32>
    "tpu.trace_stop"() : () -> ()
    %cst_173 = arith.constant 0.353553385 : f32
    %497 = vector.broadcast %cst_173 : f32 to vector<8x8x8xf32>
    %498 = arith.mulf %496, %497 : vector<8x8x8xf32>
    %499 = vector.shape_cast %498 : vector<8x8x8xf32> to vector<4x2x8x8xf32>
    %500 = vector.shape_cast %21 : vector<2x1x8xf32> to vector<1x2x1x8xf32>
    %501 = vector.broadcast %500 : vector<1x2x1x8xf32> to vector<4x2x8x8xf32>
    %502 = arith.addf %499, %501 : vector<4x2x8x8xf32>
    %503 = vector.shape_cast %502 : vector<4x2x8x8xf32> to vector<8x8x8xf32>
    %cst_174 = arith.constant dense<0xFF800000> : vector<8x8xf32>
    %504 = vector.multi_reduction <maximumf>, %503, %cst_174 [2] : vector<8x8x8xf32> to vector<8x8xf32>
    %505 = vector.shape_cast %504 : vector<8x8xf32> to vector<8x8x1xf32>
    %506 = vector.broadcast %505 : vector<8x8x1xf32> to vector<8x8x8xf32>
    %507 = arith.subf %503, %506 : vector<8x8x8xf32>
    %508 = math.exp %507 : vector<8x8x8xf32>
    %cst_175 = arith.constant dense<0.000000e+00> : vector<8x8xf32>
    %509 = vector.multi_reduction <add>, %508, %cst_175 [2] : vector<8x8x8xf32> to vector<8x8xf32>
    %510 = vector.shape_cast %509 : vector<8x8xf32> to vector<8x8x1xf32>
    %cst_176 = arith.constant 9.99999968E-21 : f32
    %511 = vector.broadcast %cst_176 : f32 to vector<8x8x1xf32>
    %512 = arith.maximumf %510, %511 : vector<8x8x1xf32>
    %513 = vector.broadcast %512 : vector<8x8x1xf32> to vector<8x8x8xf32>
    %514 = arith.divf %508, %513 : vector<8x8x8xf32>
    "tpu.trace_start"() <{level = 10 : i32, message = "bqk,bkd->bqd"}> : () -> ()
    %cst_177 = arith.constant dense<0.000000e+00> : vector<8x8x8xf32>
    %515 = tpu.matmul %514, %495, %cst_177 {dimension_numbers = #tpu.dot_dimension_numbers<[2], [1], [1], [2], [0, 0, 0, 1, 1, 2], [0], [0]>} : vector<8x8x8xf32>, vector<8x8x8xf32>, vector<8x8x8xf32> -> vector<8x8x8xf32>
    "tpu.trace_stop"() : () -> ()
    %516 = vector.extract_strided_slice %515 {offsets = [0, 0, 0], sizes = [2, 8, 8], strides = [1, 1, 1]} : vector<8x8x8xf32> to vector<2x8x8xf32>
    %517 = vector.extract_strided_slice %515 {offsets = [2, 0, 0], sizes = [2, 8, 8], strides = [1, 1, 1]} : vector<8x8x8xf32> to vector<2x8x8xf32>
    %518 = vector.extract_strided_slice %515 {offsets = [4, 0, 0], sizes = [2, 8, 8], strides = [1, 1, 1]} : vector<8x8x8xf32> to vector<2x8x8xf32>
    %519 = vector.extract_strided_slice %515 {offsets = [6, 0, 0], sizes = [2, 8, 8], strides = [1, 1, 1]} : vector<8x8x8xf32> to vector<2x8x8xf32>
    %520 = tpu.concatenate %516, %517, %518, %519 in 2 : vector<2x8x8xf32>, vector<2x8x8xf32>, vector<2x8x8xf32>, vector<2x8x8xf32> -> vector<2x8x32xf32>
    %521 = vector.shape_cast %520 : vector<2x8x32xf32> to vector<16x32xf32>
    %c0_178 = arith.constant 0 : index
    %c0_179 = arith.constant 0 : index
    %c0_180 = arith.constant 0 : index
    %522 = vector.load %arg28[%c0_178, %c0_179, %c0_180] : memref<2x32x32xf32, #tpu.memory_space<vmem>>, vector<1x32x32xf32>
    %523 = vector.shape_cast %522 : vector<1x32x32xf32> to vector<32x32xf32>
    %cst_181 = arith.constant dense<0.000000e+00> : vector<16x32xf32>
    %524 = tpu.matmul %521, %523, %cst_181 {dimension_numbers = #tpu.dot_dimension_numbers<[1], [0], [0], [1], [0, 0, 1, 1], [], []>} : vector<16x32xf32>, vector<32x32xf32>, vector<16x32xf32> -> vector<16x32xf32>
    %c0_182 = arith.constant 0 : index
    %c0_183 = arith.constant 0 : index
    %c0_184 = arith.constant 0 : index
    %525 = vector.load %arg29[%c0_182, %c0_183, %c0_184] : memref<2x1x32xf32, #tpu.memory_space<vmem>>, vector<1x1x32xf32>
    %526 = vector.shape_cast %525 : vector<1x1x32xf32> to vector<1x32xf32>
    %527 = vector.broadcast %526 : vector<1x32xf32> to vector<16x32xf32>
    %528 = arith.addf %524, %527 : vector<16x32xf32>
    %529 = vector.shape_cast %528 : vector<16x32xf32> to vector<2x8x32xf32>
    %530 = vector.extract_strided_slice %420 {offsets = [1, 0], sizes = [1, 32], strides = [1, 1]} : vector<3x32xf32> to vector<1x32xf32>
    %531 = vector.extract_strided_slice %422 {offsets = [1, 0], sizes = [1, 32], strides = [1, 1]} : vector<3x32xf32> to vector<1x32xf32>
    %532 = vector.shape_cast %352 : vector<2x32xf32> to vector<2x1x32xf32>
    %cst_185 = arith.constant 1.000000e+00 : f32
    %533 = vector.broadcast %cst_185 : f32 to vector<2x1x32xf32>
    %534 = arith.addf %533, %532 : vector<2x1x32xf32>
    %535 = vector.broadcast %534 : vector<2x1x32xf32> to vector<2x8x32xf32>
    %536 = arith.mulf %535, %529 : vector<2x8x32xf32>
    %537 = arith.addf %459, %536 : vector<2x8x32xf32>
    %538 = vector.shape_cast %353 : vector<2x32xf32> to vector<2x1x32xf32>
    %539 = vector.broadcast %538 : vector<2x1x32xf32> to vector<2x8x32xf32>
    %540 = arith.addf %537, %539 : vector<2x8x32xf32>
    %cst_186 = arith.constant dense<0.000000e+00> : vector<2x8xf32>
    %541 = vector.multi_reduction <add>, %540, %cst_186 [2] : vector<2x8x32xf32> to vector<2x8xf32>
    %542 = vector.shape_cast %541 : vector<2x8xf32> to vector<2x8x1xf32>
    %cst_187 = arith.constant 3.200000e+01 : f32
    %543 = vector.broadcast %cst_187 : f32 to vector<2x8x1xf32>
    %544 = arith.divf %542, %543 : vector<2x8x1xf32>
    %545 = vector.broadcast %544 : vector<2x8x1xf32> to vector<2x8x32xf32>
    %546 = arith.subf %540, %545 : vector<2x8x32xf32>
    %547 = vector.broadcast %544 : vector<2x8x1xf32> to vector<2x8x32xf32>
    %548 = arith.subf %540, %547 : vector<2x8x32xf32>
    %549 = arith.mulf %546, %548 : vector<2x8x32xf32>
    %cst_188 = arith.constant dense<0.000000e+00> : vector<2x8xf32>
    %550 = vector.multi_reduction <add>, %549, %cst_188 [2] : vector<2x8x32xf32> to vector<2x8xf32>
    %551 = vector.shape_cast %550 : vector<2x8xf32> to vector<2x8x1xf32>
    %cst_189 = arith.constant 3.200000e+01 : f32
    %552 = vector.broadcast %cst_189 : f32 to vector<2x8x1xf32>
    %553 = arith.divf %551, %552 : vector<2x8x1xf32>
    %554 = vector.broadcast %544 : vector<2x8x1xf32> to vector<2x8x32xf32>
    %555 = arith.subf %540, %554 : vector<2x8x32xf32>
    %cst_190 = arith.constant 9.99999974E-6 : f32
    %556 = vector.broadcast %cst_190 : f32 to vector<2x8x1xf32>
    %557 = arith.addf %553, %556 : vector<2x8x1xf32>
    %558 = math.rsqrt %557 : vector<2x8x1xf32>
    %559 = vector.broadcast %558 : vector<2x8x1xf32> to vector<2x8x32xf32>
    %560 = arith.mulf %555, %559 : vector<2x8x32xf32>
    %561 = vector.shape_cast %530 : vector<1x32xf32> to vector<1x1x32xf32>
    %562 = vector.broadcast %561 : vector<1x1x32xf32> to vector<2x8x32xf32>
    %563 = arith.mulf %560, %562 : vector<2x8x32xf32>
    %564 = vector.shape_cast %531 : vector<1x32xf32> to vector<1x1x32xf32>
    %565 = vector.broadcast %564 : vector<1x1x32xf32> to vector<2x8x32xf32>
    %566 = arith.addf %563, %565 : vector<2x8x32xf32>
    %567 = vector.shape_cast %566 : vector<2x8x32xf32> to vector<16x32xf32>
    %c0_191 = arith.constant 0 : index
    %c0_192 = arith.constant 0 : index
    %c0_193 = arith.constant 0 : index
    %568 = vector.load %arg30[%c0_191, %c0_192, %c0_193] : memref<2x32x32xf32, #tpu.memory_space<vmem>>, vector<1x32x32xf32>
    %569 = vector.shape_cast %568 : vector<1x32x32xf32> to vector<32x32xf32>
    %cst_194 = arith.constant dense<0.000000e+00> : vector<16x32xf32>
    %570 = tpu.matmul %567, %569, %cst_194 {dimension_numbers = #tpu.dot_dimension_numbers<[1], [0], [0], [1], [0, 0, 1, 1], [], []>} : vector<16x32xf32>, vector<32x32xf32>, vector<16x32xf32> -> vector<16x32xf32>
    %c0_195 = arith.constant 0 : index
    %c0_196 = arith.constant 0 : index
    %c0_197 = arith.constant 0 : index
    %571 = vector.load %arg31[%c0_195, %c0_196, %c0_197] : memref<2x1x32xf32, #tpu.memory_space<vmem>>, vector<1x1x32xf32>
    %572 = vector.shape_cast %571 : vector<1x1x32xf32> to vector<1x32xf32>
    %573 = vector.broadcast %572 : vector<1x32xf32> to vector<16x32xf32>
    %574 = arith.addf %570, %573 : vector<16x32xf32>
    %cst_198 = arith.constant 0.000000e+00 : f32
    %575 = vector.broadcast %cst_198 : f32 to vector<16x32xf32>
    %576 = arith.maximumf %574, %575 : vector<16x32xf32>
    %c0_199 = arith.constant 0 : index
    %c0_200 = arith.constant 0 : index
    %c0_201 = arith.constant 0 : index
    %577 = vector.load %arg32[%c0_199, %c0_200, %c0_201] : memref<2x32x32xf32, #tpu.memory_space<vmem>>, vector<1x32x32xf32>
    %578 = vector.shape_cast %577 : vector<1x32x32xf32> to vector<32x32xf32>
    %cst_202 = arith.constant dense<0.000000e+00> : vector<16x32xf32>
    %579 = tpu.matmul %576, %578, %cst_202 {dimension_numbers = #tpu.dot_dimension_numbers<[1], [0], [0], [1], [0, 0, 1, 1], [], []>} : vector<16x32xf32>, vector<32x32xf32>, vector<16x32xf32> -> vector<16x32xf32>
    %c0_203 = arith.constant 0 : index
    %c0_204 = arith.constant 0 : index
    %c0_205 = arith.constant 0 : index
    %580 = vector.load %arg33[%c0_203, %c0_204, %c0_205] : memref<2x1x32xf32, #tpu.memory_space<vmem>>, vector<1x1x32xf32>
    %581 = vector.shape_cast %580 : vector<1x1x32xf32> to vector<1x32xf32>
    %582 = vector.broadcast %581 : vector<1x32xf32> to vector<16x32xf32>
    %583 = arith.addf %579, %582 : vector<16x32xf32>
    %584 = vector.shape_cast %583 : vector<16x32xf32> to vector<2x8x32xf32>
    %585 = vector.extract_strided_slice %420 {offsets = [2, 0], sizes = [1, 32], strides = [1, 1]} : vector<3x32xf32> to vector<1x32xf32>
    %586 = vector.extract_strided_slice %422 {offsets = [2, 0], sizes = [1, 32], strides = [1, 1]} : vector<3x32xf32> to vector<1x32xf32>
    %587 = vector.shape_cast %354 : vector<2x32xf32> to vector<2x1x32xf32>
    %cst_206 = arith.constant 1.000000e+00 : f32
    %588 = vector.broadcast %cst_206 : f32 to vector<2x1x32xf32>
    %589 = arith.addf %588, %587 : vector<2x1x32xf32>
    %590 = vector.broadcast %589 : vector<2x1x32xf32> to vector<2x8x32xf32>
    %591 = arith.mulf %590, %584 : vector<2x8x32xf32>
    %592 = arith.addf %566, %591 : vector<2x8x32xf32>
    %593 = vector.shape_cast %355 : vector<2x32xf32> to vector<2x1x32xf32>
    %594 = vector.broadcast %593 : vector<2x1x32xf32> to vector<2x8x32xf32>
    %595 = arith.addf %592, %594 : vector<2x8x32xf32>
    %cst_207 = arith.constant dense<0.000000e+00> : vector<2x8xf32>
    %596 = vector.multi_reduction <add>, %595, %cst_207 [2] : vector<2x8x32xf32> to vector<2x8xf32>
    %597 = vector.shape_cast %596 : vector<2x8xf32> to vector<2x8x1xf32>
    %cst_208 = arith.constant 3.200000e+01 : f32
    %598 = vector.broadcast %cst_208 : f32 to vector<2x8x1xf32>
    %599 = arith.divf %597, %598 : vector<2x8x1xf32>
    %600 = vector.broadcast %599 : vector<2x8x1xf32> to vector<2x8x32xf32>
    %601 = arith.subf %595, %600 : vector<2x8x32xf32>
    %602 = vector.broadcast %599 : vector<2x8x1xf32> to vector<2x8x32xf32>
    %603 = arith.subf %595, %602 : vector<2x8x32xf32>
    %604 = arith.mulf %601, %603 : vector<2x8x32xf32>
    %cst_209 = arith.constant dense<0.000000e+00> : vector<2x8xf32>
    %605 = vector.multi_reduction <add>, %604, %cst_209 [2] : vector<2x8x32xf32> to vector<2x8xf32>
    %606 = vector.shape_cast %605 : vector<2x8xf32> to vector<2x8x1xf32>
    %cst_210 = arith.constant 3.200000e+01 : f32
    %607 = vector.broadcast %cst_210 : f32 to vector<2x8x1xf32>
    %608 = arith.divf %606, %607 : vector<2x8x1xf32>
    %609 = vector.broadcast %599 : vector<2x8x1xf32> to vector<2x8x32xf32>
    %610 = arith.subf %595, %609 : vector<2x8x32xf32>
    %cst_211 = arith.constant 9.99999974E-6 : f32
    %611 = vector.broadcast %cst_211 : f32 to vector<2x8x1xf32>
    %612 = arith.addf %608, %611 : vector<2x8x1xf32>
    %613 = math.rsqrt %612 : vector<2x8x1xf32>
    %614 = vector.broadcast %613 : vector<2x8x1xf32> to vector<2x8x32xf32>
    %615 = arith.mulf %610, %614 : vector<2x8x32xf32>
    %616 = vector.shape_cast %585 : vector<1x32xf32> to vector<1x1x32xf32>
    %617 = vector.broadcast %616 : vector<1x1x32xf32> to vector<2x8x32xf32>
    %618 = arith.mulf %615, %617 : vector<2x8x32xf32>
    %619 = vector.shape_cast %586 : vector<1x32xf32> to vector<1x1x32xf32>
    %620 = vector.broadcast %619 : vector<1x1x32xf32> to vector<2x8x32xf32>
    %621 = arith.addf %618, %620 : vector<2x8x32xf32>
    %622 = vector.extract_strided_slice %5 {offsets = [0, 448], sizes = [2, 32], strides = [1, 1]} : vector<2x640xf32> to vector<2x32xf32>
    %623 = vector.extract_strided_slice %5 {offsets = [0, 480], sizes = [2, 32], strides = [1, 1]} : vector<2x640xf32> to vector<2x32xf32>
    %624 = vector.extract_strided_slice %5 {offsets = [0, 512], sizes = [2, 32], strides = [1, 1]} : vector<2x640xf32> to vector<2x32xf32>
    %625 = vector.extract_strided_slice %5 {offsets = [0, 544], sizes = [2, 32], strides = [1, 1]} : vector<2x640xf32> to vector<2x32xf32>
    %626 = vector.extract_strided_slice %5 {offsets = [0, 576], sizes = [2, 32], strides = [1, 1]} : vector<2x640xf32> to vector<2x32xf32>
    %627 = vector.extract_strided_slice %5 {offsets = [0, 608], sizes = [2, 32], strides = [1, 1]} : vector<2x640xf32> to vector<2x32xf32>
    %628 = vector.shape_cast %621 : vector<2x8x32xf32> to vector<16x32xf32>
    %c1_212 = arith.constant 1 : index
    %c0_213 = arith.constant 0 : index
    %c0_214 = arith.constant 0 : index
    %629 = vector.load %arg20[%c1_212, %c0_213, %c0_214] : memref<2x32x96xf32, #tpu.memory_space<vmem>>, vector<1x32x96xf32>
    %630 = vector.shape_cast %629 : vector<1x32x96xf32> to vector<32x96xf32>
    %cst_215 = arith.constant dense<0.000000e+00> : vector<16x96xf32>
    %631 = tpu.matmul %628, %630, %cst_215 {dimension_numbers = #tpu.dot_dimension_numbers<[1], [0], [0], [1], [0, 0, 1, 1], [], []>} : vector<16x32xf32>, vector<32x96xf32>, vector<16x96xf32> -> vector<16x96xf32>
    %c1_216 = arith.constant 1 : index
    %c0_217 = arith.constant 0 : index
    %c0_218 = arith.constant 0 : index
    %632 = vector.load %arg21[%c1_216, %c0_217, %c0_218] : memref<2x1x96xf32, #tpu.memory_space<vmem>>, vector<1x1x96xf32>
    %633 = vector.shape_cast %632 : vector<1x1x96xf32> to vector<1x96xf32>
    %634 = vector.broadcast %633 : vector<1x96xf32> to vector<16x96xf32>
    %635 = arith.addf %631, %634 : vector<16x96xf32>
    %636 = vector.extract_strided_slice %635 {offsets = [0, 0], sizes = [16, 32], strides = [1, 1]} : vector<16x96xf32> to vector<16x32xf32>
    %637 = vector.shape_cast %636 : vector<16x32xf32> to vector<2x8x32xf32>
    %638 = vector.extract_strided_slice %635 {offsets = [0, 32], sizes = [16, 32], strides = [1, 1]} : vector<16x96xf32> to vector<16x32xf32>
    %639 = vector.shape_cast %638 : vector<16x32xf32> to vector<2x8x32xf32>
    %640 = vector.extract_strided_slice %635 {offsets = [0, 64], sizes = [16, 32], strides = [1, 1]} : vector<16x96xf32> to vector<16x32xf32>
    %641 = vector.shape_cast %640 : vector<16x32xf32> to vector<2x8x32xf32>
    %642 = vector.extract_strided_slice %637 {offsets = [0, 0, 0], sizes = [2, 8, 8], strides = [1, 1, 1]} : vector<2x8x32xf32> to vector<2x8x8xf32>
    %643 = vector.extract_strided_slice %637 {offsets = [0, 0, 8], sizes = [2, 8, 8], strides = [1, 1, 1]} : vector<2x8x32xf32> to vector<2x8x8xf32>
    %644 = vector.extract_strided_slice %637 {offsets = [0, 0, 16], sizes = [2, 8, 8], strides = [1, 1, 1]} : vector<2x8x32xf32> to vector<2x8x8xf32>
    %645 = vector.extract_strided_slice %637 {offsets = [0, 0, 24], sizes = [2, 8, 8], strides = [1, 1, 1]} : vector<2x8x32xf32> to vector<2x8x8xf32>
    %646 = tpu.concatenate %642, %643, %644, %645 in 0 : vector<2x8x8xf32>, vector<2x8x8xf32>, vector<2x8x8xf32>, vector<2x8x8xf32> -> vector<8x8x8xf32>
    %647 = vector.extract_strided_slice %639 {offsets = [0, 0, 0], sizes = [2, 8, 8], strides = [1, 1, 1]} : vector<2x8x32xf32> to vector<2x8x8xf32>
    %648 = vector.extract_strided_slice %639 {offsets = [0, 0, 8], sizes = [2, 8, 8], strides = [1, 1, 1]} : vector<2x8x32xf32> to vector<2x8x8xf32>
    %649 = vector.extract_strided_slice %639 {offsets = [0, 0, 16], sizes = [2, 8, 8], strides = [1, 1, 1]} : vector<2x8x32xf32> to vector<2x8x8xf32>
    %650 = vector.extract_strided_slice %639 {offsets = [0, 0, 24], sizes = [2, 8, 8], strides = [1, 1, 1]} : vector<2x8x32xf32> to vector<2x8x8xf32>
    %651 = tpu.concatenate %647, %648, %649, %650 in 0 : vector<2x8x8xf32>, vector<2x8x8xf32>, vector<2x8x8xf32>, vector<2x8x8xf32> -> vector<8x8x8xf32>
    %652 = vector.extract_strided_slice %641 {offsets = [0, 0, 0], sizes = [2, 8, 8], strides = [1, 1, 1]} : vector<2x8x32xf32> to vector<2x8x8xf32>
    %653 = vector.extract_strided_slice %641 {offsets = [0, 0, 8], sizes = [2, 8, 8], strides = [1, 1, 1]} : vector<2x8x32xf32> to vector<2x8x8xf32>
    %654 = vector.extract_strided_slice %641 {offsets = [0, 0, 16], sizes = [2, 8, 8], strides = [1, 1, 1]} : vector<2x8x32xf32> to vector<2x8x8xf32>
    %655 = vector.extract_strided_slice %641 {offsets = [0, 0, 24], sizes = [2, 8, 8], strides = [1, 1, 1]} : vector<2x8x32xf32> to vector<2x8x8xf32>
    %656 = tpu.concatenate %652, %653, %654, %655 in 0 : vector<2x8x8xf32>, vector<2x8x8xf32>, vector<2x8x8xf32>, vector<2x8x8xf32> -> vector<8x8x8xf32>
    "tpu.trace_start"() <{level = 10 : i32, message = "bqd,bkd->bqk"}> : () -> ()
    %cst_219 = arith.constant dense<0.000000e+00> : vector<8x8x8xf32>
    %657 = tpu.matmul %646, %651, %cst_219 {dimension_numbers = #tpu.dot_dimension_numbers<[2], [2], [1], [1], [0, 0, 0, 1, 1, 1], [0], [0]>} : vector<8x8x8xf32>, vector<8x8x8xf32>, vector<8x8x8xf32> -> vector<8x8x8xf32>
    "tpu.trace_stop"() : () -> ()
    %cst_220 = arith.constant 0.353553385 : f32
    %658 = vector.broadcast %cst_220 : f32 to vector<8x8x8xf32>
    %659 = arith.mulf %657, %658 : vector<8x8x8xf32>
    %660 = vector.shape_cast %659 : vector<8x8x8xf32> to vector<4x2x8x8xf32>
    %661 = vector.shape_cast %19 : vector<2x8x8xf32> to vector<1x2x8x8xf32>
    %662 = vector.broadcast %661 : vector<1x2x8x8xf32> to vector<4x2x8x8xf32>
    %663 = arith.addf %660, %662 : vector<4x2x8x8xf32>
    %664 = vector.shape_cast %663 : vector<4x2x8x8xf32> to vector<8x8x8xf32>
    %cst_221 = arith.constant dense<0xFF800000> : vector<8x8xf32>
    %665 = vector.multi_reduction <maximumf>, %664, %cst_221 [2] : vector<8x8x8xf32> to vector<8x8xf32>
    %666 = vector.shape_cast %665 : vector<8x8xf32> to vector<8x8x1xf32>
    %667 = vector.broadcast %666 : vector<8x8x1xf32> to vector<8x8x8xf32>
    %668 = arith.subf %664, %667 : vector<8x8x8xf32>
    %669 = math.exp %668 : vector<8x8x8xf32>
    %cst_222 = arith.constant dense<0.000000e+00> : vector<8x8xf32>
    %670 = vector.multi_reduction <add>, %669, %cst_222 [2] : vector<8x8x8xf32> to vector<8x8xf32>
    %671 = vector.shape_cast %670 : vector<8x8xf32> to vector<8x8x1xf32>
    %cst_223 = arith.constant 9.99999968E-21 : f32
    %672 = vector.broadcast %cst_223 : f32 to vector<8x8x1xf32>
    %673 = arith.maximumf %671, %672 : vector<8x8x1xf32>
    %674 = vector.broadcast %673 : vector<8x8x1xf32> to vector<8x8x8xf32>
    %675 = arith.divf %669, %674 : vector<8x8x8xf32>
    "tpu.trace_start"() <{level = 10 : i32, message = "bqk,bkd->bqd"}> : () -> ()
    %cst_224 = arith.constant dense<0.000000e+00> : vector<8x8x8xf32>
    %676 = tpu.matmul %675, %656, %cst_224 {dimension_numbers = #tpu.dot_dimension_numbers<[2], [1], [1], [2], [0, 0, 0, 1, 1, 2], [0], [0]>} : vector<8x8x8xf32>, vector<8x8x8xf32>, vector<8x8x8xf32> -> vector<8x8x8xf32>
    "tpu.trace_stop"() : () -> ()
    %677 = vector.extract_strided_slice %676 {offsets = [0, 0, 0], sizes = [2, 8, 8], strides = [1, 1, 1]} : vector<8x8x8xf32> to vector<2x8x8xf32>
    %678 = vector.extract_strided_slice %676 {offsets = [2, 0, 0], sizes = [2, 8, 8], strides = [1, 1, 1]} : vector<8x8x8xf32> to vector<2x8x8xf32>
    %679 = vector.extract_strided_slice %676 {offsets = [4, 0, 0], sizes = [2, 8, 8], strides = [1, 1, 1]} : vector<8x8x8xf32> to vector<2x8x8xf32>
    %680 = vector.extract_strided_slice %676 {offsets = [6, 0, 0], sizes = [2, 8, 8], strides = [1, 1, 1]} : vector<8x8x8xf32> to vector<2x8x8xf32>
    %681 = tpu.concatenate %677, %678, %679, %680 in 2 : vector<2x8x8xf32>, vector<2x8x8xf32>, vector<2x8x8xf32>, vector<2x8x8xf32> -> vector<2x8x32xf32>
    %682 = vector.shape_cast %681 : vector<2x8x32xf32> to vector<16x32xf32>
    %c1_225 = arith.constant 1 : index
    %c0_226 = arith.constant 0 : index
    %c0_227 = arith.constant 0 : index
    %683 = vector.load %arg22[%c1_225, %c0_226, %c0_227] : memref<2x32x32xf32, #tpu.memory_space<vmem>>, vector<1x32x32xf32>
    %684 = vector.shape_cast %683 : vector<1x32x32xf32> to vector<32x32xf32>
    %cst_228 = arith.constant dense<0.000000e+00> : vector<16x32xf32>
    %685 = tpu.matmul %682, %684, %cst_228 {dimension_numbers = #tpu.dot_dimension_numbers<[1], [0], [0], [1], [0, 0, 1, 1], [], []>} : vector<16x32xf32>, vector<32x32xf32>, vector<16x32xf32> -> vector<16x32xf32>
    %c1_229 = arith.constant 1 : index
    %c0_230 = arith.constant 0 : index
    %c0_231 = arith.constant 0 : index
    %686 = vector.load %arg23[%c1_229, %c0_230, %c0_231] : memref<2x1x32xf32, #tpu.memory_space<vmem>>, vector<1x1x32xf32>
    %687 = vector.shape_cast %686 : vector<1x1x32xf32> to vector<1x32xf32>
    %688 = vector.broadcast %687 : vector<1x32xf32> to vector<16x32xf32>
    %689 = arith.addf %685, %688 : vector<16x32xf32>
    %690 = vector.shape_cast %689 : vector<16x32xf32> to vector<2x8x32xf32>
    %c1_232 = arith.constant 1 : index
    %c0_233 = arith.constant 0 : index
    %c0_234 = arith.constant 0 : index
    %691 = vector.load %arg34[%c1_232, %c0_233, %c0_234] : memref<2x3x32xf32, #tpu.memory_space<vmem>>, vector<1x3x32xf32>
    %692 = vector.shape_cast %691 : vector<1x3x32xf32> to vector<3x32xf32>
    %c1_235 = arith.constant 1 : index
    %c0_236 = arith.constant 0 : index
    %c0_237 = arith.constant 0 : index
    %693 = vector.load %arg35[%c1_235, %c0_236, %c0_237] : memref<2x3x32xf32, #tpu.memory_space<vmem>>, vector<1x3x32xf32>
    %694 = vector.shape_cast %693 : vector<1x3x32xf32> to vector<3x32xf32>
    %695 = vector.extract_strided_slice %692 {offsets = [0, 0], sizes = [1, 32], strides = [1, 1]} : vector<3x32xf32> to vector<1x32xf32>
    %696 = vector.extract_strided_slice %694 {offsets = [0, 0], sizes = [1, 32], strides = [1, 1]} : vector<3x32xf32> to vector<1x32xf32>
    %697 = vector.shape_cast %622 : vector<2x32xf32> to vector<2x1x32xf32>
    %cst_238 = arith.constant 1.000000e+00 : f32
    %698 = vector.broadcast %cst_238 : f32 to vector<2x1x32xf32>
    %699 = arith.addf %698, %697 : vector<2x1x32xf32>
    %700 = vector.broadcast %699 : vector<2x1x32xf32> to vector<2x8x32xf32>
    %701 = arith.mulf %700, %690 : vector<2x8x32xf32>
    %702 = arith.addf %621, %701 : vector<2x8x32xf32>
    %703 = vector.shape_cast %623 : vector<2x32xf32> to vector<2x1x32xf32>
    %704 = vector.broadcast %703 : vector<2x1x32xf32> to vector<2x8x32xf32>
    %705 = arith.addf %702, %704 : vector<2x8x32xf32>
    %cst_239 = arith.constant dense<0.000000e+00> : vector<2x8xf32>
    %706 = vector.multi_reduction <add>, %705, %cst_239 [2] : vector<2x8x32xf32> to vector<2x8xf32>
    %707 = vector.shape_cast %706 : vector<2x8xf32> to vector<2x8x1xf32>
    %cst_240 = arith.constant 3.200000e+01 : f32
    %708 = vector.broadcast %cst_240 : f32 to vector<2x8x1xf32>
    %709 = arith.divf %707, %708 : vector<2x8x1xf32>
    %710 = vector.broadcast %709 : vector<2x8x1xf32> to vector<2x8x32xf32>
    %711 = arith.subf %705, %710 : vector<2x8x32xf32>
    %712 = vector.broadcast %709 : vector<2x8x1xf32> to vector<2x8x32xf32>
    %713 = arith.subf %705, %712 : vector<2x8x32xf32>
    %714 = arith.mulf %711, %713 : vector<2x8x32xf32>
    %cst_241 = arith.constant dense<0.000000e+00> : vector<2x8xf32>
    %715 = vector.multi_reduction <add>, %714, %cst_241 [2] : vector<2x8x32xf32> to vector<2x8xf32>
    %716 = vector.shape_cast %715 : vector<2x8xf32> to vector<2x8x1xf32>
    %cst_242 = arith.constant 3.200000e+01 : f32
    %717 = vector.broadcast %cst_242 : f32 to vector<2x8x1xf32>
    %718 = arith.divf %716, %717 : vector<2x8x1xf32>
    %719 = vector.broadcast %709 : vector<2x8x1xf32> to vector<2x8x32xf32>
    %720 = arith.subf %705, %719 : vector<2x8x32xf32>
    %cst_243 = arith.constant 9.99999974E-6 : f32
    %721 = vector.broadcast %cst_243 : f32 to vector<2x8x1xf32>
    %722 = arith.addf %718, %721 : vector<2x8x1xf32>
    %723 = math.rsqrt %722 : vector<2x8x1xf32>
    %724 = vector.broadcast %723 : vector<2x8x1xf32> to vector<2x8x32xf32>
    %725 = arith.mulf %720, %724 : vector<2x8x32xf32>
    %726 = vector.shape_cast %695 : vector<1x32xf32> to vector<1x1x32xf32>
    %727 = vector.broadcast %726 : vector<1x1x32xf32> to vector<2x8x32xf32>
    %728 = arith.mulf %725, %727 : vector<2x8x32xf32>
    %729 = vector.shape_cast %696 : vector<1x32xf32> to vector<1x1x32xf32>
    %730 = vector.broadcast %729 : vector<1x1x32xf32> to vector<2x8x32xf32>
    %731 = arith.addf %728, %730 : vector<2x8x32xf32>
    %732 = vector.shape_cast %731 : vector<2x8x32xf32> to vector<16x32xf32>
    %c1_244 = arith.constant 1 : index
    %c0_245 = arith.constant 0 : index
    %c0_246 = arith.constant 0 : index
    %733 = vector.load %arg24[%c1_244, %c0_245, %c0_246] : memref<2x32x32xf32, #tpu.memory_space<vmem>>, vector<1x32x32xf32>
    %734 = vector.shape_cast %733 : vector<1x32x32xf32> to vector<32x32xf32>
    %cst_247 = arith.constant dense<0.000000e+00> : vector<16x32xf32>
    %735 = tpu.matmul %732, %734, %cst_247 {dimension_numbers = #tpu.dot_dimension_numbers<[1], [0], [0], [1], [0, 0, 1, 1], [], []>} : vector<16x32xf32>, vector<32x32xf32>, vector<16x32xf32> -> vector<16x32xf32>
    %c1_248 = arith.constant 1 : index
    %c0_249 = arith.constant 0 : index
    %c0_250 = arith.constant 0 : index
    %736 = vector.load %arg25[%c1_248, %c0_249, %c0_250] : memref<2x1x32xf32, #tpu.memory_space<vmem>>, vector<1x1x32xf32>
    %737 = vector.shape_cast %736 : vector<1x1x32xf32> to vector<1x32xf32>
    %738 = vector.broadcast %737 : vector<1x32xf32> to vector<16x32xf32>
    %739 = arith.addf %735, %738 : vector<16x32xf32>
    %740 = vector.shape_cast %739 : vector<16x32xf32> to vector<2x8x32xf32>
    %741 = vector.shape_cast %348 : vector<2x8x32xf32> to vector<16x32xf32>
    %c1_251 = arith.constant 1 : index
    %c0_252 = arith.constant 0 : index
    %c0_253 = arith.constant 0 : index
    %742 = vector.load %arg26[%c1_251, %c0_252, %c0_253] : memref<2x32x64xf32, #tpu.memory_space<vmem>>, vector<1x32x64xf32>
    %743 = vector.shape_cast %742 : vector<1x32x64xf32> to vector<32x64xf32>
    %cst_254 = arith.constant dense<0.000000e+00> : vector<16x64xf32>
    %744 = tpu.matmul %741, %743, %cst_254 {dimension_numbers = #tpu.dot_dimension_numbers<[1], [0], [0], [1], [0, 0, 1, 1], [], []>} : vector<16x32xf32>, vector<32x64xf32>, vector<16x64xf32> -> vector<16x64xf32>
    %c1_255 = arith.constant 1 : index
    %c0_256 = arith.constant 0 : index
    %c0_257 = arith.constant 0 : index
    %745 = vector.load %arg27[%c1_255, %c0_256, %c0_257] : memref<2x1x64xf32, #tpu.memory_space<vmem>>, vector<1x1x64xf32>
    %746 = vector.shape_cast %745 : vector<1x1x64xf32> to vector<1x64xf32>
    %747 = vector.broadcast %746 : vector<1x64xf32> to vector<16x64xf32>
    %748 = arith.addf %744, %747 : vector<16x64xf32>
    %749 = vector.extract_strided_slice %748 {offsets = [0, 0], sizes = [16, 32], strides = [1, 1]} : vector<16x64xf32> to vector<16x32xf32>
    %750 = vector.shape_cast %749 : vector<16x32xf32> to vector<2x8x32xf32>
    %751 = vector.extract_strided_slice %748 {offsets = [0, 32], sizes = [16, 32], strides = [1, 1]} : vector<16x64xf32> to vector<16x32xf32>
    %752 = vector.shape_cast %751 : vector<16x32xf32> to vector<2x8x32xf32>
    %753 = vector.extract_strided_slice %740 {offsets = [0, 0, 0], sizes = [2, 8, 8], strides = [1, 1, 1]} : vector<2x8x32xf32> to vector<2x8x8xf32>
    %754 = vector.extract_strided_slice %740 {offsets = [0, 0, 8], sizes = [2, 8, 8], strides = [1, 1, 1]} : vector<2x8x32xf32> to vector<2x8x8xf32>
    %755 = vector.extract_strided_slice %740 {offsets = [0, 0, 16], sizes = [2, 8, 8], strides = [1, 1, 1]} : vector<2x8x32xf32> to vector<2x8x8xf32>
    %756 = vector.extract_strided_slice %740 {offsets = [0, 0, 24], sizes = [2, 8, 8], strides = [1, 1, 1]} : vector<2x8x32xf32> to vector<2x8x8xf32>
    %757 = tpu.concatenate %753, %754, %755, %756 in 0 : vector<2x8x8xf32>, vector<2x8x8xf32>, vector<2x8x8xf32>, vector<2x8x8xf32> -> vector<8x8x8xf32>
    %758 = vector.extract_strided_slice %750 {offsets = [0, 0, 0], sizes = [2, 8, 8], strides = [1, 1, 1]} : vector<2x8x32xf32> to vector<2x8x8xf32>
    %759 = vector.extract_strided_slice %750 {offsets = [0, 0, 8], sizes = [2, 8, 8], strides = [1, 1, 1]} : vector<2x8x32xf32> to vector<2x8x8xf32>
    %760 = vector.extract_strided_slice %750 {offsets = [0, 0, 16], sizes = [2, 8, 8], strides = [1, 1, 1]} : vector<2x8x32xf32> to vector<2x8x8xf32>
    %761 = vector.extract_strided_slice %750 {offsets = [0, 0, 24], sizes = [2, 8, 8], strides = [1, 1, 1]} : vector<2x8x32xf32> to vector<2x8x8xf32>
    %762 = tpu.concatenate %758, %759, %760, %761 in 0 : vector<2x8x8xf32>, vector<2x8x8xf32>, vector<2x8x8xf32>, vector<2x8x8xf32> -> vector<8x8x8xf32>
    %763 = vector.extract_strided_slice %752 {offsets = [0, 0, 0], sizes = [2, 8, 8], strides = [1, 1, 1]} : vector<2x8x32xf32> to vector<2x8x8xf32>
    %764 = vector.extract_strided_slice %752 {offsets = [0, 0, 8], sizes = [2, 8, 8], strides = [1, 1, 1]} : vector<2x8x32xf32> to vector<2x8x8xf32>
    %765 = vector.extract_strided_slice %752 {offsets = [0, 0, 16], sizes = [2, 8, 8], strides = [1, 1, 1]} : vector<2x8x32xf32> to vector<2x8x8xf32>
    %766 = vector.extract_strided_slice %752 {offsets = [0, 0, 24], sizes = [2, 8, 8], strides = [1, 1, 1]} : vector<2x8x32xf32> to vector<2x8x8xf32>
    %767 = tpu.concatenate %763, %764, %765, %766 in 0 : vector<2x8x8xf32>, vector<2x8x8xf32>, vector<2x8x8xf32>, vector<2x8x8xf32> -> vector<8x8x8xf32>
    "tpu.trace_start"() <{level = 10 : i32, message = "bqd,bkd->bqk"}> : () -> ()
    %cst_258 = arith.constant dense<0.000000e+00> : vector<8x8x8xf32>
    %768 = tpu.matmul %757, %762, %cst_258 {dimension_numbers = #tpu.dot_dimension_numbers<[2], [2], [1], [1], [0, 0, 0, 1, 1, 1], [0], [0]>} : vector<8x8x8xf32>, vector<8x8x8xf32>, vector<8x8x8xf32> -> vector<8x8x8xf32>
    "tpu.trace_stop"() : () -> ()
    %cst_259 = arith.constant 0.353553385 : f32
    %769 = vector.broadcast %cst_259 : f32 to vector<8x8x8xf32>
    %770 = arith.mulf %768, %769 : vector<8x8x8xf32>
    %771 = vector.shape_cast %770 : vector<8x8x8xf32> to vector<4x2x8x8xf32>
    %772 = vector.shape_cast %21 : vector<2x1x8xf32> to vector<1x2x1x8xf32>
    %773 = vector.broadcast %772 : vector<1x2x1x8xf32> to vector<4x2x8x8xf32>
    %774 = arith.addf %771, %773 : vector<4x2x8x8xf32>
    %775 = vector.shape_cast %774 : vector<4x2x8x8xf32> to vector<8x8x8xf32>
    %cst_260 = arith.constant dense<0xFF800000> : vector<8x8xf32>
    %776 = vector.multi_reduction <maximumf>, %775, %cst_260 [2] : vector<8x8x8xf32> to vector<8x8xf32>
    %777 = vector.shape_cast %776 : vector<8x8xf32> to vector<8x8x1xf32>
    %778 = vector.broadcast %777 : vector<8x8x1xf32> to vector<8x8x8xf32>
    %779 = arith.subf %775, %778 : vector<8x8x8xf32>
    %780 = math.exp %779 : vector<8x8x8xf32>
    %cst_261 = arith.constant dense<0.000000e+00> : vector<8x8xf32>
    %781 = vector.multi_reduction <add>, %780, %cst_261 [2] : vector<8x8x8xf32> to vector<8x8xf32>
    %782 = vector.shape_cast %781 : vector<8x8xf32> to vector<8x8x1xf32>
    %cst_262 = arith.constant 9.99999968E-21 : f32
    %783 = vector.broadcast %cst_262 : f32 to vector<8x8x1xf32>
    %784 = arith.maximumf %782, %783 : vector<8x8x1xf32>
    %785 = vector.broadcast %784 : vector<8x8x1xf32> to vector<8x8x8xf32>
    %786 = arith.divf %780, %785 : vector<8x8x8xf32>
    "tpu.trace_start"() <{level = 10 : i32, message = "bqk,bkd->bqd"}> : () -> ()
    %cst_263 = arith.constant dense<0.000000e+00> : vector<8x8x8xf32>
    %787 = tpu.matmul %786, %767, %cst_263 {dimension_numbers = #tpu.dot_dimension_numbers<[2], [1], [1], [2], [0, 0, 0, 1, 1, 2], [0], [0]>} : vector<8x8x8xf32>, vector<8x8x8xf32>, vector<8x8x8xf32> -> vector<8x8x8xf32>
    "tpu.trace_stop"() : () -> ()
    %788 = vector.extract_strided_slice %787 {offsets = [0, 0, 0], sizes = [2, 8, 8], strides = [1, 1, 1]} : vector<8x8x8xf32> to vector<2x8x8xf32>
    %789 = vector.extract_strided_slice %787 {offsets = [2, 0, 0], sizes = [2, 8, 8], strides = [1, 1, 1]} : vector<8x8x8xf32> to vector<2x8x8xf32>
    %790 = vector.extract_strided_slice %787 {offsets = [4, 0, 0], sizes = [2, 8, 8], strides = [1, 1, 1]} : vector<8x8x8xf32> to vector<2x8x8xf32>
    %791 = vector.extract_strided_slice %787 {offsets = [6, 0, 0], sizes = [2, 8, 8], strides = [1, 1, 1]} : vector<8x8x8xf32> to vector<2x8x8xf32>
    %792 = tpu.concatenate %788, %789, %790, %791 in 2 : vector<2x8x8xf32>, vector<2x8x8xf32>, vector<2x8x8xf32>, vector<2x8x8xf32> -> vector<2x8x32xf32>
    %793 = vector.shape_cast %792 : vector<2x8x32xf32> to vector<16x32xf32>
    %c1_264 = arith.constant 1 : index
    %c0_265 = arith.constant 0 : index
    %c0_266 = arith.constant 0 : index
    %794 = vector.load %arg28[%c1_264, %c0_265, %c0_266] : memref<2x32x32xf32, #tpu.memory_space<vmem>>, vector<1x32x32xf32>
    %795 = vector.shape_cast %794 : vector<1x32x32xf32> to vector<32x32xf32>
    %cst_267 = arith.constant dense<0.000000e+00> : vector<16x32xf32>
    %796 = tpu.matmul %793, %795, %cst_267 {dimension_numbers = #tpu.dot_dimension_numbers<[1], [0], [0], [1], [0, 0, 1, 1], [], []>} : vector<16x32xf32>, vector<32x32xf32>, vector<16x32xf32> -> vector<16x32xf32>
    %c1_268 = arith.constant 1 : index
    %c0_269 = arith.constant 0 : index
    %c0_270 = arith.constant 0 : index
    %797 = vector.load %arg29[%c1_268, %c0_269, %c0_270] : memref<2x1x32xf32, #tpu.memory_space<vmem>>, vector<1x1x32xf32>
    %798 = vector.shape_cast %797 : vector<1x1x32xf32> to vector<1x32xf32>
    %799 = vector.broadcast %798 : vector<1x32xf32> to vector<16x32xf32>
    %800 = arith.addf %796, %799 : vector<16x32xf32>
    %801 = vector.shape_cast %800 : vector<16x32xf32> to vector<2x8x32xf32>
    %802 = vector.extract_strided_slice %692 {offsets = [1, 0], sizes = [1, 32], strides = [1, 1]} : vector<3x32xf32> to vector<1x32xf32>
    %803 = vector.extract_strided_slice %694 {offsets = [1, 0], sizes = [1, 32], strides = [1, 1]} : vector<3x32xf32> to vector<1x32xf32>
    %804 = vector.shape_cast %624 : vector<2x32xf32> to vector<2x1x32xf32>
    %cst_271 = arith.constant 1.000000e+00 : f32
    %805 = vector.broadcast %cst_271 : f32 to vector<2x1x32xf32>
    %806 = arith.addf %805, %804 : vector<2x1x32xf32>
    %807 = vector.broadcast %806 : vector<2x1x32xf32> to vector<2x8x32xf32>
    %808 = arith.mulf %807, %801 : vector<2x8x32xf32>
    %809 = arith.addf %731, %808 : vector<2x8x32xf32>
    %810 = vector.shape_cast %625 : vector<2x32xf32> to vector<2x1x32xf32>
    %811 = vector.broadcast %810 : vector<2x1x32xf32> to vector<2x8x32xf32>
    %812 = arith.addf %809, %811 : vector<2x8x32xf32>
    %cst_272 = arith.constant dense<0.000000e+00> : vector<2x8xf32>
    %813 = vector.multi_reduction <add>, %812, %cst_272 [2] : vector<2x8x32xf32> to vector<2x8xf32>
    %814 = vector.shape_cast %813 : vector<2x8xf32> to vector<2x8x1xf32>
    %cst_273 = arith.constant 3.200000e+01 : f32
    %815 = vector.broadcast %cst_273 : f32 to vector<2x8x1xf32>
    %816 = arith.divf %814, %815 : vector<2x8x1xf32>
    %817 = vector.broadcast %816 : vector<2x8x1xf32> to vector<2x8x32xf32>
    %818 = arith.subf %812, %817 : vector<2x8x32xf32>
    %819 = vector.broadcast %816 : vector<2x8x1xf32> to vector<2x8x32xf32>
    %820 = arith.subf %812, %819 : vector<2x8x32xf32>
    %821 = arith.mulf %818, %820 : vector<2x8x32xf32>
    %cst_274 = arith.constant dense<0.000000e+00> : vector<2x8xf32>
    %822 = vector.multi_reduction <add>, %821, %cst_274 [2] : vector<2x8x32xf32> to vector<2x8xf32>
    %823 = vector.shape_cast %822 : vector<2x8xf32> to vector<2x8x1xf32>
    %cst_275 = arith.constant 3.200000e+01 : f32
    %824 = vector.broadcast %cst_275 : f32 to vector<2x8x1xf32>
    %825 = arith.divf %823, %824 : vector<2x8x1xf32>
    %826 = vector.broadcast %816 : vector<2x8x1xf32> to vector<2x8x32xf32>
    %827 = arith.subf %812, %826 : vector<2x8x32xf32>
    %cst_276 = arith.constant 9.99999974E-6 : f32
    %828 = vector.broadcast %cst_276 : f32 to vector<2x8x1xf32>
    %829 = arith.addf %825, %828 : vector<2x8x1xf32>
    %830 = math.rsqrt %829 : vector<2x8x1xf32>
    %831 = vector.broadcast %830 : vector<2x8x1xf32> to vector<2x8x32xf32>
    %832 = arith.mulf %827, %831 : vector<2x8x32xf32>
    %833 = vector.shape_cast %802 : vector<1x32xf32> to vector<1x1x32xf32>
    %834 = vector.broadcast %833 : vector<1x1x32xf32> to vector<2x8x32xf32>
    %835 = arith.mulf %832, %834 : vector<2x8x32xf32>
    %836 = vector.shape_cast %803 : vector<1x32xf32> to vector<1x1x32xf32>
    %837 = vector.broadcast %836 : vector<1x1x32xf32> to vector<2x8x32xf32>
    %838 = arith.addf %835, %837 : vector<2x8x32xf32>
    %839 = vector.shape_cast %838 : vector<2x8x32xf32> to vector<16x32xf32>
    %c1_277 = arith.constant 1 : index
    %c0_278 = arith.constant 0 : index
    %c0_279 = arith.constant 0 : index
    %840 = vector.load %arg30[%c1_277, %c0_278, %c0_279] : memref<2x32x32xf32, #tpu.memory_space<vmem>>, vector<1x32x32xf32>
    %841 = vector.shape_cast %840 : vector<1x32x32xf32> to vector<32x32xf32>
    %cst_280 = arith.constant dense<0.000000e+00> : vector<16x32xf32>
    %842 = tpu.matmul %839, %841, %cst_280 {dimension_numbers = #tpu.dot_dimension_numbers<[1], [0], [0], [1], [0, 0, 1, 1], [], []>} : vector<16x32xf32>, vector<32x32xf32>, vector<16x32xf32> -> vector<16x32xf32>
    %c1_281 = arith.constant 1 : index
    %c0_282 = arith.constant 0 : index
    %c0_283 = arith.constant 0 : index
    %843 = vector.load %arg31[%c1_281, %c0_282, %c0_283] : memref<2x1x32xf32, #tpu.memory_space<vmem>>, vector<1x1x32xf32>
    %844 = vector.shape_cast %843 : vector<1x1x32xf32> to vector<1x32xf32>
    %845 = vector.broadcast %844 : vector<1x32xf32> to vector<16x32xf32>
    %846 = arith.addf %842, %845 : vector<16x32xf32>
    %cst_284 = arith.constant 0.000000e+00 : f32
    %847 = vector.broadcast %cst_284 : f32 to vector<16x32xf32>
    %848 = arith.maximumf %846, %847 : vector<16x32xf32>
    %c1_285 = arith.constant 1 : index
    %c0_286 = arith.constant 0 : index
    %c0_287 = arith.constant 0 : index
    %849 = vector.load %arg32[%c1_285, %c0_286, %c0_287] : memref<2x32x32xf32, #tpu.memory_space<vmem>>, vector<1x32x32xf32>
    %850 = vector.shape_cast %849 : vector<1x32x32xf32> to vector<32x32xf32>
    %cst_288 = arith.constant dense<0.000000e+00> : vector<16x32xf32>
    %851 = tpu.matmul %848, %850, %cst_288 {dimension_numbers = #tpu.dot_dimension_numbers<[1], [0], [0], [1], [0, 0, 1, 1], [], []>} : vector<16x32xf32>, vector<32x32xf32>, vector<16x32xf32> -> vector<16x32xf32>
    %c1_289 = arith.constant 1 : index
    %c0_290 = arith.constant 0 : index
    %c0_291 = arith.constant 0 : index
    %852 = vector.load %arg33[%c1_289, %c0_290, %c0_291] : memref<2x1x32xf32, #tpu.memory_space<vmem>>, vector<1x1x32xf32>
    %853 = vector.shape_cast %852 : vector<1x1x32xf32> to vector<1x32xf32>
    %854 = vector.broadcast %853 : vector<1x32xf32> to vector<16x32xf32>
    %855 = arith.addf %851, %854 : vector<16x32xf32>
    %856 = vector.shape_cast %855 : vector<16x32xf32> to vector<2x8x32xf32>
    %857 = vector.extract_strided_slice %692 {offsets = [2, 0], sizes = [1, 32], strides = [1, 1]} : vector<3x32xf32> to vector<1x32xf32>
    %858 = vector.extract_strided_slice %694 {offsets = [2, 0], sizes = [1, 32], strides = [1, 1]} : vector<3x32xf32> to vector<1x32xf32>
    %859 = vector.shape_cast %626 : vector<2x32xf32> to vector<2x1x32xf32>
    %cst_292 = arith.constant 1.000000e+00 : f32
    %860 = vector.broadcast %cst_292 : f32 to vector<2x1x32xf32>
    %861 = arith.addf %860, %859 : vector<2x1x32xf32>
    %862 = vector.broadcast %861 : vector<2x1x32xf32> to vector<2x8x32xf32>
    %863 = arith.mulf %862, %856 : vector<2x8x32xf32>
    %864 = arith.addf %838, %863 : vector<2x8x32xf32>
    %865 = vector.shape_cast %627 : vector<2x32xf32> to vector<2x1x32xf32>
    %866 = vector.broadcast %865 : vector<2x1x32xf32> to vector<2x8x32xf32>
    %867 = arith.addf %864, %866 : vector<2x8x32xf32>
    %cst_293 = arith.constant dense<0.000000e+00> : vector<2x8xf32>
    %868 = vector.multi_reduction <add>, %867, %cst_293 [2] : vector<2x8x32xf32> to vector<2x8xf32>
    %869 = vector.shape_cast %868 : vector<2x8xf32> to vector<2x8x1xf32>
    %cst_294 = arith.constant 3.200000e+01 : f32
    %870 = vector.broadcast %cst_294 : f32 to vector<2x8x1xf32>
    %871 = arith.divf %869, %870 : vector<2x8x1xf32>
    %872 = vector.broadcast %871 : vector<2x8x1xf32> to vector<2x8x32xf32>
    %873 = arith.subf %867, %872 : vector<2x8x32xf32>
    %874 = vector.broadcast %871 : vector<2x8x1xf32> to vector<2x8x32xf32>
    %875 = arith.subf %867, %874 : vector<2x8x32xf32>
    %876 = arith.mulf %873, %875 : vector<2x8x32xf32>
    %cst_295 = arith.constant dense<0.000000e+00> : vector<2x8xf32>
    %877 = vector.multi_reduction <add>, %876, %cst_295 [2] : vector<2x8x32xf32> to vector<2x8xf32>
    %878 = vector.shape_cast %877 : vector<2x8xf32> to vector<2x8x1xf32>
    %cst_296 = arith.constant 3.200000e+01 : f32
    %879 = vector.broadcast %cst_296 : f32 to vector<2x8x1xf32>
    %880 = arith.divf %878, %879 : vector<2x8x1xf32>
    %881 = vector.broadcast %871 : vector<2x8x1xf32> to vector<2x8x32xf32>
    %882 = arith.subf %867, %881 : vector<2x8x32xf32>
    %cst_297 = arith.constant 9.99999974E-6 : f32
    %883 = vector.broadcast %cst_297 : f32 to vector<2x8x1xf32>
    %884 = arith.addf %880, %883 : vector<2x8x1xf32>
    %885 = math.rsqrt %884 : vector<2x8x1xf32>
    %886 = vector.broadcast %885 : vector<2x8x1xf32> to vector<2x8x32xf32>
    %887 = arith.mulf %882, %886 : vector<2x8x32xf32>
    %888 = vector.shape_cast %857 : vector<1x32xf32> to vector<1x1x32xf32>
    %889 = vector.broadcast %888 : vector<1x1x32xf32> to vector<2x8x32xf32>
    %890 = arith.mulf %887, %889 : vector<2x8x32xf32>
    %891 = vector.shape_cast %858 : vector<1x32xf32> to vector<1x1x32xf32>
    %892 = vector.broadcast %891 : vector<1x1x32xf32> to vector<2x8x32xf32>
    %893 = arith.addf %890, %892 : vector<2x8x32xf32>
    %894 = vector.shape_cast %893 : vector<2x8x32xf32> to vector<16x32xf32>
    %c0_298 = arith.constant 0 : index
    %c0_299 = arith.constant 0 : index
    %895 = vector.load %arg36[%c0_298, %c0_299] : memref<32x128xf32, #tpu.memory_space<vmem>>, vector<32x128xf32>
    %cst_300 = arith.constant dense<0.000000e+00> : vector<16x128xf32>
    %896 = tpu.matmul %894, %895, %cst_300 {dimension_numbers = #tpu.dot_dimension_numbers<[1], [0], [0], [1], [0, 0, 1, 1], [], []>} : vector<16x32xf32>, vector<32x128xf32>, vector<16x128xf32> -> vector<16x128xf32>
    %c0_301 = arith.constant 0 : index
    %c0_302 = arith.constant 0 : index
    %897 = vector.load %arg37[%c0_301, %c0_302] : memref<1x128xf32, #tpu.memory_space<vmem>>, vector<1x128xf32>
    %898 = vector.broadcast %897 : vector<1x128xf32> to vector<16x128xf32>
    %899 = arith.addf %896, %898 : vector<16x128xf32>
    %900 = vector.shape_cast %899 : vector<16x128xf32> to vector<2x8x128xf32>
    %c0_303 = arith.constant 0 : index
    %c0_304 = arith.constant 0 : index
    %c0_305 = arith.constant 0 : index
    %901 = vector.load %arg38[%c0_303, %c0_304, %c0_305] : memref<2x8x128xf32, #tpu.memory_space<vmem>>, vector<2x8x128xf32>
    tpu.vector_store %arg38[%c0_303, %c0_304, %c0_305], %900 {strides = array<i32>} : memref<2x8x128xf32, #tpu.memory_space<vmem>>, vector<2x8x128xf32>,
    return
  }
}

</mosaic_0001>

<bundles_post_ra>
// kernel: tpu_custom_call.1
= control target key start
LH: loop header
LB: loop body
LE: loop exit
PB: predicated region body
PF: predicated region fallthrough
CT: control target
= control target key end

     0   :  { %s14825_s6 = smov 1   ;;  %s14826_s10 = smov 2   ;;  %s17039_s0 = inlined_call_operand.smem [shape: u32[39], index: -1, kind: input, shape index: {}] }
   0x1   :  { %s14922_s5 = sld [smem:[%s17039_s0]]   ;;  %s14827_s14 = smov 3  }
   0x2   :  { %s14927_s9 = sld [smem:[%s17039_s0 + %s14825_s6]]   ;;  %s14828_s18 = smov 4  }
   0x3   :  { %s14932_s13 = sld [smem:[%s17039_s0 + %s14826_s10]]   ;;  %s14829_s22 = smov 5  }
   0x4   :  { %s14937_s17 = sld [smem:[%s17039_s0 + %s14827_s14]]   ;;  %s14830_s26 = smov 6  }
   0x5   :  { %s14942_s21 = sld [smem:[%s17039_s0 + %s14828_s18]]   ;;  %s14831_s30 = smov 7  }
   0x6   :  { %s14947_s25 = sld [smem:[%s17039_s0 + %s14829_s22]]   ;;  %s14832_s4 = smov 8  }
   0x7   :  { %17061 = sst [smem:[#allocation71_spill]] %s14922_s5  ;;  %s14833_s10 = smov 9  }
   0x8   :  { %s14952_s29 = sld [smem:[%s17039_s0 + %s14830_s26]]   ;;  %s14834_s15 = smov 10  }
   0x9   :  { %17062 = sst [smem:[#allocation72_spill]] %s14932_s13  ;;  %s14835_s20 = smov 11  }
   0xa   :  { %s14957_s3 = sld [smem:[%s17039_s0 + %s14831_s30]]   ;;  %s14836_s26 = smov 12  }
   0xb   :  { %17063 = sst [smem:[#allocation73_spill]] %s14942_s21  ;;  %s14837_s1 = smov 13  }
   0xc   :  { %s14962_s8 = sld [smem:[%s17039_s0 + %s14832_s4]]   ;;  %s14838_s7 = smov 14  }
   0xd   :  { %s14967_s14 = sld [smem:[%s17039_s0 + %s14833_s10]]   ;;  %s14840_s22 = smov 16  }
   0xe   :  { %17064 = sst [smem:[#allocation74_spill]] %s14952_s29  ;;  %s14841_s28 = smov 17  }
   0xf   :  { %s14972_s19 = sld [smem:[%s17039_s0 + %s14834_s15]]   ;;  %s14839_s15 = smov 15  }
  0x10   :  { %s14977_s24 = sld [smem:[%s17039_s0 + %s14835_s20]]  }
  0x11   :  { %s14982_s30 = sld [smem:[%s17039_s0 + %s14836_s26]]  }
  0x12   :  { %17065 = sst [smem:[#allocation75_spill]] %s14962_s8 }
  0x13   :  { %s14987_s6 = sld [smem:[%s17039_s0 + %s14837_s1]]  }
  0x14   :  { %s14992_s12 = sld [smem:[%s17039_s0 + %s14838_s7]]   ;;  %s14842_s7 = smov 18  }
  0x15   :  { %17066 = sst [smem:[#allocation76_spill]] %s14972_s19 }
  0x16   :  { %17067 = sst [smem:[#allocation77_spill]] %s14977_s24 }
  0x17   :  { %s14997_s20 = sld [smem:[%s17039_s0 + %s14839_s15]]   ;;  %s14843_s15 = smov 19  }
  0x18   :  { %s15002_s27 = sld [smem:[%s17039_s0 + %s14840_s22]]   ;;  %s14844_s22 = smov 20  }
  0x19   :  { %17068 = sst [smem:[#allocation78_spill]] %s14987_s6 }
  0x1a   :  { %s15007_s4 = sld [smem:[%s17039_s0 + %s14841_s28]]   ;;  %s14845_s28 = smov 21  }
  0x1b   :  { %s15012_s19 = sld [smem:[%s17039_s0 + %s14842_s7]]   ;;  %s14846_s7 = smov 22  }
  0x1c   :  { %s15022_s6 = sld [smem:[%s17039_s0 + %s14844_s22]]   ;;  %s14848_s22 = smov 24  }
  0x1d   :  { %17069 = sst [smem:[#allocation79_spill]] %s14997_s20 }
  0x1e   :  { %s15017_s20 = sld [smem:[%s17039_s0 + %s14843_s15]]   ;;  %s14847_s15 = smov 23  }
  0x1f   :  { %s15032_s24 = sld [smem:[%s17039_s0 + %s14846_s7]]   ;;  %s14850_s7 = smov 26  }
  0x20   :  { %17070 = sst [smem:[#allocation80_spill]] %s15007_s4 }
  0x21   :  { %s15027_s4 = sld [smem:[%s17039_s0 + %s14845_s28]]   ;;  %s14849_s28 = smov 25  }
  0x22   :  { %s15042_s8 = sld [smem:[%s17039_s0 + %s14848_s22]]   ;;  %s14852_s22 = smov 28  }
  0x23   :  { %s15052_s29 = sld [smem:[%s17039_s0 + %s14850_s7]]   ;;  %s14854_s7 = smov 30  }
  0x24   :  { %17071 = sst [smem:[#allocation81_spill]] %s15017_s20 }
  0x25   :  { %s15037_s20 = sld [smem:[%s17039_s0 + %s14847_s15]]   ;;  %s14851_s15 = smov 27  }
  0x26   :  { %s15062_s21 = sld [smem:[%s17039_s0 + %s14852_s22]]   ;;  %s14856_s22 = smov 32  }
  0x27   :  { %17072 = sst [smem:[#allocation82_spill]] %s15027_s4 }
  0x28   :  { %s15047_s4 = sld [smem:[%s17039_s0 + %s14849_s28]]   ;;  %s14853_s28 = smov 29  }
  0x29   :  { %s15072_s13 = sld [smem:[%s17039_s0 + %s14854_s7]]   ;;  %s14858_s7 = smov 34  }
  0x2b   :  { %17073 = sst [smem:[#allocation83_spill]] %s15037_s20 }
  0x2c   :  { %s15057_s20 = sld [smem:[%s17039_s0 + %s14851_s15]]   ;;  %s14855_s15 = smov 31  }
  0x2d   :  { %17076 = sst [smem:[#allocation86_spill]] %s15062_s21 }
  0x2e   :  { %17074 = sst [smem:[#allocation84_spill]] %s15047_s4 }
  0x2f   :  { %s15067_s4 = sld [smem:[%s17039_s0 + %s14853_s28]]   ;;  %s14857_s28 = smov 33  }
  0x30   :  { %17077 = sst [smem:[#allocation87_spill]] %s15072_s13 }
  0x31   :  { %s15082_s21 = sld [smem:[%s17039_s0 + %s14856_s22]]   ;;  %s14860_s22 = smov 36  }
  0x32   :  { %17075 = sst [smem:[#allocation85_spill]] %s15057_s20 }
  0x33   :  { %s15077_s20 = sld [smem:[%s17039_s0 + %s14855_s15]]   ;;  %s14859_s15 = smov 35  }
  0x34   :  { %s15087_s5 = sld [smem:[%s17039_s0 + %s14857_s28]]   ;;  %s14861_s28 = smov 37  }
  0x35   :  { %s15092_s13 = sld [smem:[%s17039_s0 + %s14858_s7]]   ;;  %s14862_s7 = smov 38  }
  0x37   :  { %17079 = sst [smem:[#allocation89_spill]] %s15082_s21 }
  0x38   :  { %s15102_s21 = sld [smem:[%s17039_s0 + %s14860_s22]]  }
  0x39   :  { %17078 = sst [smem:[#allocation88_spill]] %s15077_s20 }
  0x3a   :  { %17080 = sst [smem:[#allocation90_spill]] %s15087_s5 }
  0x3b   :  { %17081 = sst [smem:[#allocation91_spill]] %s15092_s13 }
  0x3c   :  { %s15097_s20 = sld [smem:[%s17039_s0 + %s14859_s15]]  }
  0x3d   :  { %s15107_s5 = sld [smem:[%s17039_s0 + %s14861_s28]]  }
  0x3e   :  { %s15112_s13 = sld [smem:[%s17039_s0 + %s14862_s7]]  }
  0x3f   :  { %82 = vsyncpa [#allocation3], 0 }
  0x40   :  { %83 = vsyncpa [#allocation6], 0 }
  0x41   :  { %84 = vsyncpa [#allocation9], 0 }
  0x42   :  { %85 = vsyncpa [#allocation12], 0 }
  0x43   :  { %86 = vsyncpa [#allocation15], 0 }
  0x44   :  { %87 = vsyncpa [#allocation18], 0 }
  0x45   :  { %88 = vsyncpa [#allocation21], 0 }
  0x46   :  { %89 = vsyncpa [#allocation24], 0 }
  0x47   :  { %90 = vsyncpa [#allocation27], 0 }
  0x48   :  { %91 = vsyncpa [#allocation30], 0 }
  0x49   :  { %92 = vsyncpa [#allocation33], 0 }
  0x4a   :  { %93 = vsyncpa [#allocation36], 0 }
  0x4b   :  { %94 = vsyncpa [#allocation39], 0 }
  0x4c   :  { %95 = vsyncpa [#allocation42], 0 }
  0x4d   :  { %96 = vsyncpa [#allocation45], 0 }
  0x4e   :  { %97 = vsyncpa [#allocation48], 0 }
  0x4f   :  { %98 = vsyncpa [#allocation51], 0 }
  0x50   :  { %99 = vsyncpa [#allocation4], 0  ;;  %s14863_s0 = smov [#allocation5]   ;;  %s14864_s16 = smov [#allocation8]  }
  0x51   :  { %s117_s15 = sshll.u32 %s14863_s0, 4  ;;  %s139_s18 = sshll.u32 %s14864_s16, 4  ;;  %s118_s15 = int_to_ptr.vmem [resolvable:$true] %s117_s15  ;;  %s15114_s18 = int_to_ptr.vmem [resolvable:$true] %s139_s18 }
  0x52   :  { %s14063_s22 = scalar_lea.hbm %s14927_s9, 256 }
  0x53   :  { %p14064_p0 = scmp.ne.s32.totalorder %s14927_s9, %s14063_s22  ;;  %p14067_p1 = scmp.lt.u32.totalorder %s14063_s22, %s14927_s9 }
  0x55   :  { %p14069_p2 = pnand %p14067_p1, %p14064_p0 }
  0x57   :  { %14072 = shalt.err (!%p14069_p2)
}
  0x58   :  { %s14073_s23 = scalar_lea.vmem %s118_s15, 256  ;;  %p14078_p4 = scmp.lt.s32.totalorder %s118_s15, %s118_s15 }
  0x59   :  { %p14074_p3 = scmp.ne.s32.totalorder %s118_s15, %s14073_s23  ;;  %p14079_p5 = scmp.lt.s32.totalorder %s14073_s23, %s14073_s23 }
  0x5b   :  { %p14080_p6 = por %p14079_p5, %p14078_p4 }
  0x5d   :  { %p14081_p7 = pnand %p14080_p6, %p14074_p3 }
  0x5f   :  { %14084 = shalt.err (!%p14081_p7)
}
  0x60   :  { %s14865_s26 = smov 128   ;;  %s14866_s28 = smov 8  }
  0x61   :  { %123 = dma.hbm_to_vmem [thread:$0]  %s14927_s9, 256, %s118_s15, [#allocation6], %s14865_s26, %s14865_s26, %s14866_s28  }
  0x62   :  { %s14085_s1 = scalar_lea.hbm %s14937_s17, 2560 }
  0x63   :  { %p14086_p8 = scmp.ne.s32.totalorder %s14937_s17, %s14085_s1  ;;  %p14089_p9 = scmp.lt.u32.totalorder %s14085_s1, %s14937_s17 }
  0x65   :  { %p14091_p10 = pnand %p14089_p9, %p14086_p8 }
  0x67   :  { %14094 = shalt.err (!%p14091_p10)
}
  0x68   :  { %s14095_s2 = scalar_lea.vmem %s15114_s18, 2560  ;;  %p14100_p12 = scmp.lt.s32.totalorder %s15114_s18, %s15114_s18 }
  0x69   :  { %p14096_p11 = scmp.ne.s32.totalorder %s15114_s18, %s14095_s2  ;;  %p14101_p13 = scmp.lt.s32.totalorder %s14095_s2, %s14095_s2 }
  0x6b   :  { %p14102_p0 = por %p14101_p13, %p14100_p12 }
  0x6d   :  { %p14103_p1 = pnand %p14102_p0, %p14096_p11 }
  0x6f   :  { %14106 = shalt.err (!%p14103_p1)
}
  0x70   :  { %s14867_s7 = smov 640   ;;  %s14868_s9 = smov 40  }
  0x71   :  { %145 = dma.hbm_to_vmem [thread:$0]  %s14937_s17, 2560, %s15114_s18, [#allocation9], %s14867_s7, %s14867_s7, %s14868_s9  }
  0x72   :  { %s14869_s10 = smov [#allocation11]   ;;  %s14870_s0 = smov [#allocation14]  }
  0x73   :  { %s162_s11 = sshll.u32 %s14869_s10, 4  ;;  %s182_s15 = sshll.u32 %s14870_s0, 4  ;;  %s163_s11 = int_to_ptr.vmem [resolvable:$true] %s162_s11  ;;  %s183_s15 = int_to_ptr.vmem [resolvable:$true] %s182_s15 }
  0x74   :  { %s14107_s16 = scalar_lea.hbm %s14947_s25, 128 }
  0x75   :  { %p14108_p2 = scmp.ne.s32.totalorder %s14947_s25, %s14107_s16  ;;  %p14111_p3 = scmp.lt.u32.totalorder %s14107_s16, %s14947_s25 }
  0x77   :  { %p14113_p4 = pnand %p14111_p3, %p14108_p2 }
  0x79   :  { %14116 = shalt.err (!%p14113_p4)
}
  0x7a   :  { %s14117_s22 = scalar_lea.vmem %s163_s11, 128  ;;  %p14122_p6 = scmp.lt.s32.totalorder %s163_s11, %s163_s11 }
  0x7b   :  { %p14118_p5 = scmp.ne.s32.totalorder %s163_s11, %s14117_s22  ;;  %p14123_p7 = scmp.lt.s32.totalorder %s14117_s22, %s14117_s22 }
  0x7d   :  { %p14124_p8 = por %p14123_p7, %p14122_p6 }
  0x7f   :  { %p14125_p9 = pnand %p14124_p8, %p14118_p5 }
  0x81   :  { %14128 = shalt.err (!%p14125_p9)
}
  0x82   :  { %165 = dma.hbm_to_vmem [thread:$0]  %s14947_s25, 128, %s163_s11, [#allocation12]  }
  0x83   :  { %s14129_s17 = scalar_lea.hbm %s14957_s3, 32 }
  0x84   :  { %p14130_p10 = scmp.ne.s32.totalorder %s14957_s3, %s14129_s17  ;;  %p14133_p11 = scmp.lt.u32.totalorder %s14129_s17, %s14957_s3 }
  0x86   :  { %p14135_p12 = pnand %p14133_p11, %p14130_p10 }
  0x88   :  { %14138 = shalt.err (!%p14135_p12)
}
  0x89   :  { %s14139_s18 = scalar_lea.vmem %s183_s15, 32  ;;  %p14144_p0 = scmp.lt.s32.totalorder %s183_s15, %s183_s15 }
  0x8a   :  { %p14140_p13 = scmp.ne.s32.totalorder %s183_s15, %s14139_s18  ;;  %p14145_p1 = scmp.lt.s32.totalorder %s14139_s18, %s14139_s18 }
  0x8c   :  { %p14146_p2 = por %p14145_p1, %p14144_p0 }
  0x8e   :  { %p14147_p3 = pnand %p14146_p2, %p14140_p13 }
  0x90   :  { %14150 = shalt.err (!%p14147_p3)
}
  0x91   :  { %185 = dma.hbm_to_vmem [thread:$0]  %s14957_s3, 32, %s183_s15, [#allocation15]  }
  0x92   :  { %s14871_s23 = smov [#allocation17]   ;;  %s14872_s25 = smov [#allocation20]  }
  0x93   :  { %s202_s1 = sshll.u32 %s14871_s23, 4  ;;  %s225_s2 = sshll.u32 %s14872_s25, 4  ;;  %s203_s1 = int_to_ptr.vmem [resolvable:$true] %s202_s1  ;;  %s15140_s2 = int_to_ptr.vmem [resolvable:$true] %s225_s2 }
  0x94   :  { %s14151_s7 = scalar_lea.hbm %s14967_s14, 32 }
  0x95   :  { %p14152_p4 = scmp.ne.s32.totalorder %s14967_s14, %s14151_s7  ;;  %p14155_p5 = scmp.lt.u32.totalorder %s14151_s7, %s14967_s14 }
  0x97   :  { %p14157_p6 = pnand %p14155_p5, %p14152_p4 }
  0x99   :  { %14160 = shalt.err (!%p14157_p6)
}
  0x9a   :  { %s14161_s9 = scalar_lea.vmem %s203_s1, 32  ;;  %p14166_p8 = scmp.lt.s32.totalorder %s203_s1, %s203_s1 }
  0x9b   :  { %p14162_p7 = scmp.ne.s32.totalorder %s203_s1, %s14161_s9  ;;  %p14167_p9 = scmp.lt.s32.totalorder %s14161_s9, %s14161_s9 }
  0x9d   :  { %p14168_p10 = por %p14167_p9, %p14166_p8 }
  0x9f   :  { %p14169_p11 = pnand %p14168_p10, %p14162_p7 }
  0xa1   :  { %14172 = shalt.err (!%p14169_p11)
}
  0xa2   :  { %205 = dma.hbm_to_vmem [thread:$0]  %s14967_s14, 32, %s203_s1, [#allocation18]  }
  0xa3   :  { %s14173_s3 = scalar_lea.hbm %s14982_s30, 1024 }
  0xa4   :  { %p14174_p12 = scmp.ne.s32.totalorder %s14982_s30, %s14173_s3  ;;  %p14177_p13 = scmp.lt.u32.totalorder %s14173_s3, %s14982_s30 }
  0xa6   :  { %p14179_p0 = pnand %p14177_p13, %p14174_p12 }
  0xa8   :  { %14182 = shalt.err (!%p14179_p0)
}
  0xa9   :  { %s14183_s10 = scalar_lea.vmem %s15140_s2, 1024  ;;  %p14188_p2 = scmp.lt.s32.totalorder %s15140_s2, %s15140_s2 }
  0xaa   :  { %p14184_p1 = scmp.ne.s32.totalorder %s15140_s2, %s14183_s10  ;;  %p14189_p3 = scmp.lt.s32.totalorder %s14183_s10, %s14183_s10 }
  0xac   :  { %p14190_p4 = por %p14189_p3, %p14188_p2 }
  0xae   :  { %p14191_p5 = pnand %p14190_p4, %p14184_p1 }
  0xb0   :  { %14194 = shalt.err (!%p14191_p5)
}
  0xb1   :  { %231 = dma.hbm_to_vmem [thread:$0]  %s14982_s30, 1024, %s15140_s2, [#allocation21], %s14865_s26, %s14865_s26, %s14866_s28  }
  0xb2   :  { %s14873_s14 = smov [#allocation23]   ;;  %s14874_s0 = smov [#allocation26]  }
  0xb3   :  { %s249_s11 = sshll.u32 %s14873_s14, 4  ;;  %s273_s15 = sshll.u32 %s14874_s0, 4  ;;  %s250_s11 = int_to_ptr.vmem [resolvable:$true] %s249_s11  ;;  %s15158_s15 = int_to_ptr.vmem [resolvable:$true] %s273_s15 }
  0xb4   :  { %s14195_s16 = scalar_lea.hbm %s14992_s12, 1024 }
  0xb5   :  { %p14196_p6 = scmp.ne.s32.totalorder %s14992_s12, %s14195_s16  ;;  %p14199_p7 = scmp.lt.u32.totalorder %s14195_s16, %s14992_s12 }
  0xb7   :  { %p14201_p8 = pnand %p14199_p7, %p14196_p6 }
  0xb9   :  { %14204 = shalt.err (!%p14201_p8)
}
  0xba   :  { %s14205_s22 = scalar_lea.vmem %s250_s11, 1024  ;;  %p14210_p10 = scmp.lt.s32.totalorder %s250_s11, %s250_s11 }
  0xbb   :  { %p14206_p9 = scmp.ne.s32.totalorder %s250_s11, %s14205_s22  ;;  %p14211_p11 = scmp.lt.s32.totalorder %s14205_s22, %s14205_s22 }
  0xbd   :  { %p14212_p12 = por %p14211_p11, %p14210_p10 }
  0xbf   :  { %p14213_p13 = pnand %p14212_p12, %p14206_p9 }
  0xc1   :  { %14216 = shalt.err (!%p14213_p13)
}
  0xc2   :  { %255 = dma.hbm_to_vmem [thread:$0]  %s14992_s12, 1024, %s250_s11, [#allocation24], %s14865_s26, %s14865_s26, %s14866_s28  }
  0xc3   :  { %s14217_s30 = scalar_lea.hbm %s15002_s27, 1024 }
  0xc4   :  { %p14218_p0 = scmp.ne.s32.totalorder %s15002_s27, %s14217_s30  ;;  %p14221_p1 = scmp.lt.u32.totalorder %s14217_s30, %s15002_s27 }
  0xc6   :  { %p14223_p2 = pnand %p14221_p1, %p14218_p0 }
  0xc8   :  { %14226 = shalt.err (!%p14223_p2)
}
  0xc9   :  { %s14227_s17 = scalar_lea.vmem %s15158_s15, 1024  ;;  %p14232_p4 = scmp.lt.s32.totalorder %s15158_s15, %s15158_s15 }
  0xca   :  { %p14228_p3 = scmp.ne.s32.totalorder %s15158_s15, %s14227_s17  ;;  %p14233_p5 = scmp.lt.s32.totalorder %s14227_s17, %s14227_s17 }
  0xcc   :  { %p14234_p6 = por %p14233_p5, %p14232_p4 }
  0xce   :  { %p14235_p7 = pnand %p14234_p6, %p14228_p3 }
  0xd0   :  { %14238 = shalt.err (!%p14235_p7)
}
  0xd1   :  { %279 = dma.hbm_to_vmem [thread:$0]  %s15002_s27, 1024, %s15158_s15, [#allocation27], %s14865_s26, %s14865_s26, %s14866_s28  }
  0xd2   :  { %s14875_s12 = smov [#allocation29]   ;;  %s14239_s23 = scalar_lea.hbm %s15012_s19, 64 }
  0xd3   :  { %s297_s18 = sshll.u32 %s14875_s12, 4  ;;  %p14240_p8 = scmp.ne.s32.totalorder %s15012_s19, %s14239_s23  ;;  %s298_s18 = int_to_ptr.vmem [resolvable:$true] %s297_s18 }
  0xd4   :  { %p14243_p9 = scmp.lt.u32.totalorder %s14239_s23, %s15012_s19 }
  0xd6   :  { %p14245_p10 = pnand %p14243_p9, %p14240_p8 }
  0xd8   :  { %14248 = shalt.err (!%p14245_p10)
}
  0xd9   :  { %s14249_s1 = scalar_lea.vmem %s298_s18, 64  ;;  %p14254_p12 = scmp.lt.s32.totalorder %s298_s18, %s298_s18 }
  0xda   :  { %p14250_p11 = scmp.ne.s32.totalorder %s298_s18, %s14249_s1  ;;  %p14255_p13 = scmp.lt.s32.totalorder %s14249_s1, %s14249_s1 }
  0xdc   :  { %p14256_p0 = por %p14255_p13, %p14254_p12 }
  0xde   :  { %p14257_p1 = pnand %p14256_p0, %p14250_p11 }
  0xe0   :  { %14260 = shalt.err (!%p14257_p1)
}
  0xe1   :  { %s14876_s25 = smov 32   ;;  %s14877_s27 = smov 2  }
  0xe2   :  { %303 = dma.hbm_to_vmem [thread:$0]  %s15012_s19, 64, %s298_s18, [#allocation30], %s14876_s25, %s14876_s25, %s14877_s27  }
  0xe3   :  { %s14878_s2 = smov [#allocation32]   ;;  %s14879_s9 = smov [#allocation35]  }
  0xe4   :  { %s321_s7 = sshll.u32 %s14878_s2, 4  ;;  %s345_s3 = sshll.u32 %s14879_s9, 4  ;;  %s322_s7 = int_to_ptr.vmem [resolvable:$true] %s321_s7  ;;  %s346_s3 = int_to_ptr.vmem [resolvable:$true] %s345_s3 }
  0xe5   :  { %s14261_s10 = scalar_lea.hbm %s15022_s6, 1024 }
  0xe6   :  { %p14262_p2 = scmp.ne.s32.totalorder %s15022_s6, %s14261_s10  ;;  %p14265_p3 = scmp.lt.u32.totalorder %s14261_s10, %s15022_s6 }
  0xe8   :  { %p14267_p4 = pnand %p14265_p3, %p14262_p2 }
  0xea   :  { %14270 = shalt.err (!%p14267_p4)
}
  0xeb   :  { %s14271_s14 = scalar_lea.vmem %s322_s7, 1024  ;;  %p14276_p6 = scmp.lt.s32.totalorder %s322_s7, %s322_s7 }
  0xec   :  { %p14272_p5 = scmp.ne.s32.totalorder %s322_s7, %s14271_s14  ;;  %p14277_p7 = scmp.lt.s32.totalorder %s14271_s14, %s14271_s14 }
  0xee   :  { %p14278_p8 = por %p14277_p7, %p14276_p6 }
  0xf0   :  { %p14279_p9 = pnand %p14278_p8, %p14272_p5 }
  0xf2   :  { %14282 = shalt.err (!%p14279_p9)
}
  0xf3   :  { %327 = dma.hbm_to_vmem [thread:$0]  %s15022_s6, 1024, %s322_s7, [#allocation33], %s14865_s26, %s14865_s26, %s14866_s28  }
  0xf4   :  { %s14283_s19 = scalar_lea.hbm %s15032_s24, 1024 }
  0xf5   :  { %p14284_p10 = scmp.ne.s32.totalorder %s15032_s24, %s14283_s19  ;;  %p14287_p11 = scmp.lt.u32.totalorder %s14283_s19, %s15032_s24 }
  0xf7   :  { %p14289_p12 = pnand %p14287_p11, %p14284_p10 }
  0xf9   :  { %14292 = shalt.err (!%p14289_p12)
}
  0xfa   :  { %s14293_s11 = scalar_lea.vmem %s346_s3, 1024  ;;  %p14298_p0 = scmp.lt.s32.totalorder %s346_s3, %s346_s3 }
  0xfb   :  { %p14294_p13 = scmp.ne.s32.totalorder %s346_s3, %s14293_s11  ;;  %p14299_p1 = scmp.lt.s32.totalorder %s14293_s11, %s14293_s11 }
  0xfd   :  { %p14300_p2 = por %p14299_p1, %p14298_p0 }
  0xff   :  { %p14301_p3 = pnand %p14300_p2, %p14294_p13 }
 0x101   :  { %14304 = shalt.err (!%p14301_p3)
}
 0x102   :  { %351 = dma.hbm_to_vmem [thread:$0]  %s15032_s24, 1024, %s346_s3, [#allocation36], %s14865_s26, %s14865_s26, %s14866_s28  }
 0x103   :  { %s14880_s6 = smov [#allocation38]   ;;  %s14881_s15 = smov [#allocation41]  }
 0x104   :  { %s369_s0 = sshll.u32 %s14880_s6, 4  ;;  %s393_s16 = sshll.u32 %s14881_s15, 4  ;;  %s370_s0 = int_to_ptr.vmem [resolvable:$true] %s369_s0  ;;  %s394_s16 = int_to_ptr.vmem [resolvable:$true] %s393_s16 }
 0x105   :  { %s14305_s22 = scalar_lea.hbm %s15042_s8, 1024 }
 0x106   :  { %p14306_p4 = scmp.ne.s32.totalorder %s15042_s8, %s14305_s22  ;;  %p14309_p5 = scmp.lt.u32.totalorder %s14305_s22, %s15042_s8 }
 0x108   :  { %p14311_p6 = pnand %p14309_p5, %p14306_p4 }
 0x10a   :  { %14314 = shalt.err (!%p14311_p6)
}
 0x10b   :  { %s14315_s30 = scalar_lea.vmem %s370_s0, 1024  ;;  %p14320_p8 = scmp.lt.s32.totalorder %s370_s0, %s370_s0 }
 0x10c   :  { %p14316_p7 = scmp.ne.s32.totalorder %s370_s0, %s14315_s30  ;;  %p14321_p9 = scmp.lt.s32.totalorder %s14315_s30, %s14315_s30 }
 0x10e   :  { %p14322_p10 = por %p14321_p9, %p14320_p8 }
 0x110   :  { %p14323_p11 = pnand %p14322_p10, %p14316_p7 }
 0x112   :  { %14326 = shalt.err (!%p14323_p11)
}
 0x113   :  { %375 = dma.hbm_to_vmem [thread:$0]  %s15042_s8, 1024, %s370_s0, [#allocation39], %s14865_s26, %s14865_s26, %s14866_s28  }
 0x114   :  { %s14327_s24 = scalar_lea.hbm %s15052_s29, 1024 }
 0x115   :  { %p14328_p12 = scmp.ne.s32.totalorder %s15052_s29, %s14327_s24  ;;  %p14331_p13 = scmp.lt.u32.totalorder %s14327_s24, %s15052_s29 }
 0x117   :  { %p14333_p0 = pnand %p14331_p13, %p14328_p12 }
 0x119   :  { %14336 = shalt.err (!%p14333_p0)
}
 0x11a   :  { %s14337_s17 = scalar_lea.vmem %s394_s16, 1024  ;;  %p14342_p2 = scmp.lt.s32.totalorder %s394_s16, %s394_s16 }
 0x11b   :  { %p14338_p1 = scmp.ne.s32.totalorder %s394_s16, %s14337_s17  ;;  %p14343_p3 = scmp.lt.s32.totalorder %s14337_s17, %s14337_s17 }
 0x11d   :  { %p14344_p4 = por %p14343_p3, %p14342_p2 }
 0x11f   :  { %p14345_p5 = pnand %p14344_p4, %p14338_p1 }
 0x121   :  { %14348 = shalt.err (!%p14345_p5)
}
 0x122   :  { %399 = dma.hbm_to_vmem [thread:$0]  %s15052_s29, 1024, %s394_s16, [#allocation42], %s14865_s26, %s14865_s26, %s14866_s28  }
 0x123   :  { %s14882_s8 = smov [#allocation44]   ;;  %s14883_s18 = smov [#allocation47]  }
 0x124   :  { %s419_s12 = sshll.u32 %s14882_s8, 4  ;;  %s443_s23 = sshll.u32 %s14883_s18, 4  ;;  %s420_s12 = int_to_ptr.vmem [resolvable:$true] %s419_s12  ;;  %s444_s23 = int_to_ptr.vmem [resolvable:$true] %s443_s23 }
 0x125   :  { %s14349_s1 = scalar_lea.hbm %s15067_s4, 32 }
 0x126   :  { %p14350_p6 = scmp.ne.s32.totalorder %s15067_s4, %s14349_s1  ;;  %p14353_p7 = scmp.lt.u32.totalorder %s14349_s1, %s15067_s4 }
 0x128   :  { %p14355_p8 = pnand %p14353_p7, %p14350_p6 }
 0x12a   :  { %14358 = shalt.err (!%p14355_p8)
}
 0x12b   :  { %s14359_s2 = scalar_lea.vmem %s420_s12, 32  ;;  %p14364_p10 = scmp.lt.s32.totalorder %s420_s12, %s420_s12 }
 0x12c   :  { %p14360_p9 = scmp.ne.s32.totalorder %s420_s12, %s14359_s2  ;;  %p14365_p11 = scmp.lt.s32.totalorder %s14359_s2, %s14359_s2 }
 0x12e   :  { %p14366_p12 = por %p14365_p11, %p14364_p10 }
 0x130   :  { %p14367_p13 = pnand %p14366_p12, %p14360_p9 }
 0x132   :  { %14370 = shalt.err (!%p14367_p13)
}
 0x133   :  { %s14884_s7 = smov 16   ;;  %s17082_s29 = sld [smem:[#allocation88_spill]] }
 0x134   :  { %s14885_s9 = smov 1  }
 0x135   :  { %425 = dma.hbm_to_vmem [thread:$0]  %s15067_s4, 32, %s420_s12, [#allocation45], %s14884_s7, %s14884_s7, %s14885_s9  }
 0x139   :  { %s14371_s3 = scalar_lea.hbm %s17082_s29, 32 }
 0x13a   :  { %p14372_p0 = scmp.ne.s32.totalorder %s17082_s29, %s14371_s3  ;;  %p14375_p1 = scmp.lt.u32.totalorder %s14371_s3, %s17082_s29 }
 0x13c   :  { %p14377_p2 = pnand %p14375_p1, %p14372_p0 }
 0x13e   :  { %14380 = shalt.err (!%p14377_p2)
}
 0x13f   :  { %s14381_s10 = scalar_lea.vmem %s444_s23, 32  ;;  %p14386_p4 = scmp.lt.s32.totalorder %s444_s23, %s444_s23 }
 0x140   :  { %p14382_p3 = scmp.ne.s32.totalorder %s444_s23, %s14381_s10  ;;  %p14387_p5 = scmp.lt.s32.totalorder %s14381_s10, %s14381_s10 }
 0x142   :  { %p14388_p6 = por %p14387_p5, %p14386_p4 }
 0x144   :  { %p14389_p7 = pnand %p14388_p6, %p14382_p3 }
 0x146   :  { %14392 = shalt.err (!%p14389_p7)
}
 0x147   :  { %s17083_s14 = sld [smem:[#allocation71_spill]]  ;;  %s14886_s4 = smov [#allocation2]  }
 0x148   :  { %449 = dma.hbm_to_vmem [thread:$0]  %s17082_s29, 32, %s444_s23, [#allocation48], %s14884_s7, %s14884_s7, %s14885_s9  }
 0x149   :  { %s105_s19 = sshll.u32 %s14886_s4, 4  ;;  %s14887_s11 = smov [#allocation7]   ;;  %s106_s19 = int_to_ptr.vmem [resolvable:$true] %s105_s19 }
 0x14a   :  { %s130_s6 = sshll.u32 %s14887_s11, 4  ;;  %s131_s6 = int_to_ptr.vmem [resolvable:$true] %s130_s6 }
 0x14d   :  { %s14393_s0 = scalar_lea.hbm %s17083_s14, 256 }
 0x14e   :  { %p14394_p8 = scmp.ne.s32.totalorder %s17083_s14, %s14393_s0  ;;  %p14397_p9 = scmp.lt.u32.totalorder %s14393_s0, %s17083_s14 }
 0x150   :  { %p14399_p10 = pnand %p14397_p9, %p14394_p8 }
 0x152   :  { %14402 = shalt.err (!%p14399_p10)
}
 0x153   :  { %s14403_s15 = scalar_lea.vmem %s106_s19, 256  ;;  %p14408_p12 = scmp.lt.s32.totalorder %s106_s19, %s106_s19 }
 0x154   :  { %p14404_p11 = scmp.ne.s32.totalorder %s106_s19, %s14403_s15  ;;  %p14409_p13 = scmp.lt.s32.totalorder %s14403_s15, %s14403_s15 }
 0x156   :  { %p14410_p0 = por %p14409_p13, %p14408_p12 }
 0x158   :  { %p14411_p1 = pnand %p14410_p0, %p14404_p11 }
 0x15a   :  { %14414 = shalt.err (!%p14411_p1)
}
 0x15b   :  { %s17084_s16 = sld [smem:[#allocation72_spill]] }
 0x15c   :  { %111 = dma.hbm_to_vmem [thread:$0]  %s17083_s14, 256, %s106_s19, [#allocation3], %s14865_s26, %s14865_s26, %s14866_s28  }
 0x161   :  { %s14415_s22 = scalar_lea.hbm %s17084_s16, 32 }
 0x162   :  { %p14416_p2 = scmp.ne.s32.totalorder %s17084_s16, %s14415_s22  ;;  %p14419_p3 = scmp.lt.u32.totalorder %s14415_s22, %s17084_s16 }
 0x164   :  { %p14421_p4 = pnand %p14419_p3, %p14416_p2 }
 0x166   :  { %14424 = shalt.err (!%p14421_p4)
}
 0x167   :  { %s14425_s30 = scalar_lea.vmem %s131_s6, 32  ;;  %p14430_p6 = scmp.lt.s32.totalorder %s131_s6, %s131_s6 }
 0x168   :  { %p14426_p5 = scmp.ne.s32.totalorder %s131_s6, %s14425_s30  ;;  %p14431_p7 = scmp.lt.s32.totalorder %s14425_s30, %s14425_s30 }
 0x16a   :  { %p14432_p8 = por %p14431_p7, %p14430_p6 }
 0x16c   :  { %p14433_p9 = pnand %p14432_p8, %p14426_p5 }
 0x16e   :  { %14436 = shalt.err (!%p14433_p9)
}
 0x16f   :  { %s17085_s24 = sld [smem:[#allocation73_spill]]  ;;  %s14888_s17 = smov [#allocation10]  }
 0x170   :  { %133 = dma.hbm_to_vmem [thread:$0]  %s17084_s16, 32, %s131_s6, [#allocation6]  }
 0x171   :  { %s152_s8 = sshll.u32 %s14888_s17, 4  ;;  %s14889_s12 = smov [#allocation13]   ;;  %s153_s8 = int_to_ptr.vmem [resolvable:$true] %s152_s8 }
 0x172   :  { %s172_s18 = sshll.u32 %s14889_s12, 4  ;;  %s173_s18 = int_to_ptr.vmem [resolvable:$true] %s172_s18 }
 0x175   :  { %s14437_s23 = scalar_lea.hbm %s17085_s24, 80 }
 0x176   :  { %p14438_p10 = scmp.ne.s32.totalorder %s17085_s24, %s14437_s23  ;;  %p14441_p11 = scmp.lt.u32.totalorder %s14437_s23, %s17085_s24 }
 0x178   :  { %p14443_p12 = pnand %p14441_p11, %p14438_p10 }
 0x17a   :  { %14446 = shalt.err (!%p14443_p12)
}
 0x17b   :  { %s14447_s1 = scalar_lea.vmem %s153_s8, 80  ;;  %s14451_s2 = scalar_lea.vmem %s153_s8, 96 }
 0x17c   :  { %p14448_p13 = scmp.ne.s32.totalorder %s153_s8, %s14447_s1  ;;  %p14452_p0 = scmp.lt.s32.totalorder %s153_s8, %s153_s8 }
 0x17d   :  { %p14453_p1 = scmp.lt.s32.totalorder %s14451_s2, %s14447_s1 }
 0x17f   :  { %p14454_p2 = por %p14453_p1, %p14452_p0 }
 0x181   :  { %p14455_p3 = pnand %p14454_p2, %p14448_p13 }
 0x183   :  { %14458 = shalt.err (!%p14455_p3)
}
 0x184   :  { %s17086_s29 = sld [smem:[#allocation74_spill]] }
 0x185   :  { %155 = dma.hbm_to_vmem [thread:$0]  %s17085_s24, 80, %s153_s8, [#allocation9]  }
 0x18a   :  { %s14459_s3 = scalar_lea.hbm %s17086_s29, 128 }
 0x18b   :  { %p14460_p4 = scmp.ne.s32.totalorder %s17086_s29, %s14459_s3  ;;  %p14463_p5 = scmp.lt.u32.totalorder %s14459_s3, %s17086_s29 }
 0x18d   :  { %p14465_p6 = pnand %p14463_p5, %p14460_p4 }
 0x18f   :  { %14468 = shalt.err (!%p14465_p6)
}
 0x190   :  { %s14469_s10 = scalar_lea.vmem %s173_s18, 128  ;;  %p14474_p8 = scmp.lt.s32.totalorder %s173_s18, %s173_s18 }
 0x191   :  { %p14470_p7 = scmp.ne.s32.totalorder %s173_s18, %s14469_s10  ;;  %p14475_p9 = scmp.lt.s32.totalorder %s14469_s10, %s14469_s10 }
 0x193   :  { %p14476_p10 = por %p14475_p9, %p14474_p8 }
 0x195   :  { %p14477_p11 = pnand %p14476_p10, %p14470_p7 }
 0x197   :  { %14480 = shalt.err (!%p14477_p11)
}
 0x198   :  { %s17087_s14 = sld [smem:[#allocation75_spill]]  ;;  %s14890_s4 = smov [#allocation16]  }
 0x199   :  { %175 = dma.hbm_to_vmem [thread:$0]  %s17086_s29, 128, %s173_s18, [#allocation12]  }
 0x19a   :  { %s192_s19 = sshll.u32 %s14890_s4, 4  ;;  %s14891_s11 = smov [#allocation19]   ;;  %s193_s19 = int_to_ptr.vmem [resolvable:$true] %s192_s19 }
 0x19b   :  { %s213_s6 = sshll.u32 %s14891_s11, 4  ;;  %s214_s6 = int_to_ptr.vmem [resolvable:$true] %s213_s6 }
 0x19e   :  { %s14481_s0 = scalar_lea.hbm %s17087_s14, 32 }
 0x19f   :  { %p14482_p12 = scmp.ne.s32.totalorder %s17087_s14, %s14481_s0  ;;  %p14485_p13 = scmp.lt.u32.totalorder %s14481_s0, %s17087_s14 }
 0x1a1   :  { %p14487_p0 = pnand %p14485_p13, %p14482_p12 }
 0x1a3   :  { %14490 = shalt.err (!%p14487_p0)
}
 0x1a4   :  { %s14491_s15 = scalar_lea.vmem %s193_s19, 32  ;;  %p14496_p2 = scmp.lt.s32.totalorder %s193_s19, %s193_s19 }
 0x1a5   :  { %p14492_p1 = scmp.ne.s32.totalorder %s193_s19, %s14491_s15  ;;  %p14497_p3 = scmp.lt.s32.totalorder %s14491_s15, %s14491_s15 }
 0x1a7   :  { %p14498_p4 = por %p14497_p3, %p14496_p2 }
 0x1a9   :  { %p14499_p5 = pnand %p14498_p4, %p14492_p1 }
 0x1ab   :  { %14502 = shalt.err (!%p14499_p5)
}
 0x1ac   :  { %s17088_s16 = sld [smem:[#allocation77_spill]] }
 0x1ad   :  { %195 = dma.hbm_to_vmem [thread:$0]  %s17087_s14, 32, %s193_s19, [#allocation15]  }
 0x1b2   :  { %s14503_s22 = scalar_lea.hbm %s17088_s16, 32 }
 0x1b3   :  { %p14504_p6 = scmp.ne.s32.totalorder %s17088_s16, %s14503_s22  ;;  %p14507_p7 = scmp.lt.u32.totalorder %s14503_s22, %s17088_s16 }
 0x1b5   :  { %p14509_p8 = pnand %p14507_p7, %p14504_p6 }
 0x1b7   :  { %14512 = shalt.err (!%p14509_p8)
}
 0x1b8   :  { %s14513_s30 = scalar_lea.vmem %s214_s6, 32  ;;  %p14518_p10 = scmp.lt.s32.totalorder %s214_s6, %s214_s6 }
 0x1b9   :  { %p14514_p9 = scmp.ne.s32.totalorder %s214_s6, %s14513_s30  ;;  %p14519_p11 = scmp.lt.s32.totalorder %s14513_s30, %s14513_s30 }
 0x1bb   :  { %p14520_p12 = por %p14519_p11, %p14518_p10 }
 0x1bd   :  { %p14521_p13 = pnand %p14520_p12, %p14514_p9 }
 0x1bf   :  { %14524 = shalt.err (!%p14521_p13)
}
 0x1c0   :  { %s17089_s24 = sld [smem:[#allocation78_spill]]  ;;  %s14892_s17 = smov [#allocation22]  }
 0x1c1   :  { %219 = dma.hbm_to_vmem [thread:$0]  %s17088_s16, 32, %s214_s6, [#allocation18], %s14884_s7, %s14884_s7, %s14885_s9  }
 0x1c2   :  { %s237_s8 = sshll.u32 %s14892_s17, 4  ;;  %s14893_s12 = smov [#allocation25]   ;;  %s238_s8 = int_to_ptr.vmem [resolvable:$true] %s237_s8 }
 0x1c3   :  { %s261_s18 = sshll.u32 %s14893_s12, 4  ;;  %s262_s18 = int_to_ptr.vmem [resolvable:$true] %s261_s18 }
 0x1c6   :  { %s14525_s23 = scalar_lea.hbm %s17089_s24, 32 }
 0x1c7   :  { %p14526_p0 = scmp.ne.s32.totalorder %s17089_s24, %s14525_s23  ;;  %p14529_p1 = scmp.lt.u32.totalorder %s14525_s23, %s17089_s24 }
 0x1c9   :  { %p14531_p2 = pnand %p14529_p1, %p14526_p0 }
 0x1cb   :  { %14534 = shalt.err (!%p14531_p2)
}
 0x1cc   :  { %s14535_s1 = scalar_lea.vmem %s238_s8, 32  ;;  %p14540_p4 = scmp.lt.s32.totalorder %s238_s8, %s238_s8 }
 0x1cd   :  { %p14536_p3 = scmp.ne.s32.totalorder %s238_s8, %s14535_s1  ;;  %p14541_p5 = scmp.lt.s32.totalorder %s14535_s1, %s14535_s1 }
 0x1cf   :  { %p14542_p6 = por %p14541_p5, %p14540_p4 }
 0x1d1   :  { %p14543_p7 = pnand %p14542_p6, %p14536_p3 }
 0x1d3   :  { %14546 = shalt.err (!%p14543_p7)
}
 0x1d4   :  { %s17090_s2 = sld [smem:[#allocation79_spill]] }
 0x1d5   :  { %243 = dma.hbm_to_vmem [thread:$0]  %s17089_s24, 32, %s238_s8, [#allocation21], %s14884_s7, %s14884_s7, %s14885_s9  }
 0x1da   :  { %s14547_s29 = scalar_lea.hbm %s17090_s2, 32 }
 0x1db   :  { %p14548_p8 = scmp.ne.s32.totalorder %s17090_s2, %s14547_s29  ;;  %p14551_p9 = scmp.lt.u32.totalorder %s14547_s29, %s17090_s2 }
 0x1dd   :  { %p14553_p10 = pnand %p14551_p9, %p14548_p8 }
 0x1df   :  { %14556 = shalt.err (!%p14553_p10)
}
 0x1e0   :  { %s14557_s3 = scalar_lea.vmem %s262_s18, 32  ;;  %p14562_p12 = scmp.lt.s32.totalorder %s262_s18, %s262_s18 }
 0x1e1   :  { %p14558_p11 = scmp.ne.s32.totalorder %s262_s18, %s14557_s3  ;;  %p14563_p13 = scmp.lt.s32.totalorder %s14557_s3, %s14557_s3 }
 0x1e3   :  { %p14564_p0 = por %p14563_p13, %p14562_p12 }
 0x1e5   :  { %p14565_p1 = pnand %p14564_p0, %p14558_p11 }
 0x1e7   :  { %14568 = shalt.err (!%p14565_p1)
}
 0x1e8   :  { %s17091_s10 = sld [smem:[#allocation80_spill]]  ;;  %s14894_s14 = smov [#allocation28]  }
 0x1e9   :  { %267 = dma.hbm_to_vmem [thread:$0]  %s17090_s2, 32, %s262_s18, [#allocation24], %s14884_s7, %s14884_s7, %s14885_s9  }
 0x1ea   :  { %s285_s4 = sshll.u32 %s14894_s14, 4  ;;  %s14895_s19 = smov [#allocation31]   ;;  %s286_s4 = int_to_ptr.vmem [resolvable:$true] %s285_s4 }
 0x1eb   :  { %s309_s11 = sshll.u32 %s14895_s19, 4  ;;  %s310_s11 = int_to_ptr.vmem [resolvable:$true] %s309_s11 }
 0x1ee   :  { %s14569_s6 = scalar_lea.hbm %s17091_s10, 32 }
 0x1ef   :  { %p14570_p2 = scmp.ne.s32.totalorder %s17091_s10, %s14569_s6  ;;  %p14573_p3 = scmp.lt.u32.totalorder %s14569_s6, %s17091_s10 }
 0x1f1   :  { %p14575_p4 = pnand %p14573_p3, %p14570_p2 }
 0x1f3   :  { %14578 = shalt.err (!%p14575_p4)
}
 0x1f4   :  { %s14579_s0 = scalar_lea.vmem %s286_s4, 32  ;;  %p14584_p6 = scmp.lt.s32.totalorder %s286_s4, %s286_s4 }
 0x1f5   :  { %p14580_p5 = scmp.ne.s32.totalorder %s286_s4, %s14579_s0  ;;  %p14585_p7 = scmp.lt.s32.totalorder %s14579_s0, %s14579_s0 }
 0x1f7   :  { %p14586_p8 = por %p14585_p7, %p14584_p6 }
 0x1f9   :  { %p14587_p9 = pnand %p14586_p8, %p14580_p5 }
 0x1fb   :  { %14590 = shalt.err (!%p14587_p9)
}
 0x1fc   :  { %s17092_s15 = sld [smem:[#allocation81_spill]] }
 0x1fd   :  { %291 = dma.hbm_to_vmem [thread:$0]  %s17091_s10, 32, %s286_s4, [#allocation27], %s14884_s7, %s14884_s7, %s14885_s9  }
 0x202   :  { %s14591_s16 = scalar_lea.hbm %s17092_s15, 64 }
 0x203   :  { %p14592_p10 = scmp.ne.s32.totalorder %s17092_s15, %s14591_s16  ;;  %p14595_p11 = scmp.lt.u32.totalorder %s14591_s16, %s17092_s15 }
 0x205   :  { %p14597_p12 = pnand %p14595_p11, %p14592_p10 }
 0x207   :  { %14600 = shalt.err (!%p14597_p12)
}
 0x208   :  { %s14601_s22 = scalar_lea.vmem %s310_s11, 64  ;;  %p14606_p0 = scmp.lt.s32.totalorder %s310_s11, %s310_s11 }
 0x209   :  { %p14602_p13 = scmp.ne.s32.totalorder %s310_s11, %s14601_s22  ;;  %p14607_p1 = scmp.lt.s32.totalorder %s14601_s22, %s14601_s22 }
 0x20b   :  { %p14608_p2 = por %p14607_p1, %p14606_p0 }
 0x20d   :  { %p14609_p3 = pnand %p14608_p2, %p14602_p13 }
 0x20f   :  { %14612 = shalt.err (!%p14609_p3)
}
 0x210   :  { %s17093_s30 = sld [smem:[#allocation82_spill]]  ;;  %s14896_s24 = smov [#allocation34]  }
 0x211   :  { %315 = dma.hbm_to_vmem [thread:$0]  %s17092_s15, 64, %s310_s11, [#allocation30], %s14876_s25, %s14876_s25, %s14877_s27  }
 0x212   :  { %s333_s17 = sshll.u32 %s14896_s24, 4  ;;  %s14897_s8 = smov [#allocation37]   ;;  %s334_s17 = int_to_ptr.vmem [resolvable:$true] %s333_s17 }
 0x213   :  { %s357_s12 = sshll.u32 %s14897_s8, 4  ;;  %s358_s12 = int_to_ptr.vmem [resolvable:$true] %s357_s12 }
 0x216   :  { %s14613_s18 = scalar_lea.hbm %s17093_s30, 32 }
 0x217   :  { %p14614_p4 = scmp.ne.s32.totalorder %s17093_s30, %s14613_s18  ;;  %p14617_p5 = scmp.lt.u32.totalorder %s14613_s18, %s17093_s30 }
 0x219   :  { %p14619_p6 = pnand %p14617_p5, %p14614_p4 }
 0x21b   :  { %14622 = shalt.err (!%p14619_p6)
}
 0x21c   :  { %s14623_s23 = scalar_lea.vmem %s334_s17, 32  ;;  %p14628_p8 = scmp.lt.s32.totalorder %s334_s17, %s334_s17 }
 0x21d   :  { %p14624_p7 = scmp.ne.s32.totalorder %s334_s17, %s14623_s23  ;;  %p14629_p9 = scmp.lt.s32.totalorder %s14623_s23, %s14623_s23 }
 0x21f   :  { %p14630_p10 = por %p14629_p9, %p14628_p8 }
 0x221   :  { %p14631_p11 = pnand %p14630_p10, %p14624_p7 }
 0x223   :  { %14634 = shalt.err (!%p14631_p11)
}
 0x224   :  { %s17094_s27 = sld [smem:[#allocation83_spill]] }
 0x225   :  { %339 = dma.hbm_to_vmem [thread:$0]  %s17093_s30, 32, %s334_s17, [#allocation33], %s14884_s7, %s14884_s7, %s14885_s9  }
 0x22a   :  { %s14635_s1 = scalar_lea.hbm %s17094_s27, 32 }
 0x22b   :  { %p14636_p12 = scmp.ne.s32.totalorder %s17094_s27, %s14635_s1  ;;  %p14639_p13 = scmp.lt.u32.totalorder %s14635_s1, %s17094_s27 }
 0x22d   :  { %p14641_p0 = pnand %p14639_p13, %p14636_p12 }
 0x22f   :  { %14644 = shalt.err (!%p14641_p0)
}
 0x230   :  { %s14645_s2 = scalar_lea.vmem %s358_s12, 32  ;;  %p14650_p2 = scmp.lt.s32.totalorder %s358_s12, %s358_s12 }
 0x231   :  { %p14646_p1 = scmp.ne.s32.totalorder %s358_s12, %s14645_s2  ;;  %p14651_p3 = scmp.lt.s32.totalorder %s14645_s2, %s14645_s2 }
 0x233   :  { %p14652_p4 = por %p14651_p3, %p14650_p2 }
 0x235   :  { %p14653_p5 = pnand %p14652_p4, %p14646_p1 }
 0x237   :  { %14656 = shalt.err (!%p14653_p5)
}
 0x238   :  { %s17095_s29 = sld [smem:[#allocation84_spill]]  ;;  %s14898_s3 = smov [#allocation40]  }
 0x239   :  { %363 = dma.hbm_to_vmem [thread:$0]  %s17094_s27, 32, %s358_s12, [#allocation36], %s14884_s7, %s14884_s7, %s14885_s9  }
 0x23a   :  { %s381_s10 = sshll.u32 %s14898_s3, 4  ;;  %s14899_s14 = smov [#allocation43]   ;;  %s382_s10 = int_to_ptr.vmem [resolvable:$true] %s381_s10 }
 0x23b   :  { %s405_s4 = sshll.u32 %s14899_s14, 4  ;;  %s406_s4 = int_to_ptr.vmem [resolvable:$true] %s405_s4 }
 0x23e   :  { %s14657_s19 = scalar_lea.hbm %s17095_s29, 32 }
 0x23f   :  { %p14658_p6 = scmp.ne.s32.totalorder %s17095_s29, %s14657_s19  ;;  %p14661_p7 = scmp.lt.u32.totalorder %s14657_s19, %s17095_s29 }
 0x241   :  { %p14663_p8 = pnand %p14661_p7, %p14658_p6 }
 0x243   :  { %14666 = shalt.err (!%p14663_p8)
}
 0x244   :  { %s14667_s11 = scalar_lea.vmem %s382_s10, 32  ;;  %p14672_p10 = scmp.lt.s32.totalorder %s382_s10, %s382_s10 }
 0x245   :  { %p14668_p9 = scmp.ne.s32.totalorder %s382_s10, %s14667_s11  ;;  %p14673_p11 = scmp.lt.s32.totalorder %s14667_s11, %s14667_s11 }
 0x247   :  { %p14674_p12 = por %p14673_p11, %p14672_p10 }
 0x249   :  { %p14675_p13 = pnand %p14674_p12, %p14668_p9 }
 0x24b   :  { %14678 = shalt.err (!%p14675_p13)
}
 0x24c   :  { %s17096_s6 = sld [smem:[#allocation85_spill]] }
 0x24d   :  { %387 = dma.hbm_to_vmem [thread:$0]  %s17095_s29, 32, %s382_s10, [#allocation39], %s14884_s7, %s14884_s7, %s14885_s9  }
 0x252   :  { %s14679_s0 = scalar_lea.hbm %s17096_s6, 32 }
 0x253   :  { %p14680_p0 = scmp.ne.s32.totalorder %s17096_s6, %s14679_s0  ;;  %p14683_p1 = scmp.lt.u32.totalorder %s14679_s0, %s17096_s6 }
 0x255   :  { %p14685_p2 = pnand %p14683_p1, %p14680_p0 }
 0x257   :  { %14688 = shalt.err (!%p14685_p2)
}
 0x258   :  { %s14689_s15 = scalar_lea.vmem %s406_s4, 32  ;;  %p14694_p4 = scmp.lt.s32.totalorder %s406_s4, %s406_s4 }
 0x259   :  { %p14690_p3 = scmp.ne.s32.totalorder %s406_s4, %s14689_s15  ;;  %p14695_p5 = scmp.lt.s32.totalorder %s14689_s15, %s14689_s15 }
 0x25b   :  { %p14696_p6 = por %p14695_p5, %p14694_p4 }
 0x25d   :  { %p14697_p7 = pnand %p14696_p6, %p14690_p3 }
 0x25f   :  { %14700 = shalt.err (!%p14697_p7)
}
 0x260   :  { %s17097_s16 = sld [smem:[#allocation87_spill]]  ;;  %s14900_s22 = smov [#allocation46]  }
 0x261   :  { %411 = dma.hbm_to_vmem [thread:$0]  %s17096_s6, 32, %s406_s4, [#allocation42], %s14884_s7, %s14884_s7, %s14885_s9  }
 0x262   :  { %s431_s30 = sshll.u32 %s14900_s22, 4  ;;  %s14901_s24 = smov [#allocation49]   ;;  %s432_s30 = int_to_ptr.vmem [resolvable:$true] %s431_s30 }
 0x263   :  { %s455_s17 = sshll.u32 %s14901_s24, 4  ;;  %s456_s17 = int_to_ptr.vmem [resolvable:$true] %s455_s17 }
 0x266   :  { %s14701_s8 = scalar_lea.hbm %s17097_s16, 1024 }
 0x267   :  { %p14702_p8 = scmp.ne.s32.totalorder %s17097_s16, %s14701_s8  ;;  %p14705_p9 = scmp.lt.u32.totalorder %s14701_s8, %s17097_s16 }
 0x269   :  { %p14707_p10 = pnand %p14705_p9, %p14702_p8 }
 0x26b   :  { %14710 = shalt.err (!%p14707_p10)
}
 0x26c   :  { %s14711_s12 = scalar_lea.vmem %s432_s30, 1024  ;;  %p14716_p12 = scmp.lt.s32.totalorder %s432_s30, %s432_s30 }
 0x26d   :  { %p14712_p11 = scmp.ne.s32.totalorder %s432_s30, %s14711_s12  ;;  %p14717_p13 = scmp.lt.s32.totalorder %s14711_s12, %s14711_s12 }
 0x26f   :  { %p14718_p0 = por %p14717_p13, %p14716_p12 }
 0x271   :  { %p14719_p1 = pnand %p14718_p0, %p14712_p11 }
 0x273   :  { %14722 = shalt.err (!%p14719_p1)
}
 0x274   :  { %s17098_s18 = sld [smem:[#allocation89_spill]] }
 0x275   :  { %437 = dma.hbm_to_vmem [thread:$0]  %s17097_s16, 1024, %s432_s30, [#allocation45], %s14865_s26, %s14865_s26, %s14866_s28  }
 0x27a   :  { %s14723_s23 = scalar_lea.hbm %s17098_s18, 1024 }
 0x27b   :  { %p14724_p2 = scmp.ne.s32.totalorder %s17098_s18, %s14723_s23  ;;  %p14727_p3 = scmp.lt.u32.totalorder %s14723_s23, %s17098_s18 }
 0x27d   :  { %p14729_p4 = pnand %p14727_p3, %p14724_p2 }
 0x27f   :  { %14732 = shalt.err (!%p14729_p4)
}
 0x280   :  { %s14733_s27 = scalar_lea.vmem %s456_s17, 1024  ;;  %p14738_p6 = scmp.lt.s32.totalorder %s456_s17, %s456_s17 }
 0x281   :  { %p14734_p5 = scmp.ne.s32.totalorder %s456_s17, %s14733_s27  ;;  %p14739_p7 = scmp.lt.s32.totalorder %s14733_s27, %s14733_s27 }
 0x283   :  { %p14740_p8 = por %p14739_p7, %p14738_p6 }
 0x285   :  { %p14741_p9 = pnand %p14740_p8, %p14734_p5 }
 0x287   :  { %14744 = shalt.err (!%p14741_p9)
}
 0x288   :  { %s17099_s1 = sld [smem:[#allocation90_spill]]  ;;  %s14902_s2 = smov [#allocation50]  }
 0x289   :  { %461 = dma.hbm_to_vmem [thread:$0]  %s17098_s18, 1024, %s456_s17, [#allocation48], %s14865_s26, %s14865_s26, %s14866_s28  }
 0x28a   :  { %s467_s29 = sshll.u32 %s14902_s2, 4  ;;  %s468_s29 = int_to_ptr.vmem [resolvable:$true] %s467_s29 }
 0x28e   :  { %s14745_s3 = scalar_lea.hbm %s17099_s1, 32 }
 0x28f   :  { %p14746_p10 = scmp.ne.s32.totalorder %s17099_s1, %s14745_s3  ;;  %p14749_p11 = scmp.lt.u32.totalorder %s14745_s3, %s17099_s1 }
 0x291   :  { %p14751_p12 = pnand %p14749_p11, %p14746_p10 }
 0x293   :  { %14754 = shalt.err (!%p14751_p12)
}
 0x294   :  { %s14755_s10 = scalar_lea.vmem %s468_s29, 32  ;;  %p14760_p0 = scmp.lt.s32.totalorder %s468_s29, %s468_s29 }
 0x295   :  { %p14756_p13 = scmp.ne.s32.totalorder %s468_s29, %s14755_s10  ;;  %p14761_p1 = scmp.lt.s32.totalorder %s14755_s10, %s14755_s10 }
 0x297   :  { %p14762_p2 = por %p14761_p1, %p14760_p0 }
 0x299   :  { %p14763_p3 = pnand %p14762_p2, %p14756_p13 }
 0x29b   :  { %14766 = shalt.err (!%p14763_p3)
}
 0x29c   :  { %473 = dma.hbm_to_vmem [thread:$0]  %s17099_s1, 32, %s468_s29, [#allocation51], %s14884_s7, %s14884_s7, %s14885_s9  }
 0x29d   :  { %14789 = dma.done.wait [#allocation3], 256  }
 0x29e   :  { %14790 = vsyncadd [#allocation3], 4294967040 }
 0x29f   :  { %14791 = dma.done.wait [#allocation6], 288  }
 0x2a0   :  { %14792 = vsyncadd [#allocation6], 4294967008 }
 0x2a1   :  { %14793 = dma.done.wait [#allocation9], 2640  }
 0x2a2   :  { %14794 = vsyncadd [#allocation9], 4294964656 }
 0x2a3   :  { %14795 = dma.done.wait [#allocation12], 256  }
 0x2a4   :  { %14796 = vsyncadd [#allocation12], 4294967040 }
 0x2a5   :  { %14797 = dma.done.wait [#allocation15], 64  }
 0x2a6   :  { %14798 = vsyncadd [#allocation15], 4294967232 }
 0x2a7   :  { %14799 = dma.done.wait [#allocation18], 64  }
 0x2a8   :  { %14800 = vsyncadd [#allocation18], 4294967232 }
 0x2a9   :  { %14801 = dma.done.wait [#allocation21], 1056  }
 0x2aa   :  { %14802 = vsyncadd [#allocation21], 4294966240 }
 0x2ab   :  { %14803 = dma.done.wait [#allocation24], 1056  }
 0x2ac   :  { %14804 = vsyncadd [#allocation24], 4294966240 }
 0x2ad   :  { %14805 = dma.done.wait [#allocation27], 1056  }
 0x2ae   :  { %14806 = vsyncadd [#allocation27], 4294966240 }
 0x2af   :  { %14807 = dma.done.wait [#allocation30], 128  }
 0x2b0   :  { %14808 = vsyncadd [#allocation30], 4294967168 }
 0x2b1   :  { %14809 = dma.done.wait [#allocation33], 1056  }
 0x2b2   :  { %14810 = vsyncadd [#allocation33], 4294966240 }
 0x2b3   :  { %14811 = dma.done.wait [#allocation36], 1056  }
 0x2b4   :  { %14812 = vsyncadd [#allocation36], 4294966240 }
 0x2b5   :  { %14813 = dma.done.wait [#allocation39], 1056  }
 0x2b6   :  { %14814 = vsyncadd [#allocation39], 4294966240 }
 0x2b7   :  { %14815 = dma.done.wait [#allocation42], 1056  }
 0x2b8   :  { %14816 = vsyncadd [#allocation42], 4294966240 }
 0x2b9   :  { %14817 = dma.done.wait [#allocation45], 1056  }
 0x2ba   :  { %14818 = vsyncadd [#allocation45], 4294966240 }
 0x2bb   :  { %14819 = dma.done.wait [#allocation48], 1056  }
 0x2bc   :  { %14820 = vsyncadd [#allocation48], 4294966240 }
 0x2bd   :  { %14821 = dma.done.wait [#allocation51], 32  }
 0x2be   :  { %14822 = vsyncadd [#allocation51], 4294967264  ;;  %s17100_s9 = sld [smem:[#allocation76_spill]]  ;;  %v14903_v0 = vmov 0.0   ;;  %v582_v1 = vld [vmem:[#allocation8 + $0x18] sm:$0xff]  ;;  %v587_v2 = vld [vmem:[#allocation8 + $0x40] sm:$0xff] }
 0x2bf   :  { %765 = vmatprep.mubr.f32.mxu1 %v14903_v0  ;;  %694 = vmatprep.mubr.f32.mxu0 %v14903_v0  ;;  %v581_v3 = vld [vmem:[#allocation8 + $0x10] sm:$0xff]  ;;  %v13542_v4 = vpack.c.bf16 %v587_v2, %v582_v1  ;;  %v586_v5 = vld [vmem:[#allocation8 + $0x38] sm:$0xff]  ;;  %v592_v6 = vld [vmem:[#allocation8 + $0x68] sm:$0xff]  ;;  %vm626_vm0 = vcmask 261120   ;;  %v14904_v34 = vmov 0.0|0.0   ;;  %vm14905_vm1 = vmmov 0  }
 0x2c0   :  { %v597_v7 = vld [vmem:[#allocation8 + $0x90] sm:$0xff]  ;;  %v13544_v8 = vpack.c.bf16 %v586_v5, %v581_v3  ;;  %v591_v10 = vld [vmem:[#allocation8 + $0x60] sm:$0xff]  ;;  %v596_v11 = vld [vmem:[#allocation8 + $0x88] sm:$0xff]  ;;  %s14906_s14 = smov 112   ;;  %s14907_s4 = smov 120   ;;  %vm1027_vm2 = vcmask 64512   ;;  %v601_v5 = vlaneseq }
 0x2c1   :  { %v13546_v9 = vpack.c.bf16 %v597_v7, %v592_v6  ;;  %13543 = vmatprep.subr.bf16.mxu1 %v13542_v4  ;;  %v13548_v14 = vpack.c.bf16 %v596_v11, %v591_v10  ;;  %v578_v18 = vld [vmem:[#allocation7] sm:$0x3]  ;;  %v15346_v21 = vld [vmem:[#allocation2 + $0x8] sm:$0xff]  ;;  %v585_v23 = vld [vmem:[#allocation8 + $0x30] sm:$0xff]  ;;  %s14908_s19 = smov 104   ;;  %s14909_s11 = smov 96  }
 0x2c2   :  { %13545 = vmatpush1.bf16.msra.mxu1 %v13544_v8  ;;  %v15341_v20 = vld [vmem:[#allocation2] sm:$0xff]  ;;  %v580_v22 = vld [vmem:[#allocation8 + $0x8] sm:$0xff]  ;;  %v589_v31 = vld [vmem:[#allocation8 + $0x50] sm:$0xff]  ;;  %v14910_v3 = vmov 1966171168   ;;  %v15462_v8 = vshrl.u32 %v601_v5, 7 }
 0x2c3   :  { %13547 = vmatprep.subr.bf16.mxu1 %v13546_v9  ;;  %v579_v24 = vld [vmem:[#allocation8] sm:$0xff]  ;;  %v13534_v25 = vpack.c.bf16 %v585_v23, %v580_v22  ;;  %v584_v26 = vld [vmem:[#allocation8 + $0x28] sm:$0xff]  ;;  %v590_v27 = vld [vmem:[#allocation8 + $0x58] sm:$0xff]  ;;  %v854_v4 = vunpack.c.l.s4 %v14910_v3  ;;  %s14911_s6 = smov 64   ;;  %s14912_s0 = smov 24   ;;  %vm2380_vm3 = vcmask 130048  }
 0x2c4   :  { %v919_v12 = vld [vmem:[%s17100_s9] sm:$0xff]  ;;  %v920_v13 = vld [vmem:[%s17100_s9 + $0x8] sm:$0xff]  ;;  %v921_v16 = vld [vmem:[%s17100_s9 + $0x10] sm:$0xff]  ;;  %v13536_v29 = vpack.c.bf16 %v584_v26, %v579_v24  ;;  %vm2383_vm4 = vcmask 195584   ;;  %s17101_s15 = sld [smem:[#allocation91_spill]]  ;;  %s17102_s16 = sld [smem:[#allocation86_spill]] }
 0x2c5   :  { %v13556_v15 = vpack.c.bf16 %v920_v13, %v919_v12  ;;  %v922_v17 = vld [vmem:[%s17100_s9 + $0x18] sm:$0xff]  ;;  %v595_v28 = vld [vmem:[#allocation8 + $0x80] sm:$0xff]  ;;  %13535 = vmatprep.subr.bf16.mxu0 %v13534_v25  ;;  %v588_v36 = vld [vmem:[#allocation8 + $0x48] sm:$0xff]  ;;  %v855_v7 = vunpack.c.0.s8 %v854_v4  ;;  %v15470_v13 = vsub.s32 0, %v15462_v8 }
 0x2c6   :  { %13549 = vmatpush1.bf16.msra.mxu1 %v13548_v14  ;;  %v13560_v19 = vpack.c.bf16 %v922_v17, %v921_v16  ;;  %v13538_v30 = vpack.c.bf16 %v595_v28, %v590_v27  ;;  %v594_v32 = vld [vmem:[#allocation8 + $0x78] sm:$0xff]  ;;  %13537 = vmatpush1.bf16.msra.mxu0 %v13536_v29  ;;  %v583_v35 = vld [vmem:[#allocation8 + $0x20] sm:$0xff]  ;;  %v593_v38 = vld [vmem:[#allocation8 + $0x70] sm:$0xff] }
 0x2c7   :  { %13557 = vmatprep.subr.bf16.mxu1 %v13556_v15  ;;  %v13540_v33 = vpack.c.bf16 %v594_v32, %v589_v31  ;;  %v13551_v37 = vpack.c.bf16 %v588_v36, %v583_v35  ;;  %v598_v39 = vld [vmem:[#allocation8 + $0x98] sm:$0xff]  ;;  %v12229_v6 = vld.sshfl [vmem:[#allocation14] sm:$0x11 pattern:$0x75316420]  ;;  %v15465_v10 = vsub.s32 %v855_v7, %v15462_v8 }
 0x2c8   :  { %13539 = vmatprep.subr.bf16.mxu0 %v13538_v30  ;;  %v13554_v41 = vpack.c.bf16 %v598_v39, %v593_v38  ;;  %v12231_v43 = vld [vmem:[#allocation19] ss:$0 sm:$0xff]  ;;  %v852_v9 = vcombine.high %v12229_v6, %v12229_v6 }
 0x2c9   :  { %12227 = vmatmul.mubr.msk.f32.vlgmr.msra.gmra.mrb[0].mxu1 %vm626_vm0, %v578_v18  ;;  %v859_v12 = vrot.slane %v12229_v6, %v15465_v10 }
 0x2ca   :  { %13559 = vmatpush3.bf16.msra.mxu1 %v13556_v15  ;;  %12809 = vmatprep.mubr.msk.f32.mxu1 %vm626_vm0, %v15341_v20  ;;  %v866_v11 = vrot.slane %v852_v9, %v15465_v10  ;;  %v842_v15 = vld [vmem:[#allocation11] sm:$0xff] }
 0x2cb   :  { %13561 = vmatprep.subr.bf16.mxu1 %v13560_v19  ;;  %13541 = vmatpush1.bf16.msra.mxu0 %v13540_v33  ;;  %v870_v16 = vrot.slane %v859_v12, %v15470_v13 }
 0x2cc   :  { %13550 = vmatprep.subr.bf16.mxu0 %v14904_v34  ;;  %v874_v14 = vrot.slane %v866_v11, %v15470_v13 }
 0x2ce   :  { %13563 = vmatpush3.bf16.msra.mxu1 %v13560_v19  ;;  %12226 = vmatmul.mubr.msk.f32.vlgmr.msra.gmra.mrb[0].mxu0 %vm626_vm0, %v578_v18  ;;  %v15474_v17 = vadd.f32 %v874_v14, %v842_v15  ;;  %v15476_v19 = vadd.f32 %v870_v16, %v842_v15 }
 0x2cf   :  { %12817 = vmatprep.subr.mxu1 %v14903_v0  ;;  %13552 = vmatpush3.bf16.msra.mxu0 %v13551_v37 }
 0x2d0   :  { %13553 = vmatprep.subr.bf16.mxu0 %v14904_v34  ;;  %12798 = vmatprep.mubr.msk.f32.mxu0 %vm14905_vm1, %v14903_v0 }
 0x2d1   :  { %12810 = vmatmul.mubr.msk.f32.vlgmr.msra.gmra.mrb[2].mxu1 %vm626_vm0, %v15346_v21 }
 0x2d2   :  { %12819 = vmatprep.mubr.msk.f32.mxu1 %vm14905_vm1, %v14903_v0 }
 0x2d3   :  { %13555 = vmatpush3.bf16.msra.mxu0 %v13554_v41 }
 0x2d4   :  { %12812 = vmatprep.subr.mxu0 %v14903_v0 }
 0x2d6   :  { %12799 = vmatmul.mubr.msk.f32.vlgmr.msra.gmra.mrb[2].mxu0 %vm626_vm0, %v578_v18 }
 0x2d7   :  { %12814 = vmatprep.mubr.msk.f32.mxu0 %vm14905_vm1, %v14903_v0 }
 0x39c   :  { %v15352_v40 = vpop.f32.mrb[0].mxu1 }
 0x39d   :  { %v15354_v42 = vpop.f32.mrb[1].mxu1 }
 0x3a1   :  { %v15390_v50 = vpop.f32.mrb[0].mxu0 }
 0x3a2   :  { %v15400_v53 = vpop.f32.mrb[1].mxu0 }
 0x3a4   :  { %v12811_v44 = vpop.f32.mrb[2].mxu1 }
 0x3a5   :  { %v1002_v45 = vpop.f32.mrb[3].mxu1  ;;  %v15370_v47 = vadd.f32 %v12811_v44, %v12231_v43 }
 0x3a6   :  { %v15362_v46 = vadd.f32 %v12231_v43, %v1002_v45 }
 0x3a8   :  { %1017 = vrot.lane.b32.xlu1 %v15362_v46, %s14906_s14  ;;  %1013 = vrot.lane.b32.xlu0 %v15362_v46, %s14907_s4 }
 0x3a9   :  { %v15424_v58 = vpop.f32.mrb[2].mxu0 }
 0x3aa   :  { %v12800_v59 = vpop.f32.mrb[3].mxu0 }
 0x3ac   :  { %1019 = vrot.lane.b32.xlu1 %v15370_v47, %s14906_s14  ;;  %1015 = vrot.lane.b32.xlu0 %v15370_v47, %s14907_s4 }
 0x3b0   :  { %1023 = vrot.lane.b32.xlu1 %v15370_v47, %s14908_s19  ;;  %1021 = vrot.lane.b32.xlu0 %v15362_v46, %s14908_s19 }
 0x3b4   :  { %1102 = vrot.lane.b32.xlu1 %v15370_v47, %s14909_s11  ;;  %1025 = vrot.lane.b32.xlu0 %v15362_v46, %s14909_s11 }
 0x41a   :  { %v15384_v48 = vpop.permute.xlu1 %1017  ;;  %v15386_v49 = vpop.permute.xlu0 %1013 }
 0x41b   :  { %1178 = vrot.lane.b32.xlu0 %v15386_v49, %s14909_s11 }
 0x41e   :  { %v15392_v51 = vpop.permute.xlu1 %1019  ;;  %v15394_v52 = vpop.permute.xlu0 %1015 }
 0x41f   :  { %1330 = vrot.lane.b32.xlu0 %v15384_v48, %s14909_s11  ;;  %1254 = vrot.lane.b32.xlu1 %v15394_v52, %s14909_s11 }
 0x422   :  { %v15402_v54 = vpop.permute.xlu1 %1023  ;;  %v15404_v55 = vpop.permute.xlu0 %1021 }
 0x423   :  { %1406 = vrot.lane.b32.xlu1 %v15392_v51, %s14909_s11  ;;  %1482 = vrot.lane.b32.xlu0 %v15404_v55, %s14909_s11 }
 0x426   :  { %v1103_v56 = vpop.permute.xlu1 %1102  ;;  %v1026_v57 = vpop.permute.xlu0 %1025 }
 0x427   :  { %12818 = vmatpush3.xpose.msk.msra.mxu1 %vm1027_vm2, %v1103_v56  ;;  %1558 = vrot.lane.b32.xlu1 %v15402_v54, %s14909_s11 }
 0x428   :  { %12813 = vmatpush3.xpose.msk.msra.mxu0 %vm1027_vm2, %v1026_v57  ;;  %12827 = vmatprep.subr.mxu1 %v14903_v0 }
 0x429   :  { %12822 = vmatprep.subr.mxu0 %v14903_v0 }
 0x42a   :  { %12820 = vmatmul.mubr.msk.f32.vlgmr.msra.gmra.mrb[4].mxu1 %vm1027_vm2, %v15370_v47 }
 0x42b   :  { %12815 = vmatmul.mubr.msk.f32.vlgmr.msra.gmra.mrb[4].mxu0 %vm1027_vm2, %v15362_v46  ;;  %12829 = vmatprep.mubr.msk.f32.mxu1 %vm14905_vm1, %v14903_v0 }
 0x42c   :  { %12824 = vmatprep.mubr.msk.f32.mxu0 %vm14905_vm1, %v14903_v0 }
 0x48d   :  { %v1179_v60 = vpop.permute.xlu0 %1178 }
 0x48e   :  { %12823 = vmatpush3.xpose.msk.msra.mxu0 %vm1027_vm2, %v1179_v60 }
 0x48f   :  { %12832 = vmatprep.subr.mxu0 %v14903_v0 }
 0x491   :  { %v1255_v61 = vpop.permute.xlu1 %1254  ;;  %v1331_v62 = vpop.permute.xlu0 %1330  ;;  %12825 = vmatmul.mubr.msk.f32.vlgmr.msra.gmra.mrb[6].mxu0 %vm1027_vm2, %v15386_v49 }
 0x492   :  { %12828 = vmatpush3.xpose.msk.msra.mxu1 %vm1027_vm2, %v1255_v61  ;;  %12833 = vmatpush3.xpose.msk.msra.mxu0 %vm1027_vm2, %v1331_v62 }
 0x493   :  { %12834 = vmatprep.mubr.msk.f32.mxu0 %vm14905_vm1, %v14903_v0  ;;  %12837 = vmatprep.subr.mxu1 %v14903_v0 }
 0x494   :  { %12842 = vmatprep.subr.mxu0 %v14903_v0 }
 0x495   :  { %12830 = vmatmul.mubr.msk.f32.vlgmr.msra.gmra.mrb[6].mxu1 %vm1027_vm2, %v15394_v52  ;;  %v1407_v63 = vpop.permute.xlu1 %1406  ;;  %v1483_v1 = vpop.permute.xlu0 %1482  ;;  %12835 = vmatmul.mubr.msk.f32.vlgmr.msra.gmra.mrb[8].mxu0 %vm1027_vm2, %v15384_v48 }
 0x496   :  { %12838 = vmatpush3.xpose.msk.msra.mxu1 %vm1027_vm2, %v1407_v63  ;;  %12843 = vmatpush3.xpose.msk.msra.mxu0 %vm1027_vm2, %v1483_v1 }
 0x497   :  { %12839 = vmatprep.mubr.msk.f32.mxu1 %vm14905_vm1, %v14903_v0  ;;  %12844 = vmatprep.mubr.msk.f32.mxu0 %vm14905_vm1, %v14903_v0 }
 0x498   :  { %12847 = vmatprep.subr.mxu1 %v14903_v0  ;;  %12852 = vmatprep.subr.mxu0 %v14903_v0 }
 0x499   :  { %12840 = vmatmul.mubr.msk.f32.vlgmr.msra.gmra.mrb[8].mxu1 %vm1027_vm2, %v15392_v51  ;;  %v1559_v2 = vpop.permute.xlu1 %1558  ;;  %12845 = vmatmul.mubr.msk.f32.vlgmr.msra.gmra.mrb[10].mxu0 %vm1027_vm2, %v15404_v55 }
 0x49a   :  { %12848 = vmatpush3.xpose.msk.msra.mxu1 %vm1027_vm2, %v1559_v2  ;;  %12849 = vmatprep.mubr.msk.f32.mxu1 %vm14905_vm1, %v14903_v0 }
 0x49b   :  { %12857 = vmatprep.subr.mxu1 %v14903_v0  ;;  %12854 = vmatprep.mubr.msk.f32.mxu0 %vm14905_vm1, %v14903_v0 }
 0x49d   :  { %12850 = vmatmul.mubr.msk.f32.vlgmr.msra.gmra.mrb[10].mxu1 %vm1027_vm2, %v15402_v54 }
 0x49e   :  { %12859 = vmatprep.mubr.msk.f32.mxu1 %vm14905_vm1, %v14903_v0 }
 0x4fd   :  { %v1174_v18 = vpop.f32.mrb[4].mxu1 }
 0x4fe   :  { %v1098_v22 = vpop.f32.mrb[4].mxu0  ;;  %v1635_v23 = vmul.f32 0.35355338, %v1174_v18  ;;  %v12821_v24 = vpop.f32.mrb[5].mxu1 }
 0x4ff   :  { %v1634_v25 = vmul.f32 0.35355338, %v1098_v22  ;;  %v12816_v26 = vpop.f32.mrb[5].mxu0 }
 0x500   :  { %v1643_v27 = vadd.f32 %v1635_v23, %v15474_v17 }
 0x501   :  { %v1642_v28 = vadd.f32 %v1634_v25, %v15476_v19 }
 0x502   :  { %v1653_v29 = vsel %vm1027_vm2, %v1643_v27, -inf }
 0x503   :  { %1654 = vmax.xlane.f32.xlu1 %v1653_v29  ;;  %v1650_v30 = vsel %vm1027_vm2, %v1642_v28, -inf }
 0x504   :  { %1651 = vmax.xlane.f32.xlu0 %v1650_v30 }
 0x564   :  { %v1250_v31 = vpop.f32.mrb[6].mxu0 }
 0x565   :  { %v1636_v32 = vmul.f32 0.35355338, %v1250_v31  ;;  %v12826_v33 = vpop.f32.mrb[7].mxu0 }
 0x567   :  { %v1644_v34 = vadd.f32 %v1636_v32, %v15476_v19 }
 0x568   :  { %v1326_v35 = vpop.f32.mrb[6].mxu1  ;;  %v1402_v36 = vpop.f32.mrb[8].mxu0 }
 0x569   :  { %v1637_v37 = vmul.f32 0.35355338, %v1326_v35  ;;  %v1638_v38 = vmul.f32 0.35355338, %v1402_v36  ;;  %v12831_v39 = vpop.f32.mrb[7].mxu1  ;;  %v12836_v41 = vpop.f32.mrb[9].mxu0 }
 0x56a   :  { %v1656_v43 = vsel %vm1027_vm2, %v1644_v34, -inf }
 0x56b   :  { %1657 = vmax.xlane.f32.xlu0 %v1656_v43  ;;  %v1645_v44 = vadd.f32 %v1637_v37, %v15474_v17  ;;  %v1646_v45 = vadd.f32 %v1638_v38, %v15476_v19 }
 0x56c   :  { %v1478_v56 = vpop.f32.mrb[8].mxu1  ;;  %v1554_v57 = vpop.f32.mrb[10].mxu0 }
 0x56d   :  { %v1639_v59 = vmul.f32 0.35355338, %v1478_v56  ;;  %v1640_v60 = vmul.f32 0.35355338, %v1554_v57  ;;  %v12841_v61 = vpop.f32.mrb[9].mxu1  ;;  %v12846_v62 = vpop.f32.mrb[11].mxu0 }
 0x56e   :  { %v1659_v63 = vsel %vm1027_vm2, %v1645_v44, -inf  ;;  %v1662_v1 = vsel %vm1027_vm2, %v1646_v45, -inf }
 0x56f   :  { %1660 = vmax.xlane.f32.xlu0 %v1659_v63  ;;  %1663 = vmax.xlane.f32.xlu1 %v1662_v1  ;;  %v1647_v2 = vadd.f32 %v1639_v59, %v15474_v17  ;;  %v1648_v3 = vadd.f32 %v1640_v60, %v15476_v19 }
 0x570   :  { %v1630_v4 = vpop.f32.mrb[10].mxu1 }
 0x571   :  { %v1641_v5 = vmul.f32 0.35355338, %v1630_v4  ;;  %v12851_v6 = vpop.f32.mrb[11].mxu1  ;;  %v1665_v7 = vsel %vm1027_vm2, %v1647_v2, -inf  ;;  %v1668_v9 = vsel %vm1027_vm2, %v1648_v3, -inf }
 0x573   :  { %1666 = vmax.xlane.f32.xlu0 %v1665_v7  ;;  %1669 = vmax.xlane.f32.xlu1 %v1668_v9  ;;  %v1649_v11 = vadd.f32 %v1641_v5, %v15474_v17 }
 0x575   :  { %v1671_v12 = vsel %vm1027_vm2, %v1649_v11, -inf }
 0x577   :  { %1672 = vmax.xlane.f32.xlu0 %v1671_v12 }
 0x584   :  { %1746 = vrot.lane.b32.xlu1 %v15362_v46, %s14911_s6 }
 0x588   :  { %1898 = vrot.lane.b32.xlu1 %v15386_v49, %s14911_s6 }
 0x58c   :  { %1974 = vrot.lane.b32.xlu1 %v15394_v52, %s14911_s6 }
 0x58d   :  { %1822 = vrot.lane.b32.xlu0 %v15370_v47, %s14911_s6 }
 0x590   :  { %2126 = vrot.lane.b32.xlu1 %v15392_v51, %s14911_s6  ;;  %v1655_v14 = vpop.xlane.xlu1 %1654 }
 0x591   :  { %2050 = vrot.lane.b32.xlu0 %v15384_v48, %s14911_s6  ;;  %v1675_v15 = vsub.f32 %v1643_v27, %v1655_v14  ;;  %v1652_v16 = vpop.xlane.xlu0 %1651 }
 0x592   :  { %v1674_v46 = vsub.f32 %v1642_v28, %v1652_v16 }
 0x593   :  { %v1684_v18 = vmul.f32 1.442695, %v1675_v15 }
 0x594   :  { %v1682_v22 = vmul.f32 1.442695, %v1674_v46 }
 0x595   :  { %13829 = vpow2.f32 %v1684_v18 }
 0x596   :  { %13831 = vpow2.f32 %v1682_v22 }
 0x59f   :  { %v15506_v49 = vpop.eup %13829 }
 0x5a0   :  { %v1701_v52 = vsel %vm1027_vm2, %v15506_v49, 0.0  ;;  %v15510_v47 = vpop.eup %13831 }
 0x5a1   :  { %v1698_v51 = vsel %vm1027_vm2, %v15510_v47, 0.0 }
 0x5b0   :  { %1702 = vadd.xlane.f32.xlu0 %v1701_v52 }
 0x5b4   :  { %1699 = vadd.xlane.f32.xlu1 %v1698_v51 }
 0x5f8   :  { %v1658_v48 = vpop.xlane.xlu0 %1657 }
 0x5f9   :  { %v1676_v23 = vsub.f32 %v1644_v34, %v1658_v48 }
 0x5fb   :  { %v1686_v24 = vmul.f32 1.442695, %v1676_v23 }
 0x5fc   :  { %v1661_v25 = vpop.xlane.xlu0 %1660  ;;  %v1664_v26 = vpop.xlane.xlu1 %1663 }
 0x5fd   :  { %13833 = vpow2.f32 %v1686_v24  ;;  %v1677_v27 = vsub.f32 %v1645_v44, %v1661_v25  ;;  %v1678_v28 = vsub.f32 %v1646_v45, %v1664_v26 }
 0x5ff   :  { %v1688_v29 = vmul.f32 1.442695, %v1677_v27  ;;  %v1690_v30 = vmul.f32 1.442695, %v1678_v28 }
 0x600   :  { %v1667_v31 = vpop.xlane.xlu0 %1666  ;;  %v1670_v32 = vpop.xlane.xlu1 %1669 }
 0x601   :  { %13835 = vpow2.f32 %v1688_v29  ;;  %v1679_v33 = vsub.f32 %v1647_v2, %v1667_v31  ;;  %v1680_v35 = vsub.f32 %v1648_v3, %v1670_v32 }
 0x602   :  { %13837 = vpow2.f32 %v1690_v30 }
 0x603   :  { %v1692_v36 = vmul.f32 1.442695, %v1679_v33  ;;  %v1694_v37 = vmul.f32 1.442695, %v1680_v35 }
 0x604   :  { %v1673_v38 = vpop.xlane.xlu0 %1672  ;;  %v1747_v39 = vpop.permute.xlu1 %1746 }
 0x605   :  { %13839 = vpow2.f32 %v1692_v36  ;;  %v1681_v34 = vsub.f32 %v1649_v11, %v1673_v38  ;;  %12853 = vmatpush3.msra.mxu0 %v1747_v39 }
 0x606   :  { %13841 = vpow2.f32 %v1694_v37  ;;  %12862 = vmatprep.subr.mxu0 %v14903_v0 }
 0x607   :  { %v15515_v41 = vpop.eup %13833  ;;  %v1696_v43 = vmul.f32 1.442695, %v1681_v34 }
 0x608   :  { %v1823_v44 = vpop.permute.xlu0 %1822  ;;  %v1704_v45 = vsel %vm1027_vm2, %v15515_v41, 0.0  ;;  %v1899_v4 = vpop.permute.xlu1 %1898 }
 0x609   :  { %13843 = vpow2.f32 %v1696_v43  ;;  %12858 = vmatpush3.msra.mxu1 %v1823_v44  ;;  %1705 = vadd.xlane.f32.xlu1 %v1704_v45 }
 0x60a   :  { %12867 = vmatprep.subr.mxu1 %v14903_v0 }
 0x60b   :  { %v15520_v56 = vpop.eup %13835 }
 0x60c   :  { %v15522_v57 = vpop.eup %13837  ;;  %v1707_v59 = vsel %vm1027_vm2, %v15520_v56, 0.0  ;;  %v1975_v5 = vpop.permute.xlu1 %1974 }
 0x60d   :  { %1708 = vadd.xlane.f32.xlu0 %v1707_v59  ;;  %v1710_v60 = vsel %vm1027_vm2, %v15522_v57, 0.0  ;;  %v2051_v6 = vpop.permute.xlu0 %2050  ;;  %v2387_v59 = vld [vmem:[#allocation20 + $0x8] sm:$0xff] }
 0x60e   :  { %1711 = vadd.xlane.f32.xlu1 %v1710_v60 }
 0x60f   :  { %v15528_v61 = vpop.eup %13839 }
 0x610   :  { %v15530_v62 = vpop.eup %13841  ;;  %v1713_v63 = vsel %vm1027_vm2, %v15528_v61, 0.0  ;;  %v2127_v7 = vpop.permute.xlu1 %2126 }
 0x611   :  { %1714 = vadd.xlane.f32.xlu0 %v1713_v63  ;;  %v1716_v1 = vsel %vm1027_vm2, %v15530_v62, 0.0  ;;  %v2388_v63 = vld [vmem:[#allocation20 + $0x10] sm:$0xff] }
 0x612   :  { %1717 = vadd.xlane.f32.xlu1 %v1716_v1  ;;  %v2389_v1 = vld [vmem:[#allocation20 + $0x18] sm:$0xff] }
 0x613   :  { %v15536_v2 = vpop.eup %13843 }
 0x614   :  { %v1719_v3 = vsel %vm1027_vm2, %v15536_v2, 0.0 }
 0x615   :  { %1720 = vadd.xlane.f32.xlu0 %v1719_v3  ;;  %v13568_v3 = vpack.c.bf16 %v2389_v1, %v2388_v63 }
 0x623   :  { %2278 = vrot.lane.b32.xlu1 %v15402_v54, %s14911_s6 }
 0x62b   :  { %2202 = vrot.lane.b32.xlu0 %v15404_v55, %s14911_s6 }
 0x63d   :  { %v1703_v9 = vpop.xlane.xlu0 %1702 }
 0x63e   :  { %v1723_v11 = vmax.f32 %v1703_v9, 1e-20 }
 0x640   :  { %13845 = vrcp.f32 %v1723_v11 }
 0x641   :  { %v1700_v12 = vpop.xlane.xlu1 %1699 }
 0x642   :  { %v1722_v14 = vmax.f32 %v1700_v12, 1e-20 }
 0x644   :  { %13847 = vrcp.f32 %v1722_v14 }
 0x64a   :  { %v13846_v15 = vpop.eup %13845 }
 0x64b   :  { %v1733_v16 = vmul.f32 %v13846_v15, %v15506_v49 }
 0x64d   :  { %12860 = vmatmul.mubr.msk.f32.vlgmr.msra.gmra.mrb[12].mxu1 %vm1027_vm2, %v1733_v16 }
 0x64e   :  { %v13848_v18 = vpop.eup %13847  ;;  %12868 = vmatpush3.msra.mxu1 %v1975_v5  ;;  %12869 = vmatprep.mubr.msk.f32.mxu1 %vm14905_vm1, %v14903_v0 }
 0x64f   :  { %v1731_v54 = vmul.f32 %v13848_v18, %v15510_v47  ;;  %12877 = vmatprep.subr.mxu1 %v14903_v0 }
 0x651   :  { %12855 = vmatmul.mubr.msk.f32.vlgmr.msra.gmra.mrb[12].mxu0 %vm1027_vm2, %v1731_v54 }
 0x652   :  { %12863 = vmatpush3.msra.mxu0 %v1899_v4  ;;  %12864 = vmatprep.mubr.msk.f32.mxu0 %vm14905_vm1, %v14903_v0 }
 0x653   :  { %12872 = vmatprep.subr.mxu0 %v14903_v0 }
 0x696   :  { %v1706_v55 = vpop.xlane.xlu1 %1705 }
 0x697   :  { %v1724_v46 = vmax.f32 %v1706_v55, 1e-20 }
 0x699   :  { %13849 = vrcp.f32 %v1724_v46 }
 0x69a   :  { %v1709_v22 = vpop.xlane.xlu0 %1708 }
 0x69b   :  { %v1725_v49 = vmax.f32 %v1709_v22, 1e-20  ;;  %v1712_v52 = vpop.xlane.xlu1 %1711 }
 0x69c   :  { %v1726_v51 = vmax.f32 %v1712_v52, 1e-20 }
 0x69d   :  { %13851 = vrcp.f32 %v1725_v49 }
 0x69e   :  { %13853 = vrcp.f32 %v1726_v51  ;;  %v1715_v47 = vpop.xlane.xlu0 %1714 }
 0x69f   :  { %v1727_v48 = vmax.f32 %v1715_v47, 1e-20  ;;  %v1718_v23 = vpop.xlane.xlu1 %1717 }
 0x6a0   :  { %v1728_v24 = vmax.f32 %v1718_v23, 1e-20 }
 0x6a1   :  { %13855 = vrcp.f32 %v1727_v48 }
 0x6a2   :  { %13857 = vrcp.f32 %v1728_v24  ;;  %v1721_v25 = vpop.xlane.xlu0 %1720 }
 0x6a3   :  { %v13850_v26 = vpop.eup %13849  ;;  %v1729_v27 = vmax.f32 %v1721_v25, 1e-20  ;;  %v2279_v39 = vpop.permute.xlu1 %2278 }
 0x6a4   :  { %v1735_v28 = vmul.f32 %v13850_v26, %v15515_v41 }
 0x6a5   :  { %13859 = vrcp.f32 %v1729_v27 }
 0x6a6   :  { %12865 = vmatmul.mubr.msk.f32.vlgmr.msra.gmra.mrb[14].mxu0 %vm1027_vm2, %v1735_v28  ;;  %v2203_v35 = vpop.permute.xlu0 %2202 }
 0x6a7   :  { %v13852_v29 = vpop.eup %13851  ;;  %12873 = vmatpush3.msra.mxu0 %v2051_v6  ;;  %12874 = vmatprep.mubr.msk.f32.mxu0 %vm14905_vm1, %v14903_v0 }
 0x6a8   :  { %v13854_v30 = vpop.eup %13853  ;;  %12882 = vmatprep.subr.mxu0 %v14903_v0  ;;  %v1737_v31 = vmul.f32 %v13852_v29, %v15520_v56 }
 0x6a9   :  { %v1739_v32 = vmul.f32 %v13854_v30, %v15522_v57  ;;  %v2386_v57 = vld [vmem:[#allocation20] sm:$0xff] }
 0x6aa   :  { %12870 = vmatmul.mubr.msk.f32.vlgmr.msra.gmra.mrb[14].mxu1 %vm1027_vm2, %v1737_v31  ;;  %v13564_v60 = vpack.c.bf16 %v2387_v59, %v2386_v57 }
 0x6ab   :  { %v13856_v33 = vpop.eup %13855  ;;  %12875 = vmatmul.mubr.msk.f32.vlgmr.msra.gmra.mrb[16].mxu0 %vm1027_vm2, %v1739_v32  ;;  %12878 = vmatpush3.msra.mxu1 %v2127_v7 }
 0x6ac   :  { %v13858_v36 = vpop.eup %13857  ;;  %12883 = vmatpush3.msra.mxu0 %v2203_v35  ;;  %12879 = vmatprep.mubr.msk.f32.mxu1 %vm14905_vm1, %v14903_v0  ;;  %v1741_v37 = vmul.f32 %v13856_v33, %v15528_v61  ;;  %v15576_v61 = vld [vmem:[#allocation10] sm:$0x1f]  ;;  %v12258_v33 = vld [vmem:[#allocation22] ss:$0 sm:$0xff] }
 0x6ad   :  { %12884 = vmatprep.mubr.msk.f32.mxu0 %vm14905_vm1, %v14903_v0  ;;  %12887 = vmatprep.subr.mxu1 %v14903_v0  ;;  %v1743_v38 = vmul.f32 %v13858_v36, %v15530_v62  ;;  %v604_v62 = vrot.slane %v15576_v61, %v15470_v13 }
 0x6ae   :  { %12880 = vmatmul.mubr.msk.f32.vlgmr.msra.gmra.mrb[16].mxu1 %vm1027_vm2, %v1741_v37  ;;  %13565 = vmatprep.subr.bf16.mxu0 %v13564_v60 }
 0x6af   :  { %v13860_v34 = vpop.eup %13859  ;;  %12885 = vmatmul.mubr.msk.f32.vlgmr.msra.gmra.mrb[18].mxu0 %vm1027_vm2, %v1743_v38  ;;  %12888 = vmatpush3.msra.mxu1 %v2279_v39 }
 0x6b0   :  { %12889 = vmatprep.mubr.msk.f32.mxu1 %vm14905_vm1, %v14903_v0  ;;  %v1745_v41 = vmul.f32 %v13860_v34, %v15536_v2  ;;  %13567 = vmatpush3.bf16.msra.mxu0 %v13564_v60  ;;  %v697_v2 = vadd.f32 %v15390_v50, %v604_v62 }
 0x6b1   :  { %13569 = vmatprep.subr.bf16.mxu0 %v13568_v3 }
 0x6b2   :  { %12890 = vmatmul.mubr.msk.f32.vlgmr.msra.gmra.mrb[18].mxu1 %vm1027_vm2, %v1745_v41  ;;  %v2487_v6 = vrot.slane %v697_v2, %v15465_v10 }
 0x6b4   :  { %13571 = vmatpush3.bf16.msra.mxu0 %v13568_v3  ;;  %v2488_v14 = vcombine.high %v2487_v6, %v2487_v6  ;;  %v2495_v15 = vrot.slane %v2487_v6, %v15465_v10 }
 0x6b6   :  { %v2502_v55 = vrot.slane %v2488_v14, %v15465_v10  ;;  %v15590_v22 = vrot.slane %v2495_v15, %v15470_v13  ;;  %v2505_v35 = vadd.f32 1.0, %v2495_v15  ;;  %v2579_v14 = vld [vmem:[#allocation23 + $0x8] sm:$0xff] }
 0x6b8   :  { %v15596_v52 = vrot.slane %v2502_v55, %v15470_v13  ;;  %v2506_v32 = vadd.f32 1.0, %v2502_v55  ;;  %v15612_v41 = vrot.slane %v2505_v35, %v15470_v13  ;;  %v2673_v55 = vld [vmem:[#allocation26 + $0x8] sm:$0xff] }
 0x6ba   :  { %v15609_v38 = vrot.slane %v2506_v32, %v15470_v13 }
 0x720   :  { %v1894_v43 = vpop.f32.mrb[12].mxu1 }
 0x721   :  { %v12861_v44 = vpop.f32.mrb[13].mxu1 }
 0x724   :  { %v1818_v45 = vpop.f32.mrb[12].mxu0 }
 0x725   :  { %v12856_v56 = vpop.f32.mrb[13].mxu0 }
 0x779   :  { %v1970_v4 = vpop.f32.mrb[14].mxu0 }
 0x77a   :  { %2356 = vrot.lane.b32.xlu0 %v1970_v4, %s14866_s28  ;;  %v12866_v5 = vpop.f32.mrb[15].mxu0 }
 0x77d   :  { %v2046_v7 = vpop.f32.mrb[14].mxu1 }
 0x77e   :  { %v2122_v9 = vpop.f32.mrb[16].mxu0  ;;  %2358 = vrot.lane.b32.xlu1 %v2046_v7, %s14866_s28  ;;  %v12871_v11 = vpop.f32.mrb[15].mxu1 }
 0x77f   :  { %2364 = vrot.lane.b32.xlu0 %v2122_v9, %s14884_s7  ;;  %v12876_v12 = vpop.f32.mrb[17].mxu0 }
 0x780   :  { %v2578_v12 = vld [vmem:[#allocation23] sm:$0xff] }
 0x781   :  { %v2198_v50 = vpop.f32.mrb[16].mxu1  ;;  %v13572_v15 = vpack.c.bf16 %v2579_v14, %v2578_v12 }
 0x782   :  { %v2274_v16 = vpop.f32.mrb[18].mxu0  ;;  %2366 = vrot.lane.b32.xlu1 %v2198_v50, %s14884_s7  ;;  %v12881_v18 = vpop.f32.mrb[17].mxu1  ;;  %v2580_v50 = vld [vmem:[#allocation23 + $0x10] sm:$0xff] }
 0x783   :  { %2372 = vrot.lane.b32.xlu0 %v2274_v16, %s14912_s0  ;;  %v12886_v54 = vpop.f32.mrb[19].mxu0  ;;  %13573 = vmatprep.subr.bf16.mxu1 %v13572_v15  ;;  %v2581_v16 = vld [vmem:[#allocation23 + $0x18] sm:$0xff] }
 0x784   :  { %13575 = vmatpush3.bf16.msra.mxu1 %v13572_v15  ;;  %v13576_v18 = vpack.c.bf16 %v2581_v16, %v2580_v50  ;;  %v2672_v54 = vld [vmem:[#allocation26] sm:$0xff] }
 0x785   :  { %v2350_v46 = vpop.f32.mrb[18].mxu1 }
 0x786   :  { %2374 = vrot.lane.b32.xlu1 %v2350_v46, %s14912_s0  ;;  %v12891_v49 = vpop.f32.mrb[19].mxu1  ;;  %13577 = vmatprep.subr.bf16.mxu1 %v13576_v18  ;;  %v13580_v46 = vpack.c.bf16 %v2673_v55, %v2672_v54 }
 0x787   :  { %2531 = vrot.lane.b32.xlu0 %v15590_v22, %s14909_s11 }
 0x788   :  { %13579 = vmatpush3.bf16.msra.mxu1 %v13576_v18  ;;  %13581 = vmatprep.subr.bf16.mxu0 %v13580_v46 }
 0x78a   :  { %2533 = vrot.lane.b32.xlu1 %v15596_v52, %s14909_s11 }
 0x7ec   :  { %v2357_v51 = vpop.permute.xlu0 %2356 }
 0x7ed   :  { %v2378_v23 = vsel %vm1027_vm2, %v1818_v45, %v2357_v51 }
 0x7f0   :  { %v2359_v47 = vpop.permute.xlu1 %2358 }
 0x7f1   :  { %v2365_v48 = vpop.permute.xlu0 %2364  ;;  %v2379_v28 = vsel %vm1027_vm2, %v1894_v43, %v2359_v47 }
 0x7f2   :  { %v2381_v25 = vsel %vm2380_vm3, %v2378_v23, %v2365_v48 }
 0x7f4   :  { %v2367_v24 = vpop.permute.xlu1 %2366 }
 0x7f5   :  { %v2373_v26 = vpop.permute.xlu0 %2372  ;;  %v2382_v29 = vsel %vm2380_vm3, %v2379_v28, %v2367_v24 }
 0x7f6   :  { %v2384_v27 = vsel %vm2383_vm4, %v2381_v25, %v2373_v26  ;;  %v15622_v25 = vld [vmem:[#allocation29] sm:$0x3]  ;;  %v15624_v26 = vld [vmem:[#allocation31] sm:$0x3] }
 0x7f7   :  { %12900 = vmatprep.mubr.msk.f32.mxu0 %vm626_vm0, %v2384_v27  ;;  %v2569_v27 = vrot.slane %v15622_v25, %v15470_v13 }
 0x7f8   :  { %v2375_v30 = vpop.permute.xlu1 %2374 }
 0x7f9   :  { %v2385_v31 = vsel %vm2383_vm4, %v2382_v29, %v2375_v30  ;;  %v2532_v59 = vpop.permute.xlu0 %2531  ;;  %v2575_v30 = vrot.slane %v15624_v26, %v15470_v13 }
 0x7fa   :  { %12901 = vmatmul.mubr.msk.f32.vlgmr.msra.gmra.mrb[20].mxu0 %vm626_vm0, %v2385_v31 }
 0x7fb   :  { %13583 = vmatpush3.bf16.msra.mxu0 %v13580_v46 }
 0x7fc   :  { %v2534_v56 = vpop.permute.xlu1 %2533 }
 0x8cd   :  { %v12902_v36 = vpop.f32.mrb[20].mxu0 }
 0x8ce   :  { %v2475_v37 = vadd.f32 %v12902_v36, %v12258_v33  ;;  %v2469_v39 = vpop.f32.mrb[21].mxu0 }
 0x8cf   :  { %v2470_v34 = vadd.f32 %v12258_v33, %v2469_v39  ;;  %v2674_v39 = vld [vmem:[#allocation26 + $0x10] sm:$0xff] }
 0x8d0   :  { %v2520_v43 = vmul.f32 %v15609_v38, %v2475_v37 }
 0x8d1   :  { %v2519_v44 = vmul.f32 %v15612_v41, %v2470_v34  ;;  %v2675_v34 = vld [vmem:[#allocation26 + $0x18] sm:$0xff] }
 0x8d2   :  { %v2522_v45 = vadd.f32 %v2520_v43, %v15346_v21  ;;  %v13584_v43 = vpack.c.bf16 %v2675_v34, %v2674_v39  ;;  %v15657_v39 = vsub.s32 1, %v15462_v8 }
 0x8d3   :  { %v2521_v57 = vadd.f32 %v2519_v44, %v15341_v20  ;;  %v12261_v44 = vld [vmem:[#allocation25] ss:$0 sm:$0xff] }
 0x8d4   :  { %v2538_v60 = vadd.f32 %v2534_v56, %v2522_v45  ;;  %13585 = vmatprep.subr.bf16.mxu0 %v13584_v43  ;;  %v2821_v34 = vrot.slane %v15622_v25, %v15657_v39  ;;  %v12271_v25 = vld [vmem:[#allocation19 + $0x1] ss:$0 sm:$0xff] }
 0x8d5   :  { %v2537_v62 = vadd.f32 %v2532_v59, %v2521_v57  ;;  %13587 = vmatpush3.bf16.msra.mxu0 %v13584_v43 }
 0x8d6   :  { %v2542_v63 = vsel %vm626_vm0, %v2538_v60, 0.0  ;;  %12936 = vmatprep.subr.mxu0 %v14903_v0 }
 0x8d7   :  { %2543 = vadd.xlane.f32.xlu1 %v2542_v63  ;;  %v2539_v1 = vsel %vm626_vm0, %v2537_v62, 0.0  ;;  %v12264_v63 = vld [vmem:[#allocation28] ss:$0 sm:$0xff] }
 0x8d8   :  { %2540 = vadd.xlane.f32.xlu0 %v2539_v1 }
 0x964   :  { %v2544_v3 = vpop.xlane.xlu1 %2543 }
 0x965   :  { %v2547_v2 = vmul.f32 0.03125, %v2544_v3  ;;  %v2541_v4 = vpop.xlane.xlu0 %2540 }
 0x966   :  { %v2546_v5 = vmul.f32 0.03125, %v2541_v4 }
 0x967   :  { %v2549_v6 = vsub.f32 %v2538_v60, %v2547_v2 }
 0x968   :  { %v2548_v7 = vsub.f32 %v2537_v62, %v2546_v5 }
 0x969   :  { %v2551_v11 = vmul.f32 %v2549_v6, %v2549_v6 }
 0x96a   :  { %v2550_v9 = vmul.f32 %v2548_v7, %v2548_v7 }
 0x96b   :  { %v2555_v20 = vsel %vm626_vm0, %v2551_v11, 0.0 }
 0x96c   :  { %v2552_v21 = vsel %vm626_vm0, %v2550_v9, 0.0 }
 0x96d   :  { %2553 = vadd.xlane.f32.xlu0 %v2552_v21 }
 0x971   :  { %2556 = vadd.xlane.f32.xlu0 %v2555_v20 }
 0x9fa   :  { %v2554_v49 = vpop.xlane.xlu0 %2553 }
 0x9fb   :  { %v2558_v51 = vmul.f32 0.03125, %v2554_v49 }
 0x9fd   :  { %v2560_v47 = vadd.f32 1e-05, %v2558_v51 }
 0x9fe   :  { %v2557_v48 = vpop.xlane.xlu0 %2556 }
 0x9ff   :  { %13861 = vrsqrt.f32 %v2560_v47  ;;  %v2559_v23 = vmul.f32 0.03125, %v2557_v48 }
 0xa01   :  { %v2561_v24 = vadd.f32 1e-05, %v2559_v23  ;;  %v12267_v23 = vld [vmem:[%s17100_s9 + $0x20] sm:$0xff] }
 0xa03   :  { %13863 = vrsqrt.f32 %v2561_v24  ;;  %v12268_v24 = vld [vmem:[%s17100_s9 + $0x28] sm:$0xff] }
 0xa09   :  { %v13862_v28 = vpop.eup %13861 }
 0xa0a   :  { %v2564_v29 = vmul.f32 %v13862_v28, %v2548_v7  ;;  %v12269_v28 = vld [vmem:[%s17100_s9 + $0x30] sm:$0xff] }
 0xa0c   :  { %v2570_v31 = vmul.f32 %v2569_v27, %v2564_v29  ;;  %v12270_v29 = vld [vmem:[%s17100_s9 + $0x38] sm:$0xff] }
 0xa0d   :  { %v13864_v32 = vpop.eup %13863 }
 0xa0e   :  { %v2565_v33 = vmul.f32 %v13864_v32, %v2549_v6  ;;  %v2576_v35 = vadd.f32 %v2575_v30, %v2570_v31 }
 0xa10   :  { %v2571_v36 = vmul.f32 %v2569_v27, %v2565_v33  ;;  %12911 = vmatprep.mubr.msk.f32.mxu1 %vm626_vm0, %v2576_v35  ;;  %v13588_v27 = vpack.c.bf16 %v12268_v24, %v12267_v23 }
 0xa12   :  { %v2577_v37 = vadd.f32 %v2575_v30, %v2571_v36  ;;  %13589 = vmatprep.subr.bf16.mxu1 %v13588_v27  ;;  %v13592_v30 = vpack.c.bf16 %v12270_v29, %v12269_v28 }
 0xa14   :  { %12912 = vmatmul.mubr.msk.f32.vlgmr.msra.gmra.mrb[20].mxu1 %vm626_vm0, %v2577_v37 }
 0xa15   :  { %13591 = vmatpush3.bf16.msra.mxu1 %v13588_v27 }
 0xa16   :  { %13593 = vmatprep.subr.bf16.mxu1 %v13592_v30 }
 0xa19   :  { %13595 = vmatpush3.bf16.msra.mxu1 %v13592_v30 }
 0xa1a   :  { %12941 = vmatprep.subr.mxu1 %v14903_v0 }
 0xae7   :  { %v12913_v45 = vpop.f32.mrb[20].mxu1 }
 0xae8   :  { %v2667_v56 = vadd.f32 %v12913_v45, %v12261_v44  ;;  %v2661_v57 = vpop.f32.mrb[21].mxu1  ;;  %v2827_v45 = vrot.slane %v15624_v26, %v15657_v39 }
 0xae9   :  { %v2662_v59 = vadd.f32 %v12261_v44, %v2661_v57 }
 0xaea   :  { %v2671_v62 = vmax.f32 %v2667_v56, 0.0 }
 0xaeb   :  { %v2670_v60 = vmax.f32 %v2662_v59, 0.0 }
 0xaed   :  { %12922 = vmatprep.mubr.msk.f32.mxu0 %vm626_vm0, %v2670_v60 }
 0xaee   :  { %12923 = vmatmul.mubr.msk.f32.vlgmr.msra.gmra.mrb[22].mxu0 %vm626_vm0, %v2671_v62 }
 0xaef   :  { %12938 = vmatprep.mubr.msk.f32.mxu0 %vm14905_vm1, %v14903_v0 }
 0xbc1   :  { %v12924_v1 = vpop.f32.mrb[22].mxu0 }
 0xbc2   :  { %v2761_v3 = vadd.f32 %v12924_v1, %v12264_v63  ;;  %v2755_v2 = vpop.f32.mrb[23].mxu0 }
 0xbc3   :  { %v2756_v4 = vadd.f32 %v12264_v63, %v2755_v2 }
 0xbc4   :  { %2768 = vrot.lane.b32.xlu0 %v2761_v3, %s14911_s6 }
 0xbc5   :  { %2766 = vrot.lane.b32.xlu1 %v2756_v4, %s14911_s6 }
 0xbc8   :  { %2784 = vrot.lane.b32.xlu0 %v15590_v22, %s14876_s25 }
 0xc36   :  { %v2769_v5 = vpop.permute.xlu0 %2768 }
 0xc37   :  { %v2773_v6 = vmul.f32 %v2769_v5, %v15609_v38  ;;  %v2767_v7 = vpop.permute.xlu1 %2766 }
 0xc38   :  { %v2772_v9 = vmul.f32 %v2767_v7, %v15612_v41 }
 0xc39   :  { %2778 = vrot.lane.b32.xlu1 %v2773_v6, %s14911_s6 }
 0xc3a   :  { %v2785_v12 = vpop.permute.xlu0 %2784 }
 0xc3d   :  { %2776 = vrot.lane.b32.xlu1 %v2772_v9, %s14911_s6 }
 0xc41   :  { %2786 = vrot.lane.b32.xlu1 %v15596_v52, %s14876_s25 }
 0xcab   :  { %v2779_v21 = vpop.permute.xlu1 %2778 }
 0xcac   :  { %v2783_v14 = vadd.f32 %v2779_v21, %v2577_v37 }
 0xcaf   :  { %v2777_v11 = vpop.permute.xlu1 %2776 }
 0xcb0   :  { %v2782_v20 = vadd.f32 %v2777_v11, %v2576_v35 }
 0xcb2   :  { %v2790_v15 = vadd.f32 %v2785_v12, %v2782_v20 }
 0xcb3   :  { %v2787_v22 = vpop.permute.xlu1 %2786 }
 0xcb4   :  { %v2791_v50 = vadd.f32 %v2787_v22, %v2783_v14  ;;  %v2792_v38 = vsel %vm626_vm0, %v2790_v15, 0.0 }
 0xcb5   :  { %2793 = vadd.xlane.f32.xlu0 %v2792_v38 }
 0xcb6   :  { %v2795_v41 = vsel %vm626_vm0, %v2791_v50, 0.0 }
 0xcb7   :  { %2796 = vadd.xlane.f32.xlu1 %v2795_v41 }
 0xd42   :  { %v2794_v16 = vpop.xlane.xlu0 %2793 }
 0xd43   :  { %v2798_v18 = vmul.f32 0.03125, %v2794_v16 }
 0xd44   :  { %v2797_v52 = vpop.xlane.xlu1 %2796 }
 0xd45   :  { %v2800_v54 = vsub.f32 %v2790_v15, %v2798_v18  ;;  %v2799_v55 = vmul.f32 0.03125, %v2797_v52 }
 0xd47   :  { %v2801_v46 = vsub.f32 %v2791_v50, %v2799_v55  ;;  %v2802_v49 = vmul.f32 %v2800_v54, %v2800_v54 }
 0xd49   :  { %v2804_v51 = vsel %vm626_vm0, %v2802_v49, 0.0  ;;  %v2803_v47 = vmul.f32 %v2801_v46, %v2801_v46 }
 0xd4a   :  { %2805 = vadd.xlane.f32.xlu0 %v2804_v51 }
 0xd4b   :  { %v2807_v48 = vsel %vm626_vm0, %v2803_v47, 0.0 }
 0xd4e   :  { %2808 = vadd.xlane.f32.xlu0 %v2807_v48 }
 0xdd7   :  { %v2806_v31 = vpop.xlane.xlu0 %2805 }
 0xdd8   :  { %v2810_v32 = vmul.f32 0.03125, %v2806_v31 }
 0xdda   :  { %v2812_v33 = vadd.f32 1e-05, %v2810_v32 }
 0xddb   :  { %v2809_v35 = vpop.xlane.xlu0 %2808 }
 0xddc   :  { %13865 = vrsqrt.f32 %v2812_v33  ;;  %v2811_v36 = vmul.f32 0.03125, %v2809_v35 }
 0xdde   :  { %v2813_v37 = vadd.f32 1e-05, %v2811_v36 }
 0xde0   :  { %13867 = vrsqrt.f32 %v2813_v37 }
 0xde6   :  { %v13866_v43 = vpop.eup %13865 }
 0xde7   :  { %v2816_v44 = vmul.f32 %v13866_v43, %v2800_v54 }
 0xde9   :  { %v2822_v56 = vmul.f32 %v2821_v34, %v2816_v44 }
 0xdea   :  { %v13868_v57 = vpop.eup %13867 }
 0xdeb   :  { %v2817_v59 = vmul.f32 %v13868_v57, %v2801_v46  ;;  %v15663_v60 = vadd.f32 %v2827_v45, %v2822_v56 }
 0xded   :  { %v2823_v62 = vmul.f32 %v2821_v34, %v2817_v59  ;;  %12933 = vmatprep.mubr.msk.f32.mxu1 %vm626_vm0, %v15663_v60 }
 0xdef   :  { %v15667_v63 = vadd.f32 %v2827_v45, %v2823_v62 }
 0xdf1   :  { %12934 = vmatmul.mubr.msk.f32.vlgmr.msra.gmra.mrb[22].mxu1 %vm626_vm0, %v15667_v63 }
 0xdf2   :  { %12943 = vmatprep.mubr.msk.f32.mxu1 %vm14905_vm1, %v14903_v0 }
 0xec4   :  { %v12935_v1 = vpop.f32.mrb[22].mxu1 }
 0xec5   :  { %v15673_v26 = vadd.f32 %v12935_v1, %v12271_v25  ;;  %v2915_v3 = vpop.f32.mrb[23].mxu1 }
 0xec6   :  { %v15675_v2 = vadd.f32 %v12271_v25, %v2915_v3 }
 0xec7   :  { %2928 = vrot.lane.b32.xlu0 %v15673_v26, %s14907_s4 }
 0xec8   :  { %2926 = vrot.lane.b32.xlu1 %v15675_v2, %s14907_s4 }
 0xecb   :  { %2934 = vrot.lane.b32.xlu0 %v15675_v2, %s14908_s19 }
 0xecc   :  { %2930 = vrot.lane.b32.xlu1 %v15675_v2, %s14906_s14 }
 0xecf   :  { %2938 = vrot.lane.b32.xlu0 %v15675_v2, %s14909_s11 }
 0xed0   :  { %2932 = vrot.lane.b32.xlu1 %v15673_v26, %s14906_s14 }
 0xed4   :  { %2936 = vrot.lane.b32.xlu1 %v15673_v26, %s14908_s19 }
 0xed8   :  { %3014 = vrot.lane.b32.xlu1 %v15673_v26, %s14909_s11 }
 0xf39   :  { %v15693_v4 = vpop.permute.xlu0 %2928 }
 0xf3a   :  { %3166 = vrot.lane.b32.xlu1 %v15693_v4, %s14909_s11  ;;  %v15697_v5 = vpop.permute.xlu1 %2926 }
 0xf3b   :  { %3090 = vrot.lane.b32.xlu0 %v15697_v5, %s14909_s11 }
 0xf3d   :  { %v15701_v6 = vpop.permute.xlu0 %2934 }
 0xf3e   :  { %v15703_v7 = vpop.permute.xlu1 %2930 }
 0xf3f   :  { %3242 = vrot.lane.b32.xlu0 %v15703_v7, %s14909_s11 }
 0xf41   :  { %v2939_v9 = vpop.permute.xlu0 %2938 }
 0xf42   :  { %12937 = vmatpush3.xpose.msk.msra.mxu0 %vm1027_vm2, %v2939_v9  ;;  %v15708_v21 = vpop.permute.xlu1 %2932 }
 0xf43   :  { %3394 = vrot.lane.b32.xlu0 %v15701_v6, %s14909_s11  ;;  %3318 = vrot.lane.b32.xlu1 %v15708_v21, %s14909_s11 }
 0xf44   :  { %12946 = vmatprep.subr.mxu0 %v14903_v0 }
 0xf45   :  { %12939 = vmatmul.mubr.msk.f32.vlgmr.msra.gmra.mrb[24].mxu0 %vm1027_vm2, %v15675_v2 }
 0xf46   :  { %v15717_v11 = vpop.permute.xlu1 %2936  ;;  %12948 = vmatprep.mubr.msk.f32.mxu0 %vm14905_vm1, %v14903_v0 }
 0xf47   :  { %3470 = vrot.lane.b32.xlu1 %v15717_v11, %s14909_s11 }
 0xf4a   :  { %v3015_v20 = vpop.permute.xlu1 %3014 }
 0xf4b   :  { %12942 = vmatpush3.xpose.msk.msra.mxu1 %vm1027_vm2, %v3015_v20 }
 0xf4c   :  { %12951 = vmatprep.subr.mxu1 %v14903_v0 }
 0xf4e   :  { %12944 = vmatmul.mubr.msk.f32.vlgmr.msra.gmra.mrb[24].mxu1 %vm1027_vm2, %v15673_v26 }
 0xf4f   :  { %12953 = vmatprep.mubr.msk.f32.mxu1 %vm14905_vm1, %v14903_v0 }
 0xfac   :  { %v3167_v12 = vpop.permute.xlu1 %3166 }
 0xfad   :  { %v3091_v14 = vpop.permute.xlu0 %3090  ;;  %12952 = vmatpush3.xpose.msk.msra.mxu1 %vm1027_vm2, %v3167_v12 }
 0xfae   :  { %12947 = vmatpush3.xpose.msk.msra.mxu0 %vm1027_vm2, %v3091_v14  ;;  %12961 = vmatprep.subr.mxu1 %v14903_v0 }
 0xfaf   :  { %12956 = vmatprep.subr.mxu0 %v14903_v0 }
 0xfb0   :  { %12954 = vmatmul.mubr.msk.f32.vlgmr.msra.gmra.mrb[26].mxu1 %vm1027_vm2, %v15693_v4 }
 0xfb1   :  { %12949 = vmatmul.mubr.msk.f32.vlgmr.msra.gmra.mrb[26].mxu0 %vm1027_vm2, %v15697_v5  ;;  %v3243_v15 = vpop.permute.xlu0 %3242  ;;  %12963 = vmatprep.mubr.msk.f32.mxu1 %vm14905_vm1, %v14903_v0 }
 0xfb2   :  { %12957 = vmatpush3.xpose.msk.msra.mxu0 %vm1027_vm2, %v3243_v15  ;;  %12958 = vmatprep.mubr.msk.f32.mxu0 %vm14905_vm1, %v14903_v0 }
 0xfb3   :  { %12966 = vmatprep.subr.mxu0 %v14903_v0 }
 0xfb5   :  { %12959 = vmatmul.mubr.msk.f32.vlgmr.msra.gmra.mrb[28].mxu0 %vm1027_vm2, %v15703_v7  ;;  %v3395_v22 = vpop.permute.xlu0 %3394  ;;  %v3319_v50 = vpop.permute.xlu1 %3318 }
 0xfb6   :  { %12962 = vmatpush3.xpose.msk.msra.mxu1 %vm1027_vm2, %v3319_v50  ;;  %12967 = vmatpush3.xpose.msk.msra.mxu0 %vm1027_vm2, %v3395_v22 }
 0xfb7   :  { %12968 = vmatprep.mubr.msk.f32.mxu0 %vm14905_vm1, %v14903_v0  ;;  %12971 = vmatprep.subr.mxu1 %v14903_v0 }
 0xfb8   :  { %12976 = vmatprep.subr.mxu0 %v14903_v0 }
 0xfb9   :  { %12964 = vmatmul.mubr.msk.f32.vlgmr.msra.gmra.mrb[28].mxu1 %vm1027_vm2, %v15708_v21  ;;  %12969 = vmatmul.mubr.msk.f32.vlgmr.msra.gmra.mrb[30].mxu0 %vm1027_vm2, %v15701_v6  ;;  %v3471_v38 = vpop.permute.xlu1 %3470 }
 0xfba   :  { %12972 = vmatpush3.xpose.msk.msra.mxu1 %vm1027_vm2, %v3471_v38  ;;  %12973 = vmatprep.mubr.msk.f32.mxu1 %vm14905_vm1, %v14903_v0 }
 0xfbb   :  { %12981 = vmatprep.subr.mxu1 %v14903_v0  ;;  %12978 = vmatprep.mubr.msk.f32.mxu0 %vm14905_vm1, %v14903_v0 }
 0xfbd   :  { %12974 = vmatmul.mubr.msk.f32.vlgmr.msra.gmra.mrb[30].mxu1 %vm1027_vm2, %v15717_v11 }
 0xfbe   :  { %12983 = vmatprep.mubr.msk.f32.mxu1 %vm14905_vm1, %v14903_v0 }
0x1018   :  { %v3010_v41 = vpop.f32.mrb[24].mxu0 }
0x1019   :  { %v3546_v16 = vmul.f32 0.35355338, %v3010_v41  ;;  %v12940_v18 = vpop.f32.mrb[25].mxu0 }
0x101b   :  { %v3554_v52 = vadd.f32 %v3546_v16, %v15476_v19 }
0x101d   :  { %v3562_v54 = vsel %vm1027_vm2, %v3554_v52, -inf }
0x101e   :  { %3563 = vmax.xlane.f32.xlu0 %v3562_v54 }
0x1021   :  { %v3086_v55 = vpop.f32.mrb[24].mxu1 }
0x1022   :  { %v3547_v46 = vmul.f32 0.35355338, %v3086_v55  ;;  %v12945_v49 = vpop.f32.mrb[25].mxu1 }
0x1024   :  { %v3555_v51 = vadd.f32 %v3547_v46, %v15474_v17 }
0x1026   :  { %v3565_v47 = vsel %vm1027_vm2, %v3555_v51, -inf }
0x1027   :  { %3566 = vmax.xlane.f32.xlu1 %v3565_v47 }
0x1083   :  { %v3238_v48 = vpop.f32.mrb[26].mxu1 }
0x1084   :  { %v3549_v23 = vmul.f32 0.35355338, %v3238_v48  ;;  %v3162_v24 = vpop.f32.mrb[26].mxu0  ;;  %v12955_v27 = vpop.f32.mrb[27].mxu1 }
0x1085   :  { %v3548_v28 = vmul.f32 0.35355338, %v3162_v24  ;;  %v12950_v29 = vpop.f32.mrb[27].mxu0 }
0x1086   :  { %v3557_v32 = vadd.f32 %v3549_v23, %v15474_v17 }
0x1087   :  { %v3556_v30 = vadd.f32 %v3548_v28, %v15476_v19 }
0x1088   :  { %v3314_v31 = vpop.f32.mrb[28].mxu0  ;;  %v3571_v44 = vsel %vm1027_vm2, %v3557_v32, -inf }
0x1089   :  { %v3550_v33 = vmul.f32 0.35355338, %v3314_v31  ;;  %v12960_v35 = vpop.f32.mrb[29].mxu0  ;;  %v3568_v36 = vsel %vm1027_vm2, %v3556_v30, -inf }
0x108a   :  { %3569 = vmax.xlane.f32.xlu0 %v3568_v36 }
0x108b   :  { %v3558_v37 = vadd.f32 %v3550_v33, %v15476_v19 }
0x108c   :  { %v3390_v34 = vpop.f32.mrb[28].mxu1  ;;  %v3466_v43 = vpop.f32.mrb[30].mxu0 }
0x108d   :  { %v3551_v45 = vmul.f32 0.35355338, %v3390_v34  ;;  %v3552_v56 = vmul.f32 0.35355338, %v3466_v43  ;;  %v12965_v57 = vpop.f32.mrb[29].mxu1  ;;  %v12970_v59 = vpop.f32.mrb[31].mxu0 }
0x108e   :  { %v3574_v62 = vsel %vm1027_vm2, %v3558_v37, -inf  ;;  %3572 = vmax.xlane.f32.xlu0 %v3571_v44 }
0x108f   :  { %3575 = vmax.xlane.f32.xlu1 %v3574_v62  ;;  %v3560_v25 = vadd.f32 %v3552_v56, %v15476_v19  ;;  %v3559_v1 = vadd.f32 %v3551_v45, %v15474_v17 }
0x1090   :  { %v3542_v3 = vpop.f32.mrb[30].mxu1 }
0x1091   :  { %v3553_v9 = vmul.f32 0.35355338, %v3542_v3  ;;  %v12975_v20 = vpop.f32.mrb[31].mxu1  ;;  %v3580_v12 = vsel %vm1027_vm2, %v3560_v25, -inf  ;;  %v3577_v14 = vsel %vm1027_vm2, %v3559_v1, -inf }
0x1092   :  { %3578 = vmax.xlane.f32.xlu0 %v3577_v14 }
0x1093   :  { %3581 = vmax.xlane.f32.xlu1 %v3580_v12  ;;  %v3561_v15 = vadd.f32 %v3553_v9, %v15474_v17 }
0x1095   :  { %v3583_v22 = vsel %vm1027_vm2, %v3561_v15, -inf }
0x1096   :  { %3584 = vmax.xlane.f32.xlu0 %v3583_v22 }
0x10a4   :  { %3658 = vrot.lane.b32.xlu1 %v15675_v2, %s14911_s6 }
0x10a8   :  { %3810 = vrot.lane.b32.xlu1 %v15697_v5, %s14911_s6 }
0x10ab   :  { %v3564_v50 = vpop.xlane.xlu0 %3563 }
0x10ac   :  { %3886 = vrot.lane.b32.xlu1 %v15693_v4, %s14911_s6  ;;  %3734 = vrot.lane.b32.xlu0 %v15673_v26, %s14911_s6  ;;  %v3586_v2 = vsub.f32 %v3554_v52, %v3564_v50 }
0x10ae   :  { %v3594_v41 = vmul.f32 1.442695, %v3586_v2 }
0x10b0   :  { %4038 = vrot.lane.b32.xlu1 %v15708_v21, %s14911_s6  ;;  %3962 = vrot.lane.b32.xlu0 %v15703_v7, %s14911_s6 }
0x10b4   :  { %v3567_v17 = vpop.xlane.xlu1 %3566 }
0x10b5   :  { %v3587_v19 = vsub.f32 %v3555_v51, %v3567_v17 }
0x10b7   :  { %v3596_v38 = vmul.f32 1.442695, %v3587_v19 }
0x10b9   :  { %13869 = vpow2.f32 %v3596_v38 }
0x10ba   :  { %13871 = vpow2.f32 %v3594_v41 }
0x10c3   :  { %v15793_v5 = vpop.eup %13869 }
0x10c4   :  { %v3613_v4 = vsel %vm1027_vm2, %v15793_v5, 0.0  ;;  %v15797_v26 = vpop.eup %13871 }
0x10c5   :  { %v3610_v21 = vsel %vm1027_vm2, %v15797_v26, 0.0 }
0x10cf   :  { %3614 = vadd.xlane.f32.xlu0 %v3613_v4 }
0x10d4   :  { %3611 = vadd.xlane.f32.xlu1 %v3610_v21 }
0x1117   :  { %v3570_v7 = vpop.xlane.xlu0 %3569 }
0x1118   :  { %v3588_v16 = vsub.f32 %v3556_v30, %v3570_v7 }
0x111a   :  { %v3598_v18 = vmul.f32 1.442695, %v3588_v16 }
0x111b   :  { %v3573_v54 = vpop.xlane.xlu0 %3572 }
0x111c   :  { %13873 = vpow2.f32 %v3598_v18  ;;  %v3589_v52 = vsub.f32 %v3557_v32, %v3573_v54  ;;  %v3576_v55 = vpop.xlane.xlu1 %3575 }
0x111d   :  { %v3590_v46 = vsub.f32 %v3558_v37, %v3576_v55 }
0x111e   :  { %v3600_v49 = vmul.f32 1.442695, %v3589_v52 }
0x111f   :  { %v3602_v51 = vmul.f32 1.442695, %v3590_v46  ;;  %v3579_v47 = vpop.xlane.xlu0 %3578 }
0x1120   :  { %13875 = vpow2.f32 %v3600_v49  ;;  %v3591_v48 = vsub.f32 %v3559_v1, %v3579_v47  ;;  %v3582_v23 = vpop.xlane.xlu1 %3581 }
0x1121   :  { %13877 = vpow2.f32 %v3602_v51  ;;  %v3592_v24 = vsub.f32 %v3560_v25, %v3582_v23 }
0x1122   :  { %v3604_v27 = vmul.f32 1.442695, %v3591_v48 }
0x1123   :  { %v3606_v28 = vmul.f32 1.442695, %v3592_v24  ;;  %v3585_v29 = vpop.xlane.xlu0 %3584 }
0x1124   :  { %13879 = vpow2.f32 %v3604_v27  ;;  %v3593_v31 = vsub.f32 %v3561_v15, %v3585_v29  ;;  %v3659_v30 = vpop.permute.xlu1 %3658 }
0x1125   :  { %13881 = vpow2.f32 %v3606_v28  ;;  %12977 = vmatpush3.msra.mxu0 %v3659_v30 }
0x1126   :  { %v15801_v33 = vpop.eup %13873  ;;  %v3608_v32 = vmul.f32 1.442695, %v3593_v31  ;;  %12986 = vmatprep.subr.mxu0 %v14903_v0 }
0x1127   :  { %v3735_v35 = vpop.permute.xlu0 %3734  ;;  %v3616_v36 = vsel %vm1027_vm2, %v15801_v33, 0.0 }
0x1128   :  { %13883 = vpow2.f32 %v3608_v32  ;;  %3617 = vadd.xlane.f32.xlu1 %v3616_v36  ;;  %12982 = vmatpush3.msra.mxu1 %v3735_v35  ;;  %v3811_v1 = vpop.permute.xlu1 %3810 }
0x1129   :  { %12991 = vmatprep.subr.mxu1 %v14903_v0 }
0x112a   :  { %v15807_v37 = vpop.eup %13875 }
0x112b   :  { %v15809_v34 = vpop.eup %13877  ;;  %v3619_v43 = vsel %vm1027_vm2, %v15807_v37, 0.0  ;;  %v3963_v9 = vpop.permute.xlu0 %3962 }
0x112c   :  { %3620 = vadd.xlane.f32.xlu0 %v3619_v43  ;;  %v3622_v44 = vsel %vm1027_vm2, %v15809_v34, 0.0  ;;  %v3887_v3 = vpop.permute.xlu1 %3886 }
0x112d   :  { %3623 = vadd.xlane.f32.xlu1 %v3622_v44  ;;  %v608_v44 = vrot.slane %v15576_v61, %v15657_v39 }
0x112e   :  { %v15815_v45 = vpop.eup %13879 }
0x112f   :  { %v15817_v56 = vpop.eup %13881  ;;  %v3625_v57 = vsel %vm1027_vm2, %v15815_v45, 0.0 }
0x1130   :  { %3626 = vadd.xlane.f32.xlu0 %v3625_v57  ;;  %v3628_v59 = vsel %vm1027_vm2, %v15817_v56, 0.0  ;;  %v4039_v12 = vpop.permute.xlu1 %4038 }
0x1131   :  { %3629 = vadd.xlane.f32.xlu1 %v3628_v59  ;;  %v699_v59 = vadd.f32 %v15400_v53, %v608_v44 }
0x1132   :  { %v15823_v62 = vpop.eup %13883 }
0x1133   :  { %v3631_v25 = vsel %vm1027_vm2, %v15823_v62, 0.0 }
0x1134   :  { %3632 = vadd.xlane.f32.xlu0 %v3631_v25 }
0x1142   :  { %4190 = vrot.lane.b32.xlu1 %v15717_v11, %s14911_s6 }
0x114a   :  { %4114 = vrot.lane.b32.xlu0 %v15701_v6, %s14911_s6 }
0x115c   :  { %v3615_v20 = vpop.xlane.xlu0 %3614 }
0x115d   :  { %v3635_v14 = vmax.f32 %v3615_v20, 1e-20 }
0x115f   :  { %13885 = vrcp.f32 %v3635_v14 }
0x1161   :  { %v3612_v15 = vpop.xlane.xlu1 %3611 }
0x1162   :  { %v3634_v22 = vmax.f32 %v3612_v15, 1e-20 }
0x1164   :  { %13887 = vrcp.f32 %v3634_v22 }
0x1169   :  { %v13886_v17 = vpop.eup %13885 }
0x116a   :  { %v3645_v19 = vmul.f32 %v13886_v17, %v15793_v5 }
0x116c   :  { %12984 = vmatmul.mubr.msk.f32.vlgmr.msra.gmra.mrb[32].mxu1 %vm1027_vm2, %v3645_v19 }
0x116d   :  { %12992 = vmatpush3.msra.mxu1 %v3887_v3  ;;  %12993 = vmatprep.mubr.msk.f32.mxu1 %vm14905_vm1, %v14903_v0 }
0x116e   :  { %v13888_v6 = vpop.eup %13887  ;;  %13001 = vmatprep.subr.mxu1 %v14903_v0 }
0x116f   :  { %v3643_v11 = vmul.f32 %v13888_v6, %v15797_v26 }
0x1171   :  { %12979 = vmatmul.mubr.msk.f32.vlgmr.msra.gmra.mrb[32].mxu0 %vm1027_vm2, %v3643_v11 }
0x1172   :  { %12987 = vmatpush3.msra.mxu0 %v3811_v1  ;;  %12988 = vmatprep.mubr.msk.f32.mxu0 %vm14905_vm1, %v14903_v0  ;;  %v4401_v1 = vrot.slane %v699_v59, %v15465_v10 }
0x1173   :  { %12996 = vmatprep.subr.mxu0 %v14903_v0 }
0x1174   :  { %v4409_v14 = vrot.slane %v4401_v1, %v15465_v10 }
0x1176   :  { %v15875_v6 = vrot.slane %v4409_v14, %v15470_v13 }
0x11b5   :  { %v3618_v50 = vpop.xlane.xlu1 %3617 }
0x11b6   :  { %v3636_v38 = vmax.f32 %v3618_v50, 1e-20 }
0x11b8   :  { %13889 = vrcp.f32 %v3636_v38 }
0x11b9   :  { %v3621_v2 = vpop.xlane.xlu0 %3620 }
0x11ba   :  { %v3637_v41 = vmax.f32 %v3621_v2, 1e-20  ;;  %v3624_v5 = vpop.xlane.xlu1 %3623 }
0x11bb   :  { %v3638_v4 = vmax.f32 %v3624_v5, 1e-20 }
0x11bc   :  { %13891 = vrcp.f32 %v3637_v41 }
0x11bd   :  { %13893 = vrcp.f32 %v3638_v4  ;;  %v3627_v21 = vpop.xlane.xlu0 %3626 }
0x11be   :  { %v3639_v7 = vmax.f32 %v3627_v21, 1e-20  ;;  %v3630_v26 = vpop.xlane.xlu1 %3629 }
0x11bf   :  { %v3640_v16 = vmax.f32 %v3630_v26, 1e-20 }
0x11c0   :  { %13895 = vrcp.f32 %v3639_v7 }
0x11c1   :  { %13897 = vrcp.f32 %v3640_v16  ;;  %v3633_v18 = vpop.xlane.xlu0 %3632 }
0x11c2   :  { %v13890_v54 = vpop.eup %13889  ;;  %v3641_v52 = vmax.f32 %v3633_v18, 1e-20  ;;  %v4191_v29 = vpop.permute.xlu1 %4190 }
0x11c3   :  { %v3647_v55 = vmul.f32 %v13890_v54, %v15801_v33 }
0x11c4   :  { %13899 = vrcp.f32 %v3641_v52 }
0x11c5   :  { %12989 = vmatmul.mubr.msk.f32.vlgmr.msra.gmra.mrb[34].mxu0 %vm1027_vm2, %v3647_v55  ;;  %v4115_v23 = vpop.permute.xlu0 %4114 }
0x11c6   :  { %v13892_v46 = vpop.eup %13891  ;;  %12997 = vmatpush3.msra.mxu0 %v3963_v9  ;;  %12998 = vmatprep.mubr.msk.f32.mxu0 %vm14905_vm1, %v14903_v0 }
0x11c7   :  { %v13894_v49 = vpop.eup %13893  ;;  %13006 = vmatprep.subr.mxu0 %v14903_v0  ;;  %v3649_v51 = vmul.f32 %v13892_v46, %v15807_v37  ;;  %v4297_v37 = vld [vmem:[#allocation20 + $0x20] sm:$0xff] }
0x11c8   :  { %v3651_v47 = vmul.f32 %v13894_v49, %v15809_v34  ;;  %v4298_v34 = vld [vmem:[#allocation20 + $0x28] sm:$0xff]  ;;  %v12298_v49 = vld [vmem:[#allocation22 + $0x1] ss:$0 sm:$0xff] }
0x11c9   :  { %12994 = vmatmul.mubr.msk.f32.vlgmr.msra.gmra.mrb[34].mxu1 %vm1027_vm2, %v3649_v51  ;;  %v13596_v43 = vpack.c.bf16 %v4298_v34, %v4297_v37  ;;  %v4419_v51 = vadd.f32 1.0, %v4409_v14 }
0x11ca   :  { %v13896_v48 = vpop.eup %13895  ;;  %12999 = vmatmul.mubr.msk.f32.vlgmr.msra.gmra.mrb[36].mxu0 %vm1027_vm2, %v3651_v47  ;;  %13002 = vmatpush3.msra.mxu1 %v4039_v12  ;;  %v4402_v12 = vcombine.high %v4401_v1, %v4401_v1 }
0x11cb   :  { %v13898_v24 = vpop.eup %13897  ;;  %13007 = vmatpush3.msra.mxu0 %v4115_v23  ;;  %13003 = vmatprep.mubr.msk.f32.mxu1 %vm14905_vm1, %v14903_v0  ;;  %v3653_v27 = vmul.f32 %v13896_v48, %v15815_v45  ;;  %v4299_v45 = vld [vmem:[#allocation20 + $0x30] sm:$0xff] }
0x11cc   :  { %13008 = vmatprep.mubr.msk.f32.mxu0 %vm14905_vm1, %v14903_v0  ;;  %13011 = vmatprep.subr.mxu1 %v14903_v0  ;;  %v3655_v28 = vmul.f32 %v13898_v24, %v15817_v56  ;;  %v4300_v56 = vld [vmem:[#allocation20 + $0x38] sm:$0xff]  ;;  %v4416_v19 = vrot.slane %v4402_v12, %v15465_v10 }
0x11cd   :  { %13004 = vmatmul.mubr.msk.f32.vlgmr.msra.gmra.mrb[36].mxu1 %vm1027_vm2, %v3653_v27  ;;  %13597 = vmatprep.subr.bf16.mxu0 %v13596_v43  ;;  %v13600_v57 = vpack.c.bf16 %v4300_v56, %v4299_v45  ;;  %v4495_v12 = vld [vmem:[#allocation23 + $0x38] sm:$0xff] }
0x11ce   :  { %v13900_v31 = vpop.eup %13899  ;;  %13009 = vmatmul.mubr.msk.f32.vlgmr.msra.gmra.mrb[38].mxu0 %vm1027_vm2, %v3655_v28  ;;  %13012 = vmatpush3.msra.mxu1 %v4191_v29  ;;  %v15881_v38 = vrot.slane %v4416_v19, %v15470_v13  ;;  %v4420_v46 = vadd.f32 1.0, %v4416_v19  ;;  %v15897_v28 = vrot.slane %v4419_v51, %v15470_v13  ;;  %v4589_v19 = vld [vmem:[#allocation26 + $0x28] sm:$0xff] }
0x11cf   :  { %13013 = vmatprep.mubr.msk.f32.mxu1 %vm14905_vm1, %v14903_v0  ;;  %v3657_v30 = vmul.f32 %v13900_v31, %v15823_v62  ;;  %13599 = vmatpush3.bf16.msra.mxu0 %v13596_v43 }
0x11d0   :  { %13601 = vmatprep.subr.bf16.mxu0 %v13600_v57  ;;  %v15894_v23 = vrot.slane %v4420_v46, %v15470_v13 }
0x11d1   :  { %13014 = vmatmul.mubr.msk.f32.vlgmr.msra.gmra.mrb[38].mxu1 %vm1027_vm2, %v3657_v30 }
0x11d3   :  { %13603 = vmatpush3.bf16.msra.mxu0 %v13600_v57 }
0x123f   :  { %v3806_v33 = vpop.f32.mrb[32].mxu1 }
0x1240   :  { %v12985_v32 = vpop.f32.mrb[33].mxu1 }
0x1244   :  { %v3730_v35 = vpop.f32.mrb[32].mxu0 }
0x1245   :  { %v12980_v36 = vpop.f32.mrb[33].mxu0 }
0x1298   :  { %v3882_v62 = vpop.f32.mrb[34].mxu0 }
0x1299   :  { %4268 = vrot.lane.b32.xlu0 %v3882_v62, %s14866_s28  ;;  %v12990_v25 = vpop.f32.mrb[35].mxu0 }
0x129c   :  { %v3958_v3 = vpop.f32.mrb[34].mxu1 }
0x129d   :  { %v4034_v9 = vpop.f32.mrb[36].mxu0  ;;  %4270 = vrot.lane.b32.xlu1 %v3958_v3, %s14866_s28  ;;  %v12995_v61 = vpop.f32.mrb[35].mxu1  ;;  %v4492_v3 = vld [vmem:[#allocation23 + $0x20] sm:$0xff] }
0x129e   :  { %4276 = vrot.lane.b32.xlu0 %v4034_v9, %s14884_s7  ;;  %v13000_v20 = vpop.f32.mrb[37].mxu0  ;;  %v4493_v9 = vld [vmem:[#allocation23 + $0x28] sm:$0xff] }
0x129f   :  { %v13604_v61 = vpack.c.bf16 %v4493_v9, %v4492_v3  ;;  %v4494_v20 = vld [vmem:[#allocation23 + $0x30] sm:$0xff] }
0x12a0   :  { %v4110_v53 = vpop.f32.mrb[36].mxu1  ;;  %v13608_v14 = vpack.c.bf16 %v4495_v12, %v4494_v20 }
0x12a1   :  { %v4186_v15 = vpop.f32.mrb[38].mxu0  ;;  %4278 = vrot.lane.b32.xlu1 %v4110_v53, %s14884_s7  ;;  %v13005_v22 = vpop.f32.mrb[37].mxu1  ;;  %13605 = vmatprep.subr.bf16.mxu1 %v13604_v61  ;;  %v4749_v53 = vld [vmem:[#allocation32] sm:$0xff] }
0x12a2   :  { %4284 = vrot.lane.b32.xlu0 %v4186_v15, %s14912_s0  ;;  %v13010_v17 = vpop.f32.mrb[39].mxu0  ;;  %13607 = vmatpush3.bf16.msra.mxu1 %v13604_v61  ;;  %v4750_v15 = vld [vmem:[#allocation32 + $0x8] sm:$0xff] }
0x12a3   :  { %13609 = vmatprep.subr.bf16.mxu1 %v13608_v14  ;;  %v13620_v22 = vpack.c.bf16 %v4750_v15, %v4749_v53  ;;  %v4588_v17 = vld [vmem:[#allocation26 + $0x20] sm:$0xff] }
0x12a4   :  { %v4262_v11 = vpop.f32.mrb[38].mxu1 }
0x12a5   :  { %4286 = vrot.lane.b32.xlu1 %v4262_v11, %s14912_s0  ;;  %v13015_v50 = vpop.f32.mrb[39].mxu1  ;;  %v13612_v11 = vpack.c.bf16 %v4589_v19, %v4588_v17 }
0x12a6   :  { %4445 = vrot.lane.b32.xlu0 %v15875_v6, %s14909_s11  ;;  %13611 = vmatpush3.bf16.msra.mxu1 %v13608_v14 }
0x12a7   :  { %13621 = vmatprep.subr.bf16.mxu1 %v13620_v22  ;;  %13613 = vmatprep.subr.bf16.mxu0 %v13612_v11 }
0x12a9   :  { %4447 = vrot.lane.b32.xlu1 %v15881_v38, %s14909_s11 }
0x130b   :  { %v4269_v2 = vpop.permute.xlu0 %4268 }
0x130c   :  { %v4290_v4 = vsel %vm1027_vm2, %v3730_v35, %v4269_v2 }
0x130f   :  { %v4271_v41 = vpop.permute.xlu1 %4270 }
0x1310   :  { %v4277_v5 = vpop.permute.xlu0 %4276  ;;  %v4291_v18 = vsel %vm1027_vm2, %v3806_v33, %v4271_v41 }
0x1311   :  { %v4292_v7 = vsel %vm2380_vm3, %v4290_v4, %v4277_v5 }
0x1313   :  { %v4279_v21 = vpop.permute.xlu1 %4278 }
0x1314   :  { %v4285_v26 = vpop.permute.xlu0 %4284  ;;  %v4293_v54 = vsel %vm2380_vm3, %v4291_v18, %v4279_v21 }
0x1315   :  { %v4294_v16 = vsel %vm2383_vm4, %v4292_v7, %v4285_v26  ;;  %v15907_v7 = vld [vmem:[#allocation29 + $0x2] sm:$0x3]  ;;  %v15909_v26 = vld [vmem:[#allocation31 + $0x2] sm:$0x3] }
0x1316   :  { %13024 = vmatprep.mubr.msk.f32.mxu0 %vm626_vm0, %v4294_v16  ;;  %v4482_v16 = vrot.slane %v15907_v7, %v15470_v13 }
0x1317   :  { %v4287_v52 = vpop.permute.xlu1 %4286 }
0x1318   :  { %v4295_v55 = vsel %vm2383_vm4, %v4293_v54, %v4287_v52  ;;  %v4446_v35 = vpop.permute.xlu0 %4445  ;;  %v4488_v52 = vrot.slane %v15909_v26, %v15470_v13 }
0x1319   :  { %13025 = vmatmul.mubr.msk.f32.vlgmr.msra.gmra.mrb[40].mxu0 %vm626_vm0, %v4295_v55 }
0x131a   :  { %13615 = vmatpush3.bf16.msra.mxu0 %v13612_v11 }
0x131b   :  { %v4448_v33 = vpop.permute.xlu1 %4447 }
0x13ec   :  { %v13026_v47 = vpop.f32.mrb[40].mxu0 }
0x13ed   :  { %v4387_v48 = vadd.f32 %v13026_v47, %v12298_v49  ;;  %v4381_v24 = vpop.f32.mrb[41].mxu0  ;;  %v4751_v47 = vld [vmem:[#allocation32 + $0x10] sm:$0xff] }
0x13ee   :  { %v4382_v27 = vadd.f32 %v12298_v49, %v4381_v24 }
0x13ef   :  { %v4434_v29 = vmul.f32 %v15894_v23, %v4387_v48  ;;  %v4752_v48 = vld [vmem:[#allocation32 + $0x18] sm:$0xff] }
0x13f0   :  { %v4433_v31 = vmul.f32 %v15897_v28, %v4382_v27 }
0x13f1   :  { %v4436_v30 = vadd.f32 %v4434_v29, %v15667_v63  ;;  %v13624_v29 = vpack.c.bf16 %v4752_v48, %v4751_v47 }
0x13f2   :  { %v4435_v32 = vadd.f32 %v4433_v31, %v15663_v60  ;;  %v15921_v31 = vld [vmem:[#allocation5] sm:$0xff] }
0x13f3   :  { %v4452_v36 = vadd.f32 %v4448_v33, %v4436_v30  ;;  %v15927_v30 = vld [vmem:[#allocation5 + $0x8] sm:$0xff] }
0x13f4   :  { %v4451_v37 = vadd.f32 %v4446_v35, %v4435_v32  ;;  %v4590_v33 = vld [vmem:[#allocation26 + $0x30] sm:$0xff]  ;;  %v4591_v32 = vld [vmem:[#allocation26 + $0x38] sm:$0xff] }
0x13f5   :  { %v4456_v34 = vsel %vm626_vm0, %v4452_v36, 0.0  ;;  %v13616_v35 = vpack.c.bf16 %v4591_v32, %v4590_v33 }
0x13f6   :  { %4457 = vadd.xlane.f32.xlu1 %v4456_v34  ;;  %v4453_v43 = vsel %vm626_vm0, %v4451_v37, 0.0 }
0x13f7   :  { %4454 = vadd.xlane.f32.xlu0 %v4453_v43  ;;  %13617 = vmatprep.subr.bf16.mxu0 %v13616_v35 }
0x13f8   :  { %13619 = vmatpush3.bf16.msra.mxu0 %v13616_v35 }
0x13f9   :  { %13060 = vmatprep.subr.mxu0 %v14903_v0 }
0x1483   :  { %v4458_v44 = vpop.xlane.xlu1 %4457 }
0x1484   :  { %v4460_v45 = vmul.f32 0.03125, %v4458_v44  ;;  %v4455_v56 = vpop.xlane.xlu0 %4454 }
0x1485   :  { %v4459_v57 = vmul.f32 0.03125, %v4455_v56 }
0x1486   :  { %v4462_v59 = vsub.f32 %v4452_v36, %v4460_v45  ;;  %v12301_v36 = vld [vmem:[#allocation25 + $0x1] ss:$0 sm:$0xff] }
0x1487   :  { %v4461_v62 = vsub.f32 %v4451_v37, %v4459_v57  ;;  %v12307_v57 = vld [vmem:[#allocation34] ss:$0 sm:$0xff] }
0x1488   :  { %v4464_v1 = vmul.f32 %v4462_v59, %v4462_v59 }
0x1489   :  { %v4463_v25 = vmul.f32 %v4461_v62, %v4461_v62 }
0x148a   :  { %v4468_v60 = vsel %vm626_vm0, %v4464_v1, 0.0 }
0x148b   :  { %v4465_v63 = vsel %vm626_vm0, %v4463_v25, 0.0 }
0x148c   :  { %4466 = vadd.xlane.f32.xlu0 %v4465_v63 }
0x1490   :  { %4469 = vadd.xlane.f32.xlu0 %v4468_v60 }
0x1519   :  { %v4467_v50 = vpop.xlane.xlu0 %4466 }
0x151a   :  { %v4471_v2 = vmul.f32 0.03125, %v4467_v50 }
0x151c   :  { %v4473_v41 = vadd.f32 1e-05, %v4471_v2 }
0x151d   :  { %v4470_v5 = vpop.xlane.xlu0 %4469 }
0x151e   :  { %13901 = vrsqrt.f32 %v4473_v41  ;;  %v4472_v4 = vmul.f32 0.03125, %v4470_v5  ;;  %v12230_v41 = vld.sshfl [vmem:[#allocation16] sm:$0x11 pattern:$0x75316420] }
0x151f   :  { %v896_v5 = vrot.slane %v12230_v41, %v15465_v10 }
0x1520   :  { %v4474_v21 = vadd.f32 1e-05, %v4472_v4 }
0x1521   :  { %v907_v4 = vrot.slane %v896_v5, %v15470_v13 }
0x1522   :  { %13903 = vrsqrt.f32 %v4474_v21  ;;  %v879_v21 = vld [vmem:[#allocation13] sm:$0xff] }
0x1528   :  { %v13902_v18 = vpop.eup %13901 }
0x1529   :  { %v4477_v54 = vmul.f32 %v13902_v18, %v4461_v62  ;;  %v16037_v18 = vadd.f32 %v907_v4, %v879_v21 }
0x152b   :  { %v4483_v55 = vmul.f32 %v4482_v16, %v4477_v54 }
0x152c   :  { %v13904_v46 = vpop.eup %13903 }
0x152d   :  { %v4478_v49 = vmul.f32 %v13904_v46, %v4462_v59  ;;  %v15915_v51 = vadd.f32 %v4488_v52, %v4483_v55 }
0x152f   :  { %v4484_v24 = vmul.f32 %v4482_v16, %v4478_v49  ;;  %13035 = vmatprep.mubr.msk.f32.mxu1 %vm626_vm0, %v15915_v51  ;;  %v889_v16 = vcombine.high %v12230_v41, %v12230_v41 }
0x1531   :  { %v15919_v27 = vadd.f32 %v4488_v52, %v4484_v24  ;;  %v903_v52 = vrot.slane %v889_v16, %v15465_v10 }
0x1533   :  { %13036 = vmatmul.mubr.msk.f32.vlgmr.msra.gmra.mrb[40].mxu1 %vm626_vm0, %v15919_v27  ;;  %v911_v47 = vrot.slane %v903_v52, %v15470_v13 }
0x1534   :  { %13623 = vmatpush3.bf16.msra.mxu1 %v13620_v22  ;;  %13057 = vmatprep.mubr.msk.f32.mxu1 %vm626_vm0, %v15921_v31 }
0x1535   :  { %13625 = vmatprep.subr.bf16.mxu1 %v13624_v29  ;;  %v16043_v24 = vadd.f32 %v911_v47, %v879_v21 }
0x1538   :  { %13627 = vmatpush3.bf16.msra.mxu1 %v13624_v29 }
0x1539   :  { %13065 = vmatprep.subr.mxu1 %v14903_v0 }
0x153b   :  { %13058 = vmatmul.mubr.msk.f32.vlgmr.msra.gmra.mrb[42].mxu1 %vm626_vm0, %v15927_v30 }
0x153c   :  { %13067 = vmatprep.mubr.msk.f32.mxu1 %vm14905_vm1, %v14903_v0 }
0x1606   :  { %v13037_v37 = vpop.f32.mrb[40].mxu1 }
0x1607   :  { %v4582_v34 = vadd.f32 %v13037_v37, %v12301_v36  ;;  %v4576_v43 = vpop.f32.mrb[41].mxu1 }
0x1608   :  { %v4577_v44 = vadd.f32 %v12301_v36, %v4576_v43 }
0x1609   :  { %v4586_v56 = vmax.f32 %v4582_v34, 0.0 }
0x160a   :  { %v4585_v45 = vmax.f32 %v4577_v44, 0.0 }
0x160c   :  { %13046 = vmatprep.mubr.msk.f32.mxu0 %vm626_vm0, %v4585_v45 }
0x160d   :  { %13047 = vmatmul.mubr.msk.f32.vlgmr.msra.gmra.mrb[42].mxu0 %vm626_vm0, %v4586_v56 }
0x160e   :  { %v13059_v59 = vpop.f32.mrb[42].mxu1  ;;  %13062 = vmatprep.mubr.msk.f32.mxu0 %vm14905_vm1, %v14903_v0 }
0x160f   :  { %v15939_v62 = vadd.f32 %v13059_v59, %v12307_v57  ;;  %v4832_v25 = vpop.f32.mrb[43].mxu1 }
0x1610   :  { %v15941_v63 = vadd.f32 %v12307_v57, %v4832_v25 }
0x1611   :  { %4845 = vrot.lane.b32.xlu0 %v15939_v62, %s14907_s4 }
0x1612   :  { %4843 = vrot.lane.b32.xlu1 %v15941_v63, %s14907_s4 }
0x1615   :  { %4851 = vrot.lane.b32.xlu0 %v15941_v63, %s14908_s19 }
0x1616   :  { %4847 = vrot.lane.b32.xlu1 %v15941_v63, %s14906_s14 }
0x1619   :  { %4855 = vrot.lane.b32.xlu0 %v15941_v63, %s14909_s11 }
0x161a   :  { %4849 = vrot.lane.b32.xlu1 %v15939_v62, %s14906_s14 }
0x161e   :  { %4853 = vrot.lane.b32.xlu1 %v15939_v62, %s14908_s19 }
0x1622   :  { %4931 = vrot.lane.b32.xlu1 %v15939_v62, %s14909_s11 }
0x1683   :  { %v15959_v1 = vpop.permute.xlu0 %4845 }
0x1684   :  { %5083 = vrot.lane.b32.xlu1 %v15959_v1, %s14909_s11  ;;  %v15963_v60 = vpop.permute.xlu1 %4843 }
0x1685   :  { %5007 = vrot.lane.b32.xlu0 %v15963_v60, %s14909_s11 }
0x1687   :  { %v15967_v3 = vpop.permute.xlu0 %4851 }
0x1688   :  { %v15969_v9 = vpop.permute.xlu1 %4847 }
0x1689   :  { %5159 = vrot.lane.b32.xlu0 %v15969_v9, %s14909_s11 }
0x168b   :  { %v4856_v61 = vpop.permute.xlu0 %4855 }
0x168c   :  { %v15973_v20 = vpop.permute.xlu1 %4849  ;;  %13061 = vmatpush3.xpose.msk.msra.mxu0 %vm1027_vm2, %v4856_v61 }
0x168d   :  { %5311 = vrot.lane.b32.xlu0 %v15967_v3, %s14909_s11  ;;  %5235 = vrot.lane.b32.xlu1 %v15973_v20, %s14909_s11 }
0x168e   :  { %13070 = vmatprep.subr.mxu0 %v14903_v0 }
0x168f   :  { %13063 = vmatmul.mubr.msk.f32.vlgmr.msra.gmra.mrb[44].mxu0 %vm1027_vm2, %v15941_v63 }
0x1690   :  { %v15983_v12 = vpop.permute.xlu1 %4853  ;;  %13072 = vmatprep.mubr.msk.f32.mxu0 %vm14905_vm1, %v14903_v0 }
0x1691   :  { %5387 = vrot.lane.b32.xlu1 %v15983_v12, %s14909_s11 }
0x1694   :  { %v4932_v14 = vpop.permute.xlu1 %4931 }
0x1695   :  { %13066 = vmatpush3.xpose.msk.msra.mxu1 %vm1027_vm2, %v4932_v14 }
0x1696   :  { %13075 = vmatprep.subr.mxu1 %v14903_v0 }
0x1698   :  { %13068 = vmatmul.mubr.msk.f32.vlgmr.msra.gmra.mrb[44].mxu1 %vm1027_vm2, %v15939_v62 }
0x1699   :  { %13077 = vmatprep.mubr.msk.f32.mxu1 %vm14905_vm1, %v14903_v0 }
0x16e0   :  { %v15995_v53 = vpop.f32.mrb[42].mxu0 }
0x16e1   :  { %v15997_v15 = vpop.f32.mrb[43].mxu0 }
0x16f6   :  { %v5084_v22 = vpop.permute.xlu1 %5083 }
0x16f7   :  { %v5008_v17 = vpop.permute.xlu0 %5007  ;;  %13076 = vmatpush3.xpose.msk.msra.mxu1 %vm1027_vm2, %v5084_v22 }
0x16f8   :  { %13071 = vmatpush3.xpose.msk.msra.mxu0 %vm1027_vm2, %v5008_v17  ;;  %13085 = vmatprep.subr.mxu1 %v14903_v0 }
0x16f9   :  { %13080 = vmatprep.subr.mxu0 %v14903_v0 }
0x16fa   :  { %13078 = vmatmul.mubr.msk.f32.vlgmr.msra.gmra.mrb[46].mxu1 %vm1027_vm2, %v15959_v1 }
0x16fb   :  { %v5160_v19 = vpop.permute.xlu0 %5159  ;;  %13073 = vmatmul.mubr.msk.f32.vlgmr.msra.gmra.mrb[46].mxu0 %vm1027_vm2, %v15963_v60  ;;  %13087 = vmatprep.mubr.msk.f32.mxu1 %vm14905_vm1, %v14903_v0 }
0x16fc   :  { %13081 = vmatpush3.xpose.msk.msra.mxu0 %vm1027_vm2, %v5160_v19  ;;  %13082 = vmatprep.mubr.msk.f32.mxu0 %vm14905_vm1, %v14903_v0 }
0x16fd   :  { %13090 = vmatprep.subr.mxu0 %v14903_v0 }
0x16ff   :  { %v5312_v11 = vpop.permute.xlu0 %5311  ;;  %v5236_v50 = vpop.permute.xlu1 %5235  ;;  %13083 = vmatmul.mubr.msk.f32.vlgmr.msra.gmra.mrb[48].mxu0 %vm1027_vm2, %v15969_v9 }
0x1700   :  { %13086 = vmatpush3.xpose.msk.msra.mxu1 %vm1027_vm2, %v5236_v50  ;;  %13091 = vmatpush3.xpose.msk.msra.mxu0 %vm1027_vm2, %v5312_v11 }
0x1701   :  { %13092 = vmatprep.mubr.msk.f32.mxu0 %vm14905_vm1, %v14903_v0  ;;  %13095 = vmatprep.subr.mxu1 %v14903_v0 }
0x1702   :  { %13100 = vmatprep.subr.mxu0 %v14903_v0 }
0x1703   :  { %13088 = vmatmul.mubr.msk.f32.vlgmr.msra.gmra.mrb[48].mxu1 %vm1027_vm2, %v15973_v20  ;;  %v5388_v2 = vpop.permute.xlu1 %5387  ;;  %13093 = vmatmul.mubr.msk.f32.vlgmr.msra.gmra.mrb[50].mxu0 %vm1027_vm2, %v15967_v3 }
0x1704   :  { %13096 = vmatpush3.xpose.msk.msra.mxu1 %vm1027_vm2, %v5388_v2  ;;  %13097 = vmatprep.mubr.msk.f32.mxu1 %vm14905_vm1, %v14903_v0 }
0x1705   :  { %13105 = vmatprep.subr.mxu1 %v14903_v0  ;;  %13102 = vmatprep.mubr.msk.f32.mxu0 %vm14905_vm1, %v14903_v0 }
0x1707   :  { %13098 = vmatmul.mubr.msk.f32.vlgmr.msra.gmra.mrb[50].mxu1 %vm1027_vm2, %v15983_v12 }
0x1708   :  { %13107 = vmatprep.mubr.msk.f32.mxu1 %vm14905_vm1, %v14903_v0 }
0x1762   :  { %v4927_v54 = vpop.f32.mrb[44].mxu0 }
0x1763   :  { %v5463_v55 = vmul.f32 0.35355338, %v4927_v54  ;;  %v13064_v46 = vpop.f32.mrb[45].mxu0 }
0x1765   :  { %v5471_v49 = vadd.f32 %v5463_v55, %v16037_v18 }
0x1767   :  { %v5479_v48 = vsel %vm1027_vm2, %v5471_v49, -inf }
0x1768   :  { %5480 = vmax.xlane.f32.xlu0 %v5479_v48 }
0x176b   :  { %v5003_v29 = vpop.f32.mrb[44].mxu1 }
0x176c   :  { %v5464_v33 = vmul.f32 0.35355338, %v5003_v29  ;;  %v13069_v32 = vpop.f32.mrb[45].mxu1 }
0x176e   :  { %v5472_v35 = vadd.f32 %v5464_v33, %v16043_v24 }
0x1770   :  { %v5482_v36 = vsel %vm1027_vm2, %v5472_v35, -inf }
0x1771   :  { %5483 = vmax.xlane.f32.xlu1 %v5482_v36 }
0x17cd   :  { %v5155_v37 = vpop.f32.mrb[46].mxu1 }
0x17ce   :  { %v5466_v34 = vmul.f32 0.35355338, %v5155_v37  ;;  %v5079_v43 = vpop.f32.mrb[46].mxu0  ;;  %v13079_v44 = vpop.f32.mrb[47].mxu1 }
0x17cf   :  { %v5465_v45 = vmul.f32 0.35355338, %v5079_v43  ;;  %v13074_v56 = vpop.f32.mrb[47].mxu0 }
0x17d0   :  { %v5474_v59 = vadd.f32 %v5466_v34, %v16043_v24 }
0x17d1   :  { %v5473_v57 = vadd.f32 %v5465_v45, %v16037_v18 }
0x17d2   :  { %v5231_v25 = vpop.f32.mrb[48].mxu0  ;;  %v5488_v50 = vsel %vm1027_vm2, %v5474_v59, -inf }
0x17d3   :  { %v5467_v61 = vmul.f32 0.35355338, %v5231_v25  ;;  %v13084_v14 = vpop.f32.mrb[49].mxu0  ;;  %v5485_v22 = vsel %vm1027_vm2, %v5473_v57, -inf }
0x17d4   :  { %5486 = vmax.xlane.f32.xlu0 %v5485_v22 }
0x17d5   :  { %v5475_v17 = vadd.f32 %v5467_v61, %v16037_v18 }
0x17d6   :  { %v5307_v19 = vpop.f32.mrb[48].mxu1  ;;  %v5383_v11 = vpop.f32.mrb[50].mxu0 }
0x17d7   :  { %v5468_v2 = vmul.f32 0.35355338, %v5307_v19  ;;  %v5469_v41 = vmul.f32 0.35355338, %v5383_v11  ;;  %v13089_v5 = vpop.f32.mrb[49].mxu1  ;;  %v13094_v4 = vpop.f32.mrb[51].mxu0 }
0x17d8   :  { %5489 = vmax.xlane.f32.xlu0 %v5488_v50  ;;  %v5491_v21 = vsel %vm1027_vm2, %v5475_v17, -inf }
0x17d9   :  { %v5476_v16 = vadd.f32 %v5468_v2, %v16043_v24  ;;  %v5477_v54 = vadd.f32 %v5469_v41, %v16037_v18  ;;  %5492 = vmax.xlane.f32.xlu1 %v5491_v21 }
0x17da   :  { %v5459_v52 = vpop.f32.mrb[50].mxu1 }
0x17db   :  { %v5470_v55 = vmul.f32 0.35355338, %v5459_v52  ;;  %v13099_v46 = vpop.f32.mrb[51].mxu1  ;;  %v5494_v47 = vsel %vm1027_vm2, %v5476_v16, -inf  ;;  %v5497_v48 = vsel %vm1027_vm2, %v5477_v54, -inf }
0x17dc   :  { %5495 = vmax.xlane.f32.xlu0 %v5494_v47 }
0x17dd   :  { %v5478_v29 = vadd.f32 %v5470_v55, %v16043_v24  ;;  %5498 = vmax.xlane.f32.xlu1 %v5497_v48 }
0x17df   :  { %v5500_v33 = vsel %vm1027_vm2, %v5478_v29, -inf }
0x17e0   :  { %5501 = vmax.xlane.f32.xlu0 %v5500_v33 }
0x17ee   :  { %5575 = vrot.lane.b32.xlu1 %v15941_v63, %s14911_s6 }
0x17f2   :  { %5727 = vrot.lane.b32.xlu1 %v15963_v60, %s14911_s6 }
0x17f5   :  { %v5481_v37 = vpop.xlane.xlu0 %5480 }
0x17f6   :  { %5803 = vrot.lane.b32.xlu1 %v15959_v1, %s14911_s6  ;;  %5651 = vrot.lane.b32.xlu0 %v15939_v62, %s14911_s6  ;;  %v5503_v63 = vsub.f32 %v5471_v49, %v5481_v37 }
0x17f8   :  { %v5511_v43 = vmul.f32 1.442695, %v5503_v63 }
0x17fa   :  { %5955 = vrot.lane.b32.xlu1 %v15973_v20, %s14911_s6  ;;  %5879 = vrot.lane.b32.xlu0 %v15969_v9, %s14911_s6 }
0x17fe   :  { %v5484_v32 = vpop.xlane.xlu1 %5483 }
0x17ff   :  { %v5504_v36 = vsub.f32 %v5472_v35, %v5484_v32 }
0x1801   :  { %v5513_v34 = vmul.f32 1.442695, %v5504_v36 }
0x1803   :  { %13905 = vpow2.f32 %v5513_v34 }
0x1804   :  { %13907 = vpow2.f32 %v5511_v43 }
0x180d   :  { %v16071_v60 = vpop.eup %13905 }
0x180e   :  { %v5530_v1 = vsel %vm1027_vm2, %v16071_v60, 0.0  ;;  %v16075_v62 = vpop.eup %13907 }
0x180f   :  { %v5527_v20 = vsel %vm1027_vm2, %v16075_v62, 0.0 }
0x1819   :  { %5531 = vadd.xlane.f32.xlu0 %v5530_v1 }
0x181e   :  { %5528 = vadd.xlane.f32.xlu1 %v5527_v20 }
0x1861   :  { %v5487_v9 = vpop.xlane.xlu0 %5486 }
0x1862   :  { %v5505_v35 = vsub.f32 %v5473_v57, %v5487_v9 }
0x1864   :  { %v5515_v44 = vmul.f32 1.442695, %v5505_v35 }
0x1865   :  { %v5490_v45 = vpop.xlane.xlu0 %5489 }
0x1866   :  { %13909 = vpow2.f32 %v5515_v44  ;;  %v5506_v49 = vsub.f32 %v5474_v59, %v5490_v45  ;;  %v5493_v56 = vpop.xlane.xlu1 %5492 }
0x1867   :  { %v5507_v25 = vsub.f32 %v5475_v17, %v5493_v56 }
0x1868   :  { %v5517_v61 = vmul.f32 1.442695, %v5506_v49 }
0x1869   :  { %v5519_v14 = vmul.f32 1.442695, %v5507_v25  ;;  %v5496_v22 = vpop.xlane.xlu0 %5495 }
0x186a   :  { %13911 = vpow2.f32 %v5517_v61  ;;  %v5508_v19 = vsub.f32 %v5476_v16, %v5496_v22  ;;  %v5499_v11 = vpop.xlane.xlu1 %5498 }
0x186b   :  { %13913 = vpow2.f32 %v5519_v14  ;;  %v5509_v50 = vsub.f32 %v5477_v54, %v5499_v11 }
0x186c   :  { %v5521_v2 = vmul.f32 1.442695, %v5508_v19 }
0x186d   :  { %v5523_v41 = vmul.f32 1.442695, %v5509_v50  ;;  %v5502_v5 = vpop.xlane.xlu0 %5501 }
0x186e   :  { %13915 = vpow2.f32 %v5521_v2  ;;  %v5510_v4 = vsub.f32 %v5478_v29, %v5502_v5  ;;  %v5576_v57 = vpop.permute.xlu1 %5575 }
0x186f   :  { %13917 = vpow2.f32 %v5523_v41  ;;  %13101 = vmatpush3.msra.mxu0 %v5576_v57 }
0x1870   :  { %v16079_v21 = vpop.eup %13909  ;;  %v5525_v59 = vmul.f32 1.442695, %v5510_v4  ;;  %13110 = vmatprep.subr.mxu0 %v14903_v0 }
0x1871   :  { %v5652_v17 = vpop.permute.xlu0 %5651  ;;  %v5533_v16 = vsel %vm1027_vm2, %v16079_v21, 0.0 }
0x1872   :  { %13919 = vpow2.f32 %v5525_v59  ;;  %13106 = vmatpush3.msra.mxu1 %v5652_v17  ;;  %5534 = vadd.xlane.f32.xlu1 %v5533_v16  ;;  %v5728_v37 = vpop.permute.xlu1 %5727 }
0x1873   :  { %13115 = vmatprep.subr.mxu1 %v14903_v0 }
0x1874   :  { %v16085_v54 = vpop.eup %13911 }
0x1875   :  { %v16087_v52 = vpop.eup %13913  ;;  %v5536_v55 = vsel %vm1027_vm2, %v16085_v54, 0.0  ;;  %v5880_v63 = vpop.permute.xlu0 %5879 }
0x1876   :  { %5537 = vadd.xlane.f32.xlu0 %v5536_v55  ;;  %v5539_v46 = vsel %vm1027_vm2, %v16087_v52, 0.0  ;;  %v5804_v34 = vpop.permute.xlu1 %5803 }
0x1877   :  { %5540 = vadd.xlane.f32.xlu1 %v5539_v46 }
0x1878   :  { %v16093_v47 = vpop.eup %13915 }
0x1879   :  { %v16095_v48 = vpop.eup %13917  ;;  %v5542_v29 = vsel %vm1027_vm2, %v16093_v47, 0.0 }
0x187a   :  { %5543 = vadd.xlane.f32.xlu0 %v5542_v29  ;;  %v5545_v33 = vsel %vm1027_vm2, %v16095_v48, 0.0  ;;  %v5956_v1 = vpop.permute.xlu1 %5955 }
0x187b   :  { %5546 = vadd.xlane.f32.xlu1 %v5545_v33 }
0x187c   :  { %v16101_v32 = vpop.eup %13919 }
0x187d   :  { %v5548_v36 = vsel %vm1027_vm2, %v16101_v32, 0.0 }
0x187e   :  { %5549 = vadd.xlane.f32.xlu0 %v5548_v36 }
0x188c   :  { %6107 = vrot.lane.b32.xlu1 %v15983_v12, %s14911_s6 }
0x1894   :  { %6031 = vrot.lane.b32.xlu0 %v15967_v3, %s14911_s6 }
0x18a6   :  { %v5532_v43 = vpop.xlane.xlu0 %5531 }
0x18a7   :  { %v5552_v20 = vmax.f32 %v5532_v43, 1e-20 }
0x18a9   :  { %13921 = vrcp.f32 %v5552_v20  ;;  %v6216_v20 = vld [vmem:[#allocation35 + $0x18] sm:$0xff] }
0x18ab   :  { %v5529_v9 = vpop.xlane.xlu1 %5528 }
0x18ac   :  { %v5551_v35 = vmax.f32 %v5529_v9, 1e-20 }
0x18ae   :  { %13923 = vrcp.f32 %v5551_v35 }
0x18b3   :  { %v13922_v44 = vpop.eup %13921 }
0x18b4   :  { %v5562_v45 = vmul.f32 %v13922_v44, %v16071_v60 }
0x18b6   :  { %13108 = vmatmul.mubr.msk.f32.vlgmr.msra.gmra.mrb[52].mxu1 %vm1027_vm2, %v5562_v45 }
0x18b7   :  { %13116 = vmatpush3.msra.mxu1 %v5804_v34  ;;  %13117 = vmatprep.mubr.msk.f32.mxu1 %vm14905_vm1, %v14903_v0 }
0x18b8   :  { %v13924_v3 = vpop.eup %13923  ;;  %13125 = vmatprep.subr.mxu1 %v14903_v0 }
0x18b9   :  { %v5560_v12 = vmul.f32 %v13924_v3, %v16075_v62 }
0x18bb   :  { %13103 = vmatmul.mubr.msk.f32.vlgmr.msra.gmra.mrb[52].mxu0 %vm1027_vm2, %v5560_v12 }
0x18bc   :  { %13111 = vmatpush3.msra.mxu0 %v5728_v37  ;;  %13112 = vmatprep.mubr.msk.f32.mxu0 %vm14905_vm1, %v14903_v0 }
0x18bd   :  { %13120 = vmatprep.subr.mxu0 %v14903_v0 }
0x18ff   :  { %v5535_v60 = vpop.xlane.xlu1 %5534 }
0x1900   :  { %v5553_v49 = vmax.f32 %v5535_v60, 1e-20 }
0x1902   :  { %13925 = vrcp.f32 %v5553_v49  ;;  %v12304_v49 = vld [vmem:[#allocation28 + $0x1] ss:$0 sm:$0xff] }
0x1903   :  { %v5538_v56 = vpop.xlane.xlu0 %5537 }
0x1904   :  { %v5554_v25 = vmax.f32 %v5538_v56, 1e-20  ;;  %v5541_v61 = vpop.xlane.xlu1 %5540 }
0x1905   :  { %v5555_v14 = vmax.f32 %v5541_v61, 1e-20 }
0x1906   :  { %13927 = vrcp.f32 %v5554_v25 }
0x1907   :  { %13929 = vrcp.f32 %v5555_v14  ;;  %v5544_v22 = vpop.xlane.xlu0 %5543  ;;  %v4673_v14 = vadd.f32 %v12304_v49, %v15997_v15 }
0x1908   :  { %v5556_v19 = vmax.f32 %v5544_v22, 1e-20  ;;  %v5547_v62 = vpop.xlane.xlu1 %5546 }
0x1909   :  { %v5557_v11 = vmax.f32 %v5547_v62, 1e-20  ;;  %v4678_v62 = vadd.f32 %v15995_v53, %v12304_v49 }
0x190a   :  { %13931 = vrcp.f32 %v5556_v19 }
0x190b   :  { %13933 = vrcp.f32 %v5557_v11  ;;  %v5550_v50 = vpop.xlane.xlu0 %5549 }
0x190c   :  { %v13926_v2 = vpop.eup %13925  ;;  %v5558_v41 = vmax.f32 %v5550_v50, 1e-20  ;;  %v16152_v50 = vsub.s32 2, %v15462_v8 }
0x190d   :  { %v5564_v5 = vmul.f32 %v13926_v2, %v16079_v21 }
0x190e   :  { %13935 = vrcp.f32 %v5558_v41  ;;  %v16154_v41 = vld [vmem:[#allocation10] sm:$0x1f] }
0x190f   :  { %13113 = vmatmul.mubr.msk.f32.vlgmr.msra.gmra.mrb[54].mxu0 %vm1027_vm2, %v5564_v5  ;;  %v6032_v55 = vpop.permute.xlu0 %6031  ;;  %v612_v15 = vrot.slane %v16154_v41, %v16152_v50 }
0x1910   :  { %v13928_v4 = vpop.eup %13927  ;;  %13121 = vmatpush3.msra.mxu0 %v5880_v63  ;;  %13122 = vmatprep.mubr.msk.f32.mxu0 %vm14905_vm1, %v14903_v0  ;;  %v6213_v63 = vld [vmem:[#allocation35] sm:$0xff] }
0x1911   :  { %v13930_v57 = vpop.eup %13929  ;;  %13130 = vmatprep.subr.mxu0 %v14903_v0  ;;  %v5566_v59 = vmul.f32 %v13928_v4, %v16085_v54 }
0x1912   :  { %v5568_v17 = vmul.f32 %v13930_v57, %v16087_v52  ;;  %v6108_v52 = vpop.permute.xlu1 %6107 }
0x1913   :  { %13118 = vmatmul.mubr.msk.f32.vlgmr.msra.gmra.mrb[54].mxu1 %vm1027_vm2, %v5566_v59  ;;  %v768_v59 = vadd.f32 %v15352_v40, %v612_v15 }
0x1914   :  { %v13932_v16 = vpop.eup %13931  ;;  %13123 = vmatmul.mubr.msk.f32.vlgmr.msra.gmra.mrb[56].mxu0 %vm1027_vm2, %v5568_v17  ;;  %13126 = vmatpush3.msra.mxu1 %v5956_v1  ;;  %v6215_v1 = vld [vmem:[#allocation35 + $0x10] sm:$0xff] }
0x1915   :  { %v13934_v21 = vpop.eup %13933  ;;  %13131 = vmatpush3.msra.mxu0 %v6032_v55  ;;  %13127 = vmatprep.mubr.msk.f32.mxu1 %vm14905_vm1, %v14903_v0  ;;  %v5570_v46 = vmul.f32 %v13932_v16, %v16093_v47  ;;  %v13632_v9 = vpack.c.bf16 %v6216_v20, %v6215_v1 }
0x1916   :  { %13132 = vmatprep.mubr.msk.f32.mxu0 %vm14905_vm1, %v14903_v0  ;;  %13135 = vmatprep.subr.mxu1 %v14903_v0  ;;  %v5572_v54 = vmul.f32 %v13934_v21, %v16095_v48  ;;  %v6214_v48 = vld [vmem:[#allocation35 + $0x8] sm:$0xff] }
0x1917   :  { %13128 = vmatmul.mubr.msk.f32.vlgmr.msra.gmra.mrb[56].mxu1 %vm1027_vm2, %v5570_v46  ;;  %v13628_v43 = vpack.c.bf16 %v6214_v48, %v6213_v63 }
0x1918   :  { %v13936_v29 = vpop.eup %13935  ;;  %13133 = vmatmul.mubr.msk.f32.vlgmr.msra.gmra.mrb[58].mxu0 %vm1027_vm2, %v5572_v54  ;;  %13136 = vmatpush3.msra.mxu1 %v6108_v52  ;;  %v6314_v54 = vrot.slane %v768_v59, %v15465_v10 }
0x1919   :  { %13137 = vmatprep.mubr.msk.f32.mxu1 %vm14905_vm1, %v14903_v0  ;;  %v5574_v33 = vmul.f32 %v13936_v29, %v16101_v32  ;;  %13629 = vmatprep.subr.bf16.mxu0 %v13628_v43 }
0x191a   :  { %13631 = vmatpush3.bf16.msra.mxu0 %v13628_v43 }
0x191b   :  { %13138 = vmatmul.mubr.msk.f32.vlgmr.msra.gmra.mrb[58].mxu1 %vm1027_vm2, %v5574_v33  ;;  %13633 = vmatprep.subr.bf16.mxu0 %v13632_v9 }
0x191e   :  { %13635 = vmatpush3.bf16.msra.mxu0 %v13632_v9 }
0x1989   :  { %v5723_v47 = vpop.f32.mrb[52].mxu1 }
0x198a   :  { %v13109_v36 = vpop.f32.mrb[53].mxu1 }
0x198b   :  { %v6315_v36 = vcombine.high %v6314_v54, %v6314_v54 }
0x198e   :  { %v5647_v37 = vpop.f32.mrb[52].mxu0 }
0x198f   :  { %v13104_v34 = vpop.f32.mrb[53].mxu0 }
0x1990   :  { %v6329_v34 = vrot.slane %v6315_v36, %v15465_v10 }
0x19e2   :  { %v5799_v35 = vpop.f32.mrb[54].mxu0 }
0x19e3   :  { %6185 = vrot.lane.b32.xlu0 %v5799_v35, %s14866_s28  ;;  %v13114_v32 = vpop.f32.mrb[55].mxu0 }
0x19e6   :  { %v5875_v44 = vpop.f32.mrb[54].mxu1 }
0x19e7   :  { %v5951_v45 = vpop.f32.mrb[56].mxu0  ;;  %6187 = vrot.lane.b32.xlu1 %v5875_v44, %s14866_s28  ;;  %v13119_v3 = vpop.f32.mrb[55].mxu1  ;;  %v6333_v44 = vadd.f32 1.0, %v6329_v34 }
0x19e8   :  { %6193 = vrot.lane.b32.xlu0 %v5951_v45, %s14884_s7  ;;  %v13124_v12 = vpop.f32.mrb[57].mxu0  ;;  %v12334_v45 = vld [vmem:[#allocation37] ss:$0 sm:$0xff] }
0x19ea   :  { %v6027_v60 = vpop.f32.mrb[56].mxu1 }
0x19eb   :  { %v6103_v56 = vpop.f32.mrb[58].mxu0  ;;  %6195 = vrot.lane.b32.xlu1 %v6027_v60, %s14884_s7  ;;  %v13129_v25 = vpop.f32.mrb[57].mxu1 }
0x19ec   :  { %6201 = vrot.lane.b32.xlu0 %v6103_v56, %s14912_s0  ;;  %v13134_v61 = vpop.f32.mrb[59].mxu0 }
0x19ee   :  { %v6179_v22 = vpop.f32.mrb[58].mxu1 }
0x19ef   :  { %6203 = vrot.lane.b32.xlu1 %v6179_v22, %s14912_s0  ;;  %v13139_v19 = vpop.f32.mrb[59].mxu1 }
0x19f0   :  { %4683 = vrot.lane.b32.xlu0 %v4673_v14, %s14911_s6 }
0x19f3   :  { %4685 = vrot.lane.b32.xlu1 %v4678_v62, %s14911_s6 }
0x1a55   :  { %v6186_v11 = vpop.permute.xlu0 %6185 }
0x1a56   :  { %v6207_v4 = vsel %vm1027_vm2, %v5647_v37, %v6186_v11  ;;  %v6322_v37 = vrot.slane %v6314_v54, %v15465_v10  ;;  %v6497_v54 = vld [vmem:[#allocation41 + $0x8] sm:$0xff] }
0x1a58   :  { %v16177_v63 = vrot.slane %v6322_v37, %v15470_v13  ;;  %v6332_v3 = vadd.f32 1.0, %v6322_v37 }
0x1a59   :  { %v6188_v2 = vpop.permute.xlu1 %6187 }
0x1a5a   :  { %v6194_v5 = vpop.permute.xlu0 %6193  ;;  %v6208_v55 = vsel %vm1027_vm2, %v5723_v47, %v6188_v2 }
0x1a5b   :  { %v6209_v53 = vsel %vm2380_vm3, %v6207_v4, %v6194_v5 }
0x1a5d   :  { %v6196_v57 = vpop.permute.xlu1 %6195 }
0x1a5e   :  { %v6202_v17 = vpop.permute.xlu0 %6201  ;;  %v6210_v21 = vsel %vm2380_vm3, %v6208_v55, %v6196_v57 }
0x1a5f   :  { %v6211_v16 = vsel %vm2383_vm4, %v6209_v53, %v6202_v17 }
0x1a60   :  { %13148 = vmatprep.mubr.msk.f32.mxu0 %vm626_vm0, %v6211_v16 }
0x1a61   :  { %v6204_v46 = vpop.permute.xlu1 %6203 }
0x1a62   :  { %v6212_v52 = vsel %vm2383_vm4, %v6210_v21, %v6204_v46  ;;  %v4684_v29 = vpop.permute.xlu0 %4683  ;;  %v6496_v46 = vld [vmem:[#allocation41] sm:$0xff] }
0x1a63   :  { %v4689_v33 = vmul.f32 %v4684_v29, %v15897_v28  ;;  %13149 = vmatmul.mubr.msk.f32.vlgmr.msra.gmra.mrb[60].mxu0 %vm626_vm0, %v6212_v52  ;;  %v13644_v52 = vpack.c.bf16 %v6497_v54, %v6496_v46  ;;  %v6498_v29 = vld [vmem:[#allocation41 + $0x10] sm:$0xff] }
0x1a65   :  { %4693 = vrot.lane.b32.xlu0 %v4689_v33, %s14911_s6  ;;  %v4686_v40 = vpop.permute.xlu1 %4685  ;;  %13645 = vmatprep.subr.bf16.mxu0 %v13644_v52  ;;  %v6499_v33 = vld [vmem:[#allocation41 + $0x18] sm:$0xff] }
0x1a66   :  { %v4690_v47 = vmul.f32 %v4686_v40, %v15894_v23  ;;  %v16184_v23 = vrot.slane %v6329_v34, %v15470_v13  ;;  %13647 = vmatpush3.bf16.msra.mxu0 %v13644_v52  ;;  %v13648_v40 = vpack.c.bf16 %v6499_v33, %v6498_v29 }
0x1a68   :  { %4695 = vrot.lane.b32.xlu1 %v4690_v47, %s14911_s6  ;;  %13649 = vmatprep.subr.bf16.mxu0 %v13648_v40 }
0x1a69   :  { %4701 = vrot.lane.b32.xlu0 %v15875_v6, %s14876_s25 }
0x1a6a   :  { %13651 = vmatpush3.bf16.msra.mxu0 %v13648_v40 }
0x1a6b   :  { %13183 = vmatprep.subr.mxu0 %v14903_v0 }
0x1a6c   :  { %4703 = vrot.lane.b32.xlu1 %v15881_v38, %s14876_s25 }
0x1a6d   :  { %6358 = vrot.lane.b32.xlu0 %v16177_v63, %s14909_s11 }
0x1a70   :  { %6360 = vrot.lane.b32.xlu1 %v16184_v23, %s14909_s11 }
0x1ad7   :  { %v4694_v28 = vpop.permute.xlu0 %4693 }
0x1ad8   :  { %v4699_v6 = vadd.f32 %v4694_v28, %v15915_v51  ;;  %v16193_v51 = vrot.slane %v6333_v44, %v15470_v13  ;;  %v6407_v44 = vld [vmem:[#allocation38 + $0x18] sm:$0xff] }
0x1ada   :  { %v4696_v48 = vpop.permute.xlu1 %4695 }
0x1adb   :  { %v4702_v43 = vpop.permute.xlu0 %4701  ;;  %v4700_v20 = vadd.f32 %v4696_v48, %v15919_v27  ;;  %v16196_v27 = vrot.slane %v6332_v3, %v15470_v13 }
0x1adc   :  { %v4707_v1 = vadd.f32 %v4702_v43, %v4699_v6 }
0x1ade   :  { %v4704_v9 = vpop.permute.xlu1 %4703  ;;  %v4709_v38 = vsel %vm626_vm0, %v4707_v1, 0.0 }
0x1adf   :  { %v4708_v35 = vadd.f32 %v4704_v9, %v4700_v20  ;;  %4710 = vadd.xlane.f32.xlu0 %v4709_v38  ;;  %v6359_v19 = vpop.permute.xlu0 %6358  ;;  %v6404_v9 = vld [vmem:[#allocation38] sm:$0xff]  ;;  %v6405_v38 = vld [vmem:[#allocation38 + $0x8] sm:$0xff] }
0x1ae1   :  { %v4712_v32 = vsel %vm626_vm0, %v4708_v35, 0.0 }
0x1ae2   :  { %4713 = vadd.xlane.f32.xlu1 %v4712_v32  ;;  %v6361_v11 = vpop.permute.xlu1 %6360  ;;  %v6406_v32 = vld [vmem:[#allocation38 + $0x10] sm:$0xff] }
0x1b36   :  { %v13150_v12 = vpop.f32.mrb[60].mxu0 }
0x1b37   :  { %v6302_v60 = vadd.f32 %v13150_v12, %v12334_v45  ;;  %v6296_v49 = vpop.f32.mrb[61].mxu0 }
0x1b38   :  { %v6297_v56 = vadd.f32 %v12334_v45, %v6296_v49  ;;  %v13640_v45 = vpack.c.bf16 %v6407_v44, %v6406_v32 }
0x1b39   :  { %v6347_v25 = vmul.f32 %v16193_v51, %v6302_v60 }
0x1b3a   :  { %v6346_v61 = vmul.f32 %v16196_v27, %v6297_v56 }
0x1b3b   :  { %v6349_v14 = vadd.f32 %v6347_v25, %v15927_v30 }
0x1b3c   :  { %v6348_v22 = vadd.f32 %v6346_v61, %v15921_v31  ;;  %v4738_v61 = vrot.slane %v15907_v7, %v15657_v39 }
0x1b3d   :  { %v6365_v15 = vadd.f32 %v6361_v11, %v6349_v14 }
0x1b3e   :  { %v6364_v62 = vadd.f32 %v6359_v19, %v6348_v22  ;;  %v4744_v19 = vrot.slane %v15909_v26, %v15657_v39 }
0x1b3f   :  { %v6369_v5 = vsel %vm626_vm0, %v6365_v15, 0.0 }
0x1b40   :  { %v6366_v2 = vsel %vm626_vm0, %v6364_v62, 0.0 }
0x1b41   :  { %6367 = vadd.xlane.f32.xlu0 %v6366_v2 }
0x1b45   :  { %6370 = vadd.xlane.f32.xlu0 %v6369_v5 }
0x1b6c   :  { %v4711_v4 = vpop.xlane.xlu0 %4710 }
0x1b6d   :  { %v4715_v57 = vmul.f32 0.03125, %v4711_v4 }
0x1b6f   :  { %v4717_v59 = vsub.f32 %v4707_v1, %v4715_v57  ;;  %v4714_v53 = vpop.xlane.xlu1 %4713 }
0x1b70   :  { %v4716_v17 = vmul.f32 0.03125, %v4714_v53 }
0x1b71   :  { %v4719_v16 = vmul.f32 %v4717_v59, %v4717_v59 }
0x1b72   :  { %v4718_v55 = vsub.f32 %v4708_v35, %v4716_v17  ;;  %v13636_v35 = vpack.c.bf16 %v6405_v38, %v6404_v9 }
0x1b73   :  { %v4721_v30 = vsel %vm626_vm0, %v4719_v16, 0.0  ;;  %v16225_v16 = vld [vmem:[%s17101_s15] sm:$0x7] }
0x1b74   :  { %4722 = vadd.xlane.f32.xlu1 %v4721_v30  ;;  %v4720_v31 = vmul.f32 %v4718_v55, %v4718_v55  ;;  %13637 = vmatprep.subr.bf16.mxu1 %v13636_v35  ;;  %v6395_v30 = vrot.slane %v16225_v16, %v15470_v13 }
0x1b75   :  { %13639 = vmatpush3.bf16.msra.mxu1 %v13636_v35 }
0x1b76   :  { %v4724_v21 = vsel %vm626_vm0, %v4720_v31, 0.0  ;;  %13641 = vmatprep.subr.bf16.mxu1 %v13640_v45 }
0x1b77   :  { %4725 = vadd.xlane.f32.xlu0 %v4724_v21 }
0x1b79   :  { %13643 = vmatpush3.bf16.msra.mxu1 %v13640_v45 }
0x1b7a   :  { %13173 = vmatprep.subr.mxu1 %v14903_v0 }
0x1bce   :  { %v6368_v36 = vpop.xlane.xlu0 %6367 }
0x1bcf   :  { %v6372_v47 = vmul.f32 0.03125, %v6368_v36 }
0x1bd1   :  { %v6374_v37 = vsub.f32 %v6364_v62, %v6372_v47  ;;  %v12340_v47 = vld [vmem:[#allocation43] ss:$0 sm:$0xff] }
0x1bd2   :  { %v6371_v34 = vpop.xlane.xlu0 %6370 }
0x1bd3   :  { %v6373_v28 = vmul.f32 0.03125, %v6371_v34  ;;  %v6376_v6 = vmul.f32 %v6374_v37, %v6374_v37 }
0x1bd5   :  { %v6375_v48 = vsub.f32 %v6365_v15, %v6373_v28  ;;  %v6378_v43 = vsel %vm626_vm0, %v6376_v6, 0.0 }
0x1bd6   :  { %6379 = vadd.xlane.f32.xlu1 %v6378_v43 }
0x1bd7   :  { %v6377_v1 = vmul.f32 %v6375_v48, %v6375_v48 }
0x1bd9   :  { %v6381_v20 = vsel %vm626_vm0, %v6377_v1, 0.0 }
0x1bda   :  { %6382 = vadd.xlane.f32.xlu0 %v6381_v20 }
0x1c01   :  { %v4723_v3 = vpop.xlane.xlu1 %4722 }
0x1c02   :  { %v4727_v12 = vmul.f32 0.03125, %v4723_v3 }
0x1c04   :  { %v4729_v60 = vadd.f32 1e-05, %v4727_v12  ;;  %v4726_v49 = vpop.xlane.xlu0 %4725 }
0x1c05   :  { %v4728_v56 = vmul.f32 0.03125, %v4726_v49 }
0x1c06   :  { %13937 = vrsqrt.f32 %v4729_v60 }
0x1c07   :  { %v4730_v25 = vadd.f32 1e-05, %v4728_v56 }
0x1c09   :  { %13939 = vrsqrt.f32 %v4730_v25 }
0x1c10   :  { %v13938_v14 = vpop.eup %13937 }
0x1c11   :  { %v4733_v22 = vmul.f32 %v13938_v14, %v4717_v59  ;;  %v12359_v14 = vld.sshfl [vmem:[#allocation17] sm:$0x11 pattern:$0x75316420] }
0x1c13   :  { %v13940_v62 = vpop.eup %13939  ;;  %v4739_v11 = vmul.f32 %v4738_v61, %v4733_v22  ;;  %v7231_v22 = vrot.slane %v12359_v14, %v15465_v10 }
0x1c14   :  { %v4734_v2 = vmul.f32 %v13940_v62, %v4718_v55  ;;  %v16228_v55 = vld [vmem:[%s15097_s20] sm:$0x7] }
0x1c15   :  { %v16214_v15 = vadd.f32 %v4744_v19, %v4739_v11  ;;  %v6401_v46 = vrot.slane %v16228_v55, %v15470_v13  ;;  %v16328_v62 = vrot.slane %v7231_v22, %v15470_v13 }
0x1c16   :  { %v4740_v5 = vmul.f32 %v4738_v61, %v4734_v2 }
0x1c17   :  { %13170 = vmatprep.mubr.msk.f32.mxu0 %vm626_vm0, %v16214_v15 }
0x1c18   :  { %v16218_v4 = vadd.f32 %v4744_v19, %v4740_v5  ;;  %v7224_v19 = vcombine.high %v12359_v14, %v12359_v14 }
0x1c1a   :  { %13171 = vmatmul.mubr.msk.f32.vlgmr.msra.gmra.mrb[62].mxu0 %vm626_vm0, %v16218_v4  ;;  %v7238_v11 = vrot.slane %v7224_v19, %v15465_v10 }
0x1c1b   :  { %13185 = vmatprep.mubr.msk.f32.mxu0 %vm14905_vm1, %v14903_v0 }
0x1c63   :  { %v6380_v7 = vpop.xlane.xlu1 %6379 }
0x1c64   :  { %v6384_v26 = vmul.f32 0.03125, %v6380_v7 }
0x1c66   :  { %v6386_v57 = vadd.f32 1e-05, %v6384_v26 }
0x1c67   :  { %v6383_v59 = vpop.xlane.xlu0 %6382 }
0x1c68   :  { %13941 = vrsqrt.f32 %v6386_v57  ;;  %v6385_v53 = vmul.f32 0.03125, %v6383_v59  ;;  %v16333_v57 = vrot.slane %v7238_v11, %v15470_v13 }
0x1c6a   :  { %v6387_v17 = vadd.f32 1e-05, %v6385_v53 }
0x1c6c   :  { %13943 = vrsqrt.f32 %v6387_v17 }
0x1c72   :  { %v13942_v31 = vpop.eup %13941 }
0x1c73   :  { %v6390_v21 = vmul.f32 %v13942_v31, %v6374_v37 }
0x1c75   :  { %v6396_v54 = vmul.f32 %v6395_v30, %v6390_v21 }
0x1c76   :  { %v13944_v52 = vpop.eup %13943 }
0x1c77   :  { %v6391_v29 = vmul.f32 %v13944_v52, %v6375_v48  ;;  %v16234_v33 = vadd.f32 %v6401_v46, %v6396_v54  ;;  %v12337_v48 = vld [vmem:[#allocation40] ss:$0 sm:$0xff] }
0x1c79   :  { %v6397_v40 = vmul.f32 %v6395_v30, %v6391_v29  ;;  %13159 = vmatprep.mubr.msk.f32.mxu1 %vm626_vm0, %v16234_v33 }
0x1c7b   :  { %v16238_v36 = vadd.f32 %v6401_v46, %v6397_v40 }
0x1c7d   :  { %13160 = vmatmul.mubr.msk.f32.vlgmr.msra.gmra.mrb[60].mxu1 %vm626_vm0, %v16238_v36 }
0x1c7e   :  { %13175 = vmatprep.mubr.msk.f32.mxu1 %vm14905_vm1, %v14903_v0 }
0x1ced   :  { %v13172_v37 = vpop.f32.mrb[62].mxu0 }
0x1cee   :  { %v16244_v34 = vadd.f32 %v13172_v37, %v12340_v47  ;;  %v6579_v28 = vpop.f32.mrb[63].mxu0 }
0x1cef   :  { %v16246_v6 = vadd.f32 %v12340_v47, %v6579_v28 }
0x1cf0   :  { %6606 = vrot.lane.b32.xlu0 %v16244_v34, %s14907_s4 }
0x1cf1   :  { %6604 = vrot.lane.b32.xlu1 %v16246_v6, %s14907_s4  ;;  %13174 = vmatpush3.xpose.msk.msra.mxu1 %vm1027_vm2, %v16246_v6 }
0x1cf2   :  { %13178 = vmatprep.subr.mxu1 %v14903_v0 }
0x1cf4   :  { %6608 = vrot.lane.b32.xlu0 %v16246_v6, %s14906_s14 }
0x1cf5   :  { %6610 = vrot.lane.b32.xlu1 %v16244_v34, %s14906_s14 }
0x1cf8   :  { %6612 = vrot.lane.b32.xlu0 %v16246_v6, %s14908_s19 }
0x1d50   :  { %v13161_v43 = vpop.f32.mrb[60].mxu1 }
0x1d51   :  { %v6493_v1 = vadd.f32 %v13161_v43, %v12337_v48  ;;  %v6487_v20 = vpop.f32.mrb[61].mxu1 }
0x1d52   :  { %v6488_v9 = vadd.f32 %v12337_v48, %v6487_v20 }
0x1d53   :  { %6592 = vrot.lane.b32.xlu1 %v6493_v1, %s14907_s4 }
0x1d54   :  { %6594 = vrot.lane.b32.xlu0 %v6488_v9, %s14906_s14  ;;  %13176 = vmatmul.mubr.msk.f32.vlgmr.msra.gmra.mrb[62].mxu1 %vm1027_vm2, %v6488_v9 }
0x1d55   :  { %13179 = vmatpush3.xpose.msk.msra.mxu1 %vm1027_vm2, %v16244_v34  ;;  %13180 = vmatprep.mubr.msk.f32.mxu1 %vm14905_vm1, %v14903_v0 }
0x1d56   :  { %13188 = vmatprep.subr.mxu1 %v14903_v0 }
0x1d57   :  { %6590 = vrot.lane.b32.xlu1 %v6488_v9, %s14907_s4 }
0x1d58   :  { %6598 = vrot.lane.b32.xlu0 %v6488_v9, %s14908_s19  ;;  %13181 = vmatmul.mubr.msk.f32.vlgmr.msra.gmra.mrb[64].mxu1 %vm1027_vm2, %v6493_v1 }
0x1d59   :  { %13190 = vmatprep.mubr.msk.f32.mxu1 %vm14905_vm1, %v14903_v0 }
0x1d5b   :  { %6596 = vrot.lane.b32.xlu1 %v6493_v1, %s14906_s14 }
0x1d5f   :  { %6614 = vrot.lane.b32.xlu1 %v16244_v34, %s14908_s19 }
0x1d62   :  { %v16277_v38 = vpop.permute.xlu0 %6606 }
0x1d63   :  { %v16279_v35 = vpop.permute.xlu1 %6604  ;;  %6600 = vrot.lane.b32.xlu1 %v6493_v1, %s14908_s19  ;;  %13189 = vmatpush3.xpose.msk.msra.mxu1 %vm1027_vm2, %v16277_v38 }
0x1d64   :  { %13184 = vmatpush3.xpose.msk.msra.mxu0 %vm1027_vm2, %v16279_v35  ;;  %13198 = vmatprep.subr.mxu1 %v14903_v0 }
0x1d65   :  { %13193 = vmatprep.subr.mxu0 %v14903_v0 }
0x1d66   :  { %v16288_v32 = vpop.permute.xlu0 %6608 }
0x1d67   :  { %v16290_v44 = vpop.permute.xlu1 %6610 }
0x1d6a   :  { %v16293_v3 = vpop.permute.xlu0 %6612 }
0x1dc5   :  { %v6593_v45 = vpop.permute.xlu1 %6592 }
0x1dc6   :  { %13191 = vmatmul.mubr.msk.f32.vlgmr.msra.gmra.mrb[66].mxu1 %vm1027_vm2, %v6593_v45  ;;  %v6595_v60 = vpop.permute.xlu0 %6594 }
0x1dc7   :  { %13199 = vmatpush3.xpose.msk.msra.mxu1 %vm1027_vm2, %v16290_v44  ;;  %13200 = vmatprep.mubr.msk.f32.mxu1 %vm14905_vm1, %v14903_v0 }
0x1dc8   :  { %13208 = vmatprep.subr.mxu1 %v14903_v0 }
0x1dc9   :  { %v6591_v12 = vpop.permute.xlu1 %6590 }
0x1dca   :  { %13186 = vmatmul.mubr.msk.f32.vlgmr.msra.gmra.mrb[64].mxu0 %vm1027_vm2, %v6591_v12  ;;  %v6599_v56 = vpop.permute.xlu0 %6598 }
0x1dcb   :  { %13194 = vmatpush3.xpose.msk.msra.mxu0 %vm1027_vm2, %v16288_v32  ;;  %13195 = vmatprep.mubr.msk.f32.mxu0 %vm14905_vm1, %v14903_v0 }
0x1dcc   :  { %13203 = vmatprep.subr.mxu0 %v14903_v0 }
0x1dcd   :  { %v6597_v49 = vpop.permute.xlu1 %6596 }
0x1dce   :  { %13196 = vmatmul.mubr.msk.f32.vlgmr.msra.gmra.mrb[66].mxu0 %vm1027_vm2, %v6595_v60  ;;  %13201 = vmatmul.mubr.msk.f32.vlgmr.msra.gmra.mrb[68].mxu1 %vm1027_vm2, %v6597_v49 }
0x1dcf   :  { %13204 = vmatpush3.xpose.msk.msra.mxu0 %vm1027_vm2, %v16293_v3  ;;  %13205 = vmatprep.mubr.msk.f32.mxu0 %vm14905_vm1, %v14903_v0 }
0x1dd0   :  { %13210 = vmatprep.mubr.msk.f32.mxu1 %vm14905_vm1, %v14903_v0  ;;  %13213 = vmatprep.subr.mxu0 %v14903_v0 }
0x1dd1   :  { %v16315_v25 = vpop.permute.xlu1 %6614 }
0x1dd2   :  { %13206 = vmatmul.mubr.msk.f32.vlgmr.msra.gmra.mrb[68].mxu0 %vm1027_vm2, %v6599_v56  ;;  %13209 = vmatpush3.xpose.msk.msra.mxu1 %vm1027_vm2, %v16315_v25 }
0x1dd3   :  { %13218 = vmatprep.subr.mxu1 %v14903_v0  ;;  %13215 = vmatprep.mubr.msk.f32.mxu0 %vm14905_vm1, %v14903_v0 }
0x1dd5   :  { %v6601_v61 = vpop.permute.xlu1 %6600 }
0x1dd6   :  { %13211 = vmatmul.mubr.msk.f32.vlgmr.msra.gmra.mrb[70].mxu1 %vm1027_vm2, %v6601_v61 }
0x1dd7   :  { %13220 = vmatprep.mubr.msk.f32.mxu1 %vm14905_vm1, %v14903_v0 }
0x1e27   :  { %v6686_v2 = vpop.f32.mrb[62].mxu1 }
0x1e28   :  { %v7208_v5 = vmul.f32 0.35355338, %v6686_v2  ;;  %v13177_v7 = vpop.f32.mrb[63].mxu1 }
0x1e2a   :  { %v7249_v26 = vadd.f32 %v16328_v62, %v7208_v5 }
0x1e2b   :  { %v6760_v59 = vpop.f32.mrb[64].mxu1 }
0x1e2c   :  { %v7209_v53 = vmul.f32 0.35355338, %v6760_v59  ;;  %v13182_v17 = vpop.f32.mrb[65].mxu1  ;;  %v7257_v30 = vsel %vm1027_vm2, %v7249_v26, -inf }
0x1e2d   :  { %7258 = vmax.xlane.f32.xlu0 %v7257_v30 }
0x1e2e   :  { %v7250_v31 = vadd.f32 %v16333_v57, %v7209_v53 }
0x1e30   :  { %v7260_v21 = vsel %vm1027_vm2, %v7250_v31, -inf }
0x1e31   :  { %7261 = vmax.xlane.f32.xlu1 %v7260_v21 }
0x1e99   :  { %v6908_v46 = vpop.f32.mrb[66].mxu1 }
0x1e9a   :  { %v13192_v54 = vpop.f32.mrb[67].mxu1  ;;  %v7211_v47 = vmul.f32 0.35355338, %v6908_v46 }
0x1e9c   :  { %v7252_v9 = vadd.f32 %v16333_v57, %v7211_v47 }
0x1e9d   :  { %v6834_v52 = vpop.f32.mrb[64].mxu0 }
0x1e9e   :  { %v7210_v29 = vmul.f32 0.35355338, %v6834_v52  ;;  %v13187_v40 = vpop.f32.mrb[65].mxu0  ;;  %v7266_v19 = vsel %vm1027_vm2, %v7252_v9, -inf }
0x1ea0   :  { %v7251_v37 = vadd.f32 %v16328_v62, %v7210_v29 }
0x1ea1   :  { %v6982_v28 = vpop.f32.mrb[66].mxu0  ;;  %v7056_v48 = vpop.f32.mrb[68].mxu1 }
0x1ea2   :  { %v7212_v43 = vmul.f32 0.35355338, %v6982_v28  ;;  %v13197_v1 = vpop.f32.mrb[67].mxu0  ;;  %v13202_v20 = vpop.f32.mrb[69].mxu1  ;;  %v7213_v45 = vmul.f32 0.35355338, %v7056_v48 }
0x1ea3   :  { %v7263_v12 = vsel %vm1027_vm2, %v7251_v37, -inf }
0x1ea4   :  { %v7253_v60 = vadd.f32 %v16328_v62, %v7212_v43  ;;  %7264 = vmax.xlane.f32.xlu0 %v7263_v12  ;;  %v7254_v22 = vadd.f32 %v16333_v57, %v7213_v45 }
0x1ea5   :  { %v7130_v49 = vpop.f32.mrb[68].mxu0 }
0x1ea6   :  { %v7214_v56 = vmul.f32 0.35355338, %v7130_v49  ;;  %v13207_v61 = vpop.f32.mrb[69].mxu0  ;;  %v7269_v14 = vsel %vm1027_vm2, %v7253_v60, -inf  ;;  %v7272_v53 = vsel %vm1027_vm2, %v7254_v22, -inf }
0x1ea7   :  { %7270 = vmax.xlane.f32.xlu1 %v7269_v14 }
0x1ea8   :  { %v7255_v11 = vadd.f32 %v16328_v62, %v7214_v56  ;;  %7267 = vmax.xlane.f32.xlu0 %v7266_v19 }
0x1ea9   :  { %v7204_v2 = vpop.f32.mrb[70].mxu1 }
0x1eaa   :  { %v7215_v5 = vmul.f32 0.35355338, %v7204_v2  ;;  %v13212_v7 = vpop.f32.mrb[71].mxu1  ;;  %v7275_v59 = vsel %vm1027_vm2, %v7255_v11, -inf }
0x1eab   :  { %7276 = vmax.xlane.f32.xlu1 %v7275_v59 }
0x1eac   :  { %v7256_v17 = vadd.f32 %v16333_v57, %v7215_v5  ;;  %7273 = vmax.xlane.f32.xlu0 %v7272_v53 }
0x1eae   :  { %v7278_v30 = vsel %vm1027_vm2, %v7256_v17, -inf }
0x1eb0   :  { %7279 = vmax.xlane.f32.xlu0 %v7278_v30 }
0x1eba   :  { %v7259_v46 = vpop.xlane.xlu0 %7258 }
0x1ebb   :  { %v7281_v52 = vsub.f32 %v7249_v26, %v7259_v46 }
0x1ebc   :  { %7353 = vrot.lane.b32.xlu1 %v16246_v6, %s14909_s11 }
0x1ebd   :  { %v7289_v29 = vmul.f32 1.442695, %v7281_v52 }
0x1ebe   :  { %v7262_v21 = vpop.xlane.xlu1 %7261 }
0x1ebf   :  { %v7282_v54 = vsub.f32 %v7250_v31, %v7262_v21 }
0x1ec0   :  { %7505 = vrot.lane.b32.xlu1 %v16279_v35, %s14909_s11 }
0x1ec1   :  { %v7291_v6 = vmul.f32 1.442695, %v7282_v54 }
0x1ec3   :  { %13945 = vpow2.f32 %v7291_v6 }
0x1ec4   :  { %7581 = vrot.lane.b32.xlu1 %v16277_v38, %s14909_s11  ;;  %13947 = vpow2.f32 %v7289_v29 }
0x1ec6   :  { %7429 = vrot.lane.b32.xlu0 %v16244_v34, %s14909_s11 }
0x1ec8   :  { %7733 = vrot.lane.b32.xlu1 %v16290_v44, %s14909_s11 }
0x1eca   :  { %7657 = vrot.lane.b32.xlu0 %v16288_v32, %s14909_s11 }
0x1ecd   :  { %v16362_v35 = vpop.eup %13945 }
0x1ece   :  { %v16364_v38 = vpop.eup %13947  ;;  %v7308_v34 = vsel %vm1027_vm2, %v16362_v35, 0.0 }
0x1ecf   :  { %v7305_v44 = vsel %vm1027_vm2, %v16364_v38, 0.0 }
0x1ee9   :  { %7309 = vadd.xlane.f32.xlu0 %v7308_v34 }
0x1eec   :  { %7306 = vadd.xlane.f32.xlu1 %v7305_v44 }
0x1f31   :  { %v7265_v32 = vpop.xlane.xlu0 %7264 }
0x1f32   :  { %v7283_v40 = vsub.f32 %v7251_v37, %v7265_v32 }
0x1f34   :  { %v7293_v31 = vmul.f32 1.442695, %v7283_v40  ;;  %v7271_v26 = vpop.xlane.xlu1 %7270 }
0x1f35   :  { %v7285_v47 = vsub.f32 %v7253_v60, %v7271_v26  ;;  %v7268_v28 = vpop.xlane.xlu0 %7267 }
0x1f36   :  { %13949 = vpow2.f32 %v7293_v31  ;;  %v7284_v48 = vsub.f32 %v7252_v9, %v7268_v28 }
0x1f37   :  { %v7297_v43 = vmul.f32 1.442695, %v7285_v47 }
0x1f38   :  { %v7295_v1 = vmul.f32 1.442695, %v7284_v48  ;;  %v7277_v20 = vpop.xlane.xlu1 %7276 }
0x1f39   :  { %13951 = vpow2.f32 %v7297_v43  ;;  %v7287_v45 = vsub.f32 %v7255_v11, %v7277_v20  ;;  %v7274_v12 = vpop.xlane.xlu0 %7273 }
0x1f3a   :  { %13953 = vpow2.f32 %v7295_v1  ;;  %v7286_v49 = vsub.f32 %v7254_v22, %v7274_v12 }
0x1f3b   :  { %v7301_v56 = vmul.f32 1.442695, %v7287_v45 }
0x1f3c   :  { %v7299_v61 = vmul.f32 1.442695, %v7286_v49  ;;  %v7354_v14 = vpop.permute.xlu1 %7353 }
0x1f3d   :  { %13955 = vpow2.f32 %v7301_v56  ;;  %v7280_v19 = vpop.xlane.xlu0 %7279  ;;  %13214 = vmatpush3.msra.mxu0 %v7354_v14 }
0x1f3e   :  { %13957 = vpow2.f32 %v7299_v61  ;;  %v7288_v37 = vsub.f32 %v7256_v17, %v7280_v19  ;;  %13223 = vmatprep.subr.mxu0 %v14903_v0 }
0x1f40   :  { %v16371_v60 = vpop.eup %13949  ;;  %v7303_v9 = vmul.f32 1.442695, %v7288_v37  ;;  %v7506_v52 = vpop.permute.xlu1 %7505 }
0x1f41   :  { %v7430_v2 = vpop.permute.xlu0 %7429  ;;  %v7311_v11 = vsel %vm1027_vm2, %v16371_v60, 0.0 }
0x1f42   :  { %13959 = vpow2.f32 %v7303_v9  ;;  %7312 = vadd.xlane.f32.xlu1 %v7311_v11  ;;  %13219 = vmatpush3.msra.mxu1 %v7430_v2 }
0x1f43   :  { %v16375_v22 = vpop.eup %13951  ;;  %13228 = vmatprep.subr.mxu1 %v14903_v0 }
0x1f44   :  { %v16378_v5 = vpop.eup %13953  ;;  %v7317_v7 = vsel %vm1027_vm2, %v16375_v22, 0.0  ;;  %v7582_v6 = vpop.permute.xlu1 %7581 }
0x1f45   :  { %v7314_v59 = vsel %vm1027_vm2, %v16378_v5, 0.0  ;;  %v7658_v29 = vpop.permute.xlu0 %7657 }
0x1f46   :  { %7318 = vadd.xlane.f32.xlu1 %v7317_v7  ;;  %7315 = vadd.xlane.f32.xlu0 %v7314_v59 }
0x1f47   :  { %v16384_v53 = vpop.eup %13955 }
0x1f48   :  { %v16386_v17 = vpop.eup %13957  ;;  %v7323_v30 = vsel %vm1027_vm2, %v16384_v53, 0.0  ;;  %v7734_v34 = vpop.permute.xlu1 %7733 }
0x1f49   :  { %v7320_v21 = vsel %vm1027_vm2, %v16386_v17, 0.0 }
0x1f4a   :  { %7324 = vadd.xlane.f32.xlu1 %v7323_v30  ;;  %7321 = vadd.xlane.f32.xlu0 %v7320_v21 }
0x1f4c   :  { %v16392_v46 = vpop.eup %13959 }
0x1f4d   :  { %v7326_v54 = vsel %vm1027_vm2, %v16392_v46, 0.0 }
0x1f4e   :  { %7327 = vadd.xlane.f32.xlu0 %v7326_v54 }
0x1f5b   :  { %7885 = vrot.lane.b32.xlu1 %v16315_v25, %s14909_s11 }
0x1f64   :  { %7809 = vrot.lane.b32.xlu0 %v16293_v3, %s14909_s11 }
0x1f76   :  { %v7310_v44 = vpop.xlane.xlu0 %7309 }
0x1f77   :  { %v7330_v32 = vmax.f32 %v7310_v44, 1e-20 }
0x1f79   :  { %13961 = vrcp.f32 %v7330_v32  ;;  %v7307_v40 = vpop.xlane.xlu1 %7306  ;;  %v7993_v32 = vld [vmem:[%s17102_s16 + $0x10] sm:$0xff] }
0x1f7a   :  { %v7329_v31 = vmax.f32 %v7307_v40, 1e-20  ;;  %v7994_v40 = vld [vmem:[%s17102_s16 + $0x18] sm:$0xff] }
0x1f7c   :  { %13963 = vrcp.f32 %v7329_v31  ;;  %v13656_v31 = vpack.c.bf16 %v7994_v40, %v7993_v32 }
0x1f83   :  { %v13962_v26 = vpop.eup %13961 }
0x1f84   :  { %v7340_v47 = vmul.f32 %v13962_v26, %v16362_v35 }
0x1f86   :  { %v13964_v28 = vpop.eup %13963  ;;  %13221 = vmatmul.mubr.msk.f32.vlgmr.msra.gmra.mrb[72].mxu1 %vm1027_vm2, %v7340_v47 }
0x1f87   :  { %13229 = vmatpush3.msra.mxu1 %v7582_v6  ;;  %v7338_v25 = vmul.f32 %v13964_v28, %v16364_v38  ;;  %13230 = vmatprep.mubr.msk.f32.mxu1 %vm14905_vm1, %v14903_v0 }
0x1f88   :  { %13238 = vmatprep.subr.mxu1 %v14903_v0 }
0x1f89   :  { %13216 = vmatmul.mubr.msk.f32.vlgmr.msra.gmra.mrb[70].mxu0 %vm1027_vm2, %v7338_v25 }
0x1f8a   :  { %13224 = vmatpush3.msra.mxu0 %v7506_v52  ;;  %13225 = vmatprep.mubr.msk.f32.mxu0 %vm14905_vm1, %v14903_v0 }
0x1f8b   :  { %13233 = vmatprep.subr.mxu0 %v14903_v0 }
0x1fcf   :  { %v7313_v3 = vpop.xlane.xlu1 %7312 }
0x1fd0   :  { %v7331_v35 = vmax.f32 %v7313_v3, 1e-20 }
0x1fd2   :  { %13965 = vrcp.f32 %v7331_v35 }
0x1fd3   :  { %v7319_v48 = vpop.xlane.xlu1 %7318  ;;  %v7316_v43 = vpop.xlane.xlu0 %7315 }
0x1fd4   :  { %v7333_v1 = vmax.f32 %v7319_v48, 1e-20  ;;  %v7332_v38 = vmax.f32 %v7316_v43, 1e-20 }
0x1fd6   :  { %13967 = vrcp.f32 %v7333_v1 }
0x1fd7   :  { %13969 = vrcp.f32 %v7332_v38  ;;  %v7325_v20 = vpop.xlane.xlu1 %7324  ;;  %v7322_v45 = vpop.xlane.xlu0 %7321 }
0x1fd8   :  { %v7335_v12 = vmax.f32 %v7325_v20, 1e-20  ;;  %v7334_v49 = vmax.f32 %v7322_v45, 1e-20 }
0x1fda   :  { %13971 = vrcp.f32 %v7335_v12 }
0x1fdb   :  { %13973 = vrcp.f32 %v7334_v49  ;;  %v7328_v56 = vpop.xlane.xlu0 %7327  ;;  %v7886_v21 = vpop.permute.xlu1 %7885 }
0x1fdc   :  { %v13966_v61 = vpop.eup %13965  ;;  %v7336_v14 = vmax.f32 %v7328_v56, 1e-20 }
0x1fdd   :  { %v7342_v19 = vmul.f32 %v13966_v61, %v16371_v60 }
0x1fde   :  { %13975 = vrcp.f32 %v7336_v14 }
0x1fdf   :  { %13226 = vmatmul.mubr.msk.f32.vlgmr.msra.gmra.mrb[72].mxu0 %vm1027_vm2, %v7342_v19  ;;  %v7810_v7 = vpop.permute.xlu0 %7809 }
0x1fe0   :  { %v13968_v37 = vpop.eup %13967  ;;  %13234 = vmatpush3.msra.mxu0 %v7658_v29  ;;  %13235 = vmatprep.mubr.msk.f32.mxu0 %vm14905_vm1, %v14903_v0  ;;  %v7991_v29 = vld [vmem:[%s17102_s16] sm:$0xff] }
0x1fe1   :  { %v13970_v9 = vpop.eup %13969  ;;  %13243 = vmatprep.subr.mxu0 %v14903_v0  ;;  %v7346_v2 = vmul.f32 %v13968_v37, %v16375_v22 }
0x1fe2   :  { %v7344_v11 = vmul.f32 %v13970_v9, %v16378_v5 }
0x1fe3   :  { %13236 = vmatmul.mubr.msk.f32.vlgmr.msra.gmra.mrb[74].mxu0 %vm1027_vm2, %v7346_v2 }
0x1fe4   :  { %v13972_v59 = vpop.eup %13971  ;;  %13231 = vmatmul.mubr.msk.f32.vlgmr.msra.gmra.mrb[74].mxu1 %vm1027_vm2, %v7344_v11  ;;  %13244 = vmatpush3.msra.mxu0 %v7810_v7 }
0x1fe5   :  { %v13974_v60 = vpop.eup %13973  ;;  %13239 = vmatpush3.msra.mxu1 %v7734_v34  ;;  %13240 = vmatprep.mubr.msk.f32.mxu1 %vm14905_vm1, %v14903_v0  ;;  %v7350_v30 = vmul.f32 %v13972_v59, %v16384_v53  ;;  %v7992_v34 = vld [vmem:[%s17102_s16 + $0x8] sm:$0xff]  ;;  %v12368_v59 = vld [vmem:[#allocation44] ss:$0 sm:$0xff] }
0x1fe6   :  { %13245 = vmatprep.mubr.msk.f32.mxu0 %vm14905_vm1, %v14903_v0  ;;  %13248 = vmatprep.subr.mxu1 %v14903_v0  ;;  %v7348_v22 = vmul.f32 %v13974_v60, %v16386_v17  ;;  %v13652_v44 = vpack.c.bf16 %v7992_v34, %v7991_v29  ;;  %v615_v29 = vsub.s32 3, %v15462_v8 }
0x1fe7   :  { %13246 = vmatmul.mubr.msk.f32.vlgmr.msra.gmra.mrb[76].mxu0 %vm1027_vm2, %v7350_v30 }
0x1fe8   :  { %v13976_v5 = vpop.eup %13975  ;;  %13241 = vmatmul.mubr.msk.f32.vlgmr.msra.gmra.mrb[76].mxu1 %vm1027_vm2, %v7348_v22  ;;  %13653 = vmatprep.subr.bf16.mxu0 %v13652_v44 }
0x1fe9   :  { %13249 = vmatpush3.msra.mxu1 %v7886_v21  ;;  %13250 = vmatprep.mubr.msk.f32.mxu1 %vm14905_vm1, %v14903_v0  ;;  %v7352_v53 = vmul.f32 %v13976_v5, %v16392_v46 }
0x1fea   :  { %13655 = vmatpush3.bf16.msra.mxu0 %v13652_v44 }
0x1feb   :  { %13657 = vmatprep.subr.bf16.mxu0 %v13656_v31 }
0x1fec   :  { %13251 = vmatmul.mubr.msk.f32.vlgmr.msra.gmra.mrb[78].mxu1 %vm1027_vm2, %v7352_v53 }
0x1fee   :  { %13659 = vmatpush3.bf16.msra.mxu0 %v13656_v31  ;;  %v616_v31 = vrot.slane %v16154_v41, %v615_v29 }
0x2059   :  { %v7501_v54 = vpop.f32.mrb[72].mxu1 }
0x205a   :  { %v13222_v52 = vpop.f32.mrb[73].mxu1 }
0x205c   :  { %v7425_v6 = vpop.f32.mrb[70].mxu0 }
0x205d   :  { %v13217_v17 = vpop.f32.mrb[71].mxu0 }
0x20b2   :  { %v7577_v26 = vpop.f32.mrb[72].mxu0 }
0x20b3   :  { %v13227_v47 = vpop.f32.mrb[73].mxu0  ;;  %7963 = vrot.lane.b32.xlu0 %v7577_v26, %s14866_s28 }
0x20b6   :  { %v7729_v46 = vpop.f32.mrb[74].mxu0 }
0x20b7   :  { %v7653_v28 = vpop.f32.mrb[74].mxu1  ;;  %7971 = vrot.lane.b32.xlu0 %v7729_v46, %s14884_s7  ;;  %v13237_v25 = vpop.f32.mrb[75].mxu0 }
0x20b8   :  { %7965 = vrot.lane.b32.xlu1 %v7653_v28, %s14866_s28  ;;  %v13232_v3 = vpop.f32.mrb[75].mxu1 }
0x20ba   :  { %v7881_v35 = vpop.f32.mrb[76].mxu0 }
0x20bb   :  { %v7805_v48 = vpop.f32.mrb[76].mxu1  ;;  %7979 = vrot.lane.b32.xlu0 %v7881_v35, %s14912_s0  ;;  %v13247_v43 = vpop.f32.mrb[77].mxu0 }
0x20bc   :  { %7973 = vrot.lane.b32.xlu1 %v7805_v48, %s14884_s7  ;;  %v13242_v1 = vpop.f32.mrb[77].mxu1 }
0x20bf   :  { %v7957_v38 = vpop.f32.mrb[78].mxu1 }
0x20c0   :  { %7981 = vrot.lane.b32.xlu1 %v7957_v38, %s14912_s0  ;;  %v13252_v20 = vpop.f32.mrb[79].mxu1 }
0x2125   :  { %v7964_v45 = vpop.permute.xlu0 %7963 }
0x2126   :  { %v7985_v56 = vsel %vm1027_vm2, %v7425_v6, %v7964_v45 }
0x2129   :  { %v7972_v12 = vpop.permute.xlu0 %7971 }
0x212a   :  { %v7966_v49 = vpop.permute.xlu1 %7965  ;;  %v7987_v61 = vsel %vm2380_vm3, %v7985_v56, %v7972_v12  ;;  %v8149_v12 = vld [vmem:[#allocation46] sm:$0xff] }
0x212b   :  { %v7986_v9 = vsel %vm1027_vm2, %v7501_v54, %v7966_v49  ;;  %v8150_v49 = vld [vmem:[#allocation46 + $0x8] sm:$0xff] }
0x212c   :  { %v13660_v56 = vpack.c.bf16 %v8150_v49, %v8149_v12 }
0x212d   :  { %v7980_v14 = vpop.permute.xlu0 %7979 }
0x212e   :  { %v7974_v19 = vpop.permute.xlu1 %7973  ;;  %v7989_v37 = vsel %vm2383_vm4, %v7987_v61, %v7980_v14  ;;  %13661 = vmatprep.subr.bf16.mxu1 %v13660_v56  ;;  %v8151_v61 = vld [vmem:[#allocation46 + $0x10] sm:$0xff]  ;;  %v8152_v14 = vld [vmem:[#allocation46 + $0x18] sm:$0xff] }
0x212f   :  { %13261 = vmatprep.mubr.msk.f32.mxu0 %vm626_vm0, %v7989_v37  ;;  %v7988_v2 = vsel %vm2380_vm3, %v7986_v9, %v7974_v19  ;;  %13663 = vmatpush3.bf16.msra.mxu1 %v13660_v56  ;;  %v13664_v19 = vpack.c.bf16 %v8152_v14, %v8151_v61  ;;  %v8243_v37 = vld [vmem:[#allocation49] sm:$0xff]  ;;  %v8244_v9 = vld [vmem:[#allocation49 + $0x8] sm:$0xff] }
0x2131   :  { %13665 = vmatprep.subr.bf16.mxu1 %v13664_v19 }
0x2132   :  { %v7982_v11 = vpop.permute.xlu1 %7981 }
0x2133   :  { %v7990_v7 = vsel %vm2383_vm4, %v7988_v2, %v7982_v11  ;;  %13667 = vmatpush3.bf16.msra.mxu1 %v13664_v19  ;;  %v13668_v2 = vpack.c.bf16 %v8244_v9, %v8243_v37 }
0x2134   :  { %13262 = vmatmul.mubr.msk.f32.vlgmr.msra.gmra.mrb[78].mxu0 %vm626_vm0, %v7990_v7 }
0x2135   :  { %13669 = vmatprep.subr.bf16.mxu0 %v13668_v2 }
0x2136   :  { %13671 = vmatpush3.bf16.msra.mxu0 %v13668_v2 }
0x2207   :  { %v13263_v60 = vpop.f32.mrb[78].mxu0 }
0x2208   :  { %v8080_v30 = vadd.f32 %v13263_v60, %v12368_v59  ;;  %v8074_v22 = vpop.f32.mrb[79].mxu0 }
0x2209   :  { %v8075_v5 = vadd.f32 %v12368_v59, %v8074_v22 }
0x220a   :  { %8087 = vrot.lane.b32.xlu1 %v8080_v30, %s14911_s6 }
0x220b   :  { %8085 = vrot.lane.b32.xlu0 %v8075_v5, %s14911_s6  ;;  %v8140_v5 = vrot.slane %v16225_v16, %v15657_v39 }
0x227c   :  { %v8088_v21 = vpop.permute.xlu1 %8087 }
0x227d   :  { %v8092_v53 = vmul.f32 %v8088_v21, %v16193_v51  ;;  %v8086_v54 = vpop.permute.xlu0 %8085 }
0x227e   :  { %v8091_v52 = vmul.f32 %v8086_v54, %v16196_v27  ;;  %v8146_v54 = vrot.slane %v16228_v55, %v15657_v39 }
0x227f   :  { %8097 = vrot.lane.b32.xlu1 %v8092_v53, %s14911_s6 }
0x2280   :  { %8095 = vrot.lane.b32.xlu0 %v8091_v52, %s14911_s6 }
0x2283   :  { %8105 = vrot.lane.b32.xlu1 %v16184_v23, %s14876_s25 }
0x2284   :  { %8103 = vrot.lane.b32.xlu0 %v16177_v63, %s14876_s25  ;;  %v770_v63 = vadd.f32 %v15354_v42, %v616_v31 }
0x2286   :  { %v8342_v47 = vrot.slane %v770_v63, %v15465_v10 }
0x2288   :  { %v8343_v38 = vcombine.high %v8342_v47, %v8342_v47 }
0x228a   :  { %v8357_v20 = vrot.slane %v8343_v38, %v15465_v10 }
0x228c   :  { %v16481_v45 = vrot.slane %v8357_v20, %v15470_v13 }
0x22f1   :  { %v8098_v6 = vpop.permute.xlu1 %8097 }
0x22f2   :  { %v8096_v17 = vpop.permute.xlu0 %8095  ;;  %v8102_v34 = vadd.f32 %v8098_v6, %v16238_v36  ;;  %v16469_v36 = vrot.slane %v8342_v47, %v15465_v10 }
0x22f3   :  { %v8101_v51 = vadd.f32 %v8096_v17, %v16234_v33 }
0x22f4   :  { %v16473_v33 = vrot.slane %v16469_v36, %v15470_v13 }
0x22f5   :  { %v8106_v44 = vpop.permute.xlu1 %8105 }
0x22f6   :  { %v8110_v27 = vadd.f32 %v8106_v44, %v8102_v34  ;;  %v8104_v32 = vpop.permute.xlu0 %8103  ;;  %v8245_v44 = vld [vmem:[#allocation49 + $0x10] sm:$0xff] }
0x22f7   :  { %v8109_v40 = vadd.f32 %v8104_v32, %v8101_v51 }
0x22f8   :  { %v8114_v26 = vsel %vm626_vm0, %v8110_v27, 0.0 }
0x22f9   :  { %8115 = vadd.xlane.f32.xlu1 %v8114_v26  ;;  %v8111_v23 = vsel %vm626_vm0, %v8109_v40, 0.0 }
0x22fa   :  { %8112 = vadd.xlane.f32.xlu0 %v8111_v23 }
0x230a   :  { %8386 = vrot.lane.b32.xlu1 %v16473_v33, %s14909_s11 }
0x2386   :  { %v8116_v41 = vpop.xlane.xlu1 %8115 }
0x2387   :  { %v8118_v46 = vmul.f32 0.03125, %v8116_v41  ;;  %v8113_v28 = vpop.xlane.xlu0 %8112 }
0x2388   :  { %v8117_v25 = vmul.f32 0.03125, %v8113_v28  ;;  %v12374_v28 = vld [vmem:[#allocation50] ss:$0 sm:$0xff] }
0x2389   :  { %v8120_v3 = vsub.f32 %v8110_v27, %v8118_v46  ;;  %v8246_v27 = vld [vmem:[#allocation49 + $0x18] sm:$0xff]  ;;  %v8361_v46 = vadd.f32 1.0, %v8357_v20 }
0x238a   :  { %v8119_v35 = vsub.f32 %v8109_v40, %v8117_v25  ;;  %v13672_v32 = vpack.c.bf16 %v8246_v27, %v8245_v44  ;;  %v12371_v40 = vld [vmem:[#allocation47] ss:$0 sm:$0xff]  ;;  %v8360_v25 = vadd.f32 1.0, %v16469_v36  ;;  %v8387_v61 = vpop.permute.xlu1 %8386 }
0x238b   :  { %v8122_v43 = vmul.f32 %v8120_v3, %v8120_v3 }
0x238c   :  { %v8121_v48 = vmul.f32 %v8119_v35, %v8119_v35  ;;  %13673 = vmatprep.subr.bf16.mxu0 %v13672_v32 }
0x238d   :  { %v8126_v1 = vsel %vm626_vm0, %v8122_v43, 0.0  ;;  %13675 = vmatpush3.bf16.msra.mxu0 %v13672_v32 }
0x238e   :  { %v8123_v42 = vsel %vm626_vm0, %v8121_v48, 0.0  ;;  %13297 = vmatprep.subr.mxu0 %v14903_v0  ;;  %v16498_v48 = vrot.slane %v8361_v46, %v15470_v13 }
0x238f   :  { %8124 = vadd.xlane.f32.xlu0 %v8123_v42 }
0x2393   :  { %8127 = vadd.xlane.f32.xlu0 %v8126_v1  ;;  %v16501_v1 = vrot.slane %v8360_v25, %v15470_v13 }
0x23a9   :  { %8388 = vrot.lane.b32.xlu0 %v16481_v45, %s14909_s11 }
0x241c   :  { %v8125_v11 = vpop.xlane.xlu0 %8124 }
0x241d   :  { %v8129_v7 = vmul.f32 0.03125, %v8125_v11 }
0x241f   :  { %v8131_v59 = vadd.f32 1e-05, %v8129_v7 }
0x2420   :  { %v8128_v60 = vpop.xlane.xlu0 %8127 }
0x2421   :  { %13977 = vrsqrt.f32 %v8131_v59  ;;  %v8130_v30 = vmul.f32 0.03125, %v8128_v60 }
0x2423   :  { %v8132_v22 = vadd.f32 1e-05, %v8130_v30 }
0x2424   :  { %v8389_v56 = vpop.permute.xlu0 %8388 }
0x2425   :  { %13979 = vrsqrt.f32 %v8132_v22 }
0x242b   :  { %v13978_v21 = vpop.eup %13977 }
0x242c   :  { %v8135_v53 = vmul.f32 %v13978_v21, %v8119_v35 }
0x242e   :  { %v8141_v52 = vmul.f32 %v8140_v5, %v8135_v53  ;;  %v8433_v53 = vld [vmem:[#allocation32 + $0x20] sm:$0xff] }
0x242f   :  { %v13980_v6 = vpop.eup %13979 }
0x2430   :  { %v8136_v17 = vmul.f32 %v13980_v6, %v8120_v3  ;;  %v8147_v29 = vadd.f32 %v8146_v54, %v8141_v52  ;;  %v8435_v6 = vld [vmem:[#allocation32 + $0x30] sm:$0xff] }
0x2432   :  { %v8142_v34 = vmul.f32 %v8140_v5, %v8136_v17  ;;  %13272 = vmatprep.mubr.msk.f32.mxu1 %vm626_vm0, %v8147_v29  ;;  %v8436_v17 = vld [vmem:[#allocation32 + $0x38] sm:$0xff] }
0x2434   :  { %v8148_v51 = vadd.f32 %v8146_v54, %v8142_v34  ;;  %v8434_v54 = vld [vmem:[#allocation32 + $0x28] sm:$0xff] }
0x2435   :  { %v13676_v52 = vpack.c.bf16 %v8434_v54, %v8433_v53 }
0x2436   :  { %13273 = vmatmul.mubr.msk.f32.vlgmr.msra.gmra.mrb[80].mxu1 %vm626_vm0, %v8148_v51 }
0x2437   :  { %13677 = vmatprep.subr.bf16.mxu1 %v13676_v52 }
0x2438   :  { %13679 = vmatpush3.bf16.msra.mxu1 %v13676_v52 }
0x2509   :  { %v13274_v31 = vpop.f32.mrb[80].mxu1 }
0x250a   :  { %v8238_v26 = vadd.f32 %v13274_v31, %v12371_v40  ;;  %v8232_v23 = vpop.f32.mrb[81].mxu1  ;;  %v8423_v31 = vrot.slane %v16225_v16, %v16152_v50  ;;  %v12377_v16 = vld [vmem:[#allocation34 + $0x1] ss:$0 sm:$0xff] }
0x250b   :  { %v8233_v63 = vadd.f32 %v12371_v40, %v8232_v23 }
0x250c   :  { %v8242_v41 = vmax.f32 %v8238_v26, 0.0 }
0x250d   :  { %v8241_v47 = vmax.f32 %v8233_v63, 0.0 }
0x250f   :  { %13283 = vmatprep.mubr.msk.f32.mxu0 %vm626_vm0, %v8241_v47 }
0x2510   :  { %13284 = vmatmul.mubr.msk.f32.vlgmr.msra.gmra.mrb[80].mxu0 %vm626_vm0, %v8242_v41  ;;  %v8429_v41 = vrot.slane %v16228_v55, %v16152_v50 }
0x2511   :  { %13299 = vmatprep.mubr.msk.f32.mxu0 %vm14905_vm1, %v14903_v0 }
0x25e3   :  { %v13285_v3 = vpop.f32.mrb[80].mxu0 }
0x25e4   :  { %v8332_v35 = vadd.f32 %v13285_v3, %v12374_v28  ;;  %v8326_v42 = vpop.f32.mrb[81].mxu0 }
0x25e5   :  { %v8327_v43 = vadd.f32 %v12374_v28, %v8326_v42 }
0x25e6   :  { %v8375_v38 = vmul.f32 %v16498_v48, %v8332_v35 }
0x25e7   :  { %v8374_v12 = vmul.f32 %v16501_v1, %v8327_v43 }
0x25e8   :  { %v8377_v49 = vadd.f32 %v8375_v38, %v8148_v51 }
0x25e9   :  { %v8376_v20 = vadd.f32 %v8374_v12, %v8147_v29  ;;  %v13680_v29 = vpack.c.bf16 %v8436_v17, %v8435_v6 }
0x25ea   :  { %v8393_v14 = vadd.f32 %v8389_v56, %v8377_v49 }
0x25eb   :  { %v8392_v36 = vadd.f32 %v8387_v61, %v8376_v20  ;;  %13681 = vmatprep.subr.bf16.mxu1 %v13680_v29 }
0x25ec   :  { %v8397_v19 = vsel %vm626_vm0, %v8393_v14, 0.0  ;;  %13683 = vmatpush3.bf16.msra.mxu1 %v13680_v29 }
0x25ed   :  { %8398 = vadd.xlane.f32.xlu0 %v8397_v19  ;;  %v8394_v37 = vsel %vm626_vm0, %v8392_v36, 0.0  ;;  %13302 = vmatprep.subr.mxu1 %v14903_v0 }
0x25ee   :  { %8395 = vadd.xlane.f32.xlu1 %v8394_v37 }
0x267a   :  { %v8399_v9 = vpop.xlane.xlu0 %8398 }
0x267b   :  { %v8401_v2 = vmul.f32 0.03125, %v8399_v9  ;;  %v8396_v11 = vpop.xlane.xlu1 %8395 }
0x267c   :  { %v8400_v7 = vmul.f32 0.03125, %v8396_v11 }
0x267d   :  { %v8403_v59 = vsub.f32 %v8393_v14, %v8401_v2 }
0x267e   :  { %v8402_v60 = vsub.f32 %v8392_v36, %v8400_v7 }
0x267f   :  { %v8405_v30 = vmul.f32 %v8403_v59, %v8403_v59 }
0x2680   :  { %v8404_v22 = vmul.f32 %v8402_v60, %v8402_v60 }
0x2681   :  { %v8409_v5 = vsel %vm626_vm0, %v8405_v30, 0.0 }
0x2682   :  { %8410 = vadd.xlane.f32.xlu0 %v8409_v5  ;;  %v8406_v21 = vsel %vm626_vm0, %v8404_v22, 0.0 }
0x2683   :  { %8407 = vadd.xlane.f32.xlu1 %v8406_v21 }
0x270f   :  { %v8411_v34 = vpop.xlane.xlu0 %8410 }
0x2710   :  { %v8413_v51 = vmul.f32 0.03125, %v8411_v34  ;;  %v8408_v44 = vpop.xlane.xlu1 %8407 }
0x2711   :  { %v8412_v27 = vmul.f32 0.03125, %v8408_v44 }
0x2712   :  { %v8415_v32 = vadd.f32 1e-05, %v8413_v51 }
0x2713   :  { %v8414_v40 = vadd.f32 1e-05, %v8412_v27 }
0x2714   :  { %13981 = vrsqrt.f32 %v8415_v32 }
0x2715   :  { %13983 = vrsqrt.f32 %v8414_v40 }
0x271e   :  { %v13982_v26 = vpop.eup %13981 }
0x271f   :  { %v13984_v23 = vpop.eup %13983  ;;  %v8419_v63 = vmul.f32 %v13982_v26, %v8403_v59 }
0x2720   :  { %v8418_v47 = vmul.f32 %v13984_v23, %v8402_v60 }
0x2721   :  { %v8425_v46 = vmul.f32 %v8423_v31, %v8419_v63 }
0x2722   :  { %v8424_v28 = vmul.f32 %v8423_v31, %v8418_v47 }
0x2723   :  { %v16516_v3 = vadd.f32 %v8429_v41, %v8425_v46 }
0x2724   :  { %v16514_v25 = vadd.f32 %v8429_v41, %v8424_v28 }
0x2726   :  { %13294 = vmatprep.mubr.msk.f32.mxu1 %vm626_vm0, %v16514_v25 }
0x2727   :  { %13295 = vmatmul.mubr.msk.f32.vlgmr.msra.gmra.mrb[82].mxu1 %vm626_vm0, %v16516_v3 }
0x2728   :  { %13304 = vmatprep.mubr.msk.f32.mxu1 %vm14905_vm1, %v14903_v0 }
0x27fa   :  { %v13296_v35 = vpop.f32.mrb[82].mxu1 }
0x27fb   :  { %v16524_v42 = vadd.f32 %v13296_v35, %v12377_v16  ;;  %v8517_v55 = vpop.f32.mrb[83].mxu1 }
0x27fc   :  { %v16526_v43 = vadd.f32 %v12377_v16, %v8517_v55 }
0x27fd   :  { %8530 = vrot.lane.b32.xlu0 %v16524_v42, %s14907_s4 }
0x27fe   :  { %8528 = vrot.lane.b32.xlu1 %v16526_v43, %s14907_s4 }
0x2801   :  { %8536 = vrot.lane.b32.xlu0 %v16526_v43, %s14908_s19 }
0x2802   :  { %8532 = vrot.lane.b32.xlu1 %v16526_v43, %s14906_s14 }
0x2805   :  { %8540 = vrot.lane.b32.xlu0 %v16526_v43, %s14909_s11 }
0x2806   :  { %8534 = vrot.lane.b32.xlu1 %v16524_v42, %s14906_s14 }
0x280a   :  { %8538 = vrot.lane.b32.xlu1 %v16524_v42, %s14908_s19 }
0x280e   :  { %8616 = vrot.lane.b32.xlu1 %v16524_v42, %s14909_s11 }
0x286f   :  { %v16544_v38 = vpop.permute.xlu0 %8530 }
0x2870   :  { %8768 = vrot.lane.b32.xlu1 %v16544_v38, %s14909_s11  ;;  %v16548_v12 = vpop.permute.xlu1 %8528 }
0x2871   :  { %8692 = vrot.lane.b32.xlu0 %v16548_v12, %s14909_s11 }
0x2873   :  { %v16552_v49 = vpop.permute.xlu0 %8536 }
0x2874   :  { %v16554_v56 = vpop.permute.xlu1 %8532 }
0x2875   :  { %8844 = vrot.lane.b32.xlu0 %v16554_v56, %s14909_s11 }
0x2877   :  { %v8541_v20 = vpop.permute.xlu0 %8540 }
0x2878   :  { %13298 = vmatpush3.xpose.msk.msra.mxu0 %vm1027_vm2, %v8541_v20  ;;  %v16559_v61 = vpop.permute.xlu1 %8534 }
0x2879   :  { %8996 = vrot.lane.b32.xlu0 %v16552_v49, %s14909_s11  ;;  %8920 = vrot.lane.b32.xlu1 %v16559_v61, %s14909_s11 }
0x287a   :  { %13307 = vmatprep.subr.mxu0 %v14903_v0 }
0x287b   :  { %13300 = vmatmul.mubr.msk.f32.vlgmr.msra.gmra.mrb[82].mxu0 %vm1027_vm2, %v16526_v43 }
0x287c   :  { %v16568_v14 = vpop.permute.xlu1 %8538  ;;  %13309 = vmatprep.mubr.msk.f32.mxu0 %vm14905_vm1, %v14903_v0 }
0x287d   :  { %9072 = vrot.lane.b32.xlu1 %v16568_v14, %s14909_s11 }
0x2880   :  { %v8617_v36 = vpop.permute.xlu1 %8616 }
0x2881   :  { %13303 = vmatpush3.xpose.msk.msra.mxu1 %vm1027_vm2, %v8617_v36 }
0x2882   :  { %13312 = vmatprep.subr.mxu1 %v14903_v0 }
0x2884   :  { %13305 = vmatmul.mubr.msk.f32.vlgmr.msra.gmra.mrb[84].mxu1 %vm1027_vm2, %v16524_v42 }
0x2885   :  { %13314 = vmatprep.mubr.msk.f32.mxu1 %vm14905_vm1, %v14903_v0 }
0x28e2   :  { %v8769_v19 = vpop.permute.xlu1 %8768 }
0x28e3   :  { %v8693_v37 = vpop.permute.xlu0 %8692  ;;  %13313 = vmatpush3.xpose.msk.msra.mxu1 %vm1027_vm2, %v8769_v19 }
0x28e4   :  { %13308 = vmatpush3.xpose.msk.msra.mxu0 %vm1027_vm2, %v8693_v37  ;;  %13322 = vmatprep.subr.mxu1 %v14903_v0 }
0x28e5   :  { %13317 = vmatprep.subr.mxu0 %v14903_v0 }
0x28e6   :  { %13315 = vmatmul.mubr.msk.f32.vlgmr.msra.gmra.mrb[86].mxu1 %vm1027_vm2, %v16544_v38 }
0x28e7   :  { %13310 = vmatmul.mubr.msk.f32.vlgmr.msra.gmra.mrb[84].mxu0 %vm1027_vm2, %v16548_v12  ;;  %v8845_v9 = vpop.permute.xlu0 %8844  ;;  %13324 = vmatprep.mubr.msk.f32.mxu1 %vm14905_vm1, %v14903_v0 }
0x28e8   :  { %13318 = vmatpush3.xpose.msk.msra.mxu0 %vm1027_vm2, %v8845_v9  ;;  %13319 = vmatprep.mubr.msk.f32.mxu0 %vm14905_vm1, %v14903_v0 }
0x28e9   :  { %13327 = vmatprep.subr.mxu0 %v14903_v0 }
0x28eb   :  { %13320 = vmatmul.mubr.msk.f32.vlgmr.msra.gmra.mrb[86].mxu0 %vm1027_vm2, %v16554_v56  ;;  %v8997_v2 = vpop.permute.xlu0 %8996  ;;  %v8921_v11 = vpop.permute.xlu1 %8920 }
0x28ec   :  { %13323 = vmatpush3.xpose.msk.msra.mxu1 %vm1027_vm2, %v8921_v11  ;;  %13328 = vmatpush3.xpose.msk.msra.mxu0 %vm1027_vm2, %v8997_v2 }
0x28ed   :  { %13329 = vmatprep.mubr.msk.f32.mxu0 %vm14905_vm1, %v14903_v0  ;;  %13332 = vmatprep.subr.mxu1 %v14903_v0 }
0x28ee   :  { %13337 = vmatprep.subr.mxu0 %v14903_v0 }
0x28ef   :  { %13325 = vmatmul.mubr.msk.f32.vlgmr.msra.gmra.mrb[88].mxu1 %vm1027_vm2, %v16559_v61  ;;  %13330 = vmatmul.mubr.msk.f32.vlgmr.msra.gmra.mrb[88].mxu0 %vm1027_vm2, %v16552_v49  ;;  %v9073_v7 = vpop.permute.xlu1 %9072 }
0x28f0   :  { %13333 = vmatpush3.xpose.msk.msra.mxu1 %vm1027_vm2, %v9073_v7  ;;  %13334 = vmatprep.mubr.msk.f32.mxu1 %vm14905_vm1, %v14903_v0 }
0x28f1   :  { %13342 = vmatprep.subr.mxu1 %v14903_v0  ;;  %13339 = vmatprep.mubr.msk.f32.mxu0 %vm14905_vm1, %v14903_v0 }
0x28f3   :  { %13335 = vmatmul.mubr.msk.f32.vlgmr.msra.gmra.mrb[90].mxu1 %vm1027_vm2, %v16568_v14 }
0x28f4   :  { %13344 = vmatprep.mubr.msk.f32.mxu1 %vm14905_vm1, %v14903_v0 }
0x294e   :  { %v8612_v59 = vpop.f32.mrb[82].mxu0 }
0x294f   :  { %v9148_v60 = vmul.f32 0.35355338, %v8612_v59  ;;  %v13301_v30 = vpop.f32.mrb[83].mxu0 }
0x2951   :  { %v9156_v22 = vadd.f32 %v9148_v60, %v16037_v18 }
0x2953   :  { %v9164_v5 = vsel %vm1027_vm2, %v9156_v22, -inf }
0x2954   :  { %9165 = vmax.xlane.f32.xlu0 %v9164_v5 }
0x2957   :  { %v8688_v21 = vpop.f32.mrb[84].mxu1 }
0x2958   :  { %v9149_v53 = vmul.f32 0.35355338, %v8688_v21  ;;  %v13306_v54 = vpop.f32.mrb[85].mxu1 }
0x295a   :  { %v9157_v52 = vadd.f32 %v9149_v53, %v16043_v24 }
0x295c   :  { %v9167_v6 = vsel %vm1027_vm2, %v9157_v52, -inf }
0x295d   :  { %9168 = vmax.xlane.f32.xlu1 %v9167_v6 }
0x29b9   :  { %v8840_v17 = vpop.f32.mrb[86].mxu1 }
0x29ba   :  { %v9151_v29 = vmul.f32 0.35355338, %v8840_v17  ;;  %v8764_v34 = vpop.f32.mrb[84].mxu0  ;;  %v13316_v51 = vpop.f32.mrb[87].mxu1 }
0x29bb   :  { %v9150_v44 = vmul.f32 0.35355338, %v8764_v34  ;;  %v13311_v27 = vpop.f32.mrb[85].mxu0 }
0x29bc   :  { %v9159_v40 = vadd.f32 %v9151_v29, %v16043_v24 }
0x29bd   :  { %v9158_v32 = vadd.f32 %v9150_v44, %v16037_v18 }
0x29be   :  { %v8916_v31 = vpop.f32.mrb[86].mxu0  ;;  %v9173_v28 = vsel %vm1027_vm2, %v9159_v40, -inf }
0x29bf   :  { %v9152_v26 = vmul.f32 0.35355338, %v8916_v31  ;;  %v13321_v23 = vpop.f32.mrb[87].mxu0  ;;  %v9170_v63 = vsel %vm1027_vm2, %v9158_v32, -inf }
0x29c0   :  { %9171 = vmax.xlane.f32.xlu0 %v9170_v63 }
0x29c1   :  { %v9160_v47 = vadd.f32 %v9152_v26, %v16037_v18 }
0x29c2   :  { %v8992_v41 = vpop.f32.mrb[88].mxu1  ;;  %v9068_v46 = vpop.f32.mrb[88].mxu0 }
0x29c3   :  { %v9153_v16 = vmul.f32 0.35355338, %v8992_v41  ;;  %v9154_v35 = vmul.f32 0.35355338, %v9068_v46  ;;  %v13326_v55 = vpop.f32.mrb[89].mxu1  ;;  %v13331_v20 = vpop.f32.mrb[89].mxu0 }
0x29c4   :  { %v9176_v36 = vsel %vm1027_vm2, %v9160_v47, -inf  ;;  %9174 = vmax.xlane.f32.xlu0 %v9173_v28 }
0x29c5   :  { %v9161_v19 = vadd.f32 %v9153_v16, %v16043_v24  ;;  %v9162_v37 = vadd.f32 %v9154_v35, %v16037_v18  ;;  %9177 = vmax.xlane.f32.xlu1 %v9176_v36 }
0x29c6   :  { %v9144_v9 = vpop.f32.mrb[90].mxu1 }
0x29c7   :  { %v9155_v2 = vmul.f32 0.35355338, %v9144_v9  ;;  %v13336_v11 = vpop.f32.mrb[91].mxu1  ;;  %v9182_v7 = vsel %vm1027_vm2, %v9162_v37, -inf  ;;  %v9179_v59 = vsel %vm1027_vm2, %v9161_v19, -inf }
0x29c8   :  { %9180 = vmax.xlane.f32.xlu0 %v9179_v59 }
0x29c9   :  { %v9163_v60 = vadd.f32 %v9155_v2, %v16043_v24  ;;  %9183 = vmax.xlane.f32.xlu1 %v9182_v7 }
0x29cb   :  { %v9185_v30 = vsel %vm1027_vm2, %v9163_v60, -inf }
0x29cc   :  { %9186 = vmax.xlane.f32.xlu0 %v9185_v30 }
0x29da   :  { %9260 = vrot.lane.b32.xlu1 %v16526_v43, %s14911_s6 }
0x29de   :  { %9412 = vrot.lane.b32.xlu1 %v16548_v12, %s14911_s6 }
0x29e1   :  { %v9166_v5 = vpop.xlane.xlu0 %9165 }
0x29e2   :  { %9488 = vrot.lane.b32.xlu1 %v16544_v38, %s14911_s6  ;;  %9336 = vrot.lane.b32.xlu0 %v16524_v42, %s14911_s6  ;;  %v9188_v43 = vsub.f32 %v9156_v22, %v9166_v5 }
0x29e4   :  { %v9196_v53 = vmul.f32 1.442695, %v9188_v43 }
0x29e6   :  { %9640 = vrot.lane.b32.xlu1 %v16559_v61, %s14911_s6  ;;  %9564 = vrot.lane.b32.xlu0 %v16554_v56, %s14911_s6 }
0x29ea   :  { %v9169_v18 = vpop.xlane.xlu1 %9168 }
0x29eb   :  { %v9189_v24 = vsub.f32 %v9157_v52, %v9169_v18 }
0x29ed   :  { %v9198_v21 = vmul.f32 1.442695, %v9189_v24 }
0x29ef   :  { %13985 = vpow2.f32 %v9198_v21 }
0x29f0   :  { %13987 = vpow2.f32 %v9196_v53 }
0x29f9   :  { %v16644_v12 = vpop.eup %13985 }
0x29fa   :  { %v9215_v38 = vsel %vm1027_vm2, %v16644_v12, 0.0  ;;  %v16648_v42 = vpop.eup %13987 }
0x29fb   :  { %v9212_v61 = vsel %vm1027_vm2, %v16648_v42, 0.0 }
0x2a05   :  { %9216 = vadd.xlane.f32.xlu0 %v9215_v38 }
0x2a0a   :  { %9213 = vadd.xlane.f32.xlu1 %v9212_v61 }
0x2a4d   :  { %v9172_v56 = vpop.xlane.xlu0 %9171 }
0x2a4e   :  { %v9190_v54 = vsub.f32 %v9158_v32, %v9172_v56 }
0x2a50   :  { %v9200_v52 = vmul.f32 1.442695, %v9190_v54 }
0x2a51   :  { %v9175_v6 = vpop.xlane.xlu0 %9174 }
0x2a52   :  { %13989 = vpow2.f32 %v9200_v52  ;;  %v9191_v22 = vsub.f32 %v9159_v40, %v9175_v6  ;;  %v9178_v17 = vpop.xlane.xlu1 %9177 }
0x2a53   :  { %v9192_v29 = vsub.f32 %v9160_v47, %v9178_v17 }
0x2a54   :  { %v9202_v34 = vmul.f32 1.442695, %v9191_v22 }
0x2a55   :  { %v9204_v51 = vmul.f32 1.442695, %v9192_v29  ;;  %v9181_v44 = vpop.xlane.xlu0 %9180 }
0x2a56   :  { %13991 = vpow2.f32 %v9202_v34  ;;  %v9193_v27 = vsub.f32 %v9161_v19, %v9181_v44  ;;  %v9184_v31 = vpop.xlane.xlu1 %9183 }
0x2a57   :  { %13993 = vpow2.f32 %v9204_v51  ;;  %v9194_v26 = vsub.f32 %v9162_v37, %v9184_v31 }
0x2a58   :  { %v9206_v23 = vmul.f32 1.442695, %v9193_v27 }
0x2a59   :  { %v9208_v63 = vmul.f32 1.442695, %v9194_v26  ;;  %v9187_v41 = vpop.xlane.xlu0 %9186 }
0x2a5a   :  { %13995 = vpow2.f32 %v9206_v23  ;;  %v9195_v46 = vsub.f32 %v9163_v60, %v9187_v41  ;;  %v9261_v32 = vpop.permute.xlu1 %9260 }
0x2a5b   :  { %13997 = vpow2.f32 %v9208_v63  ;;  %13338 = vmatpush3.msra.mxu0 %v9261_v32 }
0x2a5c   :  { %v16652_v28 = vpop.eup %13989  ;;  %v9210_v40 = vmul.f32 1.442695, %v9195_v46  ;;  %13347 = vmatprep.subr.mxu0 %v14903_v0 }
0x2a5d   :  { %v9337_v47 = vpop.permute.xlu0 %9336  ;;  %v9218_v16 = vsel %vm1027_vm2, %v16652_v28, 0.0 }
0x2a5e   :  { %13999 = vpow2.f32 %v9210_v40  ;;  %9219 = vadd.xlane.f32.xlu1 %v9218_v16  ;;  %13343 = vmatpush3.msra.mxu1 %v9337_v47  ;;  %v9413_v59 = vpop.permute.xlu1 %9412 }
0x2a5f   :  { %13352 = vmatprep.subr.mxu1 %v14903_v0 }
0x2a60   :  { %v16658_v35 = vpop.eup %13991 }
0x2a61   :  { %v16660_v55 = vpop.eup %13993  ;;  %v9221_v20 = vsel %vm1027_vm2, %v16658_v35, 0.0  ;;  %v9565_v30 = vpop.permute.xlu0 %9564 }
0x2a62   :  { %9222 = vadd.xlane.f32.xlu0 %v9221_v20  ;;  %v9224_v36 = vsel %vm1027_vm2, %v16660_v55, 0.0  ;;  %v9489_v60 = vpop.permute.xlu1 %9488 }
0x2a63   :  { %9225 = vadd.xlane.f32.xlu1 %v9224_v36 }
0x2a64   :  { %v16666_v19 = vpop.eup %13995 }
0x2a65   :  { %v16668_v37 = vpop.eup %13997  ;;  %v9227_v9 = vsel %vm1027_vm2, %v16666_v19, 0.0 }
0x2a66   :  { %9228 = vadd.xlane.f32.xlu0 %v9227_v9  ;;  %v9230_v2 = vsel %vm1027_vm2, %v16668_v37, 0.0  ;;  %v9641_v24 = vpop.permute.xlu1 %9640  ;;  %v9899_v9 = vld [vmem:[#allocation35 + $0x20] sm:$0xff] }
0x2a67   :  { %9231 = vadd.xlane.f32.xlu1 %v9230_v2 }
0x2a68   :  { %v16674_v11 = vpop.eup %13999 }
0x2a69   :  { %v9233_v7 = vsel %vm1027_vm2, %v16674_v11, 0.0 }
0x2a6a   :  { %9234 = vadd.xlane.f32.xlu0 %v9233_v7  ;;  %v9901_v7 = vld [vmem:[#allocation35 + $0x30] sm:$0xff] }
0x2a78   :  { %9792 = vrot.lane.b32.xlu1 %v16568_v14, %s14911_s6 }
0x2a80   :  { %9716 = vrot.lane.b32.xlu0 %v16552_v49, %s14911_s6 }
0x2a92   :  { %v9217_v18 = vpop.xlane.xlu0 %9216 }
0x2a93   :  { %v9237_v5 = vmax.f32 %v9217_v18, 1e-20  ;;  %v10158_v18 = vld [vmem:[#allocation41 + $0x28] sm:$0xff] }
0x2a95   :  { %14001 = vrcp.f32 %v9237_v5 }
0x2a97   :  { %v9214_v21 = vpop.xlane.xlu1 %9213 }
0x2a98   :  { %v9236_v43 = vmax.f32 %v9214_v21, 1e-20 }
0x2a9a   :  { %14003 = vrcp.f32 %v9236_v43 }
0x2a9f   :  { %v14002_v53 = vpop.eup %14001 }
0x2aa0   :  { %v9247_v38 = vmul.f32 %v14002_v53, %v16644_v12 }
0x2aa2   :  { %13345 = vmatmul.mubr.msk.f32.vlgmr.msra.gmra.mrb[92].mxu1 %vm1027_vm2, %v9247_v38 }
0x2aa3   :  { %13353 = vmatpush3.msra.mxu1 %v9489_v60  ;;  %13354 = vmatprep.mubr.msk.f32.mxu1 %vm14905_vm1, %v14903_v0 }
0x2aa4   :  { %v14004_v49 = vpop.eup %14003  ;;  %13362 = vmatprep.subr.mxu1 %v14903_v0 }
0x2aa5   :  { %v9245_v14 = vmul.f32 %v14004_v49, %v16648_v42 }
0x2aa7   :  { %13340 = vmatmul.mubr.msk.f32.vlgmr.msra.gmra.mrb[90].mxu0 %vm1027_vm2, %v9245_v14 }
0x2aa8   :  { %13348 = vmatpush3.msra.mxu0 %v9413_v59  ;;  %13349 = vmatprep.mubr.msk.f32.mxu0 %vm14905_vm1, %v14903_v0  ;;  %v9902_v59 = vld [vmem:[#allocation35 + $0x38] sm:$0xff] }
0x2aa9   :  { %13357 = vmatprep.subr.mxu0 %v14903_v0  ;;  %v13688_v60 = vpack.c.bf16 %v9902_v59, %v9901_v7 }
0x2aeb   :  { %v9220_v12 = vpop.xlane.xlu1 %9219 }
0x2aec   :  { %v9238_v61 = vmax.f32 %v9220_v12, 1e-20 }
0x2aee   :  { %14005 = vrcp.f32 %v9238_v61 }
0x2aef   :  { %v9223_v56 = vpop.xlane.xlu0 %9222 }
0x2af0   :  { %v9239_v54 = vmax.f32 %v9223_v56, 1e-20  ;;  %v9226_v52 = vpop.xlane.xlu1 %9225 }
0x2af1   :  { %v9240_v6 = vmax.f32 %v9226_v52, 1e-20 }
0x2af2   :  { %14007 = vrcp.f32 %v9239_v54 }
0x2af3   :  { %14009 = vrcp.f32 %v9240_v6  ;;  %v9229_v22 = vpop.xlane.xlu0 %9228 }
0x2af4   :  { %v9241_v17 = vmax.f32 %v9229_v22, 1e-20  ;;  %v9232_v42 = vpop.xlane.xlu1 %9231 }
0x2af5   :  { %v9242_v29 = vmax.f32 %v9232_v42, 1e-20 }
0x2af6   :  { %14011 = vrcp.f32 %v9241_v17 }
0x2af7   :  { %14013 = vrcp.f32 %v9242_v29  ;;  %v9235_v34 = vpop.xlane.xlu0 %9234 }
0x2af8   :  { %v14006_v51 = vpop.eup %14005  ;;  %v9243_v44 = vmax.f32 %v9235_v34, 1e-20  ;;  %v9793_v47 = vpop.permute.xlu1 %9792 }
0x2af9   :  { %v9249_v27 = vmul.f32 %v14006_v51, %v16652_v28  ;;  %v10159_v51 = vld [vmem:[#allocation41 + $0x30] sm:$0xff] }
0x2afa   :  { %14015 = vrcp.f32 %v9243_v44  ;;  %v10160_v44 = vld [vmem:[#allocation41 + $0x38] sm:$0xff] }
0x2afb   :  { %13350 = vmatmul.mubr.msk.f32.vlgmr.msra.gmra.mrb[92].mxu0 %vm1027_vm2, %v9249_v27  ;;  %v9717_v46 = vpop.permute.xlu0 %9716 }
0x2afc   :  { %v14008_v31 = vpop.eup %14007  ;;  %13358 = vmatpush3.msra.mxu0 %v9565_v30  ;;  %13359 = vmatprep.mubr.msk.f32.mxu0 %vm14905_vm1, %v14903_v0  ;;  %v10157_v30 = vld [vmem:[#allocation41 + $0x20] sm:$0xff] }
0x2afd   :  { %v14010_v26 = vpop.eup %14009  ;;  %13367 = vmatprep.subr.mxu0 %v14903_v0  ;;  %v9251_v23 = vmul.f32 %v14008_v31, %v16658_v35 }
0x2afe   :  { %v9253_v63 = vmul.f32 %v14010_v26, %v16660_v55 }
0x2aff   :  { %13355 = vmatmul.mubr.msk.f32.vlgmr.msra.gmra.mrb[94].mxu1 %vm1027_vm2, %v9251_v23 }
0x2b00   :  { %v14012_v41 = vpop.eup %14011  ;;  %13360 = vmatmul.mubr.msk.f32.vlgmr.msra.gmra.mrb[94].mxu0 %vm1027_vm2, %v9253_v63  ;;  %13363 = vmatpush3.msra.mxu1 %v9641_v24  ;;  %v13704_v63 = vpack.c.bf16 %v10160_v44, %v10159_v51  ;;  %v16772_v51 = vld [vmem:[%s17101_s15 + $0x4] sm:$0x7] }
0x2b01   :  { %v14014_v32 = vpop.eup %14013  ;;  %13368 = vmatpush3.msra.mxu0 %v9717_v46  ;;  %13364 = vmatprep.mubr.msk.f32.mxu1 %vm14905_vm1, %v14903_v0  ;;  %v9255_v28 = vmul.f32 %v14012_v41, %v16666_v19  ;;  %v12404_v46 = vld [vmem:[#allocation37 + $0x1] ss:$0 sm:$0xff]  ;;  %v16775_v44 = vld [vmem:[%s15097_s20 + $0x4] sm:$0x7] }
0x2b02   :  { %13369 = vmatprep.mubr.msk.f32.mxu0 %vm14905_vm1, %v14903_v0  ;;  %13372 = vmatprep.subr.mxu1 %v14903_v0  ;;  %v9257_v40 = vmul.f32 %v14014_v32, %v16668_v37  ;;  %v9900_v37 = vld [vmem:[#allocation35 + $0x28] sm:$0xff] }
0x2b03   :  { %13365 = vmatmul.mubr.msk.f32.vlgmr.msra.gmra.mrb[96].mxu1 %vm1027_vm2, %v9255_v28  ;;  %v13684_v2 = vpack.c.bf16 %v9900_v37, %v9899_v9 }
0x2b04   :  { %v14016_v16 = vpop.eup %14015  ;;  %13370 = vmatmul.mubr.msk.f32.vlgmr.msra.gmra.mrb[96].mxu0 %vm1027_vm2, %v9257_v40  ;;  %13373 = vmatpush3.msra.mxu1 %v9793_v47 }
0x2b05   :  { %13374 = vmatprep.mubr.msk.f32.mxu1 %vm14905_vm1, %v14903_v0  ;;  %v9259_v35 = vmul.f32 %v14016_v16, %v16674_v11  ;;  %13685 = vmatprep.subr.bf16.mxu0 %v13684_v2  ;;  %v13700_v11 = vpack.c.bf16 %v10158_v18, %v10157_v30 }
0x2b06   :  { %13687 = vmatpush3.bf16.msra.mxu0 %v13684_v2 }
0x2b07   :  { %13375 = vmatmul.mubr.msk.f32.vlgmr.msra.gmra.mrb[98].mxu1 %vm1027_vm2, %v9259_v35  ;;  %13689 = vmatprep.subr.bf16.mxu0 %v13688_v60 }
0x2b0a   :  { %13691 = vmatpush3.bf16.msra.mxu0 %v13688_v60 }
0x2b0b   :  { %13701 = vmatprep.subr.bf16.mxu0 %v13700_v11 }
0x2b75   :  { %v9408_v55 = vpop.f32.mrb[92].mxu1 }
0x2b76   :  { %v13346_v20 = vpop.f32.mrb[93].mxu1 }
0x2b7a   :  { %v9332_v36 = vpop.f32.mrb[90].mxu0 }
0x2b7b   :  { %v13341_v19 = vpop.f32.mrb[91].mxu0 }
0x2bce   :  { %v9484_v24 = vpop.f32.mrb[92].mxu0 }
0x2bcf   :  { %9870 = vrot.lane.b32.xlu0 %v9484_v24, %s14866_s28  ;;  %v13351_v5 = vpop.f32.mrb[93].mxu0 }
0x2bd2   :  { %v9560_v21 = vpop.f32.mrb[94].mxu1 }
0x2bd3   :  { %v9636_v43 = vpop.f32.mrb[94].mxu0  ;;  %9872 = vrot.lane.b32.xlu1 %v9560_v21, %s14866_s28  ;;  %v13356_v53 = vpop.f32.mrb[95].mxu1 }
0x2bd4   :  { %9878 = vrot.lane.b32.xlu0 %v9636_v43, %s14884_s7  ;;  %v13361_v38 = vpop.f32.mrb[95].mxu0 }
0x2bd6   :  { %v9712_v49 = vpop.f32.mrb[96].mxu1 }
0x2bd7   :  { %v9788_v14 = vpop.f32.mrb[96].mxu0  ;;  %9880 = vrot.lane.b32.xlu1 %v9712_v49, %s14884_s7  ;;  %v13366_v12 = vpop.f32.mrb[97].mxu1 }
0x2bd8   :  { %9886 = vrot.lane.b32.xlu0 %v9788_v14, %s14912_s0  ;;  %v13371_v61 = vpop.f32.mrb[97].mxu0  ;;  %v10063_v14 = vld [vmem:[#allocation38 + $0x20] sm:$0xff]  ;;  %v10064_v12 = vld [vmem:[#allocation38 + $0x28] sm:$0xff] }
0x2bd9   :  { %v13692_v61 = vpack.c.bf16 %v10064_v12, %v10063_v14 }
0x2bda   :  { %v9864_v56 = vpop.f32.mrb[98].mxu1 }
0x2bdb   :  { %9888 = vrot.lane.b32.xlu1 %v9864_v56, %s14912_s0  ;;  %v13376_v54 = vpop.f32.mrb[99].mxu1  ;;  %13693 = vmatprep.subr.bf16.mxu1 %v13692_v61  ;;  %v10065_v56 = vld [vmem:[#allocation38 + $0x30] sm:$0xff] }
0x2bdc   :  { %13695 = vmatpush3.bf16.msra.mxu1 %v13692_v61  ;;  %v10066_v54 = vld [vmem:[#allocation38 + $0x38] sm:$0xff] }
0x2c41   :  { %v9871_v52 = vpop.permute.xlu0 %9870 }
0x2c42   :  { %v9892_v17 = vsel %vm1027_vm2, %v9332_v36, %v9871_v52  ;;  %v13696_v52 = vpack.c.bf16 %v10066_v54, %v10065_v56 }
0x2c44   :  { %13697 = vmatprep.subr.bf16.mxu1 %v13696_v52 }
0x2c45   :  { %v9873_v6 = vpop.permute.xlu1 %9872  ;;  %13699 = vmatpush3.bf16.msra.mxu1 %v13696_v52 }
0x2c46   :  { %v9879_v22 = vpop.permute.xlu0 %9878  ;;  %v9893_v31 = vsel %vm1027_vm2, %v9408_v55, %v9873_v6  ;;  %13410 = vmatprep.subr.mxu1 %v14903_v0 }
0x2c47   :  { %v9894_v29 = vsel %vm2380_vm3, %v9892_v17, %v9879_v22 }
0x2c49   :  { %v9881_v42 = vpop.permute.xlu1 %9880 }
0x2c4a   :  { %v9887_v34 = vpop.permute.xlu0 %9886  ;;  %v9895_v26 = vsel %vm2380_vm3, %v9893_v31, %v9881_v42 }
0x2c4b   :  { %v9896_v27 = vsel %vm2383_vm4, %v9894_v29, %v9887_v34 }
0x2c4c   :  { %13385 = vmatprep.mubr.msk.f32.mxu0 %vm626_vm0, %v9896_v27  ;;  %v10053_v27 = vrot.slane %v16772_v51, %v15470_v13 }
0x2c4d   :  { %v9889_v23 = vpop.permute.xlu1 %9888 }
0x2c4e   :  { %v9897_v41 = vsel %vm2383_vm4, %v9895_v26, %v9889_v23  ;;  %v10059_v23 = vrot.slane %v16775_v44, %v15470_v13 }
0x2c4f   :  { %13386 = vmatmul.mubr.msk.f32.vlgmr.msra.gmra.mrb[98].mxu0 %vm626_vm0, %v9897_v41 }
0x2c50   :  { %13703 = vmatpush3.bf16.msra.mxu0 %v13700_v11  ;;  %13407 = vmatprep.mubr.msk.f32.mxu0 %vm626_vm0, %v16214_v15 }
0x2c51   :  { %13705 = vmatprep.subr.bf16.mxu0 %v13704_v63 }
0x2c54   :  { %13707 = vmatpush3.bf16.msra.mxu0 %v13704_v63 }
0x2c55   :  { %13420 = vmatprep.subr.mxu0 %v14903_v0 }
0x2c57   :  { %13408 = vmatmul.mubr.msk.f32.vlgmr.msra.gmra.mrb[100].mxu0 %vm626_vm0, %v16218_v4 }
0x2c58   :  { %13422 = vmatprep.mubr.msk.f32.mxu0 %vm14905_vm1, %v14903_v0 }
0x2d22   :  { %v13387_v32 = vpop.f32.mrb[98].mxu0 }
0x2d23   :  { %v9989_v28 = vadd.f32 %v13387_v32, %v12404_v46  ;;  %v9983_v40 = vpop.f32.mrb[99].mxu0 }
0x2d24   :  { %v9984_v47 = vadd.f32 %v12404_v46, %v9983_v40 }
0x2d25   :  { %10000 = vrot.lane.b32.xlu1 %v9989_v28, %s14911_s6 }
0x2d26   :  { %9998 = vrot.lane.b32.xlu0 %v9984_v47, %s14911_s6  ;;  %v12409_v47 = vld [vmem:[#allocation40 + $0x1] ss:$0 sm:$0xff] }
0x2d2a   :  { %v13409_v15 = vpop.f32.mrb[100].mxu0 }
0x2d2b   :  { %v10235_v16 = vpop.f32.mrb[101].mxu0 }
0x2d97   :  { %v10001_v35 = vpop.permute.xlu1 %10000 }
0x2d98   :  { %v10005_v55 = vmul.f32 %v10001_v35, %v16498_v48  ;;  %v9999_v20 = vpop.permute.xlu0 %9998 }
0x2d99   :  { %v10004_v4 = vmul.f32 %v9999_v20, %v16501_v1 }
0x2d9a   :  { %10010 = vrot.lane.b32.xlu1 %v10005_v55, %s14911_s6 }
0x2d9b   :  { %10008 = vrot.lane.b32.xlu0 %v10004_v4, %s14911_s6 }
0x2d9e   :  { %10018 = vrot.lane.b32.xlu1 %v16481_v45, %s14876_s25  ;;  %v12412_v45 = vld [vmem:[#allocation43 + $0x1] ss:$0 sm:$0xff] }
0x2d9f   :  { %10016 = vrot.lane.b32.xlu0 %v16473_v33, %s14876_s25  ;;  %v16749_v30 = vadd.f32 %v12412_v45, %v10235_v16  ;;  %v16753_v33 = vadd.f32 %v13409_v15, %v12412_v45 }
0x2e0c   :  { %v10011_v36 = vpop.permute.xlu1 %10010 }
0x2e0d   :  { %v10009_v19 = vpop.permute.xlu0 %10008  ;;  %v10015_v9 = vadd.f32 %v10011_v36, %v16516_v3 }
0x2e0e   :  { %v10014_v37 = vadd.f32 %v10009_v19, %v16514_v25 }
0x2e10   :  { %v10019_v48 = vpop.permute.xlu1 %10018 }
0x2e11   :  { %v10023_v2 = vadd.f32 %v10019_v48, %v10015_v9  ;;  %v10017_v7 = vpop.permute.xlu0 %10016 }
0x2e12   :  { %v10022_v1 = vadd.f32 %v10017_v7, %v10014_v37 }
0x2e13   :  { %v10027_v59 = vsel %vm626_vm0, %v10023_v2, 0.0 }
0x2e14   :  { %10028 = vadd.xlane.f32.xlu1 %v10027_v59  ;;  %v10024_v60 = vsel %vm626_vm0, %v10022_v1, 0.0 }
0x2e15   :  { %10025 = vadd.xlane.f32.xlu0 %v10024_v60 }
0x2e25   :  { %10260 = vrot.lane.b32.xlu1 %v16749_v30, %s14907_s4 }
0x2e29   :  { %10266 = vrot.lane.b32.xlu1 %v16753_v33, %s14906_s14 }
0x2ea1   :  { %v10029_v25 = vpop.xlane.xlu1 %10028 }
0x2ea2   :  { %v10031_v3 = vmul.f32 0.03125, %v10029_v25  ;;  %v10026_v18 = vpop.xlane.xlu0 %10025 }
0x2ea3   :  { %v10030_v24 = vmul.f32 0.03125, %v10026_v18 }
0x2ea4   :  { %v10033_v11 = vsub.f32 %v10023_v2, %v10031_v3 }
0x2ea5   :  { %v10032_v5 = vsub.f32 %v10022_v1, %v10030_v24  ;;  %v16757_v21 = vpop.permute.xlu1 %10260 }
0x2ea6   :  { %13421 = vmatpush3.xpose.msk.msra.mxu0 %vm1027_vm2, %v16757_v21  ;;  %v10035_v38 = vmul.f32 %v10033_v11, %v10033_v11 }
0x2ea7   :  { %v10034_v43 = vmul.f32 %v10032_v5, %v10032_v5  ;;  %13430 = vmatprep.subr.mxu0 %v14903_v0 }
0x2ea8   :  { %v10039_v49 = vsel %vm626_vm0, %v10035_v38, 0.0 }
0x2ea9   :  { %v10036_v53 = vsel %vm626_vm0, %v10034_v43, 0.0  ;;  %v16816_v4 = vpop.permute.xlu1 %10266 }
0x2eaa   :  { %10037 = vadd.xlane.f32.xlu0 %v10036_v53 }
0x2eae   :  { %10040 = vadd.xlane.f32.xlu0 %v10039_v49 }
0x2ec4   :  { %10262 = vrot.lane.b32.xlu0 %v16753_v33, %s14907_s4 }
0x2ec8   :  { %10264 = vrot.lane.b32.xlu0 %v16749_v30, %s14906_s14 }
0x2ecc   :  { %10268 = vrot.lane.b32.xlu0 %v16749_v30, %s14908_s19 }
0x2f37   :  { %v10038_v6 = vpop.xlane.xlu0 %10037 }
0x2f38   :  { %v10042_v22 = vmul.f32 0.03125, %v10038_v6 }
0x2f3a   :  { %v10044_v17 = vadd.f32 1e-05, %v10042_v22 }
0x2f3b   :  { %v10041_v42 = vpop.xlane.xlu0 %10040 }
0x2f3c   :  { %14017 = vrsqrt.f32 %v10044_v17  ;;  %v10043_v29 = vmul.f32 0.03125, %v10041_v42 }
0x2f3e   :  { %v10045_v34 = vadd.f32 1e-05, %v10043_v29 }
0x2f3f   :  { %v16803_v20 = vpop.permute.xlu0 %10262 }
0x2f40   :  { %14019 = vrsqrt.f32 %v10045_v34 }
0x2f43   :  { %v16818_v36 = vpop.permute.xlu0 %10264 }
0x2f46   :  { %v14018_v31 = vpop.eup %14017 }
0x2f47   :  { %v10048_v26 = vmul.f32 %v14018_v31, %v10032_v5  ;;  %v16821_v9 = vpop.permute.xlu0 %10268 }
0x2f49   :  { %v10054_v63 = vmul.f32 %v10053_v27, %v10048_v26 }
0x2f4a   :  { %v14020_v41 = vpop.eup %14019 }
0x2f4b   :  { %v10049_v46 = vmul.f32 %v14020_v41, %v10033_v11  ;;  %v16781_v32 = vadd.f32 %v10059_v23, %v10054_v63 }
0x2f4d   :  { %v10055_v28 = vmul.f32 %v10053_v27, %v10049_v46  ;;  %13396 = vmatprep.mubr.msk.f32.mxu1 %vm626_vm0, %v16781_v32 }
0x2f4f   :  { %v16785_v40 = vadd.f32 %v10059_v23, %v10055_v28 }
0x2f51   :  { %13397 = vmatmul.mubr.msk.f32.vlgmr.msra.gmra.mrb[100].mxu1 %vm626_vm0, %v16785_v40 }
0x2f52   :  { %13411 = vmatpush3.xpose.msk.msra.mxu1 %vm1027_vm2, %v16749_v30  ;;  %13412 = vmatprep.mubr.msk.f32.mxu1 %vm14905_vm1, %v14903_v0 }
0x2f53   :  { %13415 = vmatprep.subr.mxu1 %v14903_v0 }
0x3024   :  { %v13398_v15 = vpop.f32.mrb[100].mxu1 }
0x3025   :  { %v10153_v16 = vadd.f32 %v13398_v15, %v12409_v47  ;;  %v10147_v35 = vpop.f32.mrb[101].mxu1 }
0x3026   :  { %v10148_v55 = vadd.f32 %v12409_v47, %v10147_v35 }
0x3027   :  { %10248 = vrot.lane.b32.xlu1 %v10153_v16, %s14907_s4 }
0x3028   :  { %10250 = vrot.lane.b32.xlu0 %v10148_v55, %s14906_s14  ;;  %13413 = vmatmul.mubr.msk.f32.vlgmr.msra.gmra.mrb[102].mxu1 %vm1027_vm2, %v10148_v55 }
0x3029   :  { %13416 = vmatpush3.xpose.msk.msra.mxu1 %vm1027_vm2, %v16753_v33  ;;  %13417 = vmatprep.mubr.msk.f32.mxu1 %vm14905_vm1, %v14903_v0 }
0x302a   :  { %13425 = vmatprep.subr.mxu1 %v14903_v0 }
0x302b   :  { %10246 = vrot.lane.b32.xlu1 %v10148_v55, %s14907_s4 }
0x302c   :  { %10254 = vrot.lane.b32.xlu0 %v10148_v55, %s14908_s19  ;;  %13418 = vmatmul.mubr.msk.f32.vlgmr.msra.gmra.mrb[104].mxu1 %vm1027_vm2, %v10153_v16 }
0x302d   :  { %13426 = vmatpush3.xpose.msk.msra.mxu1 %vm1027_vm2, %v16803_v20  ;;  %13427 = vmatprep.mubr.msk.f32.mxu1 %vm14905_vm1, %v14903_v0 }
0x302e   :  { %13435 = vmatprep.subr.mxu1 %v14903_v0 }
0x302f   :  { %10252 = vrot.lane.b32.xlu1 %v10153_v16, %s14906_s14 }
0x3033   :  { %10270 = vrot.lane.b32.xlu1 %v16753_v33, %s14908_s19 }
0x3037   :  { %10256 = vrot.lane.b32.xlu1 %v10153_v16, %s14908_s19 }
0x3099   :  { %v10249_v19 = vpop.permute.xlu1 %10248 }
0x309a   :  { %13428 = vmatmul.mubr.msk.f32.vlgmr.msra.gmra.mrb[106].mxu1 %vm1027_vm2, %v10249_v19  ;;  %v10251_v48 = vpop.permute.xlu0 %10250 }
0x309b   :  { %13436 = vmatpush3.xpose.msk.msra.mxu1 %vm1027_vm2, %v16816_v4  ;;  %13437 = vmatprep.mubr.msk.f32.mxu1 %vm14905_vm1, %v14903_v0 }
0x309c   :  { %13445 = vmatprep.subr.mxu1 %v14903_v0 }
0x309d   :  { %v10247_v37 = vpop.permute.xlu1 %10246 }
0x309e   :  { %13423 = vmatmul.mubr.msk.f32.vlgmr.msra.gmra.mrb[102].mxu0 %vm1027_vm2, %v10247_v37  ;;  %v10255_v7 = vpop.permute.xlu0 %10254 }
0x309f   :  { %13431 = vmatpush3.xpose.msk.msra.mxu0 %vm1027_vm2, %v16818_v36  ;;  %13432 = vmatprep.mubr.msk.f32.mxu0 %vm14905_vm1, %v14903_v0 }
0x30a0   :  { %13440 = vmatprep.subr.mxu0 %v14903_v0 }
0x30a1   :  { %v10253_v2 = vpop.permute.xlu1 %10252 }
0x30a2   :  { %13433 = vmatmul.mubr.msk.f32.vlgmr.msra.gmra.mrb[104].mxu0 %vm1027_vm2, %v10251_v48  ;;  %13438 = vmatmul.mubr.msk.f32.vlgmr.msra.gmra.mrb[108].mxu1 %vm1027_vm2, %v10253_v2 }
0x30a3   :  { %13441 = vmatpush3.xpose.msk.msra.mxu0 %vm1027_vm2, %v16821_v9  ;;  %13442 = vmatprep.mubr.msk.f32.mxu0 %vm14905_vm1, %v14903_v0 }
0x30a4   :  { %13447 = vmatprep.mubr.msk.f32.mxu1 %vm14905_vm1, %v14903_v0  ;;  %13450 = vmatprep.subr.mxu0 %v14903_v0 }
0x30a5   :  { %v16843_v1 = vpop.permute.xlu1 %10270 }
0x30a6   :  { %13443 = vmatmul.mubr.msk.f32.vlgmr.msra.gmra.mrb[106].mxu0 %vm1027_vm2, %v10255_v7  ;;  %13446 = vmatpush3.xpose.msk.msra.mxu1 %vm1027_vm2, %v16843_v1 }
0x30a7   :  { %13455 = vmatprep.subr.mxu1 %v14903_v0  ;;  %13452 = vmatprep.mubr.msk.f32.mxu0 %vm14905_vm1, %v14903_v0 }
0x30a9   :  { %v10257_v59 = vpop.permute.xlu1 %10256 }
0x30aa   :  { %13448 = vmatmul.mubr.msk.f32.vlgmr.msra.gmra.mrb[110].mxu1 %vm1027_vm2, %v10257_v59 }
0x30ab   :  { %13457 = vmatprep.mubr.msk.f32.mxu1 %vm14905_vm1, %v14903_v0 }
0x30fb   :  { %v10342_v60 = vpop.f32.mrb[102].mxu1 }
0x30fc   :  { %v10864_v45 = vmul.f32 0.35355338, %v10342_v60  ;;  %v13414_v25 = vpop.f32.mrb[103].mxu1 }
0x30fe   :  { %v10872_v3 = vadd.f32 %v10864_v45, %v16328_v62 }
0x30ff   :  { %v10416_v18 = vpop.f32.mrb[104].mxu1 }
0x3100   :  { %v10865_v24 = vmul.f32 0.35355338, %v10416_v18  ;;  %v13419_v11 = vpop.f32.mrb[105].mxu1  ;;  %v10880_v5 = vsel %vm1027_vm2, %v10872_v3, -inf }
0x3101   :  { %10881 = vmax.xlane.f32.xlu0 %v10880_v5 }
0x3102   :  { %v10873_v43 = vadd.f32 %v10865_v24, %v16333_v57 }
0x3104   :  { %v10883_v53 = vsel %vm1027_vm2, %v10873_v43, -inf }
0x3105   :  { %10884 = vmax.xlane.f32.xlu1 %v10883_v53 }
0x316d   :  { %v10564_v38 = vpop.f32.mrb[106].mxu1 }
0x316e   :  { %v13429_v49 = vpop.f32.mrb[107].mxu1  ;;  %v10867_v56 = vmul.f32 0.35355338, %v10564_v38 }
0x3170   :  { %v10875_v29 = vadd.f32 %v10867_v56, %v16333_v57 }
0x3171   :  { %v10490_v14 = vpop.f32.mrb[102].mxu0 }
0x3172   :  { %v10866_v12 = vmul.f32 0.35355338, %v10490_v14  ;;  %v13424_v61 = vpop.f32.mrb[103].mxu0  ;;  %v10889_v28 = vsel %vm1027_vm2, %v10875_v29, -inf }
0x3174   :  { %v10874_v54 = vadd.f32 %v10866_v12, %v16328_v62 }
0x3175   :  { %v10638_v52 = vpop.f32.mrb[104].mxu0  ;;  %v10712_v6 = vpop.f32.mrb[108].mxu1 }
0x3176   :  { %v10868_v22 = vmul.f32 0.35355338, %v10638_v52  ;;  %v13434_v17 = vpop.f32.mrb[105].mxu0  ;;  %v13439_v42 = vpop.f32.mrb[109].mxu1  ;;  %v10869_v34 = vmul.f32 0.35355338, %v10712_v6 }
0x3177   :  { %v10886_v27 = vsel %vm1027_vm2, %v10874_v54, -inf }
0x3178   :  { %v10876_v31 = vadd.f32 %v10868_v22, %v16328_v62  ;;  %10887 = vmax.xlane.f32.xlu0 %v10886_v27  ;;  %v10877_v46 = vadd.f32 %v10869_v34, %v16333_v57 }
0x3179   :  { %v10786_v26 = vpop.f32.mrb[106].mxu0 }
0x317a   :  { %v10870_v23 = vmul.f32 0.35355338, %v10786_v26  ;;  %v13444_v63 = vpop.f32.mrb[107].mxu0  ;;  %v10892_v41 = vsel %vm1027_vm2, %v10876_v31, -inf  ;;  %v10895_v19 = vsel %vm1027_vm2, %v10877_v46, -inf }
0x317b   :  { %10893 = vmax.xlane.f32.xlu1 %v10892_v41 }
0x317c   :  { %v10878_v47 = vadd.f32 %v10870_v23, %v16328_v62  ;;  %10890 = vmax.xlane.f32.xlu0 %v10889_v28 }
0x317d   :  { %v10860_v15 = vpop.f32.mrb[110].mxu1 }
0x317e   :  { %v10871_v16 = vmul.f32 0.35355338, %v10860_v15  ;;  %v13449_v35 = vpop.f32.mrb[111].mxu1  ;;  %v10898_v55 = vsel %vm1027_vm2, %v10878_v47, -inf }
0x317f   :  { %10899 = vmax.xlane.f32.xlu1 %v10898_v55 }
0x3180   :  { %v10879_v37 = vadd.f32 %v10871_v16, %v16333_v57  ;;  %10896 = vmax.xlane.f32.xlu0 %v10895_v19 }
0x3182   :  { %v10901_v48 = vsel %vm1027_vm2, %v10879_v37, -inf }
0x3184   :  { %10902 = vmax.xlane.f32.xlu0 %v10901_v48 }
0x318e   :  { %v10882_v57 = vpop.xlane.xlu0 %10881 }
0x318f   :  { %v10904_v7 = vsub.f32 %v10872_v3, %v10882_v57 }
0x3190   :  { %10976 = vrot.lane.b32.xlu1 %v16749_v30, %s14909_s11 }
0x3191   :  { %v10912_v59 = vmul.f32 1.442695, %v10904_v7 }
0x3192   :  { %v10885_v62 = vpop.xlane.xlu1 %10884 }
0x3193   :  { %v10905_v2 = vsub.f32 %v10873_v43, %v10885_v62 }
0x3194   :  { %11128 = vrot.lane.b32.xlu1 %v16757_v21, %s14909_s11 }
0x3195   :  { %v10914_v30 = vmul.f32 1.442695, %v10905_v2 }
0x3197   :  { %14021 = vpow2.f32 %v10914_v30 }
0x3198   :  { %11204 = vrot.lane.b32.xlu1 %v16803_v20, %s14909_s11  ;;  %14023 = vpow2.f32 %v10912_v59 }
0x319a   :  { %11052 = vrot.lane.b32.xlu0 %v16753_v33, %s14909_s11 }
0x319c   :  { %11356 = vrot.lane.b32.xlu1 %v16816_v4, %s14909_s11 }
0x319e   :  { %11280 = vrot.lane.b32.xlu0 %v16818_v36, %s14909_s11 }
0x31a1   :  { %v16882_v21 = vpop.eup %14021 }
0x31a2   :  { %v16884_v20 = vpop.eup %14023  ;;  %v10931_v33 = vsel %vm1027_vm2, %v16882_v21, 0.0 }
0x31a3   :  { %v10928_v4 = vsel %vm1027_vm2, %v16884_v20, 0.0 }
0x31bd   :  { %10932 = vadd.xlane.f32.xlu0 %v10931_v33 }
0x31c0   :  { %10929 = vadd.xlane.f32.xlu1 %v10928_v4 }
0x3205   :  { %v10888_v36 = vpop.xlane.xlu0 %10887 }
0x3206   :  { %v10906_v60 = vsub.f32 %v10874_v54, %v10888_v36 }
0x3208   :  { %v10916_v45 = vmul.f32 1.442695, %v10906_v60  ;;  %v10894_v25 = vpop.xlane.xlu1 %10893 }
0x3209   :  { %v10908_v3 = vsub.f32 %v10876_v31, %v10894_v25  ;;  %v10891_v18 = vpop.xlane.xlu0 %10890 }
0x320a   :  { %14025 = vpow2.f32 %v10916_v45  ;;  %v10907_v24 = vsub.f32 %v10875_v29, %v10891_v18 }
0x320b   :  { %v10920_v11 = vmul.f32 1.442695, %v10908_v3 }
0x320c   :  { %v10918_v5 = vmul.f32 1.442695, %v10907_v24  ;;  %v10900_v43 = vpop.xlane.xlu1 %10899 }
0x320d   :  { %14027 = vpow2.f32 %v10920_v11  ;;  %v10910_v53 = vsub.f32 %v10878_v47, %v10900_v43  ;;  %v10897_v38 = vpop.xlane.xlu0 %10896 }
0x320e   :  { %14029 = vpow2.f32 %v10918_v5  ;;  %v10909_v49 = vsub.f32 %v10877_v46, %v10897_v38 }
0x320f   :  { %v10924_v14 = vmul.f32 1.442695, %v10910_v53 }
0x3210   :  { %v10922_v12 = vmul.f32 1.442695, %v10909_v49  ;;  %v10977_v61 = vpop.permute.xlu1 %10976 }
0x3211   :  { %14031 = vpow2.f32 %v10924_v14  ;;  %v10903_v56 = vpop.xlane.xlu0 %10902  ;;  %13451 = vmatpush3.msra.mxu0 %v10977_v61 }
0x3212   :  { %14033 = vpow2.f32 %v10922_v12  ;;  %v10911_v54 = vsub.f32 %v10879_v37, %v10903_v56  ;;  %13460 = vmatprep.subr.mxu0 %v14903_v0 }
0x3214   :  { %v16891_v52 = vpop.eup %14025  ;;  %v10926_v6 = vmul.f32 1.442695, %v10911_v54  ;;  %v11129_v28 = vpop.permute.xlu1 %11128 }
0x3215   :  { %v11053_v22 = vpop.permute.xlu0 %11052  ;;  %v10934_v17 = vsel %vm1027_vm2, %v16891_v52, 0.0 }
0x3216   :  { %14035 = vpow2.f32 %v10926_v6  ;;  %10935 = vadd.xlane.f32.xlu1 %v10934_v17  ;;  %13456 = vmatpush3.msra.mxu1 %v11053_v22  ;;  %v619_v17 = vsub.s32 4, %v15462_v8 }
0x3217   :  { %v16895_v42 = vpop.eup %14027  ;;  %13465 = vmatprep.subr.mxu1 %v14903_v0 }
0x3218   :  { %v16898_v29 = vpop.eup %14029  ;;  %v10940_v34 = vsel %vm1027_vm2, %v16895_v42, 0.0  ;;  %v11205_v47 = vpop.permute.xlu1 %11204 }
0x3219   :  { %v10937_v27 = vsel %vm1027_vm2, %v16898_v29, 0.0  ;;  %v11281_v15 = vpop.permute.xlu0 %11280 }
0x321a   :  { %10941 = vadd.xlane.f32.xlu1 %v10940_v34  ;;  %10938 = vadd.xlane.f32.xlu0 %v10937_v27  ;;  %v14062_v27 = vld [vmem:[#allocation10] sm:$0x1f] }
0x321b   :  { %v16904_v31 = vpop.eup %14031 }
0x321c   :  { %v16906_v26 = vpop.eup %14033  ;;  %v10946_v23 = vsel %vm1027_vm2, %v16904_v31, 0.0  ;;  %v11357_v16 = vpop.permute.xlu1 %11356 }
0x321d   :  { %v10943_v63 = vsel %vm1027_vm2, %v16906_v26, 0.0 }
0x321e   :  { %10947 = vadd.xlane.f32.xlu1 %v10946_v23  ;;  %10944 = vadd.xlane.f32.xlu0 %v10943_v63 }
0x3220   :  { %v16912_v41 = vpop.eup %14035 }
0x3221   :  { %v10949_v46 = vsel %vm1027_vm2, %v16912_v41, 0.0 }
0x3222   :  { %10950 = vadd.xlane.f32.xlu0 %v10949_v46 }
0x322f   :  { %11508 = vrot.lane.b32.xlu1 %v16843_v1, %s14909_s11 }
0x3238   :  { %11432 = vrot.lane.b32.xlu0 %v16821_v9, %s14909_s11 }
0x324a   :  { %v10933_v35 = vpop.xlane.xlu0 %10932 }
0x324b   :  { %v10953_v55 = vmax.f32 %v10933_v35, 1e-20 }
0x324d   :  { %14037 = vrcp.f32 %v10953_v55  ;;  %v10930_v19 = vpop.xlane.xlu1 %10929 }
0x324e   :  { %v10952_v37 = vmax.f32 %v10930_v19, 1e-20 }
0x3250   :  { %14039 = vrcp.f32 %v10952_v37 }
0x3257   :  { %v14038_v48 = vpop.eup %14037 }
0x3258   :  { %v10963_v62 = vmul.f32 %v14038_v48, %v16882_v21 }
0x325a   :  { %v14040_v57 = vpop.eup %14039  ;;  %13458 = vmatmul.mubr.msk.f32.vlgmr.msra.gmra.mrb[112].mxu1 %vm1027_vm2, %v10963_v62 }
0x325b   :  { %13466 = vmatpush3.msra.mxu1 %v11205_v47  ;;  %v10961_v1 = vmul.f32 %v14040_v57, %v16884_v20  ;;  %13467 = vmatprep.mubr.msk.f32.mxu1 %vm14905_vm1, %v14903_v0 }
0x325c   :  { %13475 = vmatprep.subr.mxu1 %v14903_v0 }
0x325d   :  { %13453 = vmatmul.mubr.msk.f32.vlgmr.msra.gmra.mrb[108].mxu0 %vm1027_vm2, %v10961_v1 }
0x325e   :  { %13461 = vmatpush3.msra.mxu0 %v11129_v28  ;;  %13462 = vmatprep.mubr.msk.f32.mxu0 %vm14905_vm1, %v14903_v0 }
0x325f   :  { %13470 = vmatprep.subr.mxu0 %v14903_v0 }
0x32a3   :  { %v10936_v9 = vpop.xlane.xlu1 %10935 }
0x32a4   :  { %v10954_v2 = vmax.f32 %v10936_v9, 1e-20 }
0x32a6   :  { %14041 = vrcp.f32 %v10954_v2 }
0x32a7   :  { %v10942_v7 = vpop.xlane.xlu1 %10941  ;;  %v10939_v30 = vpop.xlane.xlu0 %10938 }
0x32a8   :  { %v10956_v59 = vmax.f32 %v10942_v7, 1e-20  ;;  %v10955_v21 = vmax.f32 %v10939_v30, 1e-20 }
0x32aa   :  { %14043 = vrcp.f32 %v10956_v59 }
0x32ab   :  { %14045 = vrcp.f32 %v10955_v21  ;;  %v10948_v20 = vpop.xlane.xlu1 %10947  ;;  %v10945_v33 = vpop.xlane.xlu0 %10944 }
0x32ac   :  { %v10958_v4 = vmax.f32 %v10948_v20, 1e-20  ;;  %v10957_v36 = vmax.f32 %v10945_v33, 1e-20 }
0x32ae   :  { %14047 = vrcp.f32 %v10958_v4 }
0x32af   :  { %14049 = vrcp.f32 %v10957_v36  ;;  %v10951_v60 = vpop.xlane.xlu0 %10950  ;;  %v11509_v61 = vpop.permute.xlu1 %11508 }
0x32b0   :  { %v14042_v45 = vpop.eup %14041  ;;  %v10959_v25 = vmax.f32 %v10951_v60, 1e-20 }
0x32b1   :  { %v10965_v3 = vmul.f32 %v14042_v45, %v16891_v52 }
0x32b2   :  { %14051 = vrcp.f32 %v10959_v25 }
0x32b3   :  { %13463 = vmatmul.mubr.msk.f32.vlgmr.msra.gmra.mrb[110].mxu0 %vm1027_vm2, %v10965_v3  ;;  %v11433_v43 = vpop.permute.xlu0 %11432 }
0x32b4   :  { %v14044_v18 = vpop.eup %14043  ;;  %13471 = vmatpush3.msra.mxu0 %v11281_v15  ;;  %13472 = vmatprep.mubr.msk.f32.mxu0 %vm14905_vm1, %v14903_v0 }
0x32b5   :  { %v14046_v24 = vpop.eup %14045  ;;  %13480 = vmatprep.subr.mxu0 %v14903_v0  ;;  %v10969_v11 = vmul.f32 %v14044_v18, %v16895_v42  ;;  %v12439_v42 = vld [vmem:[%s17102_s16 + $0x20] sm:$0xff]  ;;  %v12443_v18 = vld [vmem:[#allocation44 + $0x1] ss:$0 sm:$0xff] }
0x32b6   :  { %v10967_v5 = vmul.f32 %v14046_v24, %v16898_v29  ;;  %v12440_v29 = vld [vmem:[%s17102_s16 + $0x28] sm:$0xff] }
0x32b7   :  { %13473 = vmatmul.mubr.msk.f32.vlgmr.msra.gmra.mrb[112].mxu0 %vm1027_vm2, %v10969_v11  ;;  %v13708_v34 = vpack.c.bf16 %v12440_v29, %v12439_v42 }
0x32b8   :  { %v14048_v53 = vpop.eup %14047  ;;  %13468 = vmatmul.mubr.msk.f32.vlgmr.msra.gmra.mrb[114].mxu1 %vm1027_vm2, %v10967_v5  ;;  %13481 = vmatpush3.msra.mxu0 %v11433_v43 }
0x32b9   :  { %v14050_v38 = vpop.eup %14049  ;;  %13476 = vmatpush3.msra.mxu1 %v11357_v16  ;;  %13477 = vmatprep.mubr.msk.f32.mxu1 %vm14905_vm1, %v14903_v0  ;;  %v10973_v49 = vmul.f32 %v14048_v53, %v16904_v31  ;;  %v620_v31 = vrot.slane %v14062_v27, %v619_v17 }
0x32ba   :  { %13482 = vmatprep.mubr.msk.f32.mxu0 %vm14905_vm1, %v14903_v0  ;;  %13485 = vmatprep.subr.mxu1 %v14903_v0  ;;  %v10971_v14 = vmul.f32 %v14050_v38, %v16906_v26  ;;  %v12441_v26 = vld [vmem:[%s17102_s16 + $0x30] sm:$0xff] }
0x32bb   :  { %13483 = vmatmul.mubr.msk.f32.vlgmr.msra.gmra.mrb[114].mxu0 %vm1027_vm2, %v10973_v49  ;;  %13709 = vmatprep.subr.bf16.mxu0 %v13708_v34  ;;  %v839_v63 = vadd.f32 %v15424_v58, %v620_v31 }
0x32bc   :  { %v14052_v12 = vpop.eup %14051  ;;  %13478 = vmatmul.mubr.msk.f32.vlgmr.msra.gmra.mrb[116].mxu1 %vm1027_vm2, %v10971_v14  ;;  %13711 = vmatpush3.bf16.msra.mxu0 %v13708_v34 }
0x32bd   :  { %13486 = vmatpush3.msra.mxu1 %v11509_v61  ;;  %13487 = vmatprep.mubr.msk.f32.mxu1 %vm14905_vm1, %v14903_v0  ;;  %v10975_v56 = vmul.f32 %v14052_v12, %v16912_v41  ;;  %v12442_v0 = vld [vmem:[%s17102_s16 + $0x38] sm:$0xff]  ;;  %v11715_v8 = vrot.slane %v839_v63, %v15465_v10 }
0x32be   :  { %v13712_v23 = vpack.c.bf16 %v12442_v0, %v12441_v26  ;;  %v11806_v63 = vld [vmem:[#allocation46 + $0x20] sm:$0xff] }
0x32bf   :  { %v11723_v35 = vrot.slane %v11715_v8, %v15465_v10  ;;  %v11716_v55 = vcombine.high %v11715_v8, %v11715_v8  ;;  %v11808_v8 = vld [vmem:[#allocation46 + $0x30] sm:$0xff] }
0x32c0   :  { %13488 = vmatmul.mubr.msk.f32.vlgmr.msra.gmra.mrb[118].mxu1 %vm1027_vm2, %v10975_v56  ;;  %13713 = vmatprep.subr.bf16.mxu0 %v13712_v23 }
0x32c1   :  { %13715 = vmatpush3.bf16.msra.mxu0 %v13712_v23  ;;  %v16966_v62 = vrot.slane %v11723_v35, %v15470_v13  ;;  %v11730_v57 = vrot.slane %v11716_v55, %v15465_v10  ;;  %v11733_v24 = vadd.f32 1.0, %v11723_v35 }
0x32c3   :  { %v16973_v2 = vrot.slane %v11730_v57, %v15470_v13  ;;  %v11734_v3 = vadd.f32 1.0, %v11730_v57  ;;  %v16989_v49 = vrot.slane %v11733_v24, %v15470_v13 }
0x32c5   :  { %v16986_v43 = vrot.slane %v11734_v3, %v15470_v13 }
0x332d   :  { %v11124_v54 = vpop.f32.mrb[112].mxu1 }
0x332e   :  { %v13459_v52 = vpop.f32.mrb[113].mxu1 }
0x3330   :  { %v11048_v6 = vpop.f32.mrb[108].mxu0 }
0x3331   :  { %v13454_v22 = vpop.f32.mrb[109].mxu0 }
0x3386   :  { %v11200_v41 = vpop.f32.mrb[110].mxu0 }
0x3387   :  { %v13464_v46 = vpop.f32.mrb[111].mxu0  ;;  %11586 = vrot.lane.b32.xlu0 %v11200_v41, %s14866_s28  ;;  %v11807_v41 = vld [vmem:[#allocation46 + $0x28] sm:$0xff] }
0x3388   :  { %v13716_v46 = vpack.c.bf16 %v11807_v41, %v11806_v63 }
0x338a   :  { %v11352_v28 = vpop.f32.mrb[112].mxu0  ;;  %13717 = vmatprep.subr.bf16.mxu1 %v13716_v46 }
0x338b   :  { %v11276_v47 = vpop.f32.mrb[114].mxu1  ;;  %11594 = vrot.lane.b32.xlu0 %v11352_v28, %s14884_s7  ;;  %v13474_v15 = vpop.f32.mrb[113].mxu0  ;;  %13719 = vmatpush3.bf16.msra.mxu1 %v13716_v46  ;;  %v11809_v28 = vld [vmem:[#allocation46 + $0x38] sm:$0xff] }
0x338c   :  { %11588 = vrot.lane.b32.xlu1 %v11276_v47, %s14866_s28  ;;  %v13469_v16 = vpop.f32.mrb[115].mxu1  ;;  %v13720_v47 = vpack.c.bf16 %v11809_v28, %v11808_v8  ;;  %v11902_v15 = vld [vmem:[#allocation49 + $0x20] sm:$0xff]  ;;  %v12062_v28 = vld [vmem:[%s15102_s21 + $0x8] sm:$0xff] }
0x338d   :  { %v11903_v16 = vld [vmem:[#allocation49 + $0x28] sm:$0xff] }
0x338e   :  { %v11504_v58 = vpop.f32.mrb[114].mxu0  ;;  %13721 = vmatprep.subr.bf16.mxu1 %v13720_v47  ;;  %v13724_v35 = vpack.c.bf16 %v11903_v16, %v11902_v15  ;;  %v12061_v8 = vld [vmem:[%s15102_s21] sm:$0xff]  ;;  %v12063_v15 = vld [vmem:[%s15102_s21 + $0x10] sm:$0xff]  ;;  %v12064_v16 = vld [vmem:[%s15102_s21 + $0x18] sm:$0xff]  ;;  %s14913_s21 = smov [#allocation52]  }
0x338f   :  { %v11428_v19 = vpop.f32.mrb[116].mxu1  ;;  %11602 = vrot.lane.b32.xlu0 %v11504_v58, %s14912_s0  ;;  %v13484_v37 = vpop.f32.mrb[115].mxu0  ;;  %13723 = vmatpush3.bf16.msra.mxu1 %v13720_v47  ;;  %v13732_v47 = vpack.c.bf16 %v12062_v28, %v12061_v8  ;;  %s12160_s20 = sshll.u32 %s14913_s21, 4  ;;  %s12161_s20 = int_to_ptr.vmem [resolvable:$true] %s12160_s20 }
0x3390   :  { %11596 = vrot.lane.b32.xlu1 %v11428_v19, %s14884_s7  ;;  %v13479_v48 = vpop.f32.mrb[117].mxu1  ;;  %13725 = vmatprep.subr.bf16.mxu0 %v13724_v35  ;;  %p14772_p5 = scmp.lt.s32.totalorder %s12161_s20, %s12161_s20 }
0x3391   :  { %13733 = vmatprep.subr.bf16.mxu1 %v13732_v47 }
0x3393   :  { %v11580_v1 = vpop.f32.mrb[118].mxu1  ;;  %11759 = vrot.lane.b32.xlu0 %v16966_v62, %s14909_s11 }
0x3394   :  { %11604 = vrot.lane.b32.xlu1 %v11580_v1, %s14912_s0  ;;  %v13489_v9 = vpop.f32.mrb[119].mxu1  ;;  %v11796_v1 = vrot.slane %v16772_v51, %v15657_v39 }
0x3398   :  { %11761 = vrot.lane.b32.xlu1 %v16973_v2, %s14909_s11 }
0x33f9   :  { %v11587_v7 = vpop.permute.xlu0 %11586 }
0x33fa   :  { %v11608_v21 = vsel %vm1027_vm2, %v11048_v6, %v11587_v7 }
0x33fd   :  { %v11595_v30 = vpop.permute.xlu0 %11594 }
0x33fe   :  { %v11589_v59 = vpop.permute.xlu1 %11588  ;;  %v11610_v10 = vsel %vm2380_vm3, %v11608_v21, %v11595_v30  ;;  %v11802_v30 = vrot.slane %v16775_v44, %v15657_v39 }
0x33ff   :  { %v11609_v36 = vsel %vm1027_vm2, %v11124_v54, %v11589_v59 }
0x3401   :  { %v11603_v20 = vpop.permute.xlu0 %11602 }
0x3402   :  { %v11597_v33 = vpop.permute.xlu1 %11596  ;;  %v11612_v4 = vsel %vm2383_vm4, %v11610_v10, %v11603_v20 }
0x3403   :  { %13498 = vmatprep.mubr.msk.f32.mxu0 %vm626_vm0, %v11612_v4  ;;  %v11611_v60 = vsel %vm2380_vm3, %v11609_v36, %v11597_v33  ;;  %v11904_v36 = vld [vmem:[#allocation49 + $0x30] sm:$0xff] }
0x3405   :  { %v11760_v52 = vpop.permute.xlu0 %11759 }
0x3406   :  { %v11605_v45 = vpop.permute.xlu1 %11604 }
0x3407   :  { %v11613_v25 = vsel %vm2383_vm4, %v11611_v60, %v11605_v45  ;;  %v11905_v60 = vld [vmem:[#allocation49 + $0x38] sm:$0xff] }
0x3408   :  { %13499 = vmatmul.mubr.msk.f32.vlgmr.msra.gmra.mrb[116].mxu0 %vm626_vm0, %v11613_v25  ;;  %v13728_v45 = vpack.c.bf16 %v11905_v60, %v11904_v36  ;;  %v12446_v25 = vld [vmem:[#allocation47 + $0x1] ss:$0 sm:$0xff]  ;;  %v12452_v36 = vld [vmem:[%s15107_s5] ss:$0 sm:$0xff] }
0x3409   :  { %13727 = vmatpush3.bf16.msra.mxu0 %v13724_v35  ;;  %v13736_v35 = vpack.c.bf16 %v12064_v16, %v12063_v15 }
0x340a   :  { %v11762_v56 = vpop.permute.xlu1 %11761  ;;  %13729 = vmatprep.subr.bf16.mxu0 %v13728_v45 }
0x340d   :  { %13731 = vmatpush3.bf16.msra.mxu0 %v13728_v45 }
0x34db   :  { %v13500_v11 = vpop.f32.mrb[116].mxu0 }
0x34dc   :  { %v11705_v5 = vadd.f32 %v13500_v11, %v12443_v18  ;;  %v11699_v53 = vpop.f32.mrb[117].mxu0 }
0x34dd   :  { %v11700_v38 = vadd.f32 %v12443_v18, %v11699_v53  ;;  %v12449_v53 = vld [vmem:[#allocation50 + $0x1] ss:$0 sm:$0xff] }
0x34de   :  { %v11748_v14 = vmul.f32 %v16986_v43, %v11705_v5 }
0x34df   :  { %v11747_v12 = vmul.f32 %v16989_v49, %v11700_v38 }
0x34e0   :  { %v11750_v61 = vadd.f32 %v11748_v14, %v16785_v40 }
0x34e1   :  { %v11749_v54 = vadd.f32 %v11747_v12, %v16781_v32 }
0x34e2   :  { %v11766_v6 = vadd.f32 %v11762_v56, %v11750_v61 }
0x34e3   :  { %v11765_v22 = vadd.f32 %v11760_v52, %v11749_v54 }
0x34e4   :  { %v11770_v17 = vsel %vm626_vm0, %v11766_v6, 0.0 }
0x34e5   :  { %11771 = vadd.xlane.f32.xlu1 %v11770_v17  ;;  %v11767_v42 = vsel %vm626_vm0, %v11765_v22, 0.0 }
0x34e6   :  { %11768 = vadd.xlane.f32.xlu0 %v11767_v42 }
0x3572   :  { %v11772_v13 = vpop.xlane.xlu1 %11771 }
0x3573   :  { %v11774_v29 = vmul.f32 0.03125, %v11772_v13  ;;  %v11769_v34 = vpop.xlane.xlu0 %11768 }
0x3574   :  { %v11773_v27 = vmul.f32 0.03125, %v11769_v34 }
0x3575   :  { %v11776_v31 = vsub.f32 %v11766_v6, %v11774_v29 }
0x3576   :  { %v11775_v26 = vsub.f32 %v11765_v22, %v11773_v27 }
0x3577   :  { %v11778_v23 = vmul.f32 %v11776_v31, %v11776_v31 }
0x3578   :  { %v11777_v0 = vmul.f32 %v11775_v26, %v11775_v26 }
0x3579   :  { %v11782_v32 = vsel %vm626_vm0, %v11778_v23, 0.0 }
0x357a   :  { %v11779_v40 = vsel %vm626_vm0, %v11777_v0, 0.0 }
0x357b   :  { %11780 = vadd.xlane.f32.xlu0 %v11779_v40 }
0x357f   :  { %11783 = vadd.xlane.f32.xlu0 %v11782_v32 }
0x3608   :  { %v11781_v55 = vpop.xlane.xlu0 %11780 }
0x3609   :  { %v11785_v58 = vmul.f32 0.03125, %v11781_v55 }
0x360b   :  { %v11787_v19 = vadd.f32 1e-05, %v11785_v58 }
0x360c   :  { %v11784_v37 = vpop.xlane.xlu0 %11783 }
0x360d   :  { %14053 = vrsqrt.f32 %v11787_v19  ;;  %v11786_v48 = vmul.f32 0.03125, %v11784_v37 }
0x360f   :  { %v11788_v57 = vadd.f32 1e-05, %v11786_v48 }
0x3611   :  { %14055 = vrsqrt.f32 %v11788_v57 }
0x3617   :  { %v14054_v9 = vpop.eup %14053 }
0x3618   :  { %v11791_v7 = vmul.f32 %v14054_v9, %v11775_v26 }
0x361a   :  { %v11797_v59 = vmul.f32 %v11796_v1, %v11791_v7 }
0x361b   :  { %v14056_v21 = vpop.eup %14055 }
0x361c   :  { %v11792_v10 = vmul.f32 %v14056_v21, %v11776_v31  ;;  %v11803_v20 = vadd.f32 %v11802_v30, %v11797_v59 }
0x361e   :  { %v11798_v33 = vmul.f32 %v11796_v1, %v11792_v10  ;;  %13509 = vmatprep.mubr.msk.f32.mxu1 %vm626_vm0, %v11803_v20  ;;  %v12052_v1 = vrot.slane %v16772_v51, %v16152_v50 }
0x3620   :  { %v11804_v4 = vadd.f32 %v11802_v30, %v11798_v33  ;;  %v12058_v30 = vrot.slane %v16775_v44, %v16152_v50 }
0x3622   :  { %13510 = vmatmul.mubr.msk.f32.vlgmr.msra.gmra.mrb[120].mxu1 %vm626_vm0, %v11804_v4 }
0x3623   :  { %13735 = vmatpush3.bf16.msra.mxu1 %v13732_v47 }
0x3624   :  { %13737 = vmatprep.subr.bf16.mxu1 %v13736_v35 }
0x3627   :  { %13739 = vmatpush3.bf16.msra.mxu1 %v13736_v35 }
0x36f5   :  { %v13511_v3 = vpop.f32.mrb[120].mxu1 }
0x36f6   :  { %v11896_v18 = vadd.f32 %v13511_v3, %v12446_v25  ;;  %v11890_v24 = vpop.f32.mrb[121].mxu1 }
0x36f7   :  { %v11891_v39 = vadd.f32 %v12446_v25, %v11890_v24 }
0x36f8   :  { %v11900_v5 = vmax.f32 %v11896_v18, 0.0 }
0x36f9   :  { %v11899_v11 = vmax.f32 %v11891_v39, 0.0 }
0x36fb   :  { %13520 = vmatprep.mubr.msk.f32.mxu0 %vm626_vm0, %v11899_v11 }
0x36fc   :  { %13521 = vmatmul.mubr.msk.f32.vlgmr.msra.gmra.mrb[118].mxu0 %vm626_vm0, %v11900_v5 }
0x37cf   :  { %v13522_v38 = vpop.f32.mrb[118].mxu0 }
0x37d0   :  { %v11992_v14 = vadd.f32 %v13522_v38, %v12449_v53  ;;  %v11986_v12 = vpop.f32.mrb[119].mxu0 }
0x37d1   :  { %v11987_v61 = vadd.f32 %v12449_v53, %v11986_v12 }
0x37d2   :  { %11999 = vrot.lane.b32.xlu0 %v11992_v14, %s14911_s6 }
0x37d3   :  { %11997 = vrot.lane.b32.xlu1 %v11987_v61, %s14911_s6 }
0x37d6   :  { %12015 = vrot.lane.b32.xlu0 %v16966_v62, %s14876_s25 }
0x3844   :  { %v12000_v56 = vpop.permute.xlu0 %11999 }
0x3845   :  { %v12004_v54 = vmul.f32 %v12000_v56, %v16986_v43  ;;  %v11998_v52 = vpop.permute.xlu1 %11997 }
0x3846   :  { %v12003_v6 = vmul.f32 %v11998_v52, %v16989_v49 }
0x3847   :  { %12009 = vrot.lane.b32.xlu1 %v12004_v54, %s14911_s6 }
0x3848   :  { %v12016_v13 = vpop.permute.xlu0 %12015 }
0x384b   :  { %12007 = vrot.lane.b32.xlu1 %v12003_v6, %s14911_s6 }
0x384f   :  { %12017 = vrot.lane.b32.xlu1 %v16973_v2, %s14876_s25  ;;  %s14767_s25 = scalar_lea.vmem %s12161_s20, 256 }
0x3850   :  { %p14768_p4 = scmp.ne.s32.totalorder %s12161_s20, %s14767_s25  ;;  %p14773_p6 = scmp.lt.s32.totalorder %s14767_s25, %s14767_s25 }
0x3852   :  { %p14774_p7 = por %p14773_p6, %p14772_p5 }
0x3854   :  { %p14775_p8 = pnand %p14774_p7, %p14768_p4 }
0x38b9   :  { %v12010_v22 = vpop.permute.xlu1 %12009 }
0x38ba   :  { %v12014_v29 = vadd.f32 %v12010_v22, %v11804_v4 }
0x38bd   :  { %v12008_v17 = vpop.permute.xlu1 %12007 }
0x38be   :  { %v12013_v42 = vadd.f32 %v12008_v17, %v11803_v20 }
0x38c0   :  { %v12021_v34 = vadd.f32 %v12016_v13, %v12013_v42 }
0x38c1   :  { %v12018_v62 = vpop.permute.xlu1 %12017 }
0x38c2   :  { %v12022_v27 = vadd.f32 %v12018_v62, %v12014_v29  ;;  %v12023_v43 = vsel %vm626_vm0, %v12021_v34, 0.0 }
0x38c3   :  { %12024 = vadd.xlane.f32.xlu0 %v12023_v43 }
0x38c4   :  { %v12026_v49 = vsel %vm626_vm0, %v12022_v27, 0.0 }
0x38c5   :  { %12027 = vadd.xlane.f32.xlu1 %v12026_v49 }
0x3950   :  { %v12025_v31 = vpop.xlane.xlu0 %12024 }
0x3951   :  { %v12029_v26 = vmul.f32 0.03125, %v12025_v31 }
0x3952   :  { %v12028_v2 = vpop.xlane.xlu1 %12027 }
0x3953   :  { %v12031_v0 = vsub.f32 %v12021_v34, %v12029_v26  ;;  %v12030_v40 = vmul.f32 0.03125, %v12028_v2 }
0x3955   :  { %v12032_v23 = vsub.f32 %v12022_v27, %v12030_v40  ;;  %v12033_v32 = vmul.f32 %v12031_v0, %v12031_v0 }
0x3957   :  { %v12035_v63 = vsel %vm626_vm0, %v12033_v32, 0.0  ;;  %v12034_v41 = vmul.f32 %v12032_v23, %v12032_v23 }
0x3958   :  { %12036 = vadd.xlane.f32.xlu0 %v12035_v63 }
0x3959   :  { %v12038_v46 = vsel %vm626_vm0, %v12034_v41, 0.0 }
0x395c   :  { %12039 = vadd.xlane.f32.xlu0 %v12038_v46 }
0x39e5   :  { %v12037_v55 = vpop.xlane.xlu0 %12036 }
0x39e6   :  { %v12041_v58 = vmul.f32 0.03125, %v12037_v55 }
0x39e8   :  { %v12043_v19 = vadd.f32 1e-05, %v12041_v58 }
0x39e9   :  { %v12040_v37 = vpop.xlane.xlu0 %12039 }
0x39ea   :  { %14057 = vrsqrt.f32 %v12043_v19  ;;  %v12042_v48 = vmul.f32 0.03125, %v12040_v37 }
0x39ec   :  { %v12044_v57 = vadd.f32 1e-05, %v12042_v48 }
0x39ee   :  { %14059 = vrsqrt.f32 %v12044_v57 }
0x39f4   :  { %v14058_v9 = vpop.eup %14057 }
0x39f5   :  { %v12047_v7 = vmul.f32 %v14058_v9, %v12031_v0 }
0x39f7   :  { %v12053_v59 = vmul.f32 %v12052_v1, %v12047_v7 }
0x39f8   :  { %v14060_v21 = vpop.eup %14059 }
0x39f9   :  { %v12048_v10 = vmul.f32 %v14060_v21, %v12032_v23  ;;  %v12059_v20 = vadd.f32 %v12058_v30, %v12053_v59 }
0x39fb   :  { %v12054_v33 = vmul.f32 %v12052_v1, %v12048_v10  ;;  %13531 = vmatprep.mubr.msk.f32.mxu1 %vm626_vm0, %v12059_v20 }
0x39fd   :  { %v12060_v4 = vadd.f32 %v12058_v30, %v12054_v33 }
0x39ff   :  { %13532 = vmatmul.mubr.msk.f32.vlgmr.msra.gmra.mrb[122].mxu1 %vm626_vm0, %v12060_v4 }
0x3ad2   :  { %v13533_v60 = vpop.f32.mrb[122].mxu1 }
0x3ad3   :  { %v12150_v51 = vadd.f32 %v13533_v60, %v12452_v36  ;;  %v12144_v45 = vpop.f32.mrb[123].mxu1 }
0x3ad4   :  { %v12145_v25 = vadd.f32 %v12452_v36, %v12144_v45 }
0x3ad5   :  { %12154 = vst [vmem:[#allocation52 + $0x8] sm:$0xff] %v12150_v51 }
0x3ad6   :  { %12153 = vst [vmem:[#allocation52] sm:$0xff] %v12145_v25 }
0x3ad7   :  { %14778 = shalt.err (!%p14775_p8)
}
0x3ad8   :  { %s14779_s5 = scalar_lea.hbm %s15112_s13, 256 }
0x3ad9   :  { %p14780_p9 = scmp.ne.s32.totalorder %s15112_s13, %s14779_s5  ;;  %p14783_p10 = scmp.lt.u32.totalorder %s14779_s5, %s15112_s13 }
0x3adb   :  { %p14785_p11 = pnand %p14783_p10, %p14780_p9 }
0x3add   :  { %14788 = shalt.err (!%p14785_p11)
}
0x3ade   :  { %12166 = dma.vmem_to_hbm [thread:$0]  %s12161_s20, 256, %s15112_s13, [#allocation4], %s14865_s26, %s14865_s26, %s14866_s28  }
0x3adf   :  { %14823 = dma.done.wait [#allocation4], 256  }
0x3ae0   :  { %14824 = vsyncadd [#allocation4], 4294967040 }
0x3ae1   :  { %12170 = vsyncpa [#allocation3], 1 }
0x3ae2   :  { %12171 = vsyncpa [#allocation6], 1 }
0x3ae3   :  { %12172 = vsyncpa [#allocation9], 1 }
0x3ae4   :  { %12173 = vsyncpa [#allocation12], 1 }
0x3ae5   :  { %12174 = vsyncpa [#allocation15], 1 }
0x3ae6   :  { %12175 = vsyncpa [#allocation18], 1 }
0x3ae7   :  { %12176 = vsyncpa [#allocation21], 1 }
0x3ae8   :  { %12177 = vsyncpa [#allocation24], 1 }
0x3ae9   :  { %12178 = vsyncpa [#allocation27], 1 }
0x3aea   :  { %12179 = vsyncpa [#allocation30], 1 }
0x3aeb   :  { %12180 = vsyncpa [#allocation33], 1 }
0x3aec   :  { %12181 = vsyncpa [#allocation36], 1 }
0x3aed   :  { %12182 = vsyncpa [#allocation39], 1 }
0x3aee   :  { %12183 = vsyncpa [#allocation42], 1 }
0x3aef   :  { %12184 = vsyncpa [#allocation45], 1 }
0x3af0   :  { %12185 = vsyncpa [#allocation48], 1 }
0x3af1   :  { %12186 = vsyncpa [#allocation51], 1 }
0x3af2   :  { %12187 = vsyncpa [#allocation4], 1 }

</bundles_post_ra>
